<compile_context>
chip_gen: v7x
topology: tpu7x:2x2x1
jax: 0.10.0
libtpu: 0.0.40
codegen_flags: <defaults>
</compile_context>

<pallas_src>
import jax
import jax.numpy as jnp
from jax.experimental import pallas as pl
from jax.experimental.pallas import tpu as pltpu

KSIZE = 4
BN_EPS = 1e-5
LRELU_SLOPE = 0.2

# Fixed 64x64 architecture spatial sizes: 64 -> 32 -> 16 -> 8 -> 4 -> 1.
H1 = 32              # layer-1 output spatial
M1 = H1 * H1         # layer-1 patch rows per image
K1 = KSIZE * KSIZE   # layer-1 patch width (cin = 1)


# ---------------------------------------------------------------------------
# Wrapper-side im2col for layer 1 only (tiny, pure layout plumbing).
# ---------------------------------------------------------------------------
def _im2col_l1(x):
    """(B, 64, 64, 1) -> (B, 1024, 16) layer-1 patch matrix."""
    B = x.shape[0]
    xp = jnp.pad(x, ((0, 0), (1, 1), (1, 1), (0, 0)))
    cols = []
    for kh in range(KSIZE):
        for kw in range(KSIZE):
            cols.append(xp[:, kh:kh + 2 * H1 - 1:2, kw:kw + 2 * H1 - 1:2, :])
    p = jnp.concatenate(cols, axis=-1)              # (B, 32, 32, 16)
    return p.reshape(B, M1, K1)


# ---------------------------------------------------------------------------
# Fused 5-layer kernel (one grid step == one image).
# ---------------------------------------------------------------------------
def _make_kernel(c1, c2, c3, c4):
    def kernel(p1_ref, w1_ref, b1_ref, w2_ref, b2_ref, w3_ref, b3_ref,
               w4_ref, b4_ref, w5_ref, o_ref, a1_ref, a2_ref, a3_ref):
        # Zero the padded scratches every grid step (the zero border is the
        # conv padding; grid steps may run on different TensorCores on v7x).
        a1_ref[...] = jnp.zeros_like(a1_ref)
        a2_ref[...] = jnp.zeros_like(a2_ref)
        a3_ref[...] = jnp.zeros_like(a3_ref)

        def lrelu(v):
            return jnp.maximum(v, LRELU_SLOPE * v)

        # ---- Layer 1: (1024,16) @ (16,c1), chunked to keep live vectors
        #      small (lane width is only c1).  Interior of A1 = rows 1..32,
        #      cols 8..39 (col offset 8 keeps the sublane store aligned).
        for r in range(4):
            yr = jnp.dot(p1_ref[0, pl.ds(r * 256, 256), :], w1_ref[...],
                         preferred_element_type=jnp.float32)
            yr = lrelu(yr + b1_ref[...])
            a1_ref[1 + 8 * r:9 + 8 * r, 8:40, :] = yr.reshape(8, 32, c1)

        def conv_block(src_ref, w_ref, b_ref, n_oh, n_ow, cin, cout):
            # 4x4 stride-2 pad-1 conv: in-kernel im2col via strided VMEM
            # reads, accumulating 16 small MXU dots (one per kernel tap).
            # Scratch mapping: row = 1 + input_row, col = 8 + input_col, so
            # tap (kh,kw) for output (oh,ow) sits at (kh+2*oh, 7+kw+2*ow).
            acc = jnp.zeros((n_oh * n_ow, cout), jnp.float32)
            for k in range(KSIZE * KSIZE):
                kh, kw = divmod(k, KSIZE)
                p = src_ref[pl.ds(kh, n_oh, stride=2),
                            pl.ds(7 + kw, n_ow, stride=2), :]
                acc = acc + jnp.dot(p.reshape(n_oh * n_ow, cin), w_ref[k],
                                    preferred_element_type=jnp.float32)
            return lrelu(acc + b_ref[...])

        # ---- Layer 2: 32x32xc1 -> 16x16xc2
        y = conv_block(a1_ref, w2_ref, b2_ref, 16, 16, c1, c2)
        a2_ref[1:17, 8:24, :] = y.reshape(16, 16, c2)

        # ---- Layer 3: 16x16xc2 -> 8x8xc3
        y = conv_block(a2_ref, w3_ref, b3_ref, 8, 8, c2, c3)
        a3_ref[1:9, 8:16, :] = y.reshape(8, 8, c3)

        # ---- Layer 4: 8x8xc3 -> 4x4xc4.  Read 8 columns per output row
        #      (4 real + 4 dummy) so the (4,8,c3)->(32,c3) reshape stays
        #      sublane-aligned; dummy rows are killed by zeros in w5's slab.
        y4 = conv_block(a3_ref, w4_ref, b4_ref, 4, 8, c3, c4)   # (32, c4)

        # ---- Layer 5: 4x4 conv, stride 1, pad 0, cout=1  ==  full
        #      contraction of the (4,4,c4) map with the (zero-masked) weights.
        total = jnp.sum(y4 * w5_ref[...])
        o_ref[...] = jnp.full((1, 8, 128), total, dtype=jnp.float32)

    return kernel


# ---------------------------------------------------------------------------
# Forward pass wrapper.
# ---------------------------------------------------------------------------
def discriminator64_forward(din, params):
    """Mirrors Discriminator_64.forward: din[0].unsqueeze(1) -> conv stack."""
    x = din[0]                                   # (B, 64, 64)
    B = x.shape[0]
    h = x[..., None].astype(jnp.float32)         # NHWC (B, 64, 64, 1)
    p1 = _im2col_l1(h)                           # (B, 1024, 16) f32

    L = params["layers"]

    def fold(layer):
        # Fold inference-mode BN scale into the conv weights (f32, pre-cast).
        return (layer["w"] * layer["scale"].reshape(1, 1, 1, -1)
                ).astype(jnp.float32)

    w1 = fold(L[0]).reshape(K1, -1)                                   # (16,c1)
    w2 = fold(L[1]).reshape(K1, L[1]["w"].shape[2], L[1]["w"].shape[3])
    w3 = fold(L[2]).reshape(K1, L[2]["w"].shape[2], L[2]["w"].shape[3])
    w4 = fold(L[3]).reshape(K1, L[3]["w"].shape[2], L[3]["w"].shape[3])
    c1, c2, c3, c4 = w1.shape[1], w2.shape[2], w3.shape[2], w4.shape[2]

    b1 = L[0]["bias"].reshape(1, c1).astype(jnp.float32)
    b2 = L[1]["bias"].reshape(1, c2).astype(jnp.float32)
    b3 = L[2]["bias"].reshape(1, c3).astype(jnp.float32)
    b4 = L[3]["bias"].reshape(1, c4).astype(jnp.float32)

    # Layer-5 weight rearranged to match the kernel's (32, c4) y4 layout:
    # row oh*8+ow holds w5[oh,ow,:]; the 4 dummy rows per group are zero.
    w5r = fold(L[4])[..., 0]                                          # (4,4,c4)
    w5x = (jnp.zeros((4, 8, c4), jnp.float32)
           .at[:, :4, :].set(w5r).reshape(32, c4))

    kernel = _make_kernel(c1, c2, c3, c4)

    flops = 2 * B * (M1 * K1 * c1 + 256 * 16 * c1 * c2 + 64 * 16 * c2 * c3
                     + 32 * 16 * c3 * c4 + 32 * c4)
    bytes_accessed = 4 * (p1.size + w1.size + w2.size + w3.size + w4.size
                          + w5x.size + B * 8 * 128)

    out = pl.pallas_call(
        kernel,
        out_shape=jax.ShapeDtypeStruct((B, 8, 128), jnp.float32),
        grid_spec=pltpu.PrefetchScalarGridSpec(
            num_scalar_prefetch=0,
            grid=(B,),
            in_specs=[
                pl.BlockSpec((1, M1, K1), lambda b: (b, 0, 0)),   # L1 patches
                pl.BlockSpec((K1, c1), lambda b: (0, 0)),         # w1
                pl.BlockSpec((1, c1), lambda b: (0, 0)),          # b1
                pl.BlockSpec((K1, c1, c2), lambda b: (0, 0, 0)),  # w2
                pl.BlockSpec((1, c2), lambda b: (0, 0)),          # b2
                pl.BlockSpec((K1, c2, c3), lambda b: (0, 0, 0)),  # w3
                pl.BlockSpec((1, c3), lambda b: (0, 0)),          # b3
                pl.BlockSpec((K1, c3, c4), lambda b: (0, 0, 0)),  # w4
                pl.BlockSpec((1, c4), lambda b: (0, 0)),          # b4
                pl.BlockSpec((32, c4), lambda b: (0, 0)),         # w5 slab
            ],
            out_specs=pl.BlockSpec((1, 8, 128), lambda b: (b, 0, 0)),
            scratch_shapes=[
                pltpu.VMEM((36, 48, c1), jnp.float32),   # padded 32x32xc1
                pltpu.VMEM((20, 32, c2), jnp.float32),   # padded 16x16xc2
                pltpu.VMEM((12, 32, c3), jnp.float32),   # padded  8x8xc3
            ],
        ),
        compiler_params=pltpu.CompilerParams(
            dimension_semantics=("parallel",)),
        cost_estimate=pl.CostEstimate(
            flops=int(flops), transcendentals=0,
            bytes_accessed=int(bytes_accessed)),
    )(p1, w1, b1, w2, b2, w3, b3, w4, b4, w5x)

    return out[:, 0, 0]                          # (B,) == .view(-1,1).squeeze(1)


# ---------------------------------------------------------------------------
# Deterministic synthetic parameters: HWIO conv weights + folded
# inference-mode BatchNorm scale/bias.
# ---------------------------------------------------------------------------
def init_params(key, d_hidden):
    layer_defs = [
        # cin,          cout,          stride, pad, bn,    act
        (1,             d_hidden,      2,      1,   False, True),
        (d_hidden,      2 * d_hidden,  2,      1,   True,  True),
        (2 * d_hidden,  4 * d_hidden,  2,      1,   True,  True),
        (4 * d_hidden,  8 * d_hidden,  2,      1,   True,  True),
        (8 * d_hidden,  1,             1,      0,   False, False),
    ]
    layers = []
    keys = jax.random.split(key, len(layer_defs))
    for (cin, cout, stride, pad, bn, act), k in zip(layer_defs, keys):
        kw_, kg, kb, km, kv = jax.random.split(k, 5)
        fan_in = cin * KSIZE * KSIZE
        w = jax.random.normal(kw_, (KSIZE, KSIZE, cin, cout),
                              jnp.float32) / jnp.sqrt(fan_in)
        if bn:
            gamma = 1.0 + 0.1 * jax.random.normal(kg, (cout,), jnp.float32)
            beta = 0.1 * jax.random.normal(kb, (cout,), jnp.float32)
            mean = 0.1 * jax.random.normal(km, (cout,), jnp.float32)
            var = jax.random.uniform(kv, (cout,), jnp.float32, 0.5, 1.5)
            scale = gamma / jnp.sqrt(var + BN_EPS)
            bias = beta - mean * scale
        else:
            scale = jnp.ones((cout,), jnp.float32)
            bias = jnp.zeros((cout,), jnp.float32)
        layers.append(dict(w=w, scale=scale, bias=bias,
                           stride=stride, pad=pad, act=act))
    return {"layers": layers}


# ---------------------------------------------------------------------------
# Pure-JAX reference (mirrors the PyTorch forward) for validation.
# ---------------------------------------------------------------------------
def ref_forward(din, params):
    x = din[0]
    h = x[..., None].astype(jnp.float32)
    for layer in params["layers"]:
        h = jax.lax.conv_general_dilated(
            h, layer["w"],
            window_strides=(layer["stride"], layer["stride"]),
            padding=((layer["pad"], layer["pad"]),
                     (layer["pad"], layer["pad"])),
            dimension_numbers=("NHWC", "HWIO", "NHWC"),
            precision=jax.lax.Precision.HIGHEST)
        h = h * layer["scale"] + layer["bias"]
        if layer["act"]:
            h = jnp.where(h >= 0.0, h, LRELU_SLOPE * h)
    return h.reshape(-1)


if __name__ == "__main__":
    key = jax.random.PRNGKey(0)
    kp, kx, kl = jax.random.split(key, 3)

    D_HIDDEN = 16
    B = 2
    params = init_params(kp, D_HIDDEN)

    x = jax.random.normal(kx, (B, 64, 64), jnp.float32)
    labels = jax.random.randint(kl, (B,), 0, 10, dtype=jnp.int32)  # unused
    din = (x, labels)

    out = discriminator64_forward(din, params)
    out = jax.block_until_ready(out)

    ref = ref_forward(din, params)
    assert out.shape == (B,), out.shape
    assert jnp.allclose(out, ref, atol=2e-2, rtol=2e-2), (out, ref)
    print("KERNEL_OK")
</pallas_src>

<mosaic_0001>
module attributes {stable_mosaic.version = 11 : i64} {
  func.func @kernel(%arg0: i32, %arg1: memref<1x1024x16xf32, #tpu.memory_space<vmem>>, %arg2: memref<16x16xf32, #tpu.memory_space<vmem>>, %arg3: memref<1x16xf32, #tpu.memory_space<vmem>>, %arg4: memref<16x16x32xf32, #tpu.memory_space<vmem>>, %arg5: memref<1x32xf32, #tpu.memory_space<vmem>>, %arg6: memref<16x32x64xf32, #tpu.memory_space<vmem>>, %arg7: memref<1x64xf32, #tpu.memory_space<vmem>>, %arg8: memref<16x64x128xf32, #tpu.memory_space<vmem>>, %arg9: memref<1x128xf32, #tpu.memory_space<vmem>>, %arg10: memref<32x128xf32, #tpu.memory_space<vmem>>, %arg11: memref<1x8x128xf32, #tpu.memory_space<vmem>>, %arg12: memref<36x48x16xf32, #tpu.memory_space<vmem>>, %arg13: memref<20x32x32xf32, #tpu.memory_space<vmem>>, %arg14: memref<12x32x64xf32, #tpu.memory_space<vmem>>) attributes {dimension_semantics = [#tpu.dimension_semantics<parallel>], iteration_bounds = array<i64: 2>, scalar_prefetch = 0 : i64, scratch_operands = 3 : i64, tpu.core_type = #tpu.core_type<tc>, window_params = [{transform_indices = @transform_0, window_bounds = array<i64: 1, 1024, 16>}, {pipeline_mode = #tpu.pipeline_mode<synchronous>, transform_indices = @transform_1, window_bounds = array<i64: 16, 16>}, {pipeline_mode = #tpu.pipeline_mode<synchronous>, transform_indices = @transform_2, window_bounds = array<i64: 1, 16>}, {pipeline_mode = #tpu.pipeline_mode<synchronous>, transform_indices = @transform_3, window_bounds = array<i64: 16, 16, 32>}, {pipeline_mode = #tpu.pipeline_mode<synchronous>, transform_indices = @transform_4, window_bounds = array<i64: 1, 32>}, {pipeline_mode = #tpu.pipeline_mode<synchronous>, transform_indices = @transform_5, window_bounds = array<i64: 16, 32, 64>}, {pipeline_mode = #tpu.pipeline_mode<synchronous>, transform_indices = @transform_6, window_bounds = array<i64: 1, 64>}, {pipeline_mode = #tpu.pipeline_mode<synchronous>, transform_indices = @transform_7, window_bounds = array<i64: 16, 64, 128>}, {pipeline_mode = #tpu.pipeline_mode<synchronous>, transform_indices = @transform_8, window_bounds = array<i64: 1, 128>}, {pipeline_mode = #tpu.pipeline_mode<synchronous>, transform_indices = @transform_9, window_bounds = array<i64: 32, 128>}, {transform_indices = @transform_10, window_bounds = array<i64: 1, 8, 128>}]} {
    %cst = arith.constant 0.000000e+00 : f32
    %0 = vector.broadcast %cst : f32 to vector<36x48x16xf32>
    %c0 = arith.constant 0 : index
    %c0_0 = arith.constant 0 : index
    %c0_1 = arith.constant 0 : index
    %1 = vector.load %arg12[%c0, %c0_0, %c0_1] : memref<36x48x16xf32, #tpu.memory_space<vmem>>, vector<36x48x16xf32>
    tpu.vector_store %arg12[%c0, %c0_0, %c0_1], %0 {strides = array<i32>} : memref<36x48x16xf32, #tpu.memory_space<vmem>>, vector<36x48x16xf32>,
    %cst_2 = arith.constant 0.000000e+00 : f32
    %2 = vector.broadcast %cst_2 : f32 to vector<20x32x32xf32>
    %c0_3 = arith.constant 0 : index
    %c0_4 = arith.constant 0 : index
    %c0_5 = arith.constant 0 : index
    %3 = vector.load %arg13[%c0_3, %c0_4, %c0_5] : memref<20x32x32xf32, #tpu.memory_space<vmem>>, vector<20x32x32xf32>
    tpu.vector_store %arg13[%c0_3, %c0_4, %c0_5], %2 {strides = array<i32>} : memref<20x32x32xf32, #tpu.memory_space<vmem>>, vector<20x32x32xf32>,
    %cst_6 = arith.constant 0.000000e+00 : f32
    %4 = vector.broadcast %cst_6 : f32 to vector<12x32x64xf32>
    %c0_7 = arith.constant 0 : index
    %c0_8 = arith.constant 0 : index
    %c0_9 = arith.constant 0 : index
    %5 = vector.load %arg14[%c0_7, %c0_8, %c0_9] : memref<12x32x64xf32, #tpu.memory_space<vmem>>, vector<12x32x64xf32>
    tpu.vector_store %arg14[%c0_7, %c0_8, %c0_9], %4 {strides = array<i32>} : memref<12x32x64xf32, #tpu.memory_space<vmem>>, vector<12x32x64xf32>,
    %c0_10 = arith.constant 0 : index
    %c0_11 = arith.constant 0 : index
    %c0_12 = arith.constant 0 : index
    %6 = vector.load %arg1[%c0_10, %c0_11, %c0_12] : memref<1x1024x16xf32, #tpu.memory_space<vmem>>, vector<1x256x16xf32>
    %7 = vector.shape_cast %6 : vector<1x256x16xf32> to vector<256x16xf32>
    %c0_13 = arith.constant 0 : index
    %c0_14 = arith.constant 0 : index
    %8 = vector.load %arg2[%c0_13, %c0_14] : memref<16x16xf32, #tpu.memory_space<vmem>>, vector<16x16xf32>
    %cst_15 = arith.constant dense<0.000000e+00> : vector<256x16xf32>
    %9 = tpu.matmul %7, %8, %cst_15 {dimension_numbers = #tpu.dot_dimension_numbers<[1], [0], [0], [1], [0, 0, 1, 1], [], []>} : vector<256x16xf32>, vector<16x16xf32>, vector<256x16xf32> -> vector<256x16xf32>
    %c0_16 = arith.constant 0 : index
    %c0_17 = arith.constant 0 : index
    %10 = vector.load %arg3[%c0_16, %c0_17] : memref<1x16xf32, #tpu.memory_space<vmem>>, vector<1x16xf32>
    %11 = vector.broadcast %10 : vector<1x16xf32> to vector<256x16xf32>
    %12 = arith.addf %9, %11 : vector<256x16xf32>
    %cst_18 = arith.constant 2.000000e-01 : f32
    %13 = vector.broadcast %cst_18 : f32 to vector<256x16xf32>
    %14 = arith.mulf %13, %12 : vector<256x16xf32>
    %15 = arith.maximumf %12, %14 : vector<256x16xf32>
    %16 = vector.shape_cast %15 : vector<256x16xf32> to vector<8x32x16xf32>
    %c1 = arith.constant 1 : index
    %c8 = arith.constant 8 : index
    %c0_19 = arith.constant 0 : index
    %17 = vector.load %arg12[%c1, %c8, %c0_19] : memref<36x48x16xf32, #tpu.memory_space<vmem>>, vector<8x32x16xf32>
    tpu.vector_store %arg12[%c1, %c8, %c0_19], %16 {strides = array<i32>} : memref<36x48x16xf32, #tpu.memory_space<vmem>>, vector<8x32x16xf32>,
    %c0_20 = arith.constant 0 : index
    %c256 = arith.constant 256 : index
    %c0_21 = arith.constant 0 : index
    %18 = vector.load %arg1[%c0_20, %c256, %c0_21] : memref<1x1024x16xf32, #tpu.memory_space<vmem>>, vector<1x256x16xf32>
    %19 = vector.shape_cast %18 : vector<1x256x16xf32> to vector<256x16xf32>
    %c0_22 = arith.constant 0 : index
    %c0_23 = arith.constant 0 : index
    %20 = vector.load %arg2[%c0_22, %c0_23] : memref<16x16xf32, #tpu.memory_space<vmem>>, vector<16x16xf32>
    %cst_24 = arith.constant dense<0.000000e+00> : vector<256x16xf32>
    %21 = tpu.matmul %19, %20, %cst_24 {dimension_numbers = #tpu.dot_dimension_numbers<[1], [0], [0], [1], [0, 0, 1, 1], [], []>} : vector<256x16xf32>, vector<16x16xf32>, vector<256x16xf32> -> vector<256x16xf32>
    %c0_25 = arith.constant 0 : index
    %c0_26 = arith.constant 0 : index
    %22 = vector.load %arg3[%c0_25, %c0_26] : memref<1x16xf32, #tpu.memory_space<vmem>>, vector<1x16xf32>
    %23 = vector.broadcast %22 : vector<1x16xf32> to vector<256x16xf32>
    %24 = arith.addf %21, %23 : vector<256x16xf32>
    %cst_27 = arith.constant 2.000000e-01 : f32
    %25 = vector.broadcast %cst_27 : f32 to vector<256x16xf32>
    %26 = arith.mulf %25, %24 : vector<256x16xf32>
    %27 = arith.maximumf %24, %26 : vector<256x16xf32>
    %28 = vector.shape_cast %27 : vector<256x16xf32> to vector<8x32x16xf32>
    %c9 = arith.constant 9 : index
    %c8_28 = arith.constant 8 : index
    %c0_29 = arith.constant 0 : index
    %29 = vector.load %arg12[%c9, %c8_28, %c0_29] : memref<36x48x16xf32, #tpu.memory_space<vmem>>, vector<8x32x16xf32>
    tpu.vector_store %arg12[%c9, %c8_28, %c0_29], %28 {strides = array<i32>} : memref<36x48x16xf32, #tpu.memory_space<vmem>>, vector<8x32x16xf32>,
    %c0_30 = arith.constant 0 : index
    %c512 = arith.constant 512 : index
    %c0_31 = arith.constant 0 : index
    %30 = vector.load %arg1[%c0_30, %c512, %c0_31] : memref<1x1024x16xf32, #tpu.memory_space<vmem>>, vector<1x256x16xf32>
    %31 = vector.shape_cast %30 : vector<1x256x16xf32> to vector<256x16xf32>
    %c0_32 = arith.constant 0 : index
    %c0_33 = arith.constant 0 : index
    %32 = vector.load %arg2[%c0_32, %c0_33] : memref<16x16xf32, #tpu.memory_space<vmem>>, vector<16x16xf32>
    %cst_34 = arith.constant dense<0.000000e+00> : vector<256x16xf32>
    %33 = tpu.matmul %31, %32, %cst_34 {dimension_numbers = #tpu.dot_dimension_numbers<[1], [0], [0], [1], [0, 0, 1, 1], [], []>} : vector<256x16xf32>, vector<16x16xf32>, vector<256x16xf32> -> vector<256x16xf32>
    %c0_35 = arith.constant 0 : index
    %c0_36 = arith.constant 0 : index
    %34 = vector.load %arg3[%c0_35, %c0_36] : memref<1x16xf32, #tpu.memory_space<vmem>>, vector<1x16xf32>
    %35 = vector.broadcast %34 : vector<1x16xf32> to vector<256x16xf32>
    %36 = arith.addf %33, %35 : vector<256x16xf32>
    %cst_37 = arith.constant 2.000000e-01 : f32
    %37 = vector.broadcast %cst_37 : f32 to vector<256x16xf32>
    %38 = arith.mulf %37, %36 : vector<256x16xf32>
    %39 = arith.maximumf %36, %38 : vector<256x16xf32>
    %40 = vector.shape_cast %39 : vector<256x16xf32> to vector<8x32x16xf32>
    %c17 = arith.constant 17 : index
    %c8_38 = arith.constant 8 : index
    %c0_39 = arith.constant 0 : index
    %41 = vector.load %arg12[%c17, %c8_38, %c0_39] : memref<36x48x16xf32, #tpu.memory_space<vmem>>, vector<8x32x16xf32>
    tpu.vector_store %arg12[%c17, %c8_38, %c0_39], %40 {strides = array<i32>} : memref<36x48x16xf32, #tpu.memory_space<vmem>>, vector<8x32x16xf32>,
    %c0_40 = arith.constant 0 : index
    %c768 = arith.constant 768 : index
    %c0_41 = arith.constant 0 : index
    %42 = vector.load %arg1[%c0_40, %c768, %c0_41] : memref<1x1024x16xf32, #tpu.memory_space<vmem>>, vector<1x256x16xf32>
    %43 = vector.shape_cast %42 : vector<1x256x16xf32> to vector<256x16xf32>
    %c0_42 = arith.constant 0 : index
    %c0_43 = arith.constant 0 : index
    %44 = vector.load %arg2[%c0_42, %c0_43] : memref<16x16xf32, #tpu.memory_space<vmem>>, vector<16x16xf32>
    %cst_44 = arith.constant dense<0.000000e+00> : vector<256x16xf32>
    %45 = tpu.matmul %43, %44, %cst_44 {dimension_numbers = #tpu.dot_dimension_numbers<[1], [0], [0], [1], [0, 0, 1, 1], [], []>} : vector<256x16xf32>, vector<16x16xf32>, vector<256x16xf32> -> vector<256x16xf32>
    %c0_45 = arith.constant 0 : index
    %c0_46 = arith.constant 0 : index
    %46 = vector.load %arg3[%c0_45, %c0_46] : memref<1x16xf32, #tpu.memory_space<vmem>>, vector<1x16xf32>
    %47 = vector.broadcast %46 : vector<1x16xf32> to vector<256x16xf32>
    %48 = arith.addf %45, %47 : vector<256x16xf32>
    %cst_47 = arith.constant 2.000000e-01 : f32
    %49 = vector.broadcast %cst_47 : f32 to vector<256x16xf32>
    %50 = arith.mulf %49, %48 : vector<256x16xf32>
    %51 = arith.maximumf %48, %50 : vector<256x16xf32>
    %52 = vector.shape_cast %51 : vector<256x16xf32> to vector<8x32x16xf32>
    %c25 = arith.constant 25 : index
    %c8_48 = arith.constant 8 : index
    %c0_49 = arith.constant 0 : index
    %53 = vector.load %arg12[%c25, %c8_48, %c0_49] : memref<36x48x16xf32, #tpu.memory_space<vmem>>, vector<8x32x16xf32>
    tpu.vector_store %arg12[%c25, %c8_48, %c0_49], %52 {strides = array<i32>} : memref<36x48x16xf32, #tpu.memory_space<vmem>>, vector<8x32x16xf32>,
    %cst_50 = arith.constant 0.000000e+00 : f32
    %54 = vector.broadcast %cst_50 : f32 to vector<256x32xf32>
    %c0_51 = arith.constant 0 : index
    %c7 = arith.constant 7 : index
    %c0_52 = arith.constant 0 : index
    %55 = tpu.strided_load %arg12[%c0_51, %c7, %c0_52] {strides = array<i32: 2, 2, 1>} : memref<36x48x16xf32, #tpu.memory_space<vmem>>, vector<16x16x16xf32>
    %56 = vector.shape_cast %55 : vector<16x16x16xf32> to vector<256x16xf32>
    %c0_53 = arith.constant 0 : index
    %c0_54 = arith.constant 0 : index
    %c0_55 = arith.constant 0 : index
    %57 = vector.load %arg4[%c0_53, %c0_54, %c0_55] : memref<16x16x32xf32, #tpu.memory_space<vmem>>, vector<1x16x32xf32>
    %58 = vector.shape_cast %57 : vector<1x16x32xf32> to vector<16x32xf32>
    %cst_56 = arith.constant dense<0.000000e+00> : vector<256x32xf32>
    %59 = tpu.matmul %56, %58, %cst_56 {dimension_numbers = #tpu.dot_dimension_numbers<[1], [0], [0], [1], [0, 0, 1, 1], [], []>} : vector<256x16xf32>, vector<16x32xf32>, vector<256x32xf32> -> vector<256x32xf32>
    %60 = arith.addf %54, %59 : vector<256x32xf32>
    %c0_57 = arith.constant 0 : index
    %c8_58 = arith.constant 8 : index
    %c0_59 = arith.constant 0 : index
    %61 = tpu.strided_load %arg12[%c0_57, %c8_58, %c0_59] {strides = array<i32: 2, 2, 1>} : memref<36x48x16xf32, #tpu.memory_space<vmem>>, vector<16x16x16xf32>
    %62 = vector.shape_cast %61 : vector<16x16x16xf32> to vector<256x16xf32>
    %c1_60 = arith.constant 1 : index
    %c0_61 = arith.constant 0 : index
    %c0_62 = arith.constant 0 : index
    %63 = vector.load %arg4[%c1_60, %c0_61, %c0_62] : memref<16x16x32xf32, #tpu.memory_space<vmem>>, vector<1x16x32xf32>
    %64 = vector.shape_cast %63 : vector<1x16x32xf32> to vector<16x32xf32>
    %cst_63 = arith.constant dense<0.000000e+00> : vector<256x32xf32>
    %65 = tpu.matmul %62, %64, %cst_63 {dimension_numbers = #tpu.dot_dimension_numbers<[1], [0], [0], [1], [0, 0, 1, 1], [], []>} : vector<256x16xf32>, vector<16x32xf32>, vector<256x32xf32> -> vector<256x32xf32>
    %66 = arith.addf %60, %65 : vector<256x32xf32>
    %c0_64 = arith.constant 0 : index
    %c9_65 = arith.constant 9 : index
    %c0_66 = arith.constant 0 : index
    %67 = tpu.strided_load %arg12[%c0_64, %c9_65, %c0_66] {strides = array<i32: 2, 2, 1>} : memref<36x48x16xf32, #tpu.memory_space<vmem>>, vector<16x16x16xf32>
    %68 = vector.shape_cast %67 : vector<16x16x16xf32> to vector<256x16xf32>
    %c2 = arith.constant 2 : index
    %c0_67 = arith.constant 0 : index
    %c0_68 = arith.constant 0 : index
    %69 = vector.load %arg4[%c2, %c0_67, %c0_68] : memref<16x16x32xf32, #tpu.memory_space<vmem>>, vector<1x16x32xf32>
    %70 = vector.shape_cast %69 : vector<1x16x32xf32> to vector<16x32xf32>
    %cst_69 = arith.constant dense<0.000000e+00> : vector<256x32xf32>
    %71 = tpu.matmul %68, %70, %cst_69 {dimension_numbers = #tpu.dot_dimension_numbers<[1], [0], [0], [1], [0, 0, 1, 1], [], []>} : vector<256x16xf32>, vector<16x32xf32>, vector<256x32xf32> -> vector<256x32xf32>
    %72 = arith.addf %66, %71 : vector<256x32xf32>
    %c0_70 = arith.constant 0 : index
    %c10 = arith.constant 10 : index
    %c0_71 = arith.constant 0 : index
    %73 = tpu.strided_load %arg12[%c0_70, %c10, %c0_71] {strides = array<i32: 2, 2, 1>} : memref<36x48x16xf32, #tpu.memory_space<vmem>>, vector<16x16x16xf32>
    %74 = vector.shape_cast %73 : vector<16x16x16xf32> to vector<256x16xf32>
    %c3 = arith.constant 3 : index
    %c0_72 = arith.constant 0 : index
    %c0_73 = arith.constant 0 : index
    %75 = vector.load %arg4[%c3, %c0_72, %c0_73] : memref<16x16x32xf32, #tpu.memory_space<vmem>>, vector<1x16x32xf32>
    %76 = vector.shape_cast %75 : vector<1x16x32xf32> to vector<16x32xf32>
    %cst_74 = arith.constant dense<0.000000e+00> : vector<256x32xf32>
    %77 = tpu.matmul %74, %76, %cst_74 {dimension_numbers = #tpu.dot_dimension_numbers<[1], [0], [0], [1], [0, 0, 1, 1], [], []>} : vector<256x16xf32>, vector<16x32xf32>, vector<256x32xf32> -> vector<256x32xf32>
    %78 = arith.addf %72, %77 : vector<256x32xf32>
    %c1_75 = arith.constant 1 : index
    %c7_76 = arith.constant 7 : index
    %c0_77 = arith.constant 0 : index
    %79 = tpu.strided_load %arg12[%c1_75, %c7_76, %c0_77] {strides = array<i32: 2, 2, 1>} : memref<36x48x16xf32, #tpu.memory_space<vmem>>, vector<16x16x16xf32>
    %80 = vector.shape_cast %79 : vector<16x16x16xf32> to vector<256x16xf32>
    %c4 = arith.constant 4 : index
    %c0_78 = arith.constant 0 : index
    %c0_79 = arith.constant 0 : index
    %81 = vector.load %arg4[%c4, %c0_78, %c0_79] : memref<16x16x32xf32, #tpu.memory_space<vmem>>, vector<1x16x32xf32>
    %82 = vector.shape_cast %81 : vector<1x16x32xf32> to vector<16x32xf32>
    %cst_80 = arith.constant dense<0.000000e+00> : vector<256x32xf32>
    %83 = tpu.matmul %80, %82, %cst_80 {dimension_numbers = #tpu.dot_dimension_numbers<[1], [0], [0], [1], [0, 0, 1, 1], [], []>} : vector<256x16xf32>, vector<16x32xf32>, vector<256x32xf32> -> vector<256x32xf32>
    %84 = arith.addf %78, %83 : vector<256x32xf32>
    %c1_81 = arith.constant 1 : index
    %c8_82 = arith.constant 8 : index
    %c0_83 = arith.constant 0 : index
    %85 = tpu.strided_load %arg12[%c1_81, %c8_82, %c0_83] {strides = array<i32: 2, 2, 1>} : memref<36x48x16xf32, #tpu.memory_space<vmem>>, vector<16x16x16xf32>
    %86 = vector.shape_cast %85 : vector<16x16x16xf32> to vector<256x16xf32>
    %c5 = arith.constant 5 : index
    %c0_84 = arith.constant 0 : index
    %c0_85 = arith.constant 0 : index
    %87 = vector.load %arg4[%c5, %c0_84, %c0_85] : memref<16x16x32xf32, #tpu.memory_space<vmem>>, vector<1x16x32xf32>
    %88 = vector.shape_cast %87 : vector<1x16x32xf32> to vector<16x32xf32>
    %cst_86 = arith.constant dense<0.000000e+00> : vector<256x32xf32>
    %89 = tpu.matmul %86, %88, %cst_86 {dimension_numbers = #tpu.dot_dimension_numbers<[1], [0], [0], [1], [0, 0, 1, 1], [], []>} : vector<256x16xf32>, vector<16x32xf32>, vector<256x32xf32> -> vector<256x32xf32>
    %90 = arith.addf %84, %89 : vector<256x32xf32>
    %c1_87 = arith.constant 1 : index
    %c9_88 = arith.constant 9 : index
    %c0_89 = arith.constant 0 : index
    %91 = tpu.strided_load %arg12[%c1_87, %c9_88, %c0_89] {strides = array<i32: 2, 2, 1>} : memref<36x48x16xf32, #tpu.memory_space<vmem>>, vector<16x16x16xf32>
    %92 = vector.shape_cast %91 : vector<16x16x16xf32> to vector<256x16xf32>
    %c6 = arith.constant 6 : index
    %c0_90 = arith.constant 0 : index
    %c0_91 = arith.constant 0 : index
    %93 = vector.load %arg4[%c6, %c0_90, %c0_91] : memref<16x16x32xf32, #tpu.memory_space<vmem>>, vector<1x16x32xf32>
    %94 = vector.shape_cast %93 : vector<1x16x32xf32> to vector<16x32xf32>
    %cst_92 = arith.constant dense<0.000000e+00> : vector<256x32xf32>
    %95 = tpu.matmul %92, %94, %cst_92 {dimension_numbers = #tpu.dot_dimension_numbers<[1], [0], [0], [1], [0, 0, 1, 1], [], []>} : vector<256x16xf32>, vector<16x32xf32>, vector<256x32xf32> -> vector<256x32xf32>
    %96 = arith.addf %90, %95 : vector<256x32xf32>
    %c1_93 = arith.constant 1 : index
    %c10_94 = arith.constant 10 : index
    %c0_95 = arith.constant 0 : index
    %97 = tpu.strided_load %arg12[%c1_93, %c10_94, %c0_95] {strides = array<i32: 2, 2, 1>} : memref<36x48x16xf32, #tpu.memory_space<vmem>>, vector<16x16x16xf32>
    %98 = vector.shape_cast %97 : vector<16x16x16xf32> to vector<256x16xf32>
    %c7_96 = arith.constant 7 : index
    %c0_97 = arith.constant 0 : index
    %c0_98 = arith.constant 0 : index
    %99 = vector.load %arg4[%c7_96, %c0_97, %c0_98] : memref<16x16x32xf32, #tpu.memory_space<vmem>>, vector<1x16x32xf32>
    %100 = vector.shape_cast %99 : vector<1x16x32xf32> to vector<16x32xf32>
    %cst_99 = arith.constant dense<0.000000e+00> : vector<256x32xf32>
    %101 = tpu.matmul %98, %100, %cst_99 {dimension_numbers = #tpu.dot_dimension_numbers<[1], [0], [0], [1], [0, 0, 1, 1], [], []>} : vector<256x16xf32>, vector<16x32xf32>, vector<256x32xf32> -> vector<256x32xf32>
    %102 = arith.addf %96, %101 : vector<256x32xf32>
    %c2_100 = arith.constant 2 : index
    %c7_101 = arith.constant 7 : index
    %c0_102 = arith.constant 0 : index
    %103 = tpu.strided_load %arg12[%c2_100, %c7_101, %c0_102] {strides = array<i32: 2, 2, 1>} : memref<36x48x16xf32, #tpu.memory_space<vmem>>, vector<16x16x16xf32>
    %104 = vector.shape_cast %103 : vector<16x16x16xf32> to vector<256x16xf32>
    %c8_103 = arith.constant 8 : index
    %c0_104 = arith.constant 0 : index
    %c0_105 = arith.constant 0 : index
    %105 = vector.load %arg4[%c8_103, %c0_104, %c0_105] : memref<16x16x32xf32, #tpu.memory_space<vmem>>, vector<1x16x32xf32>
    %106 = vector.shape_cast %105 : vector<1x16x32xf32> to vector<16x32xf32>
    %cst_106 = arith.constant dense<0.000000e+00> : vector<256x32xf32>
    %107 = tpu.matmul %104, %106, %cst_106 {dimension_numbers = #tpu.dot_dimension_numbers<[1], [0], [0], [1], [0, 0, 1, 1], [], []>} : vector<256x16xf32>, vector<16x32xf32>, vector<256x32xf32> -> vector<256x32xf32>
    %108 = arith.addf %102, %107 : vector<256x32xf32>
    %c2_107 = arith.constant 2 : index
    %c8_108 = arith.constant 8 : index
    %c0_109 = arith.constant 0 : index
    %109 = tpu.strided_load %arg12[%c2_107, %c8_108, %c0_109] {strides = array<i32: 2, 2, 1>} : memref<36x48x16xf32, #tpu.memory_space<vmem>>, vector<16x16x16xf32>
    %110 = vector.shape_cast %109 : vector<16x16x16xf32> to vector<256x16xf32>
    %c9_110 = arith.constant 9 : index
    %c0_111 = arith.constant 0 : index
    %c0_112 = arith.constant 0 : index
    %111 = vector.load %arg4[%c9_110, %c0_111, %c0_112] : memref<16x16x32xf32, #tpu.memory_space<vmem>>, vector<1x16x32xf32>
    %112 = vector.shape_cast %111 : vector<1x16x32xf32> to vector<16x32xf32>
    %cst_113 = arith.constant dense<0.000000e+00> : vector<256x32xf32>
    %113 = tpu.matmul %110, %112, %cst_113 {dimension_numbers = #tpu.dot_dimension_numbers<[1], [0], [0], [1], [0, 0, 1, 1], [], []>} : vector<256x16xf32>, vector<16x32xf32>, vector<256x32xf32> -> vector<256x32xf32>
    %114 = arith.addf %108, %113 : vector<256x32xf32>
    %c2_114 = arith.constant 2 : index
    %c9_115 = arith.constant 9 : index
    %c0_116 = arith.constant 0 : index
    %115 = tpu.strided_load %arg12[%c2_114, %c9_115, %c0_116] {strides = array<i32: 2, 2, 1>} : memref<36x48x16xf32, #tpu.memory_space<vmem>>, vector<16x16x16xf32>
    %116 = vector.shape_cast %115 : vector<16x16x16xf32> to vector<256x16xf32>
    %c10_117 = arith.constant 10 : index
    %c0_118 = arith.constant 0 : index
    %c0_119 = arith.constant 0 : index
    %117 = vector.load %arg4[%c10_117, %c0_118, %c0_119] : memref<16x16x32xf32, #tpu.memory_space<vmem>>, vector<1x16x32xf32>
    %118 = vector.shape_cast %117 : vector<1x16x32xf32> to vector<16x32xf32>
    %cst_120 = arith.constant dense<0.000000e+00> : vector<256x32xf32>
    %119 = tpu.matmul %116, %118, %cst_120 {dimension_numbers = #tpu.dot_dimension_numbers<[1], [0], [0], [1], [0, 0, 1, 1], [], []>} : vector<256x16xf32>, vector<16x32xf32>, vector<256x32xf32> -> vector<256x32xf32>
    %120 = arith.addf %114, %119 : vector<256x32xf32>
    %c2_121 = arith.constant 2 : index
    %c10_122 = arith.constant 10 : index
    %c0_123 = arith.constant 0 : index
    %121 = tpu.strided_load %arg12[%c2_121, %c10_122, %c0_123] {strides = array<i32: 2, 2, 1>} : memref<36x48x16xf32, #tpu.memory_space<vmem>>, vector<16x16x16xf32>
    %122 = vector.shape_cast %121 : vector<16x16x16xf32> to vector<256x16xf32>
    %c11 = arith.constant 11 : index
    %c0_124 = arith.constant 0 : index
    %c0_125 = arith.constant 0 : index
    %123 = vector.load %arg4[%c11, %c0_124, %c0_125] : memref<16x16x32xf32, #tpu.memory_space<vmem>>, vector<1x16x32xf32>
    %124 = vector.shape_cast %123 : vector<1x16x32xf32> to vector<16x32xf32>
    %cst_126 = arith.constant dense<0.000000e+00> : vector<256x32xf32>
    %125 = tpu.matmul %122, %124, %cst_126 {dimension_numbers = #tpu.dot_dimension_numbers<[1], [0], [0], [1], [0, 0, 1, 1], [], []>} : vector<256x16xf32>, vector<16x32xf32>, vector<256x32xf32> -> vector<256x32xf32>
    %126 = arith.addf %120, %125 : vector<256x32xf32>
    %c3_127 = arith.constant 3 : index
    %c7_128 = arith.constant 7 : index
    %c0_129 = arith.constant 0 : index
    %127 = tpu.strided_load %arg12[%c3_127, %c7_128, %c0_129] {strides = array<i32: 2, 2, 1>} : memref<36x48x16xf32, #tpu.memory_space<vmem>>, vector<16x16x16xf32>
    %128 = vector.shape_cast %127 : vector<16x16x16xf32> to vector<256x16xf32>
    %c12 = arith.constant 12 : index
    %c0_130 = arith.constant 0 : index
    %c0_131 = arith.constant 0 : index
    %129 = vector.load %arg4[%c12, %c0_130, %c0_131] : memref<16x16x32xf32, #tpu.memory_space<vmem>>, vector<1x16x32xf32>
    %130 = vector.shape_cast %129 : vector<1x16x32xf32> to vector<16x32xf32>
    %cst_132 = arith.constant dense<0.000000e+00> : vector<256x32xf32>
    %131 = tpu.matmul %128, %130, %cst_132 {dimension_numbers = #tpu.dot_dimension_numbers<[1], [0], [0], [1], [0, 0, 1, 1], [], []>} : vector<256x16xf32>, vector<16x32xf32>, vector<256x32xf32> -> vector<256x32xf32>
    %132 = arith.addf %126, %131 : vector<256x32xf32>
    %c3_133 = arith.constant 3 : index
    %c8_134 = arith.constant 8 : index
    %c0_135 = arith.constant 0 : index
    %133 = tpu.strided_load %arg12[%c3_133, %c8_134, %c0_135] {strides = array<i32: 2, 2, 1>} : memref<36x48x16xf32, #tpu.memory_space<vmem>>, vector<16x16x16xf32>
    %134 = vector.shape_cast %133 : vector<16x16x16xf32> to vector<256x16xf32>
    %c13 = arith.constant 13 : index
    %c0_136 = arith.constant 0 : index
    %c0_137 = arith.constant 0 : index
    %135 = vector.load %arg4[%c13, %c0_136, %c0_137] : memref<16x16x32xf32, #tpu.memory_space<vmem>>, vector<1x16x32xf32>
    %136 = vector.shape_cast %135 : vector<1x16x32xf32> to vector<16x32xf32>
    %cst_138 = arith.constant dense<0.000000e+00> : vector<256x32xf32>
    %137 = tpu.matmul %134, %136, %cst_138 {dimension_numbers = #tpu.dot_dimension_numbers<[1], [0], [0], [1], [0, 0, 1, 1], [], []>} : vector<256x16xf32>, vector<16x32xf32>, vector<256x32xf32> -> vector<256x32xf32>
    %138 = arith.addf %132, %137 : vector<256x32xf32>
    %c3_139 = arith.constant 3 : index
    %c9_140 = arith.constant 9 : index
    %c0_141 = arith.constant 0 : index
    %139 = tpu.strided_load %arg12[%c3_139, %c9_140, %c0_141] {strides = array<i32: 2, 2, 1>} : memref<36x48x16xf32, #tpu.memory_space<vmem>>, vector<16x16x16xf32>
    %140 = vector.shape_cast %139 : vector<16x16x16xf32> to vector<256x16xf32>
    %c14 = arith.constant 14 : index
    %c0_142 = arith.constant 0 : index
    %c0_143 = arith.constant 0 : index
    %141 = vector.load %arg4[%c14, %c0_142, %c0_143] : memref<16x16x32xf32, #tpu.memory_space<vmem>>, vector<1x16x32xf32>
    %142 = vector.shape_cast %141 : vector<1x16x32xf32> to vector<16x32xf32>
    %cst_144 = arith.constant dense<0.000000e+00> : vector<256x32xf32>
    %143 = tpu.matmul %140, %142, %cst_144 {dimension_numbers = #tpu.dot_dimension_numbers<[1], [0], [0], [1], [0, 0, 1, 1], [], []>} : vector<256x16xf32>, vector<16x32xf32>, vector<256x32xf32> -> vector<256x32xf32>
    %144 = arith.addf %138, %143 : vector<256x32xf32>
    %c3_145 = arith.constant 3 : index
    %c10_146 = arith.constant 10 : index
    %c0_147 = arith.constant 0 : index
    %145 = tpu.strided_load %arg12[%c3_145, %c10_146, %c0_147] {strides = array<i32: 2, 2, 1>} : memref<36x48x16xf32, #tpu.memory_space<vmem>>, vector<16x16x16xf32>
    %146 = vector.shape_cast %145 : vector<16x16x16xf32> to vector<256x16xf32>
    %c15 = arith.constant 15 : index
    %c0_148 = arith.constant 0 : index
    %c0_149 = arith.constant 0 : index
    %147 = vector.load %arg4[%c15, %c0_148, %c0_149] : memref<16x16x32xf32, #tpu.memory_space<vmem>>, vector<1x16x32xf32>
    %148 = vector.shape_cast %147 : vector<1x16x32xf32> to vector<16x32xf32>
    %cst_150 = arith.constant dense<0.000000e+00> : vector<256x32xf32>
    %149 = tpu.matmul %146, %148, %cst_150 {dimension_numbers = #tpu.dot_dimension_numbers<[1], [0], [0], [1], [0, 0, 1, 1], [], []>} : vector<256x16xf32>, vector<16x32xf32>, vector<256x32xf32> -> vector<256x32xf32>
    %150 = arith.addf %144, %149 : vector<256x32xf32>
    %c0_151 = arith.constant 0 : index
    %c0_152 = arith.constant 0 : index
    %151 = vector.load %arg5[%c0_151, %c0_152] : memref<1x32xf32, #tpu.memory_space<vmem>>, vector<1x32xf32>
    %152 = vector.broadcast %151 : vector<1x32xf32> to vector<256x32xf32>
    %153 = arith.addf %150, %152 : vector<256x32xf32>
    %cst_153 = arith.constant 2.000000e-01 : f32
    %154 = vector.broadcast %cst_153 : f32 to vector<256x32xf32>
    %155 = arith.mulf %154, %153 : vector<256x32xf32>
    %156 = arith.maximumf %153, %155 : vector<256x32xf32>
    %157 = vector.shape_cast %156 : vector<256x32xf32> to vector<16x16x32xf32>
    %c1_154 = arith.constant 1 : index
    %c8_155 = arith.constant 8 : index
    %c0_156 = arith.constant 0 : index
    %158 = vector.load %arg13[%c1_154, %c8_155, %c0_156] : memref<20x32x32xf32, #tpu.memory_space<vmem>>, vector<16x16x32xf32>
    tpu.vector_store %arg13[%c1_154, %c8_155, %c0_156], %157 {strides = array<i32>} : memref<20x32x32xf32, #tpu.memory_space<vmem>>, vector<16x16x32xf32>,
    %cst_157 = arith.constant 0.000000e+00 : f32
    %159 = vector.broadcast %cst_157 : f32 to vector<64x64xf32>
    %c0_158 = arith.constant 0 : index
    %c7_159 = arith.constant 7 : index
    %c0_160 = arith.constant 0 : index
    %160 = tpu.strided_load %arg13[%c0_158, %c7_159, %c0_160] {strides = array<i32: 2, 2, 1>} : memref<20x32x32xf32, #tpu.memory_space<vmem>>, vector<8x8x32xf32>
    %161 = vector.shape_cast %160 : vector<8x8x32xf32> to vector<64x32xf32>
    %c0_161 = arith.constant 0 : index
    %c0_162 = arith.constant 0 : index
    %c0_163 = arith.constant 0 : index
    %162 = vector.load %arg6[%c0_161, %c0_162, %c0_163] : memref<16x32x64xf32, #tpu.memory_space<vmem>>, vector<1x32x64xf32>
    %163 = vector.shape_cast %162 : vector<1x32x64xf32> to vector<32x64xf32>
    %cst_164 = arith.constant dense<0.000000e+00> : vector<64x64xf32>
    %164 = tpu.matmul %161, %163, %cst_164 {dimension_numbers = #tpu.dot_dimension_numbers<[1], [0], [0], [1], [0, 0, 1, 1], [], []>} : vector<64x32xf32>, vector<32x64xf32>, vector<64x64xf32> -> vector<64x64xf32>
    %165 = arith.addf %159, %164 : vector<64x64xf32>
    %c0_165 = arith.constant 0 : index
    %c8_166 = arith.constant 8 : index
    %c0_167 = arith.constant 0 : index
    %166 = tpu.strided_load %arg13[%c0_165, %c8_166, %c0_167] {strides = array<i32: 2, 2, 1>} : memref<20x32x32xf32, #tpu.memory_space<vmem>>, vector<8x8x32xf32>
    %167 = vector.shape_cast %166 : vector<8x8x32xf32> to vector<64x32xf32>
    %c1_168 = arith.constant 1 : index
    %c0_169 = arith.constant 0 : index
    %c0_170 = arith.constant 0 : index
    %168 = vector.load %arg6[%c1_168, %c0_169, %c0_170] : memref<16x32x64xf32, #tpu.memory_space<vmem>>, vector<1x32x64xf32>
    %169 = vector.shape_cast %168 : vector<1x32x64xf32> to vector<32x64xf32>
    %cst_171 = arith.constant dense<0.000000e+00> : vector<64x64xf32>
    %170 = tpu.matmul %167, %169, %cst_171 {dimension_numbers = #tpu.dot_dimension_numbers<[1], [0], [0], [1], [0, 0, 1, 1], [], []>} : vector<64x32xf32>, vector<32x64xf32>, vector<64x64xf32> -> vector<64x64xf32>
    %171 = arith.addf %165, %170 : vector<64x64xf32>
    %c0_172 = arith.constant 0 : index
    %c9_173 = arith.constant 9 : index
    %c0_174 = arith.constant 0 : index
    %172 = tpu.strided_load %arg13[%c0_172, %c9_173, %c0_174] {strides = array<i32: 2, 2, 1>} : memref<20x32x32xf32, #tpu.memory_space<vmem>>, vector<8x8x32xf32>
    %173 = vector.shape_cast %172 : vector<8x8x32xf32> to vector<64x32xf32>
    %c2_175 = arith.constant 2 : index
    %c0_176 = arith.constant 0 : index
    %c0_177 = arith.constant 0 : index
    %174 = vector.load %arg6[%c2_175, %c0_176, %c0_177] : memref<16x32x64xf32, #tpu.memory_space<vmem>>, vector<1x32x64xf32>
    %175 = vector.shape_cast %174 : vector<1x32x64xf32> to vector<32x64xf32>
    %cst_178 = arith.constant dense<0.000000e+00> : vector<64x64xf32>
    %176 = tpu.matmul %173, %175, %cst_178 {dimension_numbers = #tpu.dot_dimension_numbers<[1], [0], [0], [1], [0, 0, 1, 1], [], []>} : vector<64x32xf32>, vector<32x64xf32>, vector<64x64xf32> -> vector<64x64xf32>
    %177 = arith.addf %171, %176 : vector<64x64xf32>
    %c0_179 = arith.constant 0 : index
    %c10_180 = arith.constant 10 : index
    %c0_181 = arith.constant 0 : index
    %178 = tpu.strided_load %arg13[%c0_179, %c10_180, %c0_181] {strides = array<i32: 2, 2, 1>} : memref<20x32x32xf32, #tpu.memory_space<vmem>>, vector<8x8x32xf32>
    %179 = vector.shape_cast %178 : vector<8x8x32xf32> to vector<64x32xf32>
    %c3_182 = arith.constant 3 : index
    %c0_183 = arith.constant 0 : index
    %c0_184 = arith.constant 0 : index
    %180 = vector.load %arg6[%c3_182, %c0_183, %c0_184] : memref<16x32x64xf32, #tpu.memory_space<vmem>>, vector<1x32x64xf32>
    %181 = vector.shape_cast %180 : vector<1x32x64xf32> to vector<32x64xf32>
    %cst_185 = arith.constant dense<0.000000e+00> : vector<64x64xf32>
    %182 = tpu.matmul %179, %181, %cst_185 {dimension_numbers = #tpu.dot_dimension_numbers<[1], [0], [0], [1], [0, 0, 1, 1], [], []>} : vector<64x32xf32>, vector<32x64xf32>, vector<64x64xf32> -> vector<64x64xf32>
    %183 = arith.addf %177, %182 : vector<64x64xf32>
    %c1_186 = arith.constant 1 : index
    %c7_187 = arith.constant 7 : index
    %c0_188 = arith.constant 0 : index
    %184 = tpu.strided_load %arg13[%c1_186, %c7_187, %c0_188] {strides = array<i32: 2, 2, 1>} : memref<20x32x32xf32, #tpu.memory_space<vmem>>, vector<8x8x32xf32>
    %185 = vector.shape_cast %184 : vector<8x8x32xf32> to vector<64x32xf32>
    %c4_189 = arith.constant 4 : index
    %c0_190 = arith.constant 0 : index
    %c0_191 = arith.constant 0 : index
    %186 = vector.load %arg6[%c4_189, %c0_190, %c0_191] : memref<16x32x64xf32, #tpu.memory_space<vmem>>, vector<1x32x64xf32>
    %187 = vector.shape_cast %186 : vector<1x32x64xf32> to vector<32x64xf32>
    %cst_192 = arith.constant dense<0.000000e+00> : vector<64x64xf32>
    %188 = tpu.matmul %185, %187, %cst_192 {dimension_numbers = #tpu.dot_dimension_numbers<[1], [0], [0], [1], [0, 0, 1, 1], [], []>} : vector<64x32xf32>, vector<32x64xf32>, vector<64x64xf32> -> vector<64x64xf32>
    %189 = arith.addf %183, %188 : vector<64x64xf32>
    %c1_193 = arith.constant 1 : index
    %c8_194 = arith.constant 8 : index
    %c0_195 = arith.constant 0 : index
    %190 = tpu.strided_load %arg13[%c1_193, %c8_194, %c0_195] {strides = array<i32: 2, 2, 1>} : memref<20x32x32xf32, #tpu.memory_space<vmem>>, vector<8x8x32xf32>
    %191 = vector.shape_cast %190 : vector<8x8x32xf32> to vector<64x32xf32>
    %c5_196 = arith.constant 5 : index
    %c0_197 = arith.constant 0 : index
    %c0_198 = arith.constant 0 : index
    %192 = vector.load %arg6[%c5_196, %c0_197, %c0_198] : memref<16x32x64xf32, #tpu.memory_space<vmem>>, vector<1x32x64xf32>
    %193 = vector.shape_cast %192 : vector<1x32x64xf32> to vector<32x64xf32>
    %cst_199 = arith.constant dense<0.000000e+00> : vector<64x64xf32>
    %194 = tpu.matmul %191, %193, %cst_199 {dimension_numbers = #tpu.dot_dimension_numbers<[1], [0], [0], [1], [0, 0, 1, 1], [], []>} : vector<64x32xf32>, vector<32x64xf32>, vector<64x64xf32> -> vector<64x64xf32>
    %195 = arith.addf %189, %194 : vector<64x64xf32>
    %c1_200 = arith.constant 1 : index
    %c9_201 = arith.constant 9 : index
    %c0_202 = arith.constant 0 : index
    %196 = tpu.strided_load %arg13[%c1_200, %c9_201, %c0_202] {strides = array<i32: 2, 2, 1>} : memref<20x32x32xf32, #tpu.memory_space<vmem>>, vector<8x8x32xf32>
    %197 = vector.shape_cast %196 : vector<8x8x32xf32> to vector<64x32xf32>
    %c6_203 = arith.constant 6 : index
    %c0_204 = arith.constant 0 : index
    %c0_205 = arith.constant 0 : index
    %198 = vector.load %arg6[%c6_203, %c0_204, %c0_205] : memref<16x32x64xf32, #tpu.memory_space<vmem>>, vector<1x32x64xf32>
    %199 = vector.shape_cast %198 : vector<1x32x64xf32> to vector<32x64xf32>
    %cst_206 = arith.constant dense<0.000000e+00> : vector<64x64xf32>
    %200 = tpu.matmul %197, %199, %cst_206 {dimension_numbers = #tpu.dot_dimension_numbers<[1], [0], [0], [1], [0, 0, 1, 1], [], []>} : vector<64x32xf32>, vector<32x64xf32>, vector<64x64xf32> -> vector<64x64xf32>
    %201 = arith.addf %195, %200 : vector<64x64xf32>
    %c1_207 = arith.constant 1 : index
    %c10_208 = arith.constant 10 : index
    %c0_209 = arith.constant 0 : index
    %202 = tpu.strided_load %arg13[%c1_207, %c10_208, %c0_209] {strides = array<i32: 2, 2, 1>} : memref<20x32x32xf32, #tpu.memory_space<vmem>>, vector<8x8x32xf32>
    %203 = vector.shape_cast %202 : vector<8x8x32xf32> to vector<64x32xf32>
    %c7_210 = arith.constant 7 : index
    %c0_211 = arith.constant 0 : index
    %c0_212 = arith.constant 0 : index
    %204 = vector.load %arg6[%c7_210, %c0_211, %c0_212] : memref<16x32x64xf32, #tpu.memory_space<vmem>>, vector<1x32x64xf32>
    %205 = vector.shape_cast %204 : vector<1x32x64xf32> to vector<32x64xf32>
    %cst_213 = arith.constant dense<0.000000e+00> : vector<64x64xf32>
    %206 = tpu.matmul %203, %205, %cst_213 {dimension_numbers = #tpu.dot_dimension_numbers<[1], [0], [0], [1], [0, 0, 1, 1], [], []>} : vector<64x32xf32>, vector<32x64xf32>, vector<64x64xf32> -> vector<64x64xf32>
    %207 = arith.addf %201, %206 : vector<64x64xf32>
    %c2_214 = arith.constant 2 : index
    %c7_215 = arith.constant 7 : index
    %c0_216 = arith.constant 0 : index
    %208 = tpu.strided_load %arg13[%c2_214, %c7_215, %c0_216] {strides = array<i32: 2, 2, 1>} : memref<20x32x32xf32, #tpu.memory_space<vmem>>, vector<8x8x32xf32>
    %209 = vector.shape_cast %208 : vector<8x8x32xf32> to vector<64x32xf32>
    %c8_217 = arith.constant 8 : index
    %c0_218 = arith.constant 0 : index
    %c0_219 = arith.constant 0 : index
    %210 = vector.load %arg6[%c8_217, %c0_218, %c0_219] : memref<16x32x64xf32, #tpu.memory_space<vmem>>, vector<1x32x64xf32>
    %211 = vector.shape_cast %210 : vector<1x32x64xf32> to vector<32x64xf32>
    %cst_220 = arith.constant dense<0.000000e+00> : vector<64x64xf32>
    %212 = tpu.matmul %209, %211, %cst_220 {dimension_numbers = #tpu.dot_dimension_numbers<[1], [0], [0], [1], [0, 0, 1, 1], [], []>} : vector<64x32xf32>, vector<32x64xf32>, vector<64x64xf32> -> vector<64x64xf32>
    %213 = arith.addf %207, %212 : vector<64x64xf32>
    %c2_221 = arith.constant 2 : index
    %c8_222 = arith.constant 8 : index
    %c0_223 = arith.constant 0 : index
    %214 = tpu.strided_load %arg13[%c2_221, %c8_222, %c0_223] {strides = array<i32: 2, 2, 1>} : memref<20x32x32xf32, #tpu.memory_space<vmem>>, vector<8x8x32xf32>
    %215 = vector.shape_cast %214 : vector<8x8x32xf32> to vector<64x32xf32>
    %c9_224 = arith.constant 9 : index
    %c0_225 = arith.constant 0 : index
    %c0_226 = arith.constant 0 : index
    %216 = vector.load %arg6[%c9_224, %c0_225, %c0_226] : memref<16x32x64xf32, #tpu.memory_space<vmem>>, vector<1x32x64xf32>
    %217 = vector.shape_cast %216 : vector<1x32x64xf32> to vector<32x64xf32>
    %cst_227 = arith.constant dense<0.000000e+00> : vector<64x64xf32>
    %218 = tpu.matmul %215, %217, %cst_227 {dimension_numbers = #tpu.dot_dimension_numbers<[1], [0], [0], [1], [0, 0, 1, 1], [], []>} : vector<64x32xf32>, vector<32x64xf32>, vector<64x64xf32> -> vector<64x64xf32>
    %219 = arith.addf %213, %218 : vector<64x64xf32>
    %c2_228 = arith.constant 2 : index
    %c9_229 = arith.constant 9 : index
    %c0_230 = arith.constant 0 : index
    %220 = tpu.strided_load %arg13[%c2_228, %c9_229, %c0_230] {strides = array<i32: 2, 2, 1>} : memref<20x32x32xf32, #tpu.memory_space<vmem>>, vector<8x8x32xf32>
    %221 = vector.shape_cast %220 : vector<8x8x32xf32> to vector<64x32xf32>
    %c10_231 = arith.constant 10 : index
    %c0_232 = arith.constant 0 : index
    %c0_233 = arith.constant 0 : index
    %222 = vector.load %arg6[%c10_231, %c0_232, %c0_233] : memref<16x32x64xf32, #tpu.memory_space<vmem>>, vector<1x32x64xf32>
    %223 = vector.shape_cast %222 : vector<1x32x64xf32> to vector<32x64xf32>
    %cst_234 = arith.constant dense<0.000000e+00> : vector<64x64xf32>
    %224 = tpu.matmul %221, %223, %cst_234 {dimension_numbers = #tpu.dot_dimension_numbers<[1], [0], [0], [1], [0, 0, 1, 1], [], []>} : vector<64x32xf32>, vector<32x64xf32>, vector<64x64xf32> -> vector<64x64xf32>
    %225 = arith.addf %219, %224 : vector<64x64xf32>
    %c2_235 = arith.constant 2 : index
    %c10_236 = arith.constant 10 : index
    %c0_237 = arith.constant 0 : index
    %226 = tpu.strided_load %arg13[%c2_235, %c10_236, %c0_237] {strides = array<i32: 2, 2, 1>} : memref<20x32x32xf32, #tpu.memory_space<vmem>>, vector<8x8x32xf32>
    %227 = vector.shape_cast %226 : vector<8x8x32xf32> to vector<64x32xf32>
    %c11_238 = arith.constant 11 : index
    %c0_239 = arith.constant 0 : index
    %c0_240 = arith.constant 0 : index
    %228 = vector.load %arg6[%c11_238, %c0_239, %c0_240] : memref<16x32x64xf32, #tpu.memory_space<vmem>>, vector<1x32x64xf32>
    %229 = vector.shape_cast %228 : vector<1x32x64xf32> to vector<32x64xf32>
    %cst_241 = arith.constant dense<0.000000e+00> : vector<64x64xf32>
    %230 = tpu.matmul %227, %229, %cst_241 {dimension_numbers = #tpu.dot_dimension_numbers<[1], [0], [0], [1], [0, 0, 1, 1], [], []>} : vector<64x32xf32>, vector<32x64xf32>, vector<64x64xf32> -> vector<64x64xf32>
    %231 = arith.addf %225, %230 : vector<64x64xf32>
    %c3_242 = arith.constant 3 : index
    %c7_243 = arith.constant 7 : index
    %c0_244 = arith.constant 0 : index
    %232 = tpu.strided_load %arg13[%c3_242, %c7_243, %c0_244] {strides = array<i32: 2, 2, 1>} : memref<20x32x32xf32, #tpu.memory_space<vmem>>, vector<8x8x32xf32>
    %233 = vector.shape_cast %232 : vector<8x8x32xf32> to vector<64x32xf32>
    %c12_245 = arith.constant 12 : index
    %c0_246 = arith.constant 0 : index
    %c0_247 = arith.constant 0 : index
    %234 = vector.load %arg6[%c12_245, %c0_246, %c0_247] : memref<16x32x64xf32, #tpu.memory_space<vmem>>, vector<1x32x64xf32>
    %235 = vector.shape_cast %234 : vector<1x32x64xf32> to vector<32x64xf32>
    %cst_248 = arith.constant dense<0.000000e+00> : vector<64x64xf32>
    %236 = tpu.matmul %233, %235, %cst_248 {dimension_numbers = #tpu.dot_dimension_numbers<[1], [0], [0], [1], [0, 0, 1, 1], [], []>} : vector<64x32xf32>, vector<32x64xf32>, vector<64x64xf32> -> vector<64x64xf32>
    %237 = arith.addf %231, %236 : vector<64x64xf32>
    %c3_249 = arith.constant 3 : index
    %c8_250 = arith.constant 8 : index
    %c0_251 = arith.constant 0 : index
    %238 = tpu.strided_load %arg13[%c3_249, %c8_250, %c0_251] {strides = array<i32: 2, 2, 1>} : memref<20x32x32xf32, #tpu.memory_space<vmem>>, vector<8x8x32xf32>
    %239 = vector.shape_cast %238 : vector<8x8x32xf32> to vector<64x32xf32>
    %c13_252 = arith.constant 13 : index
    %c0_253 = arith.constant 0 : index
    %c0_254 = arith.constant 0 : index
    %240 = vector.load %arg6[%c13_252, %c0_253, %c0_254] : memref<16x32x64xf32, #tpu.memory_space<vmem>>, vector<1x32x64xf32>
    %241 = vector.shape_cast %240 : vector<1x32x64xf32> to vector<32x64xf32>
    %cst_255 = arith.constant dense<0.000000e+00> : vector<64x64xf32>
    %242 = tpu.matmul %239, %241, %cst_255 {dimension_numbers = #tpu.dot_dimension_numbers<[1], [0], [0], [1], [0, 0, 1, 1], [], []>} : vector<64x32xf32>, vector<32x64xf32>, vector<64x64xf32> -> vector<64x64xf32>
    %243 = arith.addf %237, %242 : vector<64x64xf32>
    %c3_256 = arith.constant 3 : index
    %c9_257 = arith.constant 9 : index
    %c0_258 = arith.constant 0 : index
    %244 = tpu.strided_load %arg13[%c3_256, %c9_257, %c0_258] {strides = array<i32: 2, 2, 1>} : memref<20x32x32xf32, #tpu.memory_space<vmem>>, vector<8x8x32xf32>
    %245 = vector.shape_cast %244 : vector<8x8x32xf32> to vector<64x32xf32>
    %c14_259 = arith.constant 14 : index
    %c0_260 = arith.constant 0 : index
    %c0_261 = arith.constant 0 : index
    %246 = vector.load %arg6[%c14_259, %c0_260, %c0_261] : memref<16x32x64xf32, #tpu.memory_space<vmem>>, vector<1x32x64xf32>
    %247 = vector.shape_cast %246 : vector<1x32x64xf32> to vector<32x64xf32>
    %cst_262 = arith.constant dense<0.000000e+00> : vector<64x64xf32>
    %248 = tpu.matmul %245, %247, %cst_262 {dimension_numbers = #tpu.dot_dimension_numbers<[1], [0], [0], [1], [0, 0, 1, 1], [], []>} : vector<64x32xf32>, vector<32x64xf32>, vector<64x64xf32> -> vector<64x64xf32>
    %249 = arith.addf %243, %248 : vector<64x64xf32>
    %c3_263 = arith.constant 3 : index
    %c10_264 = arith.constant 10 : index
    %c0_265 = arith.constant 0 : index
    %250 = tpu.strided_load %arg13[%c3_263, %c10_264, %c0_265] {strides = array<i32: 2, 2, 1>} : memref<20x32x32xf32, #tpu.memory_space<vmem>>, vector<8x8x32xf32>
    %251 = vector.shape_cast %250 : vector<8x8x32xf32> to vector<64x32xf32>
    %c15_266 = arith.constant 15 : index
    %c0_267 = arith.constant 0 : index
    %c0_268 = arith.constant 0 : index
    %252 = vector.load %arg6[%c15_266, %c0_267, %c0_268] : memref<16x32x64xf32, #tpu.memory_space<vmem>>, vector<1x32x64xf32>
    %253 = vector.shape_cast %252 : vector<1x32x64xf32> to vector<32x64xf32>
    %cst_269 = arith.constant dense<0.000000e+00> : vector<64x64xf32>
    %254 = tpu.matmul %251, %253, %cst_269 {dimension_numbers = #tpu.dot_dimension_numbers<[1], [0], [0], [1], [0, 0, 1, 1], [], []>} : vector<64x32xf32>, vector<32x64xf32>, vector<64x64xf32> -> vector<64x64xf32>
    %255 = arith.addf %249, %254 : vector<64x64xf32>
    %c0_270 = arith.constant 0 : index
    %c0_271 = arith.constant 0 : index
    %256 = vector.load %arg7[%c0_270, %c0_271] : memref<1x64xf32, #tpu.memory_space<vmem>>, vector<1x64xf32>
    %257 = vector.broadcast %256 : vector<1x64xf32> to vector<64x64xf32>
    %258 = arith.addf %255, %257 : vector<64x64xf32>
    %cst_272 = arith.constant 2.000000e-01 : f32
    %259 = vector.broadcast %cst_272 : f32 to vector<64x64xf32>
    %260 = arith.mulf %259, %258 : vector<64x64xf32>
    %261 = arith.maximumf %258, %260 : vector<64x64xf32>
    %262 = vector.shape_cast %261 : vector<64x64xf32> to vector<8x8x64xf32>
    %c1_273 = arith.constant 1 : index
    %c8_274 = arith.constant 8 : index
    %c0_275 = arith.constant 0 : index
    %263 = vector.load %arg14[%c1_273, %c8_274, %c0_275] : memref<12x32x64xf32, #tpu.memory_space<vmem>>, vector<8x8x64xf32>
    tpu.vector_store %arg14[%c1_273, %c8_274, %c0_275], %262 {strides = array<i32>} : memref<12x32x64xf32, #tpu.memory_space<vmem>>, vector<8x8x64xf32>,
    %cst_276 = arith.constant 0.000000e+00 : f32
    %264 = vector.broadcast %cst_276 : f32 to vector<32x128xf32>
    %c0_277 = arith.constant 0 : index
    %c7_278 = arith.constant 7 : index
    %c0_279 = arith.constant 0 : index
    %265 = tpu.strided_load %arg14[%c0_277, %c7_278, %c0_279] {strides = array<i32: 2, 2, 1>} : memref<12x32x64xf32, #tpu.memory_space<vmem>>, vector<4x8x64xf32>
    %266 = vector.shape_cast %265 : vector<4x8x64xf32> to vector<32x64xf32>
    %c0_280 = arith.constant 0 : index
    %c0_281 = arith.constant 0 : index
    %c0_282 = arith.constant 0 : index
    %267 = vector.load %arg8[%c0_280, %c0_281, %c0_282] : memref<16x64x128xf32, #tpu.memory_space<vmem>>, vector<1x64x128xf32>
    %268 = vector.shape_cast %267 : vector<1x64x128xf32> to vector<64x128xf32>
    %cst_283 = arith.constant dense<0.000000e+00> : vector<32x128xf32>
    %269 = tpu.matmul %266, %268, %cst_283 {dimension_numbers = #tpu.dot_dimension_numbers<[1], [0], [0], [1], [0, 0, 1, 1], [], []>} : vector<32x64xf32>, vector<64x128xf32>, vector<32x128xf32> -> vector<32x128xf32>
    %270 = arith.addf %264, %269 : vector<32x128xf32>
    %c0_284 = arith.constant 0 : index
    %c8_285 = arith.constant 8 : index
    %c0_286 = arith.constant 0 : index
    %271 = tpu.strided_load %arg14[%c0_284, %c8_285, %c0_286] {strides = array<i32: 2, 2, 1>} : memref<12x32x64xf32, #tpu.memory_space<vmem>>, vector<4x8x64xf32>
    %272 = vector.shape_cast %271 : vector<4x8x64xf32> to vector<32x64xf32>
    %c1_287 = arith.constant 1 : index
    %c0_288 = arith.constant 0 : index
    %c0_289 = arith.constant 0 : index
    %273 = vector.load %arg8[%c1_287, %c0_288, %c0_289] : memref<16x64x128xf32, #tpu.memory_space<vmem>>, vector<1x64x128xf32>
    %274 = vector.shape_cast %273 : vector<1x64x128xf32> to vector<64x128xf32>
    %cst_290 = arith.constant dense<0.000000e+00> : vector<32x128xf32>
    %275 = tpu.matmul %272, %274, %cst_290 {dimension_numbers = #tpu.dot_dimension_numbers<[1], [0], [0], [1], [0, 0, 1, 1], [], []>} : vector<32x64xf32>, vector<64x128xf32>, vector<32x128xf32> -> vector<32x128xf32>
    %276 = arith.addf %270, %275 : vector<32x128xf32>
    %c0_291 = arith.constant 0 : index
    %c9_292 = arith.constant 9 : index
    %c0_293 = arith.constant 0 : index
    %277 = tpu.strided_load %arg14[%c0_291, %c9_292, %c0_293] {strides = array<i32: 2, 2, 1>} : memref<12x32x64xf32, #tpu.memory_space<vmem>>, vector<4x8x64xf32>
    %278 = vector.shape_cast %277 : vector<4x8x64xf32> to vector<32x64xf32>
    %c2_294 = arith.constant 2 : index
    %c0_295 = arith.constant 0 : index
    %c0_296 = arith.constant 0 : index
    %279 = vector.load %arg8[%c2_294, %c0_295, %c0_296] : memref<16x64x128xf32, #tpu.memory_space<vmem>>, vector<1x64x128xf32>
    %280 = vector.shape_cast %279 : vector<1x64x128xf32> to vector<64x128xf32>
    %cst_297 = arith.constant dense<0.000000e+00> : vector<32x128xf32>
    %281 = tpu.matmul %278, %280, %cst_297 {dimension_numbers = #tpu.dot_dimension_numbers<[1], [0], [0], [1], [0, 0, 1, 1], [], []>} : vector<32x64xf32>, vector<64x128xf32>, vector<32x128xf32> -> vector<32x128xf32>
    %282 = arith.addf %276, %281 : vector<32x128xf32>
    %c0_298 = arith.constant 0 : index
    %c10_299 = arith.constant 10 : index
    %c0_300 = arith.constant 0 : index
    %283 = tpu.strided_load %arg14[%c0_298, %c10_299, %c0_300] {strides = array<i32: 2, 2, 1>} : memref<12x32x64xf32, #tpu.memory_space<vmem>>, vector<4x8x64xf32>
    %284 = vector.shape_cast %283 : vector<4x8x64xf32> to vector<32x64xf32>
    %c3_301 = arith.constant 3 : index
    %c0_302 = arith.constant 0 : index
    %c0_303 = arith.constant 0 : index
    %285 = vector.load %arg8[%c3_301, %c0_302, %c0_303] : memref<16x64x128xf32, #tpu.memory_space<vmem>>, vector<1x64x128xf32>
    %286 = vector.shape_cast %285 : vector<1x64x128xf32> to vector<64x128xf32>
    %cst_304 = arith.constant dense<0.000000e+00> : vector<32x128xf32>
    %287 = tpu.matmul %284, %286, %cst_304 {dimension_numbers = #tpu.dot_dimension_numbers<[1], [0], [0], [1], [0, 0, 1, 1], [], []>} : vector<32x64xf32>, vector<64x128xf32>, vector<32x128xf32> -> vector<32x128xf32>
    %288 = arith.addf %282, %287 : vector<32x128xf32>
    %c1_305 = arith.constant 1 : index
    %c7_306 = arith.constant 7 : index
    %c0_307 = arith.constant 0 : index
    %289 = tpu.strided_load %arg14[%c1_305, %c7_306, %c0_307] {strides = array<i32: 2, 2, 1>} : memref<12x32x64xf32, #tpu.memory_space<vmem>>, vector<4x8x64xf32>
    %290 = vector.shape_cast %289 : vector<4x8x64xf32> to vector<32x64xf32>
    %c4_308 = arith.constant 4 : index
    %c0_309 = arith.constant 0 : index
    %c0_310 = arith.constant 0 : index
    %291 = vector.load %arg8[%c4_308, %c0_309, %c0_310] : memref<16x64x128xf32, #tpu.memory_space<vmem>>, vector<1x64x128xf32>
    %292 = vector.shape_cast %291 : vector<1x64x128xf32> to vector<64x128xf32>
    %cst_311 = arith.constant dense<0.000000e+00> : vector<32x128xf32>
    %293 = tpu.matmul %290, %292, %cst_311 {dimension_numbers = #tpu.dot_dimension_numbers<[1], [0], [0], [1], [0, 0, 1, 1], [], []>} : vector<32x64xf32>, vector<64x128xf32>, vector<32x128xf32> -> vector<32x128xf32>
    %294 = arith.addf %288, %293 : vector<32x128xf32>
    %c1_312 = arith.constant 1 : index
    %c8_313 = arith.constant 8 : index
    %c0_314 = arith.constant 0 : index
    %295 = tpu.strided_load %arg14[%c1_312, %c8_313, %c0_314] {strides = array<i32: 2, 2, 1>} : memref<12x32x64xf32, #tpu.memory_space<vmem>>, vector<4x8x64xf32>
    %296 = vector.shape_cast %295 : vector<4x8x64xf32> to vector<32x64xf32>
    %c5_315 = arith.constant 5 : index
    %c0_316 = arith.constant 0 : index
    %c0_317 = arith.constant 0 : index
    %297 = vector.load %arg8[%c5_315, %c0_316, %c0_317] : memref<16x64x128xf32, #tpu.memory_space<vmem>>, vector<1x64x128xf32>
    %298 = vector.shape_cast %297 : vector<1x64x128xf32> to vector<64x128xf32>
    %cst_318 = arith.constant dense<0.000000e+00> : vector<32x128xf32>
    %299 = tpu.matmul %296, %298, %cst_318 {dimension_numbers = #tpu.dot_dimension_numbers<[1], [0], [0], [1], [0, 0, 1, 1], [], []>} : vector<32x64xf32>, vector<64x128xf32>, vector<32x128xf32> -> vector<32x128xf32>
    %300 = arith.addf %294, %299 : vector<32x128xf32>
    %c1_319 = arith.constant 1 : index
    %c9_320 = arith.constant 9 : index
    %c0_321 = arith.constant 0 : index
    %301 = tpu.strided_load %arg14[%c1_319, %c9_320, %c0_321] {strides = array<i32: 2, 2, 1>} : memref<12x32x64xf32, #tpu.memory_space<vmem>>, vector<4x8x64xf32>
    %302 = vector.shape_cast %301 : vector<4x8x64xf32> to vector<32x64xf32>
    %c6_322 = arith.constant 6 : index
    %c0_323 = arith.constant 0 : index
    %c0_324 = arith.constant 0 : index
    %303 = vector.load %arg8[%c6_322, %c0_323, %c0_324] : memref<16x64x128xf32, #tpu.memory_space<vmem>>, vector<1x64x128xf32>
    %304 = vector.shape_cast %303 : vector<1x64x128xf32> to vector<64x128xf32>
    %cst_325 = arith.constant dense<0.000000e+00> : vector<32x128xf32>
    %305 = tpu.matmul %302, %304, %cst_325 {dimension_numbers = #tpu.dot_dimension_numbers<[1], [0], [0], [1], [0, 0, 1, 1], [], []>} : vector<32x64xf32>, vector<64x128xf32>, vector<32x128xf32> -> vector<32x128xf32>
    %306 = arith.addf %300, %305 : vector<32x128xf32>
    %c1_326 = arith.constant 1 : index
    %c10_327 = arith.constant 10 : index
    %c0_328 = arith.constant 0 : index
    %307 = tpu.strided_load %arg14[%c1_326, %c10_327, %c0_328] {strides = array<i32: 2, 2, 1>} : memref<12x32x64xf32, #tpu.memory_space<vmem>>, vector<4x8x64xf32>
    %308 = vector.shape_cast %307 : vector<4x8x64xf32> to vector<32x64xf32>
    %c7_329 = arith.constant 7 : index
    %c0_330 = arith.constant 0 : index
    %c0_331 = arith.constant 0 : index
    %309 = vector.load %arg8[%c7_329, %c0_330, %c0_331] : memref<16x64x128xf32, #tpu.memory_space<vmem>>, vector<1x64x128xf32>
    %310 = vector.shape_cast %309 : vector<1x64x128xf32> to vector<64x128xf32>
    %cst_332 = arith.constant dense<0.000000e+00> : vector<32x128xf32>
    %311 = tpu.matmul %308, %310, %cst_332 {dimension_numbers = #tpu.dot_dimension_numbers<[1], [0], [0], [1], [0, 0, 1, 1], [], []>} : vector<32x64xf32>, vector<64x128xf32>, vector<32x128xf32> -> vector<32x128xf32>
    %312 = arith.addf %306, %311 : vector<32x128xf32>
    %c2_333 = arith.constant 2 : index
    %c7_334 = arith.constant 7 : index
    %c0_335 = arith.constant 0 : index
    %313 = tpu.strided_load %arg14[%c2_333, %c7_334, %c0_335] {strides = array<i32: 2, 2, 1>} : memref<12x32x64xf32, #tpu.memory_space<vmem>>, vector<4x8x64xf32>
    %314 = vector.shape_cast %313 : vector<4x8x64xf32> to vector<32x64xf32>
    %c8_336 = arith.constant 8 : index
    %c0_337 = arith.constant 0 : index
    %c0_338 = arith.constant 0 : index
    %315 = vector.load %arg8[%c8_336, %c0_337, %c0_338] : memref<16x64x128xf32, #tpu.memory_space<vmem>>, vector<1x64x128xf32>
    %316 = vector.shape_cast %315 : vector<1x64x128xf32> to vector<64x128xf32>
    %cst_339 = arith.constant dense<0.000000e+00> : vector<32x128xf32>
    %317 = tpu.matmul %314, %316, %cst_339 {dimension_numbers = #tpu.dot_dimension_numbers<[1], [0], [0], [1], [0, 0, 1, 1], [], []>} : vector<32x64xf32>, vector<64x128xf32>, vector<32x128xf32> -> vector<32x128xf32>
    %318 = arith.addf %312, %317 : vector<32x128xf32>
    %c2_340 = arith.constant 2 : index
    %c8_341 = arith.constant 8 : index
    %c0_342 = arith.constant 0 : index
    %319 = tpu.strided_load %arg14[%c2_340, %c8_341, %c0_342] {strides = array<i32: 2, 2, 1>} : memref<12x32x64xf32, #tpu.memory_space<vmem>>, vector<4x8x64xf32>
    %320 = vector.shape_cast %319 : vector<4x8x64xf32> to vector<32x64xf32>
    %c9_343 = arith.constant 9 : index
    %c0_344 = arith.constant 0 : index
    %c0_345 = arith.constant 0 : index
    %321 = vector.load %arg8[%c9_343, %c0_344, %c0_345] : memref<16x64x128xf32, #tpu.memory_space<vmem>>, vector<1x64x128xf32>
    %322 = vector.shape_cast %321 : vector<1x64x128xf32> to vector<64x128xf32>
    %cst_346 = arith.constant dense<0.000000e+00> : vector<32x128xf32>
    %323 = tpu.matmul %320, %322, %cst_346 {dimension_numbers = #tpu.dot_dimension_numbers<[1], [0], [0], [1], [0, 0, 1, 1], [], []>} : vector<32x64xf32>, vector<64x128xf32>, vector<32x128xf32> -> vector<32x128xf32>
    %324 = arith.addf %318, %323 : vector<32x128xf32>
    %c2_347 = arith.constant 2 : index
    %c9_348 = arith.constant 9 : index
    %c0_349 = arith.constant 0 : index
    %325 = tpu.strided_load %arg14[%c2_347, %c9_348, %c0_349] {strides = array<i32: 2, 2, 1>} : memref<12x32x64xf32, #tpu.memory_space<vmem>>, vector<4x8x64xf32>
    %326 = vector.shape_cast %325 : vector<4x8x64xf32> to vector<32x64xf32>
    %c10_350 = arith.constant 10 : index
    %c0_351 = arith.constant 0 : index
    %c0_352 = arith.constant 0 : index
    %327 = vector.load %arg8[%c10_350, %c0_351, %c0_352] : memref<16x64x128xf32, #tpu.memory_space<vmem>>, vector<1x64x128xf32>
    %328 = vector.shape_cast %327 : vector<1x64x128xf32> to vector<64x128xf32>
    %cst_353 = arith.constant dense<0.000000e+00> : vector<32x128xf32>
    %329 = tpu.matmul %326, %328, %cst_353 {dimension_numbers = #tpu.dot_dimension_numbers<[1], [0], [0], [1], [0, 0, 1, 1], [], []>} : vector<32x64xf32>, vector<64x128xf32>, vector<32x128xf32> -> vector<32x128xf32>
    %330 = arith.addf %324, %329 : vector<32x128xf32>
    %c2_354 = arith.constant 2 : index
    %c10_355 = arith.constant 10 : index
    %c0_356 = arith.constant 0 : index
    %331 = tpu.strided_load %arg14[%c2_354, %c10_355, %c0_356] {strides = array<i32: 2, 2, 1>} : memref<12x32x64xf32, #tpu.memory_space<vmem>>, vector<4x8x64xf32>
    %332 = vector.shape_cast %331 : vector<4x8x64xf32> to vector<32x64xf32>
    %c11_357 = arith.constant 11 : index
    %c0_358 = arith.constant 0 : index
    %c0_359 = arith.constant 0 : index
    %333 = vector.load %arg8[%c11_357, %c0_358, %c0_359] : memref<16x64x128xf32, #tpu.memory_space<vmem>>, vector<1x64x128xf32>
    %334 = vector.shape_cast %333 : vector<1x64x128xf32> to vector<64x128xf32>
    %cst_360 = arith.constant dense<0.000000e+00> : vector<32x128xf32>
    %335 = tpu.matmul %332, %334, %cst_360 {dimension_numbers = #tpu.dot_dimension_numbers<[1], [0], [0], [1], [0, 0, 1, 1], [], []>} : vector<32x64xf32>, vector<64x128xf32>, vector<32x128xf32> -> vector<32x128xf32>
    %336 = arith.addf %330, %335 : vector<32x128xf32>
    %c3_361 = arith.constant 3 : index
    %c7_362 = arith.constant 7 : index
    %c0_363 = arith.constant 0 : index
    %337 = tpu.strided_load %arg14[%c3_361, %c7_362, %c0_363] {strides = array<i32: 2, 2, 1>} : memref<12x32x64xf32, #tpu.memory_space<vmem>>, vector<4x8x64xf32>
    %338 = vector.shape_cast %337 : vector<4x8x64xf32> to vector<32x64xf32>
    %c12_364 = arith.constant 12 : index
    %c0_365 = arith.constant 0 : index
    %c0_366 = arith.constant 0 : index
    %339 = vector.load %arg8[%c12_364, %c0_365, %c0_366] : memref<16x64x128xf32, #tpu.memory_space<vmem>>, vector<1x64x128xf32>
    %340 = vector.shape_cast %339 : vector<1x64x128xf32> to vector<64x128xf32>
    %cst_367 = arith.constant dense<0.000000e+00> : vector<32x128xf32>
    %341 = tpu.matmul %338, %340, %cst_367 {dimension_numbers = #tpu.dot_dimension_numbers<[1], [0], [0], [1], [0, 0, 1, 1], [], []>} : vector<32x64xf32>, vector<64x128xf32>, vector<32x128xf32> -> vector<32x128xf32>
    %342 = arith.addf %336, %341 : vector<32x128xf32>
    %c3_368 = arith.constant 3 : index
    %c8_369 = arith.constant 8 : index
    %c0_370 = arith.constant 0 : index
    %343 = tpu.strided_load %arg14[%c3_368, %c8_369, %c0_370] {strides = array<i32: 2, 2, 1>} : memref<12x32x64xf32, #tpu.memory_space<vmem>>, vector<4x8x64xf32>
    %344 = vector.shape_cast %343 : vector<4x8x64xf32> to vector<32x64xf32>
    %c13_371 = arith.constant 13 : index
    %c0_372 = arith.constant 0 : index
    %c0_373 = arith.constant 0 : index
    %345 = vector.load %arg8[%c13_371, %c0_372, %c0_373] : memref<16x64x128xf32, #tpu.memory_space<vmem>>, vector<1x64x128xf32>
    %346 = vector.shape_cast %345 : vector<1x64x128xf32> to vector<64x128xf32>
    %cst_374 = arith.constant dense<0.000000e+00> : vector<32x128xf32>
    %347 = tpu.matmul %344, %346, %cst_374 {dimension_numbers = #tpu.dot_dimension_numbers<[1], [0], [0], [1], [0, 0, 1, 1], [], []>} : vector<32x64xf32>, vector<64x128xf32>, vector<32x128xf32> -> vector<32x128xf32>
    %348 = arith.addf %342, %347 : vector<32x128xf32>
    %c3_375 = arith.constant 3 : index
    %c9_376 = arith.constant 9 : index
    %c0_377 = arith.constant 0 : index
    %349 = tpu.strided_load %arg14[%c3_375, %c9_376, %c0_377] {strides = array<i32: 2, 2, 1>} : memref<12x32x64xf32, #tpu.memory_space<vmem>>, vector<4x8x64xf32>
    %350 = vector.shape_cast %349 : vector<4x8x64xf32> to vector<32x64xf32>
    %c14_378 = arith.constant 14 : index
    %c0_379 = arith.constant 0 : index
    %c0_380 = arith.constant 0 : index
    %351 = vector.load %arg8[%c14_378, %c0_379, %c0_380] : memref<16x64x128xf32, #tpu.memory_space<vmem>>, vector<1x64x128xf32>
    %352 = vector.shape_cast %351 : vector<1x64x128xf32> to vector<64x128xf32>
    %cst_381 = arith.constant dense<0.000000e+00> : vector<32x128xf32>
    %353 = tpu.matmul %350, %352, %cst_381 {dimension_numbers = #tpu.dot_dimension_numbers<[1], [0], [0], [1], [0, 0, 1, 1], [], []>} : vector<32x64xf32>, vector<64x128xf32>, vector<32x128xf32> -> vector<32x128xf32>
    %354 = arith.addf %348, %353 : vector<32x128xf32>
    %c3_382 = arith.constant 3 : index
    %c10_383 = arith.constant 10 : index
    %c0_384 = arith.constant 0 : index
    %355 = tpu.strided_load %arg14[%c3_382, %c10_383, %c0_384] {strides = array<i32: 2, 2, 1>} : memref<12x32x64xf32, #tpu.memory_space<vmem>>, vector<4x8x64xf32>
    %356 = vector.shape_cast %355 : vector<4x8x64xf32> to vector<32x64xf32>
    %c15_385 = arith.constant 15 : index
    %c0_386 = arith.constant 0 : index
    %c0_387 = arith.constant 0 : index
    %357 = vector.load %arg8[%c15_385, %c0_386, %c0_387] : memref<16x64x128xf32, #tpu.memory_space<vmem>>, vector<1x64x128xf32>
    %358 = vector.shape_cast %357 : vector<1x64x128xf32> to vector<64x128xf32>
    %cst_388 = arith.constant dense<0.000000e+00> : vector<32x128xf32>
    %359 = tpu.matmul %356, %358, %cst_388 {dimension_numbers = #tpu.dot_dimension_numbers<[1], [0], [0], [1], [0, 0, 1, 1], [], []>} : vector<32x64xf32>, vector<64x128xf32>, vector<32x128xf32> -> vector<32x128xf32>
    %360 = arith.addf %354, %359 : vector<32x128xf32>
    %c0_389 = arith.constant 0 : index
    %c0_390 = arith.constant 0 : index
    %361 = vector.load %arg9[%c0_389, %c0_390] : memref<1x128xf32, #tpu.memory_space<vmem>>, vector<1x128xf32>
    %362 = vector.broadcast %361 : vector<1x128xf32> to vector<32x128xf32>
    %363 = arith.addf %360, %362 : vector<32x128xf32>
    %cst_391 = arith.constant 2.000000e-01 : f32
    %364 = vector.broadcast %cst_391 : f32 to vector<32x128xf32>
    %365 = arith.mulf %364, %363 : vector<32x128xf32>
    %366 = arith.maximumf %363, %365 : vector<32x128xf32>
    %c0_392 = arith.constant 0 : index
    %c0_393 = arith.constant 0 : index
    %367 = vector.load %arg10[%c0_392, %c0_393] : memref<32x128xf32, #tpu.memory_space<vmem>>, vector<32x128xf32>
    %368 = arith.mulf %366, %367 : vector<32x128xf32>
    %369 = vector.shape_cast %368 : vector<32x128xf32> to vector<1x32x128xf32>
    %cst_394 = arith.constant dense<0.000000e+00> : vector<1xf32>
    %370 = vector.multi_reduction <add>, %369, %cst_394 [1, 2] : vector<1x32x128xf32> to vector<1xf32>
    %371 = vector.shape_cast %370 : vector<1xf32> to vector<1x1x1xf32>
    %372 = vector.extract %371[0, 0, 0] : f32 from vector<1x1x1xf32>
    %373 = vector.broadcast %372 : f32 to vector<1x8x128xf32>
    %c0_395 = arith.constant 0 : index
    %c0_396 = arith.constant 0 : index
    %c0_397 = arith.constant 0 : index
    %374 = vector.load %arg11[%c0_395, %c0_396, %c0_397] : memref<1x8x128xf32, #tpu.memory_space<vmem>>, vector<1x8x128xf32>
    tpu.vector_store %arg11[%c0_395, %c0_396, %c0_397], %373 {strides = array<i32>} : memref<1x8x128xf32, #tpu.memory_space<vmem>>, vector<1x8x128xf32>,
    return
  }
  func.func @transform_0(%arg0: i32) -> (i32, i32, i32) {
    %c0_i32 = arith.constant 0 : i32
    %c0_i32_0 = arith.constant 0 : i32
    %c0_i32_1 = arith.constant 0 : i32
    return %arg0, %c0_i32, %c0_i32_0 : i32, i32, i32
  }
  func.func @transform_1(%arg0: i32) -> (i32, i32) {
    %c0_i32 = arith.constant 0 : i32
    %c0_i32_0 = arith.constant 0 : i32
    %c0_i32_1 = arith.constant 0 : i32
    return %c0_i32, %c0_i32_0 : i32, i32
  }
  func.func @transform_2(%arg0: i32) -> (i32, i32) {
    %c0_i32 = arith.constant 0 : i32
    %c0_i32_0 = arith.constant 0 : i32
    %c0_i32_1 = arith.constant 0 : i32
    return %c0_i32, %c0_i32_0 : i32, i32
  }
  func.func @transform_3(%arg0: i32) -> (i32, i32, i32) {
    %c0_i32 = arith.constant 0 : i32
    %c0_i32_0 = arith.constant 0 : i32
    %c0_i32_1 = arith.constant 0 : i32
    %c0_i32_2 = arith.constant 0 : i32
    return %c0_i32, %c0_i32_0, %c0_i32_1 : i32, i32, i32
  }
  func.func @transform_4(%arg0: i32) -> (i32, i32) {
    %c0_i32 = arith.constant 0 : i32
    %c0_i32_0 = arith.constant 0 : i32
    %c0_i32_1 = arith.constant 0 : i32
    return %c0_i32, %c0_i32_0 : i32, i32
  }
  func.func @transform_5(%arg0: i32) -> (i32, i32, i32) {
    %c0_i32 = arith.constant 0 : i32
    %c0_i32_0 = arith.constant 0 : i32
    %c0_i32_1 = arith.constant 0 : i32
    %c0_i32_2 = arith.constant 0 : i32
    return %c0_i32, %c0_i32_0, %c0_i32_1 : i32, i32, i32
  }
  func.func @transform_6(%arg0: i32) -> (i32, i32) {
    %c0_i32 = arith.constant 0 : i32
    %c0_i32_0 = arith.constant 0 : i32
    %c0_i32_1 = arith.constant 0 : i32
    return %c0_i32, %c0_i32_0 : i32, i32
  }
  func.func @transform_7(%arg0: i32) -> (i32, i32, i32) {
    %c0_i32 = arith.constant 0 : i32
    %c0_i32_0 = arith.constant 0 : i32
    %c0_i32_1 = arith.constant 0 : i32
    %c0_i32_2 = arith.constant 0 : i32
    return %c0_i32, %c0_i32_0, %c0_i32_1 : i32, i32, i32
  }
  func.func @transform_8(%arg0: i32) -> (i32, i32) {
    %c0_i32 = arith.constant 0 : i32
    %c0_i32_0 = arith.constant 0 : i32
    %c0_i32_1 = arith.constant 0 : i32
    return %c0_i32, %c0_i32_0 : i32, i32
  }
  func.func @transform_9(%arg0: i32) -> (i32, i32) {
    %c0_i32 = arith.constant 0 : i32
    %c0_i32_0 = arith.constant 0 : i32
    %c0_i32_1 = arith.constant 0 : i32
    return %c0_i32, %c0_i32_0 : i32, i32
  }
  func.func @transform_10(%arg0: i32) -> (i32, i32, i32) {
    %c0_i32 = arith.constant 0 : i32
    %c0_i32_0 = arith.constant 0 : i32
    %c0_i32_1 = arith.constant 0 : i32
    return %arg0, %c0_i32, %c0_i32_0 : i32, i32, i32
  }
}

</mosaic_0001>

<bundles_post_ra>
// kernel: tpu_custom_call.1
= control target key start
LH: loop header
LB: loop body
LE: loop exit
PB: predicated region body
PF: predicated region fallthrough
CT: control target
= control target key end

     0   :  { %s22444_s0 = inlined_call_operand.vmem [shape: f32[2,1024,16], index: 0, kind: input, shape index: {}]   ;;  %s22445_s1 = inlined_call_operand.vmem [shape: f32[16,16], index: 1, kind: input, shape index: {}]   ;;  %s22446_s2 = inlined_call_operand.vmem [shape: f32[1,16], index: 2, kind: input, shape index: {}]   ;;  %s22447_s3 = inlined_call_operand.vmem [shape: f32[16,16,32], index: 3, kind: input, shape index: {}]   ;;  %s22448_s4 = inlined_call_operand.vmem [shape: f32[1,32], index: 4, kind: input, shape index: {}]   ;;  %s22449_s5 = inlined_call_operand.vmem [shape: f32[16,32,64], index: 5, kind: input, shape index: {}]   ;;  %s22450_s6 = inlined_call_operand.vmem [shape: f32[1,64], index: 6, kind: input, shape index: {}]   ;;  %s22451_s7 = inlined_call_operand.vmem [shape: f32[16,64,128], index: 7, kind: input, shape index: {}]   ;;  %s22452_s8 = inlined_call_operand.vmem [shape: f32[1,128], index: 8, kind: input, shape index: {}]   ;;  %s22453_s9 = inlined_call_operand.vmem [shape: f32[32,128], index: 9, kind: input, shape index: {}]   ;;  %s22454_s10 = inlined_call_operand.hbm [shape: f32[2,8,128], index: 10, kind: output, shape index: {}]  }
   0x1   :  { %22455 = sst [smem:[#allocation8_spill]] %s22444_s0 }
   0x2   :  { %15 = vsyncpa [#allocation6], 0 }
   0x3   :  { %17 = vsyncpa [#allocation6 + $0x1], 0  ;;  %s19535_s13 = smov 0   ;;  %s19537_s14 = smov 0  }
   0x4   :  { %s19539_s15 = smov 0   ;;  %s19541_s16 = smov 0  }
   0x5 LB: > { %s19556_s17 = sadd.s32 4294967295, %s19476_s16   ;;  %s14410_s18 = sadd.s32 4294967294, %s19476_s16   ;;  %s19476_s16 = sphi %s19541_s16, %s22462_s16   ;;  %s19472_s15 = sphi %s19539_s15, %s22461_s15   ;;  %s19468_s14 = sphi %s19537_s14, %s22460_s14   ;;  %s19464_s13 = sphi %s19535_s13, %s22459_s13  }
   0x6   : > { %s19560_s19 = sadd.s32 1, %s19476_s16   ;;  %s245_s20 = sadd.s32 1, %s19472_s15 }
   0x7   : > { %s242_s21 = ssub.s32 %s19476_s16, %s19560_s19  ;;  %p255_p0 = scmp.ne.s32.totalorder %s19472_s15, %s19468_s14 }
   0x8   : > { %p243_p1 = scmp.eq.s32.totalorder %s242_s21, 0  ;;  %p256_p2 = scmp.eq.s32.totalorder %s19556_s17, 1 }
   0x9   : > { %p261_p3 = scmp.ne.s32.totalorder %s19468_s14, %s19464_s13  ;;  %p262_p4 = scmp.eq.s32.totalorder %s14410_s18, 1 }
   0xa   : > { %s19571_s22 = scalar_select %p243_p1, %s19472_s15, %s245_s20  }
   0xb   : > { %p19573_p5 = por %p256_p2, %p255_p0  ;;  %p19577_p6 = por %p262_p4, %p261_p3 }
   0xc   : > { %p14413_p7 = scmp.ge.s32.totalorder %s19476_s16, 1  ;;  %p315_p8 = scmp.lt.s32.totalorder %s19476_s16, 3 }
   0xe   : > { %p316_p9 = pnand %p14413_p7, %p315_p8 }
   0xf   : > { %v737_v0 = vld [vmem:[%s22445_s1] sm:$0xff] (!%p316_p9)  ;;  %v738_v1 = vld [vmem:[%s22445_s1 + $0x8] sm:$0xff] (!%p316_p9)  ;;  %p353_p10 = scmp.lt.s32.totalorder (!%p316_p9), %s19556_s17, 1  ;;  %vm358_vm0 = vcmask (!%p316_p9), 130048   ;;  %s22458_s0 = sld [smem:[#allocation8_spill]] (!%p316_p9)  ;;  %v19478_v47 = vmov (!%p316_p9), 0.0  }
  0x10   : > { %319 = sbr.rel (%p316_p9) target bundleno = 2687 (0xa7f), region = 60  ;;  %v19590_v2 = vpack.c.bf16 (!%p316_p9), %v738_v1, %v737_v0  ;;  %367 = vst.msk [vmem:[#allocation2 + $0x40] sm:$0xff] (!%p316_p9), %vm358_vm0, %v19478_v47  ;;  %359 = vst.msk [vmem:[#allocation2] sm:$0xff] (!%p316_p9), %vm358_vm0, %v19478_v47  ;;  %v14615_v57 = vld [vmem:[%s22447_s3 + $0x20] sm:$0xff] (!%p316_p9)  ;;  %v14616_v58 = vld [vmem:[%s22447_s3 + $0x28] sm:$0xff] (!%p316_p9)  ;;  %vm575_vm1 = vcmask (!%p316_p9), 261120  }
  0x11   : > { %360 = vst.msk [vmem:[#allocation2 + $0x8] sm:$0xff] (!%p316_p9), %vm358_vm0, %v19478_v47  ;;  %361 = vst.msk [vmem:[#allocation2 + $0x10] sm:$0xff] (!%p316_p9), %vm358_vm0, %v19478_v47  ;;  %v18271_v59 = vpack.c.bf16 (!%p316_p9), %v14616_v58, %v14615_v57  ;;  %vm656_vm2 = vcmask (!%p316_p9), 523264  }
  0x12   : > { %18248 = vmatprep.subr.bf16.mxu1 (!%p316_p9), %v19590_v2  ;;  %362 = vst.msk [vmem:[#allocation2 + $0x18] sm:$0xff] (!%p316_p9), %vm358_vm0, %v19478_v47  ;;  %363 = vst.msk [vmem:[#allocation2 + $0x20] sm:$0xff] (!%p316_p9), %vm358_vm0, %v19478_v47 }
  0x13   : > { %18250 = vmatpush3.bf16.msra.mxu1 (!%p316_p9), %v19590_v2  ;;  %364 = vst.msk [vmem:[#allocation2 + $0x28] sm:$0xff] (!%p316_p9), %vm358_vm0, %v19478_v47  ;;  %365 = vst.msk [vmem:[#allocation2 + $0x30] sm:$0xff] (!%p316_p9), %vm358_vm0, %v19478_v47  ;;  %18272 = vmatprep.subr.bf16.mxu0 (!%p316_p9), %v18271_v59 }
  0x14   : > { %18252 = vmatprep.subr.bf16.mxu1 (!%p316_p9), %v19590_v2  ;;  %366 = vst.msk [vmem:[#allocation2 + $0x38] sm:$0xff] (!%p316_p9), %vm358_vm0, %v19478_v47  ;;  %368 = vst.msk [vmem:[#allocation2 + $0x48] sm:$0xff] (!%p316_p9), %vm358_vm0, %v19478_v47  ;;  %18274 = vmatpush3.bf16.msra.mxu0 (!%p316_p9), %v18271_v59 }
  0x15   : > { %369 = vst.msk [vmem:[#allocation2 + $0x50] sm:$0xff] (!%p316_p9), %vm358_vm0, %v19478_v47  ;;  %370 = vst.msk [vmem:[#allocation2 + $0x58] sm:$0xff] (!%p316_p9), %vm358_vm0, %v19478_v47 }
  0x16   : > { %371 = vst.msk [vmem:[#allocation2 + $0x60] sm:$0xff] (!%p316_p9), %vm358_vm0, %v19478_v47  ;;  %372 = vst.msk [vmem:[#allocation2 + $0x68] sm:$0xff] (!%p316_p9), %vm358_vm0, %v19478_v47 }
  0x17   : > { %s354_s29 = scalar_select %p353_p10, %s19556_s17, 1  ;;  %373 = vst.msk [vmem:[#allocation2 + $0x70] sm:$0xff] %vm358_vm0, %v19478_v47  ;;  %374 = vst.msk [vmem:[#allocation2 + $0x78] sm:$0xff] %vm358_vm0, %v19478_v47 }
  0x18   : > { %375 = vst.msk [vmem:[#allocation2 + $0x80] sm:$0xff] %vm358_vm0, %v19478_v47  ;;  %376 = vst.msk [vmem:[#allocation2 + $0x88] sm:$0xff] %vm358_vm0, %v19478_v47  ;;  %v3317_v62 = vld [vmem:[#allocation2 + $0x9] ss:$2 sm:$0xff] }
  0x19   : > { %s15470_s30 = sshll.u32 %s354_s29, 10  ;;  %377 = vst.msk [vmem:[#allocation2 + $0x90] sm:$0xff] %vm358_vm0, %v19478_v47  ;;  %378 = vst.msk [vmem:[#allocation2 + $0x98] sm:$0xff] %vm358_vm0, %v19478_v47  ;;  %16851 = vmatprep.mubr.msk.f32.mxu0 %vm358_vm0, %v3317_v62  ;;  %v3319_v0 = vld [vmem:[#allocation2 + $0x19] ss:$2 sm:$0xff]  ;;  %s350_s29 = sand.u32 1, %s19468_s14  }
  0x1a   : > { %s19598_s18 = scalar_lea.vmem %s22458_s0, %s15470_s30  ;;  %379 = vst.msk [vmem:[#allocation2 + $0xa0] sm:$0xff] %vm358_vm0, %v19478_v47  ;;  %380 = vst.msk [vmem:[#allocation2 + $0xa8] sm:$0xff] %vm358_vm0, %v19478_v47  ;;  %16852 = vmatmul.mubr.msk.f32.vlgmr.msra.gmra.mrb[0].mxu0 %vm358_vm0, %v3319_v0  ;;  %s14414_s30 = sshll.u32 %s350_s29, 3 }
  0x1b   : > { %v705_v3 = vld [vmem:[%s19598_s18] sm:$0xff]  ;;  %v706_v4 = vld [vmem:[%s19598_s18 + $0x8] sm:$0xff]  ;;  %v707_v5 = vld [vmem:[%s19598_s18 + $0x10] sm:$0xff]  ;;  %381 = vst.msk [vmem:[#allocation2 + $0xb0] sm:$0xff] %vm358_vm0, %v19478_v47  ;;  %s352_s11 = scalar_lea.vmem [#allocation5], %s14414_s30  ;;  %s13810_s27 = scalar_lea.sflag [#allocation6], %s350_s29 }
  0x1c   : > { %16539 = vmatprep.mubr.msk.f32.mxu1 %vm358_vm0, %v705_v3  ;;  %v708_v6 = vld [vmem:[%s19598_s18 + $0x18] sm:$0xff]  ;;  %v709_v7 = vld [vmem:[%s19598_s18 + $0x20] sm:$0xff]  ;;  %v710_v8 = vld [vmem:[%s19598_s18 + $0x28] sm:$0xff]  ;;  %382 = vst.msk [vmem:[#allocation2 + $0xb8] sm:$0xff] %vm358_vm0, %v19478_v47  ;;  %s13823_s12 = sshll.u32 %s352_s11, 4  ;;  %s22399_s12 = int_to_ptr.vmem [resolvable:$true] %s13823_s12 }
  0x1d   : > { %16540 = vmatmul.mubr.msk.f32.vlgmr.msra.gmra.mrb[0].mxu1 %vm358_vm0, %v706_v4  ;;  %v711_v9 = vld [vmem:[%s19598_s18 + $0x30] sm:$0xff]  ;;  %v712_v10 = vld [vmem:[%s19598_s18 + $0x38] sm:$0xff]  ;;  %v713_v11 = vld [vmem:[%s19598_s18 + $0x40] sm:$0xff]  ;;  %383 = vst.msk [vmem:[#allocation2 + $0xc0] sm:$0xff] %vm358_vm0, %v19478_v47  ;;  %s19414_s28 = scalar_lea.vmem %s22399_s12, 128 }
  0x1e   : > { %18254 = vmatpush3.bf16.msra.mxu1 %v19590_v2  ;;  %16542 = vmatprep.mubr.msk.f32.mxu1 %vm358_vm0, %v707_v5  ;;  %v714_v12 = vld [vmem:[%s19598_s18 + $0x48] sm:$0xff]  ;;  %v715_v13 = vld [vmem:[%s19598_s18 + $0x50] sm:$0xff]  ;;  %v716_v14 = vld [vmem:[%s19598_s18 + $0x58] sm:$0xff]  ;;  %384 = vst.msk [vmem:[#allocation2 + $0xc8] sm:$0xff] %vm358_vm0, %v19478_v47  ;;  %p19415_p11 = scmp.ne.s32.totalorder %s22399_s12, %s19414_s28 }
  0x1f   : > { %18256 = vmatprep.subr.bf16.mxu1 %v19590_v2  ;;  %v717_v15 = vld [vmem:[%s19598_s18 + $0x60] sm:$0xff]  ;;  %v718_v16 = vld [vmem:[%s19598_s18 + $0x68] sm:$0xff]  ;;  %v719_v17 = vld [vmem:[%s19598_s18 + $0x70] sm:$0xff]  ;;  %385 = vst.msk [vmem:[#allocation2 + $0xd0] sm:$0xff] %vm358_vm0, %v19478_v47 }
  0x20   : > { %v720_v18 = vld [vmem:[%s19598_s18 + $0x78] sm:$0xff]  ;;  %v721_v19 = vld [vmem:[%s19598_s18 + $0x80] sm:$0xff]  ;;  %v722_v20 = vld [vmem:[%s19598_s18 + $0x88] sm:$0xff]  ;;  %386 = vst.msk [vmem:[#allocation2 + $0xd8] sm:$0xff] %vm358_vm0, %v19478_v47  ;;  %p19416_p12 = pnand %p19415_p11, %p19573_p5 }
  0x21   : > { %16543 = vmatmul.mubr.msk.f32.gmra.mrb[2].mxu1 %vm358_vm0, %v708_v6  ;;  %v723_v21 = vld [vmem:[%s19598_s18 + $0x90] sm:$0xff]  ;;  %v724_v22 = vld [vmem:[%s19598_s18 + $0x98] sm:$0xff]  ;;  %v725_v23 = vld [vmem:[%s19598_s18 + $0xa0] sm:$0xff]  ;;  %387 = vst.msk [vmem:[#allocation2 + $0xe0] sm:$0xff] %vm358_vm0, %v19478_v47 }
  0x22   : > { %16545 = vmatprep.mubr.msk.f32.mxu1 %vm358_vm0, %v709_v7  ;;  %v726_v24 = vld [vmem:[%s19598_s18 + $0xa8] sm:$0xff]  ;;  %v727_v25 = vld [vmem:[%s19598_s18 + $0xb0] sm:$0xff]  ;;  %v728_v26 = vld [vmem:[%s19598_s18 + $0xb8] sm:$0xff]  ;;  %388 = vst.msk [vmem:[#allocation2 + $0xe8] sm:$0xff] %vm358_vm0, %v19478_v47  ;;  %p19417_p13 = pneg %p19416_p12 }
  0x23   : > { %v729_v27 = vld [vmem:[%s19598_s18 + $0xc0] sm:$0xff]  ;;  %v730_v28 = vld [vmem:[%s19598_s18 + $0xc8] sm:$0xff]  ;;  %v731_v29 = vld [vmem:[%s19598_s18 + $0xd0] sm:$0xff]  ;;  %389 = vst.msk [vmem:[#allocation2 + $0xf0] sm:$0xff] %vm358_vm0, %v19478_v47 }
  0x24   : > { %v732_v30 = vld [vmem:[%s19598_s18 + $0xd8] sm:$0xff]  ;;  %v733_v31 = vld [vmem:[%s19598_s18 + $0xe0] sm:$0xff]  ;;  %v734_v32 = vld [vmem:[%s19598_s18 + $0xe8] sm:$0xff]  ;;  %390 = vst.msk [vmem:[#allocation2 + $0xf8] sm:$0xff] %vm358_vm0, %v19478_v47 }
  0x25   : > { %16546 = vmatmul.mubr.msk.f32.gmra.mrb[4].mxu1 %vm358_vm0, %v710_v8  ;;  %v735_v33 = vld [vmem:[%s19598_s18 + $0xf0] sm:$0xff]  ;;  %v736_v34 = vld [vmem:[%s19598_s18 + $0xf8] sm:$0xff]  ;;  %v1164_v35 = vld [vmem:[%s19598_s18 + $0x100] sm:$0xff]  ;;  %391 = vst.msk [vmem:[#allocation2 + $0x100] sm:$0xff] %vm358_vm0, %v19478_v47 }
  0x26   : > { %16548 = vmatprep.mubr.msk.f32.mxu1 %vm358_vm0, %v711_v9  ;;  %v1165_v36 = vld [vmem:[%s19598_s18 + $0x108] sm:$0xff]  ;;  %v1166_v37 = vld [vmem:[%s19598_s18 + $0x110] sm:$0xff]  ;;  %v1167_v38 = vld [vmem:[%s19598_s18 + $0x118] sm:$0xff]  ;;  %392 = vst.msk [vmem:[#allocation2 + $0x108] sm:$0xff] %vm358_vm0, %v19478_v47 }
  0x27   : > { %v1168_v39 = vld [vmem:[%s19598_s18 + $0x120] sm:$0xff]  ;;  %v1169_v40 = vld [vmem:[%s19598_s18 + $0x128] sm:$0xff]  ;;  %v1170_v41 = vld [vmem:[%s19598_s18 + $0x130] sm:$0xff]  ;;  %393 = vst.msk [vmem:[#allocation2 + $0x110] sm:$0xff] %vm358_vm0, %v19478_v47 }
  0x28   : > { %v1171_v42 = vld [vmem:[%s19598_s18 + $0x138] sm:$0xff]  ;;  %v1172_v43 = vld [vmem:[%s19598_s18 + $0x140] sm:$0xff]  ;;  %v1173_v44 = vld [vmem:[%s19598_s18 + $0x148] sm:$0xff]  ;;  %394 = vst.msk [vmem:[#allocation2 + $0x118] sm:$0xff] %vm358_vm0, %v19478_v47 }
  0x29   : > { %16549 = vmatmul.mubr.msk.f32.gmra.mrb[6].mxu1 %vm358_vm0, %v712_v10  ;;  %v1174_v45 = vld [vmem:[%s19598_s18 + $0x150] sm:$0xff]  ;;  %v19692_v46 = vld [vmem:[%s19598_s18 + $0x158] sm:$0xff]  ;;  %395 = vst.msk [vmem:[#allocation2 + $0x120] sm:$0xff] %vm358_vm0, %v19478_v47  ;;  %396 = vst.msk [vmem:[#allocation2 + $0x128] sm:$0xff] %vm358_vm0, %v19478_v47 }
  0x2a   : > { %16551 = vmatprep.mubr.msk.f32.mxu1 %vm358_vm0, %v713_v11  ;;  %397 = vst.msk [vmem:[#allocation2 + $0x130] sm:$0xff] %vm358_vm0, %v19478_v47  ;;  %398 = vst.msk [vmem:[#allocation2 + $0x138] sm:$0xff] %vm358_vm0, %v19478_v47  ;;  %v1176_v48 = vld [vmem:[%s19598_s18 + $0x160] sm:$0xff]  ;;  %v1177_v49 = vld [vmem:[%s19598_s18 + $0x168] sm:$0xff] }
  0x2b   : > { %399 = vst.msk [vmem:[#allocation2 + $0x140] sm:$0xff] %vm358_vm0, %v19478_v47  ;;  %400 = vst.msk [vmem:[#allocation2 + $0x148] sm:$0xff] %vm358_vm0, %v19478_v47  ;;  %v1178_v50 = vld [vmem:[%s19598_s18 + $0x170] sm:$0xff]  ;;  %v1179_v51 = vld [vmem:[%s19598_s18 + $0x178] sm:$0xff] }
  0x2c   : > { %401 = vst.msk [vmem:[#allocation2 + $0x150] sm:$0xff] %vm358_vm0, %v19478_v47  ;;  %402 = vst.msk [vmem:[#allocation2 + $0x158] sm:$0xff] %vm358_vm0, %v19478_v47  ;;  %v1180_v52 = vld [vmem:[%s19598_s18 + $0x180] sm:$0xff]  ;;  %v1181_v53 = vld [vmem:[%s19598_s18 + $0x188] sm:$0xff] }
  0x2d   : > { %16552 = vmatmul.mubr.msk.f32.gmra.mrb[8].mxu1 %vm358_vm0, %v714_v12  ;;  %403 = vst.msk [vmem:[#allocation2 + $0x160] sm:$0xff] %vm358_vm0, %v19478_v47  ;;  %404 = vst.msk [vmem:[#allocation2 + $0x168] sm:$0xff] %vm358_vm0, %v19478_v47  ;;  %v1182_v54 = vld [vmem:[%s19598_s18 + $0x190] sm:$0xff]  ;;  %v1183_v55 = vld [vmem:[%s19598_s18 + $0x198] sm:$0xff] }
  0x2e   : > { %16554 = vmatprep.mubr.msk.f32.mxu1 %vm358_vm0, %v715_v13  ;;  %405 = vst.msk [vmem:[#allocation2 + $0x170] sm:$0xff] %vm358_vm0, %v19478_v47  ;;  %406 = vst.msk [vmem:[#allocation2 + $0x178] sm:$0xff] %vm358_vm0, %v19478_v47  ;;  %v1184_v56 = vld [vmem:[%s19598_s18 + $0x1a0] sm:$0xff]  ;;  %v1185_v60 = vld [vmem:[%s19598_s18 + $0x1a8] sm:$0xff] }
  0x2f   : > { %407 = vst.msk [vmem:[#allocation2 + $0x180] sm:$0xff] %vm358_vm0, %v19478_v47  ;;  %408 = vst.msk [vmem:[#allocation2 + $0x188] sm:$0xff] %vm358_vm0, %v19478_v47  ;;  %v1186_v61 = vld [vmem:[%s19598_s18 + $0x1b0] sm:$0xff]  ;;  %v1187_v63 = vld [vmem:[%s19598_s18 + $0x1b8] sm:$0xff] }
  0x30   : > { %409 = vst.msk [vmem:[#allocation2 + $0x190] sm:$0xff] %vm358_vm0, %v19478_v47  ;;  %410 = vst.msk [vmem:[#allocation2 + $0x198] sm:$0xff] %vm358_vm0, %v19478_v47  ;;  %v1188_v1 = vld [vmem:[%s19598_s18 + $0x1c0] sm:$0xff]  ;;  %v1189_v3 = vld [vmem:[%s19598_s18 + $0x1c8] sm:$0xff] }
  0x31   : > { %16555 = vmatmul.mubr.msk.f32.gmra.mrb[10].mxu1 %vm358_vm0, %v716_v14  ;;  %411 = vst.msk [vmem:[#allocation2 + $0x1a0] sm:$0xff] %vm358_vm0, %v19478_v47  ;;  %412 = vst.msk [vmem:[#allocation2 + $0x1a8] sm:$0xff] %vm358_vm0, %v19478_v47  ;;  %v1190_v4 = vld [vmem:[%s19598_s18 + $0x1d0] sm:$0xff]  ;;  %v1191_v5 = vld [vmem:[%s19598_s18 + $0x1d8] sm:$0xff] }
  0x32   : > { %16557 = vmatprep.mubr.msk.f32.mxu1 %vm358_vm0, %v717_v15  ;;  %413 = vst.msk [vmem:[#allocation2 + $0x1b0] sm:$0xff] %vm358_vm0, %v19478_v47  ;;  %414 = vst.msk [vmem:[#allocation2 + $0x1b8] sm:$0xff] %vm358_vm0, %v19478_v47  ;;  %v1192_v6 = vld [vmem:[%s19598_s18 + $0x1e0] sm:$0xff]  ;;  %v1193_v7 = vld [vmem:[%s19598_s18 + $0x1e8] sm:$0xff] }
  0x33   : > { %415 = vst.msk [vmem:[#allocation2 + $0x1c0] sm:$0xff] %vm358_vm0, %v19478_v47  ;;  %416 = vst.msk [vmem:[#allocation2 + $0x1c8] sm:$0xff] %vm358_vm0, %v19478_v47  ;;  %v1194_v8 = vld [vmem:[%s19598_s18 + $0x1f0] sm:$0xff]  ;;  %v1195_v9 = vld [vmem:[%s19598_s18 + $0x1f8] sm:$0xff] }
  0x34   : > { %417 = vst.msk [vmem:[#allocation2 + $0x1d0] sm:$0xff] %vm358_vm0, %v19478_v47  ;;  %418 = vst.msk [vmem:[#allocation2 + $0x1d8] sm:$0xff] %vm358_vm0, %v19478_v47  ;;  %v1623_v10 = vld [vmem:[%s19598_s18 + $0x200] sm:$0xff]  ;;  %v14549_v11 = vld [vmem:[%s22447_s3 + $0x10] sm:$0xff] }
  0x35   : > { %16558 = vmatmul.mubr.msk.f32.gmra.mrb[12].mxu1 %vm358_vm0, %v718_v16  ;;  %419 = vst.msk [vmem:[#allocation2 + $0x1e0] sm:$0xff] %vm358_vm0, %v19478_v47  ;;  %420 = vst.msk [vmem:[#allocation2 + $0x1e8] sm:$0xff] %vm358_vm0, %v19478_v47  ;;  %v14550_v12 = vld [vmem:[%s22447_s3 + $0x18] sm:$0xff]  ;;  %v1624_v13 = vld [vmem:[%s19598_s18 + $0x208] sm:$0xff] }
  0x36   : > { %16560 = vmatprep.mubr.msk.f32.mxu1 %vm358_vm0, %v719_v17  ;;  %421 = vst.msk [vmem:[#allocation2 + $0x1f0] sm:$0xff] %vm358_vm0, %v19478_v47  ;;  %422 = vst.msk [vmem:[#allocation2 + $0x1f8] sm:$0xff] %vm358_vm0, %v19478_v47  ;;  %v1625_v14 = vld [vmem:[%s19598_s18 + $0x210] sm:$0xff]  ;;  %v20162_v15 = vpack.c.bf16 %v14550_v12, %v14549_v11  ;;  %v1626_v16 = vld [vmem:[%s19598_s18 + $0x218] sm:$0xff] }
  0x37   : > { %423 = vst.msk [vmem:[#allocation2 + $0x200] sm:$0xff] %vm358_vm0, %v19478_v47  ;;  %424 = vst.msk [vmem:[#allocation2 + $0x208] sm:$0xff] %vm358_vm0, %v19478_v47  ;;  %v1627_v17 = vld [vmem:[%s19598_s18 + $0x220] sm:$0xff]  ;;  %v2093_v57 = vld [vmem:[%s19598_s18 + $0x358] sm:$0xff] }
  0x38   : > { %425 = vst.msk [vmem:[#allocation2 + $0x210] sm:$0xff] %vm358_vm0, %v19478_v47  ;;  %426 = vst.msk [vmem:[#allocation2 + $0x218] sm:$0xff] %vm358_vm0, %v19478_v47  ;;  %v2094_v58 = vld [vmem:[%s19598_s18 + $0x360] sm:$0xff] }
  0x39   : > { %16561 = vmatmul.mubr.msk.f32.gmra.mrb[14].mxu1 %vm358_vm0, %v720_v18  ;;  %427 = vst.msk [vmem:[#allocation2 + $0x220] sm:$0xff] %vm358_vm0, %v19478_v47  ;;  %428 = vst.msk [vmem:[#allocation2 + $0x228] sm:$0xff] %vm358_vm0, %v19478_v47  ;;  %v1628_v18 = vld [vmem:[%s19598_s18 + $0x228] sm:$0xff]  ;;  %v2098_v12 = vld [vmem:[%s19598_s18 + $0x380] sm:$0xff] }
  0x3a   : > { %16563 = vmatprep.mubr.msk.f32.mxu1 %vm358_vm0, %v721_v19  ;;  %429 = vst.msk [vmem:[#allocation2 + $0x230] sm:$0xff] %vm358_vm0, %v19478_v47  ;;  %430 = vst.msk [vmem:[#allocation2 + $0x238] sm:$0xff] %vm358_vm0, %v19478_v47  ;;  %v1629_v19 = vld [vmem:[%s19598_s18 + $0x230] sm:$0xff] }
  0x3b   : > { %431 = vst.msk [vmem:[#allocation2 + $0x240] sm:$0xff] %vm358_vm0, %v19478_v47  ;;  %432 = vst.msk [vmem:[#allocation2 + $0x248] sm:$0xff] %vm358_vm0, %v19478_v47 }
  0x3c   : > { %433 = vst.msk [vmem:[#allocation2 + $0x250] sm:$0xff] %vm358_vm0, %v19478_v47  ;;  %434 = vst.msk [vmem:[#allocation2 + $0x258] sm:$0xff] %vm358_vm0, %v19478_v47 }
  0x3d   : > { %16564 = vmatmul.mubr.msk.f32.gmra.mrb[16].mxu1 %vm358_vm0, %v722_v20  ;;  %435 = vst.msk [vmem:[#allocation2 + $0x260] sm:$0xff] %vm358_vm0, %v19478_v47  ;;  %436 = vst.msk [vmem:[#allocation2 + $0x268] sm:$0xff] %vm358_vm0, %v19478_v47  ;;  %v1631_v20 = vld [vmem:[%s19598_s18 + $0x240] sm:$0xff] }
  0x3e   : > { %16566 = vmatprep.mubr.msk.f32.mxu1 %vm358_vm0, %v723_v21  ;;  %437 = vst.msk [vmem:[#allocation2 + $0x270] sm:$0xff] %vm358_vm0, %v19478_v47  ;;  %438 = vst.msk [vmem:[#allocation2 + $0x278] sm:$0xff] %vm358_vm0, %v19478_v47  ;;  %v1632_v21 = vld [vmem:[%s19598_s18 + $0x248] sm:$0xff] }
  0x3f   : > { %439 = vst.msk [vmem:[#allocation2 + $0x280] sm:$0xff] %vm358_vm0, %v19478_v47  ;;  %440 = vst.msk [vmem:[#allocation2 + $0x288] sm:$0xff] %vm358_vm0, %v19478_v47 }
  0x40   : > { %441 = vst.msk [vmem:[#allocation2 + $0x290] sm:$0xff] %vm358_vm0, %v19478_v47  ;;  %442 = vst.msk [vmem:[#allocation2 + $0x298] sm:$0xff] %vm358_vm0, %v19478_v47 }
  0x41   : > { %16567 = vmatmul.mubr.msk.f32.gmra.mrb[18].mxu1 %vm358_vm0, %v724_v22  ;;  %443 = vst.msk [vmem:[#allocation2 + $0x2a0] sm:$0xff] %vm358_vm0, %v19478_v47  ;;  %444 = vst.msk [vmem:[#allocation2 + $0x2a8] sm:$0xff] %vm358_vm0, %v19478_v47  ;;  %v1633_v22 = vld [vmem:[%s19598_s18 + $0x250] sm:$0xff] }
  0x42   : > { %16569 = vmatprep.mubr.msk.f32.mxu1 %vm358_vm0, %v725_v23  ;;  %445 = vst.msk [vmem:[#allocation2 + $0x2b0] sm:$0xff] %vm358_vm0, %v19478_v47  ;;  %446 = vst.msk [vmem:[#allocation2 + $0x2b8] sm:$0xff] %vm358_vm0, %v19478_v47  ;;  %v1634_v23 = vld [vmem:[%s19598_s18 + $0x258] sm:$0xff] }
  0x43   : > { %447 = vst.msk [vmem:[#allocation2 + $0x2c0] sm:$0xff] %vm358_vm0, %v19478_v47  ;;  %448 = vst.msk [vmem:[#allocation2 + $0x2c8] sm:$0xff] %vm358_vm0, %v19478_v47 }
  0x44   : > { %449 = vst.msk [vmem:[#allocation2 + $0x2d0] sm:$0xff] %vm358_vm0, %v19478_v47  ;;  %450 = vst.msk [vmem:[#allocation2 + $0x2d8] sm:$0xff] %vm358_vm0, %v19478_v47 }
  0x45   : > { %16570 = vmatmul.mubr.msk.f32.gmra.mrb[20].mxu1 %vm358_vm0, %v726_v24  ;;  %451 = vst.msk [vmem:[#allocation2 + $0x2e0] sm:$0xff] %vm358_vm0, %v19478_v47  ;;  %452 = vst.msk [vmem:[#allocation2 + $0x2e8] sm:$0xff] %vm358_vm0, %v19478_v47  ;;  %v1635_v24 = vld [vmem:[%s19598_s18 + $0x260] sm:$0xff] }
  0x46   : > { %16572 = vmatprep.mubr.msk.f32.mxu1 %vm358_vm0, %v727_v25  ;;  %453 = vst.msk [vmem:[#allocation2 + $0x2f0] sm:$0xff] %vm358_vm0, %v19478_v47  ;;  %454 = vst.msk [vmem:[#allocation2 + $0x2f8] sm:$0xff] %vm358_vm0, %v19478_v47  ;;  %v1636_v25 = vld [vmem:[%s19598_s18 + $0x268] sm:$0xff] }
  0x47   : > { %455 = vst.msk [vmem:[#allocation2 + $0x300] sm:$0xff] %vm358_vm0, %v19478_v47  ;;  %456 = vst.msk [vmem:[#allocation2 + $0x308] sm:$0xff] %vm358_vm0, %v19478_v47 }
  0x48   : > { %457 = vst.msk [vmem:[#allocation2 + $0x310] sm:$0xff] %vm358_vm0, %v19478_v47  ;;  %458 = vst.msk [vmem:[#allocation2 + $0x318] sm:$0xff] %vm358_vm0, %v19478_v47 }
  0x49   : > { %16573 = vmatmul.mubr.msk.f32.gmra.mrb[22].mxu1 %vm358_vm0, %v728_v26  ;;  %459 = vst.msk [vmem:[#allocation2 + $0x320] sm:$0xff] %vm358_vm0, %v19478_v47  ;;  %460 = vst.msk [vmem:[#allocation2 + $0x328] sm:$0xff] %vm358_vm0, %v19478_v47  ;;  %v1637_v26 = vld [vmem:[%s19598_s18 + $0x270] sm:$0xff] }
  0x4a   : > { %16575 = vmatprep.mubr.msk.f32.mxu1 %vm358_vm0, %v729_v27  ;;  %461 = vst.msk [vmem:[#allocation2 + $0x330] sm:$0xff] %vm358_vm0, %v19478_v47  ;;  %462 = vst.msk [vmem:[#allocation2 + $0x338] sm:$0xff] %vm358_vm0, %v19478_v47  ;;  %v1638_v27 = vld [vmem:[%s19598_s18 + $0x278] sm:$0xff] }
  0x4b   : > { %463 = vst.msk [vmem:[#allocation2 + $0x340] sm:$0xff] %vm358_vm0, %v19478_v47  ;;  %464 = vst.msk [vmem:[#allocation2 + $0x348] sm:$0xff] %vm358_vm0, %v19478_v47 }
  0x4c   : > { %465 = vst.msk [vmem:[#allocation2 + $0x350] sm:$0xff] %vm358_vm0, %v19478_v47  ;;  %466 = vst.msk [vmem:[#allocation2 + $0x358] sm:$0xff] %vm358_vm0, %v19478_v47 }
  0x4d   : > { %16576 = vmatmul.mubr.msk.f32.gmra.mrb[24].mxu1 %vm358_vm0, %v730_v28  ;;  %467 = vst.msk [vmem:[#allocation2 + $0x360] sm:$0xff] %vm358_vm0, %v19478_v47  ;;  %468 = vst.msk [vmem:[#allocation2 + $0x368] sm:$0xff] %vm358_vm0, %v19478_v47  ;;  %v1639_v28 = vld [vmem:[%s19598_s18 + $0x280] sm:$0xff] }
  0x4e   : > { %16578 = vmatprep.mubr.msk.f32.mxu1 %vm358_vm0, %v731_v29  ;;  %469 = vst.msk [vmem:[#allocation2 + $0x370] sm:$0xff] %vm358_vm0, %v19478_v47  ;;  %470 = vst.msk [vmem:[#allocation2 + $0x378] sm:$0xff] %vm358_vm0, %v19478_v47  ;;  %v1640_v29 = vld [vmem:[%s19598_s18 + $0x288] sm:$0xff] }
  0x4f   : > { %471 = vst.msk [vmem:[#allocation2 + $0x380] sm:$0xff] %vm358_vm0, %v19478_v47  ;;  %472 = vst.msk [vmem:[#allocation2 + $0x388] sm:$0xff] %vm358_vm0, %v19478_v47 }
  0x50   : > { %473 = vst.msk [vmem:[#allocation2 + $0x390] sm:$0xff] %vm358_vm0, %v19478_v47  ;;  %474 = vst.msk [vmem:[#allocation2 + $0x398] sm:$0xff] %vm358_vm0, %v19478_v47 }
  0x51   : > { %16579 = vmatmul.mubr.msk.f32.gmra.mrb[26].mxu1 %vm358_vm0, %v732_v30  ;;  %475 = vst.msk [vmem:[#allocation2 + $0x3a0] sm:$0xff] %vm358_vm0, %v19478_v47  ;;  %476 = vst.msk [vmem:[#allocation2 + $0x3a8] sm:$0xff] %vm358_vm0, %v19478_v47  ;;  %v1641_v30 = vld [vmem:[%s19598_s18 + $0x290] sm:$0xff] }
  0x52   : > { %16581 = vmatprep.mubr.msk.f32.mxu1 %vm358_vm0, %v733_v31  ;;  %477 = vst.msk [vmem:[#allocation2 + $0x3b0] sm:$0xff] %vm358_vm0, %v19478_v47  ;;  %478 = vst.msk [vmem:[#allocation2 + $0x3b8] sm:$0xff] %vm358_vm0, %v19478_v47  ;;  %v1642_v31 = vld [vmem:[%s19598_s18 + $0x298] sm:$0xff] }
  0x53   : > { %479 = vst.msk [vmem:[#allocation2 + $0x3c0] sm:$0xff] %vm358_vm0, %v19478_v47  ;;  %480 = vst.msk [vmem:[#allocation2 + $0x3c8] sm:$0xff] %vm358_vm0, %v19478_v47 }
  0x54   : > { %481 = vst.msk [vmem:[#allocation2 + $0x3d0] sm:$0xff] %vm358_vm0, %v19478_v47  ;;  %482 = vst.msk [vmem:[#allocation2 + $0x3d8] sm:$0xff] %vm358_vm0, %v19478_v47 }
  0x55   : > { %16582 = vmatmul.mubr.msk.f32.gmra.mrb[28].mxu1 %vm358_vm0, %v734_v32  ;;  %483 = vst.msk [vmem:[#allocation2 + $0x3e0] sm:$0xff] %vm358_vm0, %v19478_v47  ;;  %484 = vst.msk [vmem:[#allocation2 + $0x3e8] sm:$0xff] %vm358_vm0, %v19478_v47  ;;  %v1643_v32 = vld [vmem:[%s19598_s18 + $0x2a0] sm:$0xff] }
  0x56   : > { %16584 = vmatprep.mubr.msk.f32.mxu1 %vm358_vm0, %v735_v33  ;;  %485 = vst.msk [vmem:[#allocation2 + $0x3f0] sm:$0xff] %vm358_vm0, %v19478_v47  ;;  %486 = vst.msk [vmem:[#allocation2 + $0x3f8] sm:$0xff] %vm358_vm0, %v19478_v47  ;;  %v1644_v33 = vld [vmem:[%s19598_s18 + $0x2a8] sm:$0xff] }
  0x57   : > { %487 = vst.msk [vmem:[#allocation2 + $0x400] sm:$0xff] %vm358_vm0, %v19478_v47  ;;  %488 = vst.msk [vmem:[#allocation2 + $0x408] sm:$0xff] %vm358_vm0, %v19478_v47 }
  0x58   : > { %489 = vst.msk [vmem:[#allocation2 + $0x410] sm:$0xff] %vm358_vm0, %v19478_v47  ;;  %490 = vst.msk [vmem:[#allocation2 + $0x418] sm:$0xff] %vm358_vm0, %v19478_v47 }
  0x59   : > { %16585 = vmatmul.mubr.msk.f32.gmra.mrb[30].mxu1 %vm358_vm0, %v736_v34  ;;  %491 = vst.msk [vmem:[#allocation2 + $0x420] sm:$0xff] %vm358_vm0, %v19478_v47  ;;  %492 = vst.msk [vmem:[#allocation2 + $0x428] sm:$0xff] %vm358_vm0, %v19478_v47  ;;  %v1645_v34 = vld [vmem:[%s19598_s18 + $0x2b0] sm:$0xff] }
  0x5a   : > { %16591 = vmatprep.mubr.msk.f32.mxu1 %vm358_vm0, %v1164_v35  ;;  %493 = vst.msk [vmem:[#allocation2 + $0x430] sm:$0xff] %vm358_vm0, %v19478_v47  ;;  %494 = vst.msk [vmem:[#allocation2 + $0x438] sm:$0xff] %vm358_vm0, %v19478_v47  ;;  %v1646_v35 = vld [vmem:[%s19598_s18 + $0x2b8] sm:$0xff] }
  0x5b   : > { %495 = vst.msk [vmem:[#allocation2 + $0x440] sm:$0xff] %vm358_vm0, %v19478_v47  ;;  %496 = vst.msk [vmem:[#allocation2 + $0x448] sm:$0xff] %vm358_vm0, %v19478_v47 }
  0x5c   : > { %497 = vst.msk [vmem:[#allocation2 + $0x450] sm:$0xff] %vm358_vm0, %v19478_v47  ;;  %498 = vst.msk [vmem:[#allocation2 + $0x458] sm:$0xff] %vm358_vm0, %v19478_v47 }
  0x5d   : > { %16592 = vmatmul.mubr.msk.f32.vlgmr.msra.gmra.mrb[32].mxu1 %vm358_vm0, %v1165_v36  ;;  %499 = vst.msk [vmem:[#allocation2 + $0x460] sm:$0xff] %vm358_vm0, %v19478_v47  ;;  %500 = vst.msk [vmem:[#allocation2 + $0x468] sm:$0xff] %vm358_vm0, %v19478_v47  ;;  %v1647_v36 = vld [vmem:[%s19598_s18 + $0x2c0] sm:$0xff] }
  0x5e   : > { %18258 = vmatpush3.bf16.msra.mxu1 %v19590_v2  ;;  %16594 = vmatprep.mubr.msk.f32.mxu1 %vm358_vm0, %v1166_v37  ;;  %501 = vst.msk [vmem:[#allocation2 + $0x470] sm:$0xff] %vm358_vm0, %v19478_v47  ;;  %502 = vst.msk [vmem:[#allocation2 + $0x478] sm:$0xff] %vm358_vm0, %v19478_v47  ;;  %v1648_v37 = vld [vmem:[%s19598_s18 + $0x2c8] sm:$0xff] }
  0x5f   : > { %18260 = vmatprep.subr.bf16.mxu1 %v19590_v2  ;;  %503 = vst.msk [vmem:[#allocation2 + $0x480] sm:$0xff] %vm358_vm0, %v19478_v47  ;;  %504 = vst.msk [vmem:[#allocation2 + $0x488] sm:$0xff] %vm358_vm0, %v19478_v47 }
  0x60   : > { %505 = vst.msk [vmem:[#allocation2 + $0x490] sm:$0xff] %vm358_vm0, %v19478_v47  ;;  %506 = vst.msk [vmem:[#allocation2 + $0x498] sm:$0xff] %vm358_vm0, %v19478_v47 }
  0x61   : > { %16595 = vmatmul.mubr.msk.f32.gmra.mrb[34].mxu1 %vm358_vm0, %v1167_v38  ;;  %507 = vst.msk [vmem:[#allocation2 + $0x4a0] sm:$0xff] %vm358_vm0, %v19478_v47  ;;  %508 = vst.msk [vmem:[#allocation2 + $0x4a8] sm:$0xff] %vm358_vm0, %v19478_v47  ;;  %v1649_v38 = vld [vmem:[%s19598_s18 + $0x2d0] sm:$0xff] }
  0x62   : > { %16597 = vmatprep.mubr.msk.f32.mxu1 %vm358_vm0, %v1168_v39  ;;  %509 = vst.msk [vmem:[#allocation2 + $0x4b0] sm:$0xff] %vm358_vm0, %v19478_v47  ;;  %510 = vst.msk [vmem:[#allocation2 + $0x4b8] sm:$0xff] %vm358_vm0, %v19478_v47  ;;  %v1650_v39 = vld [vmem:[%s19598_s18 + $0x2d8] sm:$0xff] }
  0x63   : > { %511 = vst.msk [vmem:[#allocation2 + $0x4c0] sm:$0xff] %vm358_vm0, %v19478_v47  ;;  %512 = vst.msk [vmem:[#allocation2 + $0x4c8] sm:$0xff] %vm358_vm0, %v19478_v47 }
  0x64   : > { %513 = vst.msk [vmem:[#allocation2 + $0x4d0] sm:$0xff] %vm358_vm0, %v19478_v47  ;;  %514 = vst.msk [vmem:[#allocation2 + $0x4d8] sm:$0xff] %vm358_vm0, %v19478_v47 }
  0x65   : > { %16598 = vmatmul.mubr.msk.f32.gmra.mrb[36].mxu1 %vm358_vm0, %v1169_v40  ;;  %515 = vst.msk [vmem:[#allocation2 + $0x4e0] sm:$0xff] %vm358_vm0, %v19478_v47  ;;  %516 = vst.msk [vmem:[#allocation2 + $0x4e8] sm:$0xff] %vm358_vm0, %v19478_v47  ;;  %v1651_v40 = vld [vmem:[%s19598_s18 + $0x2e0] sm:$0xff] }
  0x66   : > { %16600 = vmatprep.mubr.msk.f32.mxu1 %vm358_vm0, %v1170_v41  ;;  %517 = vst.msk [vmem:[#allocation2 + $0x4f0] sm:$0xff] %vm358_vm0, %v19478_v47  ;;  %518 = vst.msk [vmem:[#allocation2 + $0x4f8] sm:$0xff] %vm358_vm0, %v19478_v47  ;;  %v1652_v41 = vld [vmem:[%s19598_s18 + $0x2e8] sm:$0xff] }
  0x67   : > { %519 = vst.msk [vmem:[#allocation2 + $0x500] sm:$0xff] %vm358_vm0, %v19478_v47  ;;  %520 = vst.msk [vmem:[#allocation2 + $0x508] sm:$0xff] %vm358_vm0, %v19478_v47 }
  0x68   : > { %521 = vst.msk [vmem:[#allocation2 + $0x510] sm:$0xff] %vm358_vm0, %v19478_v47  ;;  %522 = vst.msk [vmem:[#allocation2 + $0x518] sm:$0xff] %vm358_vm0, %v19478_v47 }
  0x69   : > { %16601 = vmatmul.mubr.msk.f32.gmra.mrb[38].mxu1 %vm358_vm0, %v1171_v42  ;;  %523 = vst.msk [vmem:[#allocation2 + $0x520] sm:$0xff] %vm358_vm0, %v19478_v47  ;;  %524 = vst.msk [vmem:[#allocation2 + $0x528] sm:$0xff] %vm358_vm0, %v19478_v47  ;;  %v1653_v42 = vld [vmem:[%s19598_s18 + $0x2f0] sm:$0xff] }
  0x6a   : > { %16603 = vmatprep.mubr.msk.f32.mxu1 %vm358_vm0, %v1172_v43  ;;  %525 = vst.msk [vmem:[#allocation2 + $0x530] sm:$0xff] %vm358_vm0, %v19478_v47  ;;  %526 = vst.msk [vmem:[#allocation2 + $0x538] sm:$0xff] %vm358_vm0, %v19478_v47  ;;  %v1654_v43 = vld [vmem:[%s19598_s18 + $0x2f8] sm:$0xff] }
  0x6b   : > { %527 = vst.msk [vmem:[#allocation2 + $0x540] sm:$0xff] %vm358_vm0, %v19478_v47  ;;  %528 = vst.msk [vmem:[#allocation2 + $0x548] sm:$0xff] %vm358_vm0, %v19478_v47 }
  0x6c   : > { %529 = vst.msk [vmem:[#allocation2 + $0x550] sm:$0xff] %vm358_vm0, %v19478_v47  ;;  %530 = vst.msk [vmem:[#allocation2 + $0x558] sm:$0xff] %vm358_vm0, %v19478_v47 }
  0x6d   : > { %16604 = vmatmul.mubr.msk.f32.gmra.mrb[40].mxu1 %vm358_vm0, %v1173_v44  ;;  %531 = vst.msk [vmem:[#allocation2 + $0x560] sm:$0xff] %vm358_vm0, %v19478_v47  ;;  %532 = vst.msk [vmem:[#allocation2 + $0x568] sm:$0xff] %vm358_vm0, %v19478_v47  ;;  %v2082_v44 = vld [vmem:[%s19598_s18 + $0x300] sm:$0xff] }
  0x6e   : > { %16606 = vmatprep.mubr.msk.f32.mxu1 %vm358_vm0, %v1174_v45  ;;  %533 = vst.msk [vmem:[#allocation2 + $0x570] sm:$0xff] %vm358_vm0, %v19478_v47  ;;  %534 = vst.msk [vmem:[#allocation2 + $0x578] sm:$0xff] %vm358_vm0, %v19478_v47  ;;  %v2083_v45 = vld [vmem:[%s19598_s18 + $0x308] sm:$0xff] }
  0x6f   : > { %535 = vst.msk [vmem:[#allocation2 + $0x580] sm:$0xff] %vm358_vm0, %v19478_v47  ;;  %536 = vst.msk [vmem:[#allocation2 + $0x588] sm:$0xff] %vm358_vm0, %v19478_v47 }
  0x70   : > { %537 = vst.msk [vmem:[#allocation2 + $0x590] sm:$0xff] %vm358_vm0, %v19478_v47  ;;  %538 = vst.msk [vmem:[#allocation2 + $0x598] sm:$0xff] %vm358_vm0, %v19478_v47 }
  0x71   : > { %539 = vst.msk [vmem:[#allocation2 + $0x5a0] sm:$0xff] %vm358_vm0, %v19478_v47  ;;  %540 = vst.msk [vmem:[#allocation2 + $0x5a8] sm:$0xff] %vm358_vm0, %v19478_v47  ;;  %16607 = vmatmul.mubr.msk.f32.gmra.mrb[42].mxu1 %vm358_vm0, %v19692_v46  ;;  %v2084_v46 = vld [vmem:[%s19598_s18 + $0x310] sm:$0xff] }
  0x72   : > { %541 = vst.msk [vmem:[#allocation2 + $0x5b0] sm:$0xff] %vm358_vm0, %v19478_v47  ;;  %542 = vst.msk [vmem:[#allocation2 + $0x5b8] sm:$0xff] %vm358_vm0, %v19478_v47  ;;  %16609 = vmatprep.mubr.msk.f32.mxu1 %vm358_vm0, %v1176_v48  ;;  %v2085_v48 = vld [vmem:[%s19598_s18 + $0x318] sm:$0xff] }
  0x73   : > { %543 = vst.msk [vmem:[#allocation2 + $0x5c0] sm:$0xff] %vm358_vm0, %v19478_v47  ;;  %544 = vst.msk [vmem:[#allocation2 + $0x5c8] sm:$0xff] %vm358_vm0, %v19478_v47 }
  0x74   : > { %545 = vst.msk [vmem:[#allocation2 + $0x5d0] sm:$0xff] %vm358_vm0, %v19478_v47  ;;  %546 = vst.msk [vmem:[#allocation2 + $0x5d8] sm:$0xff] %vm358_vm0, %v19478_v47 }
  0x75   : > { %547 = vst.msk [vmem:[#allocation2 + $0x5e0] sm:$0xff] %vm358_vm0, %v19478_v47  ;;  %548 = vst.msk [vmem:[#allocation2 + $0x5e8] sm:$0xff] %vm358_vm0, %v19478_v47  ;;  %16610 = vmatmul.mubr.msk.f32.gmra.mrb[44].mxu1 %vm358_vm0, %v1177_v49  ;;  %v2086_v49 = vld [vmem:[%s19598_s18 + $0x320] sm:$0xff] }
  0x76   : > { %549 = vst.msk [vmem:[#allocation2 + $0x5f0] sm:$0xff] %vm358_vm0, %v19478_v47  ;;  %550 = vst.msk [vmem:[#allocation2 + $0x5f8] sm:$0xff] %vm358_vm0, %v19478_v47  ;;  %16612 = vmatprep.mubr.msk.f32.mxu1 %vm358_vm0, %v1178_v50  ;;  %v2087_v50 = vld [vmem:[%s19598_s18 + $0x328] sm:$0xff] }
  0x77   : > { %551 = vst.msk [vmem:[#allocation2 + $0x600] sm:$0xff] %vm358_vm0, %v19478_v47  ;;  %552 = vst.msk [vmem:[#allocation2 + $0x608] sm:$0xff] %vm358_vm0, %v19478_v47 }
  0x78   : > { %553 = vst.msk [vmem:[#allocation2 + $0x610] sm:$0xff] %vm358_vm0, %v19478_v47  ;;  %554 = vst.msk [vmem:[#allocation2 + $0x618] sm:$0xff] %vm358_vm0, %v19478_v47 }
  0x79   : > { %555 = vst.msk [vmem:[#allocation2 + $0x620] sm:$0xff] %vm358_vm0, %v19478_v47  ;;  %556 = vst.msk [vmem:[#allocation2 + $0x628] sm:$0xff] %vm358_vm0, %v19478_v47  ;;  %16613 = vmatmul.mubr.msk.f32.gmra.mrb[46].mxu1 %vm358_vm0, %v1179_v51  ;;  %v2088_v51 = vld [vmem:[%s19598_s18 + $0x330] sm:$0xff] }
  0x7a   : > { %557 = vst.msk [vmem:[#allocation2 + $0x630] sm:$0xff] %vm358_vm0, %v19478_v47  ;;  %558 = vst.msk [vmem:[#allocation2 + $0x638] sm:$0xff] %vm358_vm0, %v19478_v47  ;;  %16615 = vmatprep.mubr.msk.f32.mxu1 %vm358_vm0, %v1180_v52  ;;  %v2089_v52 = vld [vmem:[%s19598_s18 + $0x338] sm:$0xff] }
  0x7b   : > { %559 = vst.msk [vmem:[#allocation2 + $0x640] sm:$0xff] %vm358_vm0, %v19478_v47  ;;  %560 = vst.msk [vmem:[#allocation2 + $0x648] sm:$0xff] %vm358_vm0, %v19478_v47 }
  0x7c   : > { %561 = vst.msk [vmem:[#allocation2 + $0x650] sm:$0xff] %vm358_vm0, %v19478_v47  ;;  %562 = vst.msk [vmem:[#allocation2 + $0x658] sm:$0xff] %vm358_vm0, %v19478_v47 }
  0x7d   : > { %16616 = vmatmul.mubr.msk.f32.gmra.mrb[48].mxu1 %vm358_vm0, %v1181_v53  ;;  %v2090_v53 = vld [vmem:[%s19598_s18 + $0x340] sm:$0xff]  ;;  %582 = vst.msk [vmem:[#allocation3 + $0x30] sm:$0xff] %vm575_vm1, %v19478_v47  ;;  %576 = vst.msk [vmem:[#allocation3] sm:$0xff] %vm575_vm1, %v19478_v47 }
  0x7e   : > { %16618 = vmatprep.mubr.msk.f32.mxu1 %vm358_vm0, %v1182_v54  ;;  %v2091_v54 = vld [vmem:[%s19598_s18 + $0x348] sm:$0xff]  ;;  %577 = vst.msk [vmem:[#allocation3 + $0x8] sm:$0xff] %vm575_vm1, %v19478_v47  ;;  %578 = vst.msk [vmem:[#allocation3 + $0x10] sm:$0xff] %vm575_vm1, %v19478_v47 }
  0x7f   : > { %579 = vst.msk [vmem:[#allocation3 + $0x18] sm:$0xff] %vm575_vm1, %v19478_v47  ;;  %580 = vst.msk [vmem:[#allocation3 + $0x20] sm:$0xff] %vm575_vm1, %v19478_v47 }
  0x80   : > { %581 = vst.msk [vmem:[#allocation3 + $0x28] sm:$0xff] %vm575_vm1, %v19478_v47  ;;  %583 = vst.msk [vmem:[#allocation3 + $0x38] sm:$0xff] %vm575_vm1, %v19478_v47 }
  0x81   : > { %16619 = vmatmul.mubr.msk.f32.gmra.mrb[50].mxu1 %vm358_vm0, %v1183_v55  ;;  %v2092_v55 = vld [vmem:[%s19598_s18 + $0x350] sm:$0xff]  ;;  %584 = vst.msk [vmem:[#allocation3 + $0x40] sm:$0xff] %vm575_vm1, %v19478_v47  ;;  %585 = vst.msk [vmem:[#allocation3 + $0x48] sm:$0xff] %vm575_vm1, %v19478_v47 }
  0x82   : > { %16621 = vmatprep.mubr.msk.f32.mxu1 %vm358_vm0, %v1184_v56  ;;  %v20251_v56 = vld [vmem:[%s22446_s2] ss:$0 sm:$0xff]  ;;  %586 = vst.msk [vmem:[#allocation3 + $0x50] sm:$0xff] %vm575_vm1, %v19478_v47  ;;  %587 = vst.msk [vmem:[#allocation3 + $0x58] sm:$0xff] %vm575_vm1, %v19478_v47 }
  0x83   : > { %588 = vst.msk [vmem:[#allocation3 + $0x60] sm:$0xff] %vm575_vm1, %v19478_v47  ;;  %589 = vst.msk [vmem:[#allocation3 + $0x68] sm:$0xff] %vm575_vm1, %v19478_v47 }
  0x84   : > { %590 = vst.msk [vmem:[#allocation3 + $0x70] sm:$0xff] %vm575_vm1, %v19478_v47  ;;  %591 = vst.msk [vmem:[#allocation3 + $0x78] sm:$0xff] %vm575_vm1, %v19478_v47 }
  0x85   : > { %16622 = vmatmul.mubr.msk.f32.gmra.mrb[52].mxu1 %vm358_vm0, %v1185_v60  ;;  %592 = vst.msk [vmem:[#allocation3 + $0x80] sm:$0xff] %vm575_vm1, %v19478_v47  ;;  %593 = vst.msk [vmem:[#allocation3 + $0x88] sm:$0xff] %vm575_vm1, %v19478_v47 }
  0x86   : > { %16624 = vmatprep.mubr.msk.f32.mxu1 %vm358_vm0, %v1186_v61  ;;  %594 = vst.msk [vmem:[#allocation3 + $0x90] sm:$0xff] %vm575_vm1, %v19478_v47  ;;  %595 = vst.msk [vmem:[#allocation3 + $0x98] sm:$0xff] %vm575_vm1, %v19478_v47 }
  0x87   : > { %596 = vst.msk [vmem:[#allocation3 + $0xa0] sm:$0xff] %vm575_vm1, %v19478_v47  ;;  %597 = vst.msk [vmem:[#allocation3 + $0xa8] sm:$0xff] %vm575_vm1, %v19478_v47 }
  0x88   : > { %598 = vst.msk [vmem:[#allocation3 + $0xb0] sm:$0xff] %vm575_vm1, %v19478_v47  ;;  %599 = vst.msk [vmem:[#allocation3 + $0xb8] sm:$0xff] %vm575_vm1, %v19478_v47 }
  0x89   : > { %16625 = vmatmul.mubr.msk.f32.gmra.mrb[54].mxu1 %vm358_vm0, %v1187_v63  ;;  %v2095_v63 = vld [vmem:[%s19598_s18 + $0x368] sm:$0xff]  ;;  %600 = vst.msk [vmem:[#allocation3 + $0xc0] sm:$0xff] %vm575_vm1, %v19478_v47  ;;  %601 = vst.msk [vmem:[#allocation3 + $0xc8] sm:$0xff] %vm575_vm1, %v19478_v47 }
  0x8a   : > { %16627 = vmatprep.mubr.msk.f32.mxu1 %vm358_vm0, %v1188_v1  ;;  %v2096_v1 = vld [vmem:[%s19598_s18 + $0x370] sm:$0xff]  ;;  %602 = vst.msk [vmem:[#allocation3 + $0xd0] sm:$0xff] %vm575_vm1, %v19478_v47  ;;  %603 = vst.msk [vmem:[#allocation3 + $0xd8] sm:$0xff] %vm575_vm1, %v19478_v47 }
  0x8b   : > { %604 = vst.msk [vmem:[#allocation3 + $0xe0] sm:$0xff] %vm575_vm1, %v19478_v47  ;;  %605 = vst.msk [vmem:[#allocation3 + $0xe8] sm:$0xff] %vm575_vm1, %v19478_v47 }
  0x8c   : > { %606 = vst.msk [vmem:[#allocation3 + $0xf0] sm:$0xff] %vm575_vm1, %v19478_v47  ;;  %607 = vst.msk [vmem:[#allocation3 + $0xf8] sm:$0xff] %vm575_vm1, %v19478_v47 }
  0x8d   : > { %16628 = vmatmul.mubr.msk.f32.gmra.mrb[56].mxu1 %vm358_vm0, %v1189_v3  ;;  %608 = vst.msk [vmem:[#allocation3 + $0x100] sm:$0xff] %vm575_vm1, %v19478_v47  ;;  %609 = vst.msk [vmem:[#allocation3 + $0x108] sm:$0xff] %vm575_vm1, %v19478_v47 }
  0x8e   : > { %16630 = vmatprep.mubr.msk.f32.mxu1 %vm358_vm0, %v1190_v4  ;;  %610 = vst.msk [vmem:[#allocation3 + $0x110] sm:$0xff] %vm575_vm1, %v19478_v47  ;;  %611 = vst.msk [vmem:[#allocation3 + $0x118] sm:$0xff] %vm575_vm1, %v19478_v47 }
  0x8f   : > { %612 = vst.msk [vmem:[#allocation3 + $0x120] sm:$0xff] %vm575_vm1, %v19478_v47  ;;  %613 = vst.msk [vmem:[#allocation3 + $0x128] sm:$0xff] %vm575_vm1, %v19478_v47 }
  0x90   : > { %614 = vst.msk [vmem:[#allocation3 + $0x130] sm:$0xff] %vm575_vm1, %v19478_v47  ;;  %615 = vst.msk [vmem:[#allocation3 + $0x138] sm:$0xff] %vm575_vm1, %v19478_v47 }
  0x91   : > { %16631 = vmatmul.mubr.msk.f32.gmra.mrb[58].mxu1 %vm358_vm0, %v1191_v5  ;;  %616 = vst.msk [vmem:[#allocation3 + $0x140] sm:$0xff] %vm575_vm1, %v19478_v47  ;;  %617 = vst.msk [vmem:[#allocation3 + $0x148] sm:$0xff] %vm575_vm1, %v19478_v47 }
  0x92   : > { %16633 = vmatprep.mubr.msk.f32.mxu1 %vm358_vm0, %v1192_v6  ;;  %618 = vst.msk [vmem:[#allocation3 + $0x150] sm:$0xff] %vm575_vm1, %v19478_v47  ;;  %619 = vst.msk [vmem:[#allocation3 + $0x158] sm:$0xff] %vm575_vm1, %v19478_v47 }
  0x93   : > { %620 = vst.msk [vmem:[#allocation3 + $0x160] sm:$0xff] %vm575_vm1, %v19478_v47  ;;  %621 = vst.msk [vmem:[#allocation3 + $0x168] sm:$0xff] %vm575_vm1, %v19478_v47 }
  0x94   : > { %622 = vst.msk [vmem:[#allocation3 + $0x170] sm:$0xff] %vm575_vm1, %v19478_v47  ;;  %623 = vst.msk [vmem:[#allocation3 + $0x178] sm:$0xff] %vm575_vm1, %v19478_v47 }
  0x95   : > { %16634 = vmatmul.mubr.msk.f32.gmra.mrb[60].mxu1 %vm358_vm0, %v1193_v7  ;;  %624 = vst.msk [vmem:[#allocation3 + $0x180] sm:$0xff] %vm575_vm1, %v19478_v47  ;;  %625 = vst.msk [vmem:[#allocation3 + $0x188] sm:$0xff] %vm575_vm1, %v19478_v47 }
  0x96   : > { %16636 = vmatprep.mubr.msk.f32.mxu1 %vm358_vm0, %v1194_v8  ;;  %626 = vst.msk [vmem:[#allocation3 + $0x190] sm:$0xff] %vm575_vm1, %v19478_v47  ;;  %627 = vst.msk [vmem:[#allocation3 + $0x198] sm:$0xff] %vm575_vm1, %v19478_v47 }
  0x97   : > { %628 = vst.msk [vmem:[#allocation3 + $0x1a0] sm:$0xff] %vm575_vm1, %v19478_v47  ;;  %629 = vst.msk [vmem:[#allocation3 + $0x1a8] sm:$0xff] %vm575_vm1, %v19478_v47 }
  0x98   : > { %630 = vst.msk [vmem:[#allocation3 + $0x1b0] sm:$0xff] %vm575_vm1, %v19478_v47  ;;  %631 = vst.msk [vmem:[#allocation3 + $0x1b8] sm:$0xff] %vm575_vm1, %v19478_v47 }
  0x99   : > { %16637 = vmatmul.mubr.msk.f32.gmra.mrb[62].mxu1 %vm358_vm0, %v1195_v9  ;;  %632 = vst.msk [vmem:[#allocation3 + $0x1c0] sm:$0xff] %vm575_vm1, %v19478_v47  ;;  %633 = vst.msk [vmem:[#allocation3 + $0x1c8] sm:$0xff] %vm575_vm1, %v19478_v47 }
  0x9a   : > { %16643 = vmatprep.mubr.msk.f32.mxu1 %vm358_vm0, %v1623_v10  ;;  %v2097_v10 = vld [vmem:[%s19598_s18 + $0x378] sm:$0xff]  ;;  %634 = vst.msk [vmem:[#allocation3 + $0x1d0] sm:$0xff] %vm575_vm1, %v19478_v47  ;;  %635 = vst.msk [vmem:[#allocation3 + $0x1d8] sm:$0xff] %vm575_vm1, %v19478_v47 }
  0x9b   : > { %636 = vst.msk [vmem:[#allocation3 + $0x1e0] sm:$0xff] %vm575_vm1, %v19478_v47  ;;  %637 = vst.msk [vmem:[#allocation3 + $0x1e8] sm:$0xff] %vm575_vm1, %v19478_v47 }
  0x9c   : > { %638 = vst.msk [vmem:[#allocation3 + $0x1f0] sm:$0xff] %vm575_vm1, %v19478_v47  ;;  %639 = vst.msk [vmem:[#allocation3 + $0x1f8] sm:$0xff] %vm575_vm1, %v19478_v47 }
  0x9d   : > { %16644 = vmatmul.mubr.msk.f32.vlgmr.msra.gmra.mrb[64].mxu1 %vm358_vm0, %v1624_v13  ;;  %640 = vst.msk [vmem:[#allocation3 + $0x200] sm:$0xff] %vm575_vm1, %v19478_v47  ;;  %641 = vst.msk [vmem:[#allocation3 + $0x208] sm:$0xff] %vm575_vm1, %v19478_v47 }
  0x9e   : > { %18262 = vmatpush3.bf16.msra.mxu1 %v19590_v2  ;;  %16646 = vmatprep.mubr.msk.f32.mxu1 %vm358_vm0, %v1625_v14  ;;  %v1630_v2 = vld [vmem:[%s19598_s18 + $0x238] sm:$0xff]  ;;  %642 = vst.msk [vmem:[#allocation3 + $0x210] sm:$0xff] %vm575_vm1, %v19478_v47  ;;  %643 = vst.msk [vmem:[#allocation3 + $0x218] sm:$0xff] %vm575_vm1, %v19478_v47 }
  0x9f   : > { %18264 = vmatprep.subr.bf16.mxu1 %v20162_v15  ;;  %644 = vst.msk [vmem:[#allocation3 + $0x220] sm:$0xff] %vm575_vm1, %v19478_v47  ;;  %645 = vst.msk [vmem:[#allocation3 + $0x228] sm:$0xff] %vm575_vm1, %v19478_v47 }
  0xa0   : > { %646 = vst.msk [vmem:[#allocation3 + $0x230] sm:$0xff] %vm575_vm1, %v19478_v47  ;;  %647 = vst.msk [vmem:[#allocation3 + $0x238] sm:$0xff] %vm575_vm1, %v19478_v47 }
  0xa1   : > { %16647 = vmatmul.mubr.msk.f32.gmra.mrb[66].mxu1 %vm358_vm0, %v1626_v16  ;;  %666 = vst.msk [vmem:[#allocation4 + $0x48] sm:$0xff] %vm656_vm2, %v19478_v47  ;;  %657 = vst.msk [vmem:[#allocation4] sm:$0xff] %vm656_vm2, %v19478_v47 }
  0xa2   : > { %16649 = vmatprep.mubr.msk.f32.mxu1 %vm358_vm0, %v1627_v17  ;;  %658 = vst.msk [vmem:[#allocation4 + $0x8] sm:$0xff] %vm656_vm2, %v19478_v47  ;;  %659 = vst.msk [vmem:[#allocation4 + $0x10] sm:$0xff] %vm656_vm2, %v19478_v47 }
  0xa3   : > { %660 = vst.msk [vmem:[#allocation4 + $0x18] sm:$0xff] %vm656_vm2, %v19478_v47  ;;  %661 = vst.msk [vmem:[#allocation4 + $0x20] sm:$0xff] %vm656_vm2, %v19478_v47 }
  0xa4   : > { %662 = vst.msk [vmem:[#allocation4 + $0x28] sm:$0xff] %vm656_vm2, %v19478_v47  ;;  %663 = vst.msk [vmem:[#allocation4 + $0x30] sm:$0xff] %vm656_vm2, %v19478_v47 }
  0xa5   : > { %16650 = vmatmul.mubr.msk.f32.gmra.mrb[68].mxu1 %vm358_vm0, %v1628_v18  ;;  %664 = vst.msk [vmem:[#allocation4 + $0x38] sm:$0xff] %vm656_vm2, %v19478_v47  ;;  %665 = vst.msk [vmem:[#allocation4 + $0x40] sm:$0xff] %vm656_vm2, %v19478_v47 }
  0xa6   : > { %16652 = vmatprep.mubr.msk.f32.mxu1 %vm358_vm0, %v1629_v19  ;;  %667 = vst.msk [vmem:[#allocation4 + $0x50] sm:$0xff] %vm656_vm2, %v19478_v47  ;;  %668 = vst.msk [vmem:[#allocation4 + $0x58] sm:$0xff] %vm656_vm2, %v19478_v47 }
  0xa7   : > { %669 = vst.msk [vmem:[#allocation4 + $0x60] sm:$0xff] %vm656_vm2, %v19478_v47  ;;  %670 = vst.msk [vmem:[#allocation4 + $0x68] sm:$0xff] %vm656_vm2, %v19478_v47 }
  0xa8   : > { %671 = vst.msk [vmem:[#allocation4 + $0x70] sm:$0xff] %vm656_vm2, %v19478_v47  ;;  %672 = vst.msk [vmem:[#allocation4 + $0x78] sm:$0xff] %vm656_vm2, %v19478_v47 }
  0xa9   : > { %16653 = vmatmul.mubr.msk.f32.gmra.mrb[70].mxu1 %vm358_vm0, %v1630_v2  ;;  %v2099_v2 = vld [vmem:[%s19598_s18 + $0x388] sm:$0xff]  ;;  %673 = vst.msk [vmem:[#allocation4 + $0x80] sm:$0xff] %vm656_vm2, %v19478_v47  ;;  %674 = vst.msk [vmem:[#allocation4 + $0x88] sm:$0xff] %vm656_vm2, %v19478_v47 }
  0xaa   : > { %16655 = vmatprep.mubr.msk.f32.mxu1 %vm358_vm0, %v1631_v20  ;;  %675 = vst.msk [vmem:[#allocation4 + $0x90] sm:$0xff] %vm656_vm2, %v19478_v47  ;;  %676 = vst.msk [vmem:[#allocation4 + $0x98] sm:$0xff] %vm656_vm2, %v19478_v47 }
  0xab   : > { %677 = vst.msk [vmem:[#allocation4 + $0xa0] sm:$0xff] %vm656_vm2, %v19478_v47  ;;  %678 = vst.msk [vmem:[#allocation4 + $0xa8] sm:$0xff] %vm656_vm2, %v19478_v47 }
  0xac   : > { %679 = vst.msk [vmem:[#allocation4 + $0xb0] sm:$0xff] %vm656_vm2, %v19478_v47  ;;  %680 = vst.msk [vmem:[#allocation4 + $0xb8] sm:$0xff] %vm656_vm2, %v19478_v47 }
  0xad   : > { %16656 = vmatmul.mubr.msk.f32.gmra.mrb[72].mxu1 %vm358_vm0, %v1632_v21  ;;  %v2100_v21 = vld [vmem:[%s19598_s18 + $0x390] sm:$0xff]  ;;  %681 = vst.msk [vmem:[#allocation4 + $0xc0] sm:$0xff] %vm656_vm2, %v19478_v47  ;;  %682 = vst.msk [vmem:[#allocation4 + $0xc8] sm:$0xff] %vm656_vm2, %v19478_v47 }
  0xae   : > { %16658 = vmatprep.mubr.msk.f32.mxu1 %vm358_vm0, %v1633_v22  ;;  %683 = vst.msk [vmem:[#allocation4 + $0xd0] sm:$0xff] %vm656_vm2, %v19478_v47  ;;  %684 = vst.msk [vmem:[#allocation4 + $0xd8] sm:$0xff] %vm656_vm2, %v19478_v47 }
  0xaf   : > { %685 = vst.msk [vmem:[#allocation4 + $0xe0] sm:$0xff] %vm656_vm2, %v19478_v47  ;;  %686 = vst.msk [vmem:[#allocation4 + $0xe8] sm:$0xff] %vm656_vm2, %v19478_v47 }
  0xb0   : > { %687 = vst.msk [vmem:[#allocation4 + $0xf0] sm:$0xff] %vm656_vm2, %v19478_v47  ;;  %688 = vst.msk [vmem:[#allocation4 + $0xf8] sm:$0xff] %vm656_vm2, %v19478_v47 }
  0xb1   : > { %16659 = vmatmul.mubr.msk.f32.gmra.mrb[74].mxu1 %vm358_vm0, %v1634_v23  ;;  %689 = vst.msk [vmem:[#allocation4 + $0x100] sm:$0xff] %vm656_vm2, %v19478_v47  ;;  %690 = vst.msk [vmem:[#allocation4 + $0x108] sm:$0xff] %vm656_vm2, %v19478_v47 }
  0xb2   : > { %16661 = vmatprep.mubr.msk.f32.mxu1 %vm358_vm0, %v1635_v24  ;;  %691 = vst.msk [vmem:[#allocation4 + $0x110] sm:$0xff] %vm656_vm2, %v19478_v47  ;;  %692 = vst.msk [vmem:[#allocation4 + $0x118] sm:$0xff] %vm656_vm2, %v19478_v47 }
  0xb3   : > { %693 = vst.msk [vmem:[#allocation4 + $0x120] sm:$0xff] %vm656_vm2, %v19478_v47  ;;  %694 = vst.msk [vmem:[#allocation4 + $0x128] sm:$0xff] %vm656_vm2, %v19478_v47 }
  0xb4   : > { %695 = vst.msk [vmem:[#allocation4 + $0x130] sm:$0xff] %vm656_vm2, %v19478_v47  ;;  %696 = vst.msk [vmem:[#allocation4 + $0x138] sm:$0xff] %vm656_vm2, %v19478_v47 }
  0xb5   : > { %16662 = vmatmul.mubr.msk.f32.gmra.mrb[76].mxu1 %vm358_vm0, %v1636_v25 }
  0xb6   : > { %16664 = vmatprep.mubr.msk.f32.mxu1 %vm358_vm0, %v1637_v26 }
  0xb9   : > { %16665 = vmatmul.mubr.msk.f32.gmra.mrb[78].mxu1 %vm358_vm0, %v1638_v27 }
  0xba   : > { %16667 = vmatprep.mubr.msk.f32.mxu1 %vm358_vm0, %v1639_v28 }
  0xbd   : > { %16668 = vmatmul.mubr.msk.f32.gmra.mrb[80].mxu1 %vm358_vm0, %v1640_v29  ;;  %v2101_v29 = vld [vmem:[%s19598_s18 + $0x398] sm:$0xff] }
  0xbe   : > { %16670 = vmatprep.mubr.msk.f32.mxu1 %vm358_vm0, %v1641_v30 }
  0xc1   : > { %16671 = vmatmul.mubr.msk.f32.gmra.mrb[82].mxu1 %vm358_vm0, %v1642_v31  ;;  %v2102_v31 = vld [vmem:[%s19598_s18 + $0x3a0] sm:$0xff] }
  0xc2   : > { %16673 = vmatprep.mubr.msk.f32.mxu1 %vm358_vm0, %v1643_v32 }
  0xc5   : > { %16674 = vmatmul.mubr.msk.f32.gmra.mrb[84].mxu1 %vm358_vm0, %v1644_v33 }
  0xc6   : > { %16676 = vmatprep.mubr.msk.f32.mxu1 %vm358_vm0, %v1645_v34 }
  0xc9   : > { %16677 = vmatmul.mubr.msk.f32.gmra.mrb[86].mxu1 %vm358_vm0, %v1646_v35 }
  0xca   : > { %16679 = vmatprep.mubr.msk.f32.mxu1 %vm358_vm0, %v1647_v36 }
  0xcd   : > { %16680 = vmatmul.mubr.msk.f32.gmra.mrb[88].mxu1 %vm358_vm0, %v1648_v37 }
  0xce   : > { %16682 = vmatprep.mubr.msk.f32.mxu1 %vm358_vm0, %v1649_v38 }
  0xd1   : > { %16683 = vmatmul.mubr.msk.f32.gmra.mrb[90].mxu1 %vm358_vm0, %v1650_v39  ;;  %v2103_v39 = vld [vmem:[%s19598_s18 + $0x3a8] sm:$0xff] }
  0xd2   : > { %16685 = vmatprep.mubr.msk.f32.mxu1 %vm358_vm0, %v1651_v40 }
  0xd5   : > { %16686 = vmatmul.mubr.msk.f32.gmra.mrb[92].mxu1 %vm358_vm0, %v1652_v41  ;;  %v2104_v41 = vld [vmem:[%s19598_s18 + $0x3b0] sm:$0xff] }
  0xd6   : > { %16688 = vmatprep.mubr.msk.f32.mxu1 %vm358_vm0, %v1653_v42 }
  0xd9   : > { %16689 = vmatmul.mubr.msk.f32.gmra.mrb[94].mxu1 %vm358_vm0, %v1654_v43 }
  0xda   : > { %16695 = vmatprep.mubr.msk.f32.mxu1 %vm358_vm0, %v2082_v44 }
  0xdd   : > { %16696 = vmatmul.mubr.msk.f32.vlgmr.msra.gmra.mrb[96].mxu1 %vm358_vm0, %v2083_v45 }
  0xde   : > { %16698 = vmatprep.mubr.msk.f32.mxu1 %vm358_vm0, %v2084_v46  ;;  %18266 = vmatpush3.bf16.msra.mxu1 %v20162_v15 }
  0xe1   : > { %16699 = vmatmul.mubr.msk.f32.gmra.mrb[98].mxu1 %vm358_vm0, %v2085_v48 }
  0xe2   : > { %16701 = vmatprep.mubr.msk.f32.mxu1 %vm358_vm0, %v2086_v49 }
  0xe5   : > { %16702 = vmatmul.mubr.msk.f32.gmra.mrb[100].mxu1 %vm358_vm0, %v2087_v50  ;;  %v2105_v50 = vld [vmem:[%s19598_s18 + $0x3b8] sm:$0xff] }
  0xe6   : > { %16704 = vmatprep.mubr.msk.f32.mxu1 %vm358_vm0, %v2088_v51 }
  0xe9   : > { %16705 = vmatmul.mubr.msk.f32.gmra.mrb[102].mxu1 %vm358_vm0, %v2089_v52 }
  0xea   : > { %16707 = vmatprep.mubr.msk.f32.mxu1 %vm358_vm0, %v2090_v53  ;;  %v2106_v53 = vld [vmem:[%s19598_s18 + $0x3c0] sm:$0xff] }
  0xed   : > { %16708 = vmatmul.mubr.msk.f32.gmra.mrb[104].mxu1 %vm358_vm0, %v2091_v54 }
  0xee   : > { %16710 = vmatprep.mubr.msk.f32.mxu1 %vm358_vm0, %v2092_v55 }
  0xf0   : > { %v16541_v59 = vpop.f32.mrb[0].mxu1 }
  0xf1   : > { %v914_v60 = vadd.f32 %v16541_v59, %v20251_v56  ;;  %v908_v61 = vpop.f32.mrb[1].mxu1  ;;  %16711 = vmatmul.mubr.msk.f32.gmra.mrb[106].mxu1 %vm358_vm0, %v2093_v57 }
  0xf2   : > { %v909_v62 = vadd.f32 %v20251_v56, %v908_v61  ;;  %16713 = vmatprep.mubr.msk.f32.mxu1 %vm358_vm0, %v2094_v58 }
  0xf3   : > { %v1068_v0 = vmul.f32 0.2, %v914_v60 }
  0xf4   : > { %v1067_v3 = vmul.f32 0.2, %v909_v62  ;;  %v16544_v4 = vpop.f32.mrb[2].mxu1 }
  0xf5   : > { %v1100_v5 = vmax.f32 %v914_v60, %v1068_v0  ;;  %v924_v6 = vadd.f32 %v16544_v4, %v20251_v56  ;;  %v918_v7 = vpop.f32.mrb[3].mxu1  ;;  %16714 = vmatmul.mubr.msk.f32.gmra.mrb[108].mxu1 %vm358_vm0, %v2095_v63 }
  0xf6   : > { %v1099_v8 = vmax.f32 %v909_v62, %v1067_v3  ;;  %v919_v9 = vadd.f32 %v20251_v56, %v918_v7  ;;  %16716 = vmatprep.mubr.msk.f32.mxu1 %vm358_vm0, %v2096_v1  ;;  %v2107_v62 = vld [vmem:[%s19598_s18 + $0x3c8] sm:$0xff]  ;;  %v2108_v1 = vld [vmem:[%s19598_s18 + $0x3d0] sm:$0xff] }
  0xf7   : > { %1133 = vst.msk [vmem:[#allocation2 + $0x40] sm:$0xff] %vm358_vm0, %v1100_v5  ;;  %v1070_v11 = vmul.f32 0.2, %v924_v6 }
  0xf8   : > { %1132 = vst.msk [vmem:[#allocation2 + $0x38] sm:$0xff] %vm358_vm0, %v1099_v8  ;;  %v1069_v13 = vmul.f32 0.2, %v919_v9  ;;  %v16547_v14 = vpop.f32.mrb[4].mxu1 }
  0xf9   : > { %v1102_v15 = vmax.f32 %v924_v6, %v1070_v11  ;;  %v934_v16 = vadd.f32 %v16547_v14, %v20251_v56  ;;  %v928_v17 = vpop.f32.mrb[5].mxu1  ;;  %16717 = vmatmul.mubr.msk.f32.gmra.mrb[110].mxu1 %vm358_vm0, %v2097_v10  ;;  %v2109_v10 = vld [vmem:[%s19598_s18 + $0x3d8] sm:$0xff] }
  0xfa   : > { %v1101_v18 = vmax.f32 %v919_v9, %v1069_v13  ;;  %v929_v19 = vadd.f32 %v20251_v56, %v928_v17  ;;  %16719 = vmatprep.mubr.msk.f32.mxu1 %vm358_vm0, %v2098_v12  ;;  %v2110_v12 = vld [vmem:[%s19598_s18 + $0x3e0] sm:$0xff] }
  0xfb   : > { %1135 = vst.msk [vmem:[#allocation2 + $0x50] sm:$0xff] %vm358_vm0, %v1102_v15  ;;  %v1072_v20 = vmul.f32 0.2, %v934_v16 }
  0xfc   : > { %1134 = vst.msk [vmem:[#allocation2 + $0x48] sm:$0xff] %vm358_vm0, %v1101_v18  ;;  %v1071_v22 = vmul.f32 0.2, %v929_v19  ;;  %v16550_v23 = vpop.f32.mrb[6].mxu1 }
  0xfd   : > { %v1104_v24 = vmax.f32 %v934_v16, %v1072_v20  ;;  %v944_v25 = vadd.f32 %v16550_v23, %v20251_v56  ;;  %v938_v26 = vpop.f32.mrb[7].mxu1  ;;  %16720 = vmatmul.mubr.msk.f32.gmra.mrb[112].mxu1 %vm358_vm0, %v2099_v2  ;;  %v2111_v2 = vld [vmem:[%s19598_s18 + $0x3e8] sm:$0xff] }
  0xfe   : > { %v1103_v27 = vmax.f32 %v929_v19, %v1071_v22  ;;  %v939_v28 = vadd.f32 %v20251_v56, %v938_v26  ;;  %16722 = vmatprep.mubr.msk.f32.mxu1 %vm358_vm0, %v2100_v21  ;;  %v2112_v21 = vld [vmem:[%s19598_s18 + $0x3f0] sm:$0xff] }
  0xff   : > { %1137 = vst.msk [vmem:[#allocation2 + $0x70] sm:$0xff] %vm358_vm0, %v1104_v24  ;;  %v1074_v30 = vmul.f32 0.2, %v944_v25 }
 0x100   : > { %1136 = vst.msk [vmem:[#allocation2 + $0x68] sm:$0xff] %vm358_vm0, %v1103_v27  ;;  %v1073_v32 = vmul.f32 0.2, %v939_v28  ;;  %v16553_v33 = vpop.f32.mrb[8].mxu1 }
 0x101   : > { %v1106_v34 = vmax.f32 %v944_v25, %v1074_v30  ;;  %v954_v35 = vadd.f32 %v16553_v33, %v20251_v56  ;;  %v948_v36 = vpop.f32.mrb[9].mxu1  ;;  %16723 = vmatmul.mubr.msk.f32.gmra.mrb[114].mxu1 %vm358_vm0, %v2101_v29  ;;  %v2113_v29 = vld [vmem:[%s19598_s18 + $0x3f8] sm:$0xff]  ;;  %s15467_s18 = sshll.u32 %s19556_s17, 7  ;;  %s19479_s17 = smov [#allocation5]  }
 0x102   : > { %v1105_v37 = vmax.f32 %v939_v28, %v1073_v32  ;;  %v949_v38 = vadd.f32 %v20251_v56, %v948_v36  ;;  %16725 = vmatprep.mubr.msk.f32.mxu1 %vm358_vm0, %v2102_v31  ;;  %v2608_v32 = vld [vmem:[#allocation2 + $0x8] ss:$2 sm:$0xff]  ;;  %s22404_s26 = scalar_lea.hbm %s22454_s10, %s15467_s18  ;;  %s19418_s30 = sshll.u32 %s19479_s17, 4  ;;  %s19419_s30 = int_to_ptr.vmem [resolvable:$false] %s19418_s30 }
 0x103   : > { %1139 = vst.msk [vmem:[#allocation2 + $0x80] sm:$0xff] %vm358_vm0, %v1106_v34  ;;  %v1076_v40 = vmul.f32 0.2, %v954_v35  ;;  %s19420_s0 = scalar_lea.vmem %s19419_s30, 256  ;;  %p19421_p0 = scmp.lt.s32.totalorder %s22399_s12, %s19419_s30 }
 0x104   : > { %1138 = vst.msk [vmem:[#allocation2 + $0x78] sm:$0xff] %vm358_vm0, %v1105_v37  ;;  %v1075_v42 = vmul.f32 0.2, %v949_v38  ;;  %v16556_v43 = vpop.f32.mrb[10].mxu1  ;;  %p19422_p1 = scmp.lt.s32.totalorder %s19420_s0, %s19414_s28 }
 0x105   : > { %v1108_v44 = vmax.f32 %v954_v35, %v1076_v40  ;;  %v964_v45 = vadd.f32 %v16556_v43, %v20251_v56  ;;  %v958_v46 = vpop.f32.mrb[11].mxu1  ;;  %16726 = vmatmul.mubr.msk.f32.gmra.mrb[116].mxu1 %vm358_vm0, %v2103_v39  ;;  %v2610_v40 = vld [vmem:[#allocation2 + $0x18] ss:$2 sm:$0xff] }
 0x106   : > { %v1107_v48 = vmax.f32 %v949_v38, %v1075_v42  ;;  %v959_v49 = vadd.f32 %v20251_v56, %v958_v46  ;;  %16728 = vmatprep.mubr.msk.f32.mxu1 %vm358_vm0, %v2104_v41  ;;  %p19423_p2 = por %p19422_p1, %p19421_p0 }
 0x107   : > { %1141 = vst.msk [vmem:[#allocation2 + $0xa0] sm:$0xff] %vm358_vm0, %v1108_v44  ;;  %v1078_v51 = vmul.f32 0.2, %v964_v45  ;;  %v3321_v52 = vld [vmem:[#allocation2 + $0x69] ss:$2 sm:$0xff] }
 0x108   : > { %1140 = vst.msk [vmem:[#allocation2 + $0x98] sm:$0xff] %vm358_vm0, %v1107_v48  ;;  %v1077_v54 = vmul.f32 0.2, %v959_v49  ;;  %v16559_v55 = vpop.f32.mrb[12].mxu1  ;;  %16854 = vmatprep.mubr.msk.f32.mxu0 %vm358_vm0, %v3321_v52  ;;  %p19424_p3 = pnand %p19423_p2, %p19417_p13 }
 0x109   : > { %v1110_v57 = vmax.f32 %v964_v45, %v1078_v51  ;;  %v974_v58 = vadd.f32 %v16559_v55, %v20251_v56  ;;  %v968_v59 = vpop.f32.mrb[13].mxu1  ;;  %16729 = vmatmul.mubr.msk.f32.gmra.mrb[118].mxu1 %vm358_vm0, %v2105_v50 }
 0x10a   : > { %v1109_v60 = vmax.f32 %v959_v49, %v1077_v54  ;;  %v969_v61 = vadd.f32 %v20251_v56, %v968_v59  ;;  %16731 = vmatprep.mubr.msk.f32.mxu1 %vm358_vm0, %v2106_v53  ;;  %v2612_v49 = vld [vmem:[#allocation2 + $0x68] ss:$2 sm:$0xff] }
 0x10b   : > { %1143 = vst.msk [vmem:[#allocation2 + $0xb0] sm:$0xff] %vm358_vm0, %v1110_v57  ;;  %v1080_v63 = vmul.f32 0.2, %v974_v58  ;;  %v3323_v0 = vld [vmem:[#allocation2 + $0x79] ss:$2 sm:$0xff] }
 0x10c   : > { %1142 = vst.msk [vmem:[#allocation2 + $0xa8] sm:$0xff] %vm358_vm0, %v1109_v60  ;;  %v1079_v3 = vmul.f32 0.2, %v969_v61  ;;  %v16562_v4 = vpop.f32.mrb[14].mxu1  ;;  %16855 = vmatmul.mubr.msk.f32.gmra.mrb[2].mxu0 %vm358_vm0, %v3323_v0  ;;  %v2614_v55 = vld [vmem:[#allocation2 + $0x78] ss:$2 sm:$0xff] }
 0x10d   : > { %v1112_v5 = vmax.f32 %v974_v58, %v1080_v63  ;;  %v984_v6 = vadd.f32 %v16562_v4, %v20251_v56  ;;  %v978_v7 = vpop.f32.mrb[15].mxu1  ;;  %16732 = vmatmul.mubr.msk.f32.gmra.mrb[120].mxu1 %vm358_vm0, %v2107_v62 }
 0x10e   : > { %v1111_v8 = vmax.f32 %v969_v61, %v1079_v3  ;;  %v979_v9 = vadd.f32 %v20251_v56, %v978_v7  ;;  %16734 = vmatprep.mubr.msk.f32.mxu1 %vm358_vm0, %v2108_v1 }
 0x10f   : > { %1145 = vst.msk [vmem:[#allocation2 + $0xd0] sm:$0xff] %vm358_vm0, %v1112_v5  ;;  %v1082_v11 = vmul.f32 0.2, %v984_v6 }
 0x110   : > { %1144 = vst.msk [vmem:[#allocation2 + $0xc8] sm:$0xff] %vm358_vm0, %v1111_v8  ;;  %v1081_v13 = vmul.f32 0.2, %v979_v9  ;;  %v16565_v14 = vpop.f32.mrb[16].mxu1 }
 0x111   : > { %v1114_v15 = vmax.f32 %v984_v6, %v1082_v11  ;;  %v994_v16 = vadd.f32 %v16565_v14, %v20251_v56  ;;  %v988_v17 = vpop.f32.mrb[17].mxu1  ;;  %16735 = vmatmul.mubr.msk.f32.gmra.mrb[122].mxu1 %vm358_vm0, %v2109_v10 }
 0x112   : > { %v1113_v18 = vmax.f32 %v979_v9, %v1081_v13  ;;  %v989_v19 = vadd.f32 %v20251_v56, %v988_v17  ;;  %16737 = vmatprep.mubr.msk.f32.mxu1 %vm358_vm0, %v2110_v12 }
 0x113   : > { %1147 = vst.msk [vmem:[#allocation2 + $0xe0] sm:$0xff] %vm358_vm0, %v1114_v15  ;;  %v1084_v20 = vmul.f32 0.2, %v994_v16 }
 0x114   : > { %1146 = vst.msk [vmem:[#allocation2 + $0xd8] sm:$0xff] %vm358_vm0, %v1113_v18  ;;  %v1083_v22 = vmul.f32 0.2, %v989_v19  ;;  %v16568_v23 = vpop.f32.mrb[18].mxu1 }
 0x115   : > { %v1116_v24 = vmax.f32 %v994_v16, %v1084_v20  ;;  %v1004_v25 = vadd.f32 %v16568_v23, %v20251_v56  ;;  %v998_v26 = vpop.f32.mrb[19].mxu1  ;;  %16738 = vmatmul.mubr.msk.f32.gmra.mrb[124].mxu1 %vm358_vm0, %v2111_v2 }
 0x116   : > { %v1115_v27 = vmax.f32 %v989_v19, %v1083_v22  ;;  %v999_v28 = vadd.f32 %v20251_v56, %v998_v26  ;;  %16740 = vmatprep.mubr.msk.f32.mxu1 %vm358_vm0, %v2112_v21 }
 0x117   : > { %1149 = vst.msk [vmem:[#allocation2 + $0x100] sm:$0xff] %vm358_vm0, %v1116_v24  ;;  %v1086_v30 = vmul.f32 0.2, %v1004_v25  ;;  %v3325_v31 = vld [vmem:[#allocation2 + $0xc9] ss:$2 sm:$0xff] }
 0x118   : > { %1148 = vst.msk [vmem:[#allocation2 + $0xf8] sm:$0xff] %vm358_vm0, %v1115_v27  ;;  %v1085_v33 = vmul.f32 0.2, %v999_v28  ;;  %v16571_v34 = vpop.f32.mrb[20].mxu1  ;;  %16857 = vmatprep.mubr.msk.f32.mxu0 %vm358_vm0, %v3325_v31  ;;  %v2616_v60 = vld [vmem:[#allocation2 + $0xc8] ss:$2 sm:$0xff] }
 0x119   : > { %v1118_v35 = vmax.f32 %v1004_v25, %v1086_v30  ;;  %v1014_v36 = vadd.f32 %v16571_v34, %v20251_v56  ;;  %v1008_v37 = vpop.f32.mrb[21].mxu1  ;;  %16741 = vmatmul.mubr.msk.f32.gmra.mrb[126].mxu1 %vm358_vm0, %v2113_v29 }
 0x11a   : > { %v1117_v38 = vmax.f32 %v999_v28, %v1085_v33  ;;  %v1009_v39 = vadd.f32 %v20251_v56, %v1008_v37  ;;  %16747 = vmatprep.mubr.msk.f32.mxu1 %vm358_vm0, %v2608_v32 }
 0x11b   : > { %1151 = vst.msk [vmem:[#allocation2 + $0x110] sm:$0xff] %vm358_vm0, %v1118_v35  ;;  %v1088_v41 = vmul.f32 0.2, %v1014_v36  ;;  %v3327_v42 = vld [vmem:[#allocation2 + $0xd9] ss:$2 sm:$0xff] }
 0x11c   : > { %1150 = vst.msk [vmem:[#allocation2 + $0x108] sm:$0xff] %vm358_vm0, %v1117_v38  ;;  %v1087_v43 = vmul.f32 0.2, %v1009_v39  ;;  %v16574_v44 = vpop.f32.mrb[22].mxu1  ;;  %16858 = vmatmul.mubr.msk.f32.gmra.mrb[4].mxu0 %vm358_vm0, %v3327_v42  ;;  %v2618_v3 = vld [vmem:[#allocation2 + $0xd8] ss:$2 sm:$0xff] }
 0x11d   : > { %v1120_v45 = vmax.f32 %v1014_v36, %v1088_v41  ;;  %v1024_v46 = vadd.f32 %v16574_v44, %v20251_v56  ;;  %v1018_v48 = vpop.f32.mrb[23].mxu1  ;;  %16748 = vmatmul.mubr.msk.f32.vlgmr.msra.gmra.mrb[128].mxu1 %vm358_vm0, %v2610_v40  ;;  %v14650_v40 = vld [vmem:[%s22447_s3 + $0x38] sm:$0xff] }
 0x11e   : > { %v1119_v50 = vmax.f32 %v1009_v39, %v1087_v43  ;;  %v1019_v51 = vadd.f32 %v20251_v56, %v1018_v48  ;;  %16750 = vmatprep.mubr.msk.f32.mxu1 %vm358_vm0, %v2612_v49  ;;  %v14649_v39 = vld [vmem:[%s22447_s3 + $0x30] sm:$0xff] }
 0x11f   : > { %1153 = vst.msk [vmem:[#allocation2 + $0x130] sm:$0xff] %vm358_vm0, %v1120_v45  ;;  %v1090_v52 = vmul.f32 0.2, %v1024_v46  ;;  %v18275_v44 = vpack.c.bf16 %v14650_v40, %v14649_v39 }
 0x120   : > { %1152 = vst.msk [vmem:[#allocation2 + $0x128] sm:$0xff] %vm358_vm0, %v1119_v50  ;;  %v1089_v53 = vmul.f32 0.2, %v1019_v51  ;;  %v16577_v54 = vpop.f32.mrb[24].mxu1 }
 0x121   : > { %v1122_v57 = vmax.f32 %v1024_v46, %v1090_v52  ;;  %v1034_v58 = vadd.f32 %v16577_v54, %v20251_v56  ;;  %v1028_v59 = vpop.f32.mrb[25].mxu1  ;;  %16751 = vmatmul.mubr.msk.f32.gmra.mrb[130].mxu1 %vm358_vm0, %v2614_v55  ;;  %18276 = vmatprep.subr.bf16.mxu0 %v18275_v44 }
 0x122   : > { %v1121_v61 = vmax.f32 %v1019_v51, %v1089_v53  ;;  %v1029_v62 = vadd.f32 %v20251_v56, %v1028_v59  ;;  %16753 = vmatprep.mubr.msk.f32.mxu1 %vm358_vm0, %v2616_v60  ;;  %18278 = vmatpush3.bf16.msra.mxu0 %v18275_v44 }
 0x123   : > { %1155 = vst.msk [vmem:[#allocation2 + $0x140] sm:$0xff] %vm358_vm0, %v1122_v57  ;;  %v1092_v63 = vmul.f32 0.2, %v1034_v58 }
 0x124   : > { %1154 = vst.msk [vmem:[#allocation2 + $0x138] sm:$0xff] %vm358_vm0, %v1121_v61  ;;  %v1091_v0 = vmul.f32 0.2, %v1029_v62  ;;  %v16580_v1 = vpop.f32.mrb[26].mxu1 }
 0x125   : > { %v1124_v4 = vmax.f32 %v1034_v58, %v1092_v63  ;;  %v1044_v5 = vadd.f32 %v16580_v1, %v20251_v56  ;;  %v1038_v6 = vpop.f32.mrb[27].mxu1  ;;  %16754 = vmatmul.mubr.msk.f32.gmra.mrb[132].mxu1 %vm358_vm0, %v2618_v3 }
 0x126   : > { %v1123_v7 = vmax.f32 %v1029_v62, %v1091_v0  ;;  %v1039_v8 = vadd.f32 %v20251_v56, %v1038_v6 }
 0x127   : > { %1157 = vst.msk [vmem:[#allocation2 + $0x160] sm:$0xff] %vm358_vm0, %v1124_v4  ;;  %v1094_v9 = vmul.f32 0.2, %v1044_v5  ;;  %v2620_v10 = vld [vmem:[#allocation2 + $0x128] ss:$2 sm:$0xff] }
 0x128   : > { %v3329_v11 = vld [vmem:[#allocation2 + $0x129] ss:$2 sm:$0xff]  ;;  %1156 = vst.msk [vmem:[#allocation2 + $0x158] sm:$0xff] %vm358_vm0, %v1123_v7  ;;  %v1093_v12 = vmul.f32 0.2, %v1039_v8  ;;  %v16583_v13 = vpop.f32.mrb[28].mxu1  ;;  %16756 = vmatprep.mubr.msk.f32.mxu1 %vm358_vm0, %v2620_v10 }
 0x129   : > { %16860 = vmatprep.mubr.msk.f32.mxu0 %vm358_vm0, %v3329_v11  ;;  %v1126_v14 = vmax.f32 %v1044_v5, %v1094_v9  ;;  %v1054_v15 = vadd.f32 %v16583_v13, %v20251_v56  ;;  %v1048_v16 = vpop.f32.mrb[29].mxu1 }
 0x12a   : > { %v1125_v17 = vmax.f32 %v1039_v8, %v1093_v12  ;;  %v1049_v18 = vadd.f32 %v20251_v56, %v1048_v16 }
 0x12b   : > { %1159 = vst.msk [vmem:[#allocation2 + $0x170] sm:$0xff] %vm358_vm0, %v1126_v14  ;;  %v1096_v19 = vmul.f32 0.2, %v1054_v15  ;;  %v2622_v2 = vld [vmem:[#allocation2 + $0x138] ss:$2 sm:$0xff] }
 0x12c   : > { %v3331_v20 = vld [vmem:[#allocation2 + $0x139] ss:$2 sm:$0xff]  ;;  %1158 = vst.msk [vmem:[#allocation2 + $0x168] sm:$0xff] %vm358_vm0, %v1125_v17  ;;  %v1095_v21 = vmul.f32 0.2, %v1049_v18  ;;  %v16586_v22 = vpop.f32.mrb[30].mxu1  ;;  %16757 = vmatmul.mubr.msk.f32.gmra.mrb[134].mxu1 %vm358_vm0, %v2622_v2 }
 0x12d   : > { %16861 = vmatmul.mubr.msk.f32.gmra.mrb[6].mxu0 %vm358_vm0, %v3331_v20  ;;  %v1128_v23 = vmax.f32 %v1054_v15, %v1096_v19  ;;  %v1064_v24 = vadd.f32 %v16586_v22, %v20251_v56  ;;  %v1058_v25 = vpop.f32.mrb[31].mxu1 }
 0x12e   : > { %v1127_v26 = vmax.f32 %v1049_v18, %v1095_v21  ;;  %v1059_v27 = vadd.f32 %v20251_v56, %v1058_v25 }
 0x12f   : > { %1161 = vst.msk [vmem:[#allocation2 + $0x190] sm:$0xff] %vm358_vm0, %v1128_v23  ;;  %v1098_v28 = vmul.f32 0.2, %v1064_v24 }
 0x130   : > { %1160 = vst.msk [vmem:[#allocation2 + $0x188] sm:$0xff] %vm358_vm0, %v1127_v26  ;;  %v1097_v29 = vmul.f32 0.2, %v1059_v27  ;;  %v16593_v30 = vpop.f32.mrb[32].mxu1 }
 0x131   : > { %v1130_v31 = vmax.f32 %v1064_v24, %v1098_v28  ;;  %v1373_v32 = vadd.f32 %v16593_v30, %v20251_v56  ;;  %v1367_v33 = vpop.f32.mrb[33].mxu1 }
 0x132   : > { %v1129_v34 = vmax.f32 %v1059_v27, %v1097_v29  ;;  %v1368_v35 = vadd.f32 %v20251_v56, %v1367_v33 }
 0x133   : > { %1163 = vst.msk [vmem:[#allocation2 + $0x1a0] sm:$0xff] %vm358_vm0, %v1130_v31  ;;  %v1527_v36 = vmul.f32 0.2, %v1373_v32 }
 0x134   : > { %1162 = vst.msk [vmem:[#allocation2 + $0x198] sm:$0xff] %vm358_vm0, %v1129_v34  ;;  %v1526_v37 = vmul.f32 0.2, %v1368_v35  ;;  %v16596_v38 = vpop.f32.mrb[34].mxu1 }
 0x135   : > { %v1559_v41 = vmax.f32 %v1373_v32, %v1527_v36  ;;  %v1383_v42 = vadd.f32 %v16596_v38, %v20251_v56  ;;  %v1377_v43 = vpop.f32.mrb[35].mxu1 }
 0x136   : > { %v1558_v45 = vmax.f32 %v1368_v35, %v1526_v37  ;;  %v1378_v46 = vadd.f32 %v20251_v56, %v1377_v43 }
 0x137   : > { %1592 = vst.msk [vmem:[#allocation2 + $0x1c0] sm:$0xff] %vm358_vm0, %v1559_v41  ;;  %v1529_v48 = vmul.f32 0.2, %v1383_v42  ;;  %v2624_v49 = vld [vmem:[#allocation2 + $0x188] ss:$2 sm:$0xff] }
 0x138   : > { %v3333_v50 = vld [vmem:[#allocation2 + $0x189] ss:$2 sm:$0xff]  ;;  %1591 = vst.msk [vmem:[#allocation2 + $0x1b8] sm:$0xff] %vm358_vm0, %v1558_v45  ;;  %v1528_v51 = vmul.f32 0.2, %v1378_v46  ;;  %v16599_v52 = vpop.f32.mrb[36].mxu1  ;;  %16759 = vmatprep.mubr.msk.f32.mxu1 %vm358_vm0, %v2624_v49 }
 0x139   : > { %16863 = vmatprep.mubr.msk.f32.mxu0 %vm358_vm0, %v3333_v50  ;;  %v1561_v53 = vmax.f32 %v1383_v42, %v1529_v48  ;;  %v1393_v54 = vadd.f32 %v16599_v52, %v20251_v56  ;;  %v1387_v55 = vpop.f32.mrb[37].mxu1 }
 0x13a   : > { %v1560_v57 = vmax.f32 %v1378_v46, %v1528_v51  ;;  %v1388_v58 = vadd.f32 %v20251_v56, %v1387_v55 }
 0x13b   : > { %1594 = vst.msk [vmem:[#allocation2 + $0x1d0] sm:$0xff] %vm358_vm0, %v1561_v53  ;;  %v1531_v59 = vmul.f32 0.2, %v1393_v54  ;;  %v2626_v60 = vld [vmem:[#allocation2 + $0x198] ss:$2 sm:$0xff] }
 0x13c   : > { %v3335_v61 = vld [vmem:[#allocation2 + $0x199] ss:$2 sm:$0xff]  ;;  %1593 = vst.msk [vmem:[#allocation2 + $0x1c8] sm:$0xff] %vm358_vm0, %v1560_v57  ;;  %v1530_v62 = vmul.f32 0.2, %v1388_v58  ;;  %v16602_v63 = vpop.f32.mrb[38].mxu1  ;;  %16760 = vmatmul.mubr.msk.f32.gmra.mrb[136].mxu1 %vm358_vm0, %v2626_v60 }
 0x13d   : > { %16864 = vmatmul.mubr.msk.f32.gmra.mrb[8].mxu0 %vm358_vm0, %v3335_v61  ;;  %v1563_v0 = vmax.f32 %v1393_v54, %v1531_v59  ;;  %v1403_v1 = vadd.f32 %v16602_v63, %v20251_v56  ;;  %v1397_v3 = vpop.f32.mrb[39].mxu1 }
 0x13e   : > { %v1562_v4 = vmax.f32 %v1388_v58, %v1530_v62  ;;  %v1398_v5 = vadd.f32 %v20251_v56, %v1397_v3 }
 0x13f   : > { %1596 = vst.msk [vmem:[#allocation2 + $0x1f0] sm:$0xff] %vm358_vm0, %v1563_v0  ;;  %v1533_v6 = vmul.f32 0.2, %v1403_v1 }
 0x140   : > { %1595 = vst.msk [vmem:[#allocation2 + $0x1e8] sm:$0xff] %vm358_vm0, %v1562_v4  ;;  %v1532_v7 = vmul.f32 0.2, %v1398_v5  ;;  %v16605_v8 = vpop.f32.mrb[40].mxu1 }
 0x141   : > { %v1565_v9 = vmax.f32 %v1403_v1, %v1533_v6  ;;  %v1413_v10 = vadd.f32 %v16605_v8, %v20251_v56  ;;  %v1407_v11 = vpop.f32.mrb[41].mxu1 }
 0x142   : > { %v1564_v12 = vmax.f32 %v1398_v5, %v1532_v7  ;;  %v1408_v13 = vadd.f32 %v20251_v56, %v1407_v11 }
 0x143   : > { %1598 = vst.msk [vmem:[#allocation2 + $0x200] sm:$0xff] %vm358_vm0, %v1565_v9  ;;  %v1535_v14 = vmul.f32 0.2, %v1413_v10 }
 0x144   : > { %1597 = vst.msk [vmem:[#allocation2 + $0x1f8] sm:$0xff] %vm358_vm0, %v1564_v12  ;;  %v1534_v15 = vmul.f32 0.2, %v1408_v13  ;;  %v16608_v16 = vpop.f32.mrb[42].mxu1 }
 0x145   : > { %v1567_v17 = vmax.f32 %v1413_v10, %v1535_v14  ;;  %v1423_v18 = vadd.f32 %v16608_v16, %v20251_v56  ;;  %v1417_v19 = vpop.f32.mrb[43].mxu1 }
 0x146   : > { %v1566_v2 = vmax.f32 %v1408_v13, %v1534_v15  ;;  %v1418_v20 = vadd.f32 %v20251_v56, %v1417_v19 }
 0x147   : > { %1600 = vst.msk [vmem:[#allocation2 + $0x220] sm:$0xff] %vm358_vm0, %v1567_v17  ;;  %v1537_v21 = vmul.f32 0.2, %v1423_v18  ;;  %v2628_v22 = vld [vmem:[#allocation2 + $0x1e8] ss:$2 sm:$0xff] }
 0x148   : > { %v3337_v23 = vld [vmem:[#allocation2 + $0x1e9] ss:$2 sm:$0xff]  ;;  %1599 = vst.msk [vmem:[#allocation2 + $0x218] sm:$0xff] %vm358_vm0, %v1566_v2  ;;  %v1536_v24 = vmul.f32 0.2, %v1418_v20  ;;  %v16611_v25 = vpop.f32.mrb[44].mxu1  ;;  %16762 = vmatprep.mubr.msk.f32.mxu1 %vm358_vm0, %v2628_v22 }
 0x149   : > { %16866 = vmatprep.mubr.msk.f32.mxu0 %vm358_vm0, %v3337_v23  ;;  %v1569_v26 = vmax.f32 %v1423_v18, %v1537_v21  ;;  %v1433_v27 = vadd.f32 %v16611_v25, %v20251_v56  ;;  %v1427_v28 = vpop.f32.mrb[45].mxu1 }
 0x14a   : > { %v1568_v29 = vmax.f32 %v1418_v20, %v1536_v24  ;;  %v1428_v30 = vadd.f32 %v20251_v56, %v1427_v28 }
 0x14b   : > { %1602 = vst.msk [vmem:[#allocation2 + $0x230] sm:$0xff] %vm358_vm0, %v1569_v26  ;;  %v1539_v31 = vmul.f32 0.2, %v1433_v27  ;;  %v2630_v32 = vld [vmem:[#allocation2 + $0x1f8] ss:$2 sm:$0xff] }
 0x14c   : > { %v3339_v33 = vld [vmem:[#allocation2 + $0x1f9] ss:$2 sm:$0xff]  ;;  %1601 = vst.msk [vmem:[#allocation2 + $0x228] sm:$0xff] %vm358_vm0, %v1568_v29  ;;  %v1538_v34 = vmul.f32 0.2, %v1428_v30  ;;  %v16614_v35 = vpop.f32.mrb[46].mxu1  ;;  %16763 = vmatmul.mubr.msk.f32.gmra.mrb[138].mxu1 %vm358_vm0, %v2630_v32 }
 0x14d   : > { %16867 = vmatmul.mubr.msk.f32.gmra.mrb[10].mxu0 %vm358_vm0, %v3339_v33  ;;  %v1571_v36 = vmax.f32 %v1433_v27, %v1539_v31  ;;  %v1443_v37 = vadd.f32 %v16614_v35, %v20251_v56  ;;  %v1437_v38 = vpop.f32.mrb[47].mxu1 }
 0x14e   : > { %v1570_v39 = vmax.f32 %v1428_v30, %v1538_v34  ;;  %v1438_v40 = vadd.f32 %v20251_v56, %v1437_v38 }
 0x14f   : > { %1604 = vst.msk [vmem:[#allocation2 + $0x250] sm:$0xff] %vm358_vm0, %v1571_v36  ;;  %v1541_v41 = vmul.f32 0.2, %v1443_v37 }
 0x150   : > { %1603 = vst.msk [vmem:[#allocation2 + $0x248] sm:$0xff] %vm358_vm0, %v1570_v39  ;;  %v1540_v42 = vmul.f32 0.2, %v1438_v40  ;;  %v16617_v43 = vpop.f32.mrb[48].mxu1  ;;  %v2605_v39 = vld [vmem:[%s22447_s3] sm:$0xff] }
 0x151   : > { %v1573_v44 = vmax.f32 %v1443_v37, %v1541_v41  ;;  %v1453_v45 = vadd.f32 %v16617_v43, %v20251_v56  ;;  %v1447_v46 = vpop.f32.mrb[49].mxu1 }
 0x152   : > { %v1572_v48 = vmax.f32 %v1438_v40, %v1540_v42  ;;  %v1448_v49 = vadd.f32 %v20251_v56, %v1447_v46  ;;  %v2606_v40 = vld [vmem:[%s22447_s3 + $0x8] sm:$0xff] }
 0x153   : > { %1606 = vst.msk [vmem:[#allocation2 + $0x260] sm:$0xff] %vm358_vm0, %v1573_v44  ;;  %v1543_v50 = vmul.f32 0.2, %v1453_v45  ;;  %v18267_v43 = vpack.c.bf16 %v2606_v40, %v2605_v39 }
 0x154   : > { %1605 = vst.msk [vmem:[#allocation2 + $0x258] sm:$0xff] %vm358_vm0, %v1572_v48  ;;  %v1542_v51 = vmul.f32 0.2, %v1448_v49  ;;  %v16620_v52 = vpop.f32.mrb[50].mxu1 }
 0x155   : > { %v1575_v53 = vmax.f32 %v1453_v45, %v1543_v50  ;;  %v1463_v54 = vadd.f32 %v16620_v52, %v20251_v56  ;;  %v1457_v55 = vpop.f32.mrb[51].mxu1  ;;  %18268 = vmatprep.subr.bf16.mxu1 %v18267_v43 }
 0x156   : > { %v1574_v57 = vmax.f32 %v1448_v49, %v1542_v51  ;;  %v1458_v58 = vadd.f32 %v20251_v56, %v1457_v55  ;;  %18270 = vmatpush3.bf16.msra.mxu1 %v18267_v43 }
 0x157   : > { %1608 = vst.msk [vmem:[#allocation2 + $0x280] sm:$0xff] %vm358_vm0, %v1575_v53  ;;  %v1545_v59 = vmul.f32 0.2, %v1463_v54  ;;  %v2632_v60 = vld [vmem:[#allocation2 + $0x248] ss:$2 sm:$0xff]  ;;  %v14683_v53 = vld [vmem:[%s22447_s3 + $0x40] sm:$0xff] }
 0x158   : > { %v3341_v61 = vld [vmem:[#allocation2 + $0x249] ss:$2 sm:$0xff]  ;;  %1607 = vst.msk [vmem:[#allocation2 + $0x278] sm:$0xff] %vm358_vm0, %v1574_v57  ;;  %v1544_v62 = vmul.f32 0.2, %v1458_v58  ;;  %v16623_v63 = vpop.f32.mrb[52].mxu1  ;;  %16765 = vmatprep.mubr.msk.f32.mxu1 %vm358_vm0, %v2632_v60 }
 0x159   : > { %16869 = vmatprep.mubr.msk.f32.mxu0 %vm358_vm0, %v3341_v61  ;;  %v1577_v0 = vmax.f32 %v1463_v54, %v1545_v59  ;;  %v1473_v1 = vadd.f32 %v16623_v63, %v20251_v56  ;;  %v1467_v3 = vpop.f32.mrb[53].mxu1  ;;  %v14684_v54 = vld [vmem:[%s22447_s3 + $0x48] sm:$0xff] }
 0x15a   : > { %v1576_v4 = vmax.f32 %v1458_v58, %v1544_v62  ;;  %v1468_v5 = vadd.f32 %v20251_v56, %v1467_v3  ;;  %v20471_v58 = vld [vmem:[%s22446_s2] ss:$0 sm:$0xff]  ;;  %v20473_v59 = vpack.c.bf16 %v14684_v54, %v14683_v53 }
 0x15b   : > { %1610 = vst.msk [vmem:[#allocation2 + $0x290] sm:$0xff] %vm358_vm0, %v1577_v0  ;;  %v1547_v6 = vmul.f32 0.2, %v1473_v1  ;;  %v2634_v7 = vld [vmem:[#allocation2 + $0x258] ss:$2 sm:$0xff] }
 0x15c   : > { %v3343_v8 = vld [vmem:[#allocation2 + $0x259] ss:$2 sm:$0xff]  ;;  %1609 = vst.msk [vmem:[#allocation2 + $0x288] sm:$0xff] %vm358_vm0, %v1576_v4  ;;  %v1546_v9 = vmul.f32 0.2, %v1468_v5  ;;  %v16626_v10 = vpop.f32.mrb[54].mxu1  ;;  %16766 = vmatmul.mubr.msk.f32.gmra.mrb[140].mxu1 %vm358_vm0, %v2634_v7  ;;  %18280 = vmatprep.subr.bf16.mxu0 %v20473_v59 }
 0x15d   : > { %16870 = vmatmul.mubr.msk.f32.gmra.mrb[12].mxu0 %vm358_vm0, %v3343_v8  ;;  %v1579_v11 = vmax.f32 %v1473_v1, %v1547_v6  ;;  %v1483_v12 = vadd.f32 %v16626_v10, %v20251_v56  ;;  %v1477_v13 = vpop.f32.mrb[55].mxu1 }
 0x15e   : > { %v1578_v14 = vmax.f32 %v1468_v5, %v1546_v9  ;;  %v1478_v15 = vadd.f32 %v20251_v56, %v1477_v13 }
 0x15f   : > { %1612 = vst.msk [vmem:[#allocation2 + $0x2b0] sm:$0xff] %vm358_vm0, %v1579_v11  ;;  %v1549_v16 = vmul.f32 0.2, %v1483_v12 }
 0x160   : > { %1611 = vst.msk [vmem:[#allocation2 + $0x2a8] sm:$0xff] %vm358_vm0, %v1578_v14  ;;  %v1548_v17 = vmul.f32 0.2, %v1478_v15  ;;  %v16629_v18 = vpop.f32.mrb[56].mxu1 }
 0x161   : > { %v1581_v19 = vmax.f32 %v1483_v12, %v1549_v16  ;;  %v1493_v2 = vadd.f32 %v16629_v18, %v20251_v56  ;;  %v1487_v20 = vpop.f32.mrb[57].mxu1 }
 0x162   : > { %v1580_v21 = vmax.f32 %v1478_v15, %v1548_v17  ;;  %v1488_v22 = vadd.f32 %v20251_v56, %v1487_v20 }
 0x163   : > { %1614 = vst.msk [vmem:[#allocation2 + $0x2c0] sm:$0xff] %vm358_vm0, %v1581_v19  ;;  %v1551_v23 = vmul.f32 0.2, %v1493_v2 }
 0x164   : > { %1613 = vst.msk [vmem:[#allocation2 + $0x2b8] sm:$0xff] %vm358_vm0, %v1580_v21  ;;  %v1550_v24 = vmul.f32 0.2, %v1488_v22  ;;  %v16632_v25 = vpop.f32.mrb[58].mxu1 }
 0x165   : > { %v1583_v26 = vmax.f32 %v1493_v2, %v1551_v23  ;;  %v1503_v27 = vadd.f32 %v16632_v25, %v20251_v56  ;;  %v1497_v28 = vpop.f32.mrb[59].mxu1 }
 0x166   : > { %v1582_v29 = vmax.f32 %v1488_v22, %v1550_v24  ;;  %v1498_v30 = vadd.f32 %v20251_v56, %v1497_v28 }
 0x167   : > { %1616 = vst.msk [vmem:[#allocation2 + $0x2e0] sm:$0xff] %vm358_vm0, %v1583_v26  ;;  %v1553_v31 = vmul.f32 0.2, %v1503_v27  ;;  %v2636_v32 = vld [vmem:[#allocation2 + $0x2a8] ss:$2 sm:$0xff] }
 0x168   : > { %v3345_v33 = vld [vmem:[#allocation2 + $0x2a9] ss:$2 sm:$0xff]  ;;  %1615 = vst.msk [vmem:[#allocation2 + $0x2d8] sm:$0xff] %vm358_vm0, %v1582_v29  ;;  %v1552_v34 = vmul.f32 0.2, %v1498_v30  ;;  %v16635_v35 = vpop.f32.mrb[60].mxu1  ;;  %16768 = vmatprep.mubr.msk.f32.mxu1 %vm358_vm0, %v2636_v32 }
 0x169   : > { %16872 = vmatprep.mubr.msk.f32.mxu0 %vm358_vm0, %v3345_v33  ;;  %v1585_v36 = vmax.f32 %v1503_v27, %v1553_v31  ;;  %v1513_v37 = vadd.f32 %v16635_v35, %v20251_v56  ;;  %v1507_v38 = vpop.f32.mrb[61].mxu1 }
 0x16a   : > { %v1584_v41 = vmax.f32 %v1498_v30, %v1552_v34  ;;  %v1508_v42 = vadd.f32 %v20251_v56, %v1507_v38 }
 0x16b   : > { %1618 = vst.msk [vmem:[#allocation2 + $0x2f0] sm:$0xff] %vm358_vm0, %v1585_v36  ;;  %v1555_v44 = vmul.f32 0.2, %v1513_v37  ;;  %v2638_v45 = vld [vmem:[#allocation2 + $0x2b8] ss:$2 sm:$0xff] }
 0x16c   : > { %v3347_v46 = vld [vmem:[#allocation2 + $0x2b9] ss:$2 sm:$0xff]  ;;  %1617 = vst.msk [vmem:[#allocation2 + $0x2e8] sm:$0xff] %vm358_vm0, %v1584_v41  ;;  %v1554_v48 = vmul.f32 0.2, %v1508_v42  ;;  %v16638_v49 = vpop.f32.mrb[62].mxu1  ;;  %16769 = vmatmul.mubr.msk.f32.gmra.mrb[142].mxu1 %vm358_vm0, %v2638_v45 }
 0x16d   : > { %16873 = vmatmul.mubr.msk.f32.gmra.mrb[14].mxu0 %vm358_vm0, %v3347_v46  ;;  %v1587_v50 = vmax.f32 %v1513_v37, %v1555_v44  ;;  %v1523_v51 = vadd.f32 %v16638_v49, %v20251_v56  ;;  %v1517_v52 = vpop.f32.mrb[63].mxu1 }
 0x16e   : > { %v1586_v55 = vmax.f32 %v1508_v42, %v1554_v48  ;;  %v1518_v57 = vadd.f32 %v20251_v56, %v1517_v52 }
 0x16f   : > { %1620 = vst.msk [vmem:[#allocation2 + $0x310] sm:$0xff] %vm358_vm0, %v1587_v50  ;;  %v1557_v60 = vmul.f32 0.2, %v1523_v51 }
 0x170   : > { %1619 = vst.msk [vmem:[#allocation2 + $0x308] sm:$0xff] %vm358_vm0, %v1586_v55  ;;  %v1556_v61 = vmul.f32 0.2, %v1518_v57  ;;  %v16645_v62 = vpop.f32.mrb[64].mxu1 }
 0x171   : > { %v1589_v63 = vmax.f32 %v1523_v51, %v1557_v60  ;;  %v1832_v56 = vadd.f32 %v16645_v62, %v20471_v58  ;;  %v1826_v0 = vpop.f32.mrb[65].mxu1 }
 0x172   : > { %v1588_v1 = vmax.f32 %v1518_v57, %v1556_v61  ;;  %v1827_v3 = vadd.f32 %v20471_v58, %v1826_v0 }
 0x173   : > { %1622 = vst.msk [vmem:[#allocation2 + $0x320] sm:$0xff] %vm358_vm0, %v1589_v63  ;;  %v1986_v4 = vmul.f32 0.2, %v1832_v56 }
 0x174   : > { %1621 = vst.msk [vmem:[#allocation2 + $0x318] sm:$0xff] %vm358_vm0, %v1588_v1  ;;  %v1985_v5 = vmul.f32 0.2, %v1827_v3  ;;  %v16648_v6 = vpop.f32.mrb[66].mxu1 }
 0x175   : > { %v2018_v7 = vmax.f32 %v1832_v56, %v1986_v4  ;;  %v1842_v8 = vadd.f32 %v16648_v6, %v20471_v58  ;;  %v1836_v9 = vpop.f32.mrb[67].mxu1 }
 0x176   : > { %v2017_v10 = vmax.f32 %v1827_v3, %v1985_v5  ;;  %v1837_v11 = vadd.f32 %v20471_v58, %v1836_v9 }
 0x177   : > { %2051 = vst.msk [vmem:[#allocation2 + $0x340] sm:$0xff] %vm358_vm0, %v2018_v7  ;;  %v1988_v12 = vmul.f32 0.2, %v1842_v8  ;;  %v2640_v13 = vld [vmem:[#allocation2 + $0x308] ss:$2 sm:$0xff] }
 0x178   : > { %v3349_v14 = vld [vmem:[#allocation2 + $0x309] ss:$2 sm:$0xff]  ;;  %2050 = vst.msk [vmem:[#allocation2 + $0x338] sm:$0xff] %vm358_vm0, %v2017_v10  ;;  %v1987_v15 = vmul.f32 0.2, %v1837_v11  ;;  %v16651_v16 = vpop.f32.mrb[68].mxu1  ;;  %16771 = vmatprep.mubr.msk.f32.mxu1 %vm358_vm0, %v2640_v13 }
 0x179   : > { %16875 = vmatprep.mubr.msk.f32.mxu0 %vm358_vm0, %v3349_v14  ;;  %v2020_v17 = vmax.f32 %v1842_v8, %v1988_v12  ;;  %v1852_v18 = vadd.f32 %v16651_v16, %v20471_v58  ;;  %v1846_v19 = vpop.f32.mrb[69].mxu1 }
 0x17a   : > { %v2019_v2 = vmax.f32 %v1837_v11, %v1987_v15  ;;  %v1847_v20 = vadd.f32 %v20471_v58, %v1846_v19 }
 0x17b   : > { %2053 = vst.msk [vmem:[#allocation2 + $0x350] sm:$0xff] %vm358_vm0, %v2020_v17  ;;  %v1990_v21 = vmul.f32 0.2, %v1852_v18  ;;  %v2642_v22 = vld [vmem:[#allocation2 + $0x318] ss:$2 sm:$0xff] }
 0x17c   : > { %v3351_v23 = vld [vmem:[#allocation2 + $0x319] ss:$2 sm:$0xff]  ;;  %2052 = vst.msk [vmem:[#allocation2 + $0x348] sm:$0xff] %vm358_vm0, %v2019_v2  ;;  %v1989_v24 = vmul.f32 0.2, %v1847_v20  ;;  %v16654_v25 = vpop.f32.mrb[70].mxu1  ;;  %16772 = vmatmul.mubr.msk.f32.gmra.mrb[144].mxu1 %vm358_vm0, %v2642_v22 }
 0x17d   : > { %16876 = vmatmul.mubr.msk.f32.gmra.mrb[16].mxu0 %vm358_vm0, %v3351_v23  ;;  %v2022_v26 = vmax.f32 %v1852_v18, %v1990_v21  ;;  %v1862_v27 = vadd.f32 %v16654_v25, %v20471_v58  ;;  %v1856_v28 = vpop.f32.mrb[71].mxu1 }
 0x17e   : > { %v2021_v29 = vmax.f32 %v1847_v20, %v1989_v24  ;;  %v1857_v30 = vadd.f32 %v20471_v58, %v1856_v28 }
 0x17f   : > { %2055 = vst.msk [vmem:[#allocation2 + $0x370] sm:$0xff] %vm358_vm0, %v2022_v26  ;;  %v1992_v31 = vmul.f32 0.2, %v1862_v27 }
 0x180   : > { %2054 = vst.msk [vmem:[#allocation2 + $0x368] sm:$0xff] %vm358_vm0, %v2021_v29  ;;  %v1991_v32 = vmul.f32 0.2, %v1857_v30  ;;  %v16657_v33 = vpop.f32.mrb[72].mxu1 }
 0x181   : > { %v2024_v34 = vmax.f32 %v1862_v27, %v1992_v31  ;;  %v1872_v35 = vadd.f32 %v16657_v33, %v20471_v58  ;;  %v1866_v36 = vpop.f32.mrb[73].mxu1 }
 0x182   : > { %v2023_v37 = vmax.f32 %v1857_v30, %v1991_v32  ;;  %v1867_v38 = vadd.f32 %v20471_v58, %v1866_v36 }
 0x183   : > { %2057 = vst.msk [vmem:[#allocation2 + $0x380] sm:$0xff] %vm358_vm0, %v2024_v34  ;;  %v1994_v39 = vmul.f32 0.2, %v1872_v35 }
 0x184   : > { %2056 = vst.msk [vmem:[#allocation2 + $0x378] sm:$0xff] %vm358_vm0, %v2023_v37  ;;  %v1993_v40 = vmul.f32 0.2, %v1867_v38  ;;  %v16660_v41 = vpop.f32.mrb[74].mxu1 }
 0x185   : > { %v2026_v42 = vmax.f32 %v1872_v35, %v1994_v39  ;;  %v1882_v43 = vadd.f32 %v16660_v41, %v20471_v58  ;;  %v1876_v44 = vpop.f32.mrb[75].mxu1 }
 0x186   : > { %v2025_v45 = vmax.f32 %v1867_v38, %v1993_v40  ;;  %v1877_v46 = vadd.f32 %v20471_v58, %v1876_v44 }
 0x187   : > { %2059 = vst.msk [vmem:[#allocation2 + $0x3a0] sm:$0xff] %vm358_vm0, %v2026_v42  ;;  %v1996_v48 = vmul.f32 0.2, %v1882_v43  ;;  %v2644_v49 = vld [vmem:[#allocation2 + $0x368] ss:$2 sm:$0xff] }
 0x188   : > { %v3353_v50 = vld [vmem:[#allocation2 + $0x369] ss:$2 sm:$0xff]  ;;  %2058 = vst.msk [vmem:[#allocation2 + $0x398] sm:$0xff] %vm358_vm0, %v2025_v45  ;;  %v1995_v51 = vmul.f32 0.2, %v1877_v46  ;;  %v16663_v52 = vpop.f32.mrb[76].mxu1  ;;  %16774 = vmatprep.mubr.msk.f32.mxu1 %vm358_vm0, %v2644_v49 }
 0x189   : > { %16878 = vmatprep.mubr.msk.f32.mxu0 %vm358_vm0, %v3353_v50  ;;  %v2028_v53 = vmax.f32 %v1882_v43, %v1996_v48  ;;  %v1892_v54 = vadd.f32 %v16663_v52, %v20471_v58  ;;  %v1886_v55 = vpop.f32.mrb[77].mxu1 }
 0x18a   : > { %v2027_v57 = vmax.f32 %v1877_v46, %v1995_v51  ;;  %v1887_v60 = vadd.f32 %v20471_v58, %v1886_v55 }
 0x18b   : > { %2061 = vst.msk [vmem:[#allocation2 + $0x3b0] sm:$0xff] %vm358_vm0, %v2028_v53  ;;  %v1998_v61 = vmul.f32 0.2, %v1892_v54  ;;  %v2646_v62 = vld [vmem:[#allocation2 + $0x378] ss:$2 sm:$0xff] }
 0x18c   : > { %v3355_v63 = vld [vmem:[#allocation2 + $0x379] ss:$2 sm:$0xff]  ;;  %2060 = vst.msk [vmem:[#allocation2 + $0x3a8] sm:$0xff] %vm358_vm0, %v2027_v57  ;;  %v1997_v56 = vmul.f32 0.2, %v1887_v60  ;;  %v16666_v0 = vpop.f32.mrb[78].mxu1  ;;  %16775 = vmatmul.mubr.msk.f32.gmra.mrb[146].mxu1 %vm358_vm0, %v2646_v62 }
 0x18d   : > { %16879 = vmatmul.mubr.msk.f32.gmra.mrb[18].mxu0 %vm358_vm0, %v3355_v63  ;;  %v2030_v1 = vmax.f32 %v1892_v54, %v1998_v61  ;;  %v1902_v3 = vadd.f32 %v16666_v0, %v20471_v58  ;;  %v1896_v4 = vpop.f32.mrb[79].mxu1 }
 0x18e   : > { %v2029_v5 = vmax.f32 %v1887_v60, %v1997_v56  ;;  %v1897_v6 = vadd.f32 %v20471_v58, %v1896_v4 }
 0x18f   : > { %2063 = vst.msk [vmem:[#allocation2 + $0x3d0] sm:$0xff] %vm358_vm0, %v2030_v1  ;;  %v2000_v7 = vmul.f32 0.2, %v1902_v3 }
 0x190   : > { %2062 = vst.msk [vmem:[#allocation2 + $0x3c8] sm:$0xff] %vm358_vm0, %v2029_v5  ;;  %v1999_v8 = vmul.f32 0.2, %v1897_v6  ;;  %v16669_v9 = vpop.f32.mrb[80].mxu1 }
 0x191   : > { %v2032_v10 = vmax.f32 %v1902_v3, %v2000_v7  ;;  %v1912_v11 = vadd.f32 %v16669_v9, %v20471_v58  ;;  %v1906_v12 = vpop.f32.mrb[81].mxu1 }
 0x192   : > { %v2031_v13 = vmax.f32 %v1897_v6, %v1999_v8  ;;  %v1907_v14 = vadd.f32 %v20471_v58, %v1906_v12 }
 0x193   : > { %2065 = vst.msk [vmem:[#allocation2 + $0x3e0] sm:$0xff] %vm358_vm0, %v2032_v10  ;;  %v2002_v15 = vmul.f32 0.2, %v1912_v11 }
 0x194   : > { %2064 = vst.msk [vmem:[#allocation2 + $0x3d8] sm:$0xff] %vm358_vm0, %v2031_v13  ;;  %v2001_v16 = vmul.f32 0.2, %v1907_v14  ;;  %v16672_v17 = vpop.f32.mrb[82].mxu1 }
 0x195   : > { %v2034_v18 = vmax.f32 %v1912_v11, %v2002_v15  ;;  %v1922_v19 = vadd.f32 %v16672_v17, %v20471_v58  ;;  %v1916_v2 = vpop.f32.mrb[83].mxu1 }
 0x196   : > { %v2033_v20 = vmax.f32 %v1907_v14, %v2001_v16  ;;  %v1917_v21 = vadd.f32 %v20471_v58, %v1916_v2 }
 0x197   : > { %2067 = vst.msk [vmem:[#allocation2 + $0x400] sm:$0xff] %vm358_vm0, %v2034_v18  ;;  %v2004_v22 = vmul.f32 0.2, %v1922_v19  ;;  %v2648_v23 = vld [vmem:[#allocation2 + $0x3c8] ss:$2 sm:$0xff] }
 0x198   : > { %v3357_v24 = vld [vmem:[#allocation2 + $0x3c9] ss:$2 sm:$0xff]  ;;  %2066 = vst.msk [vmem:[#allocation2 + $0x3f8] sm:$0xff] %vm358_vm0, %v2033_v20  ;;  %v2003_v25 = vmul.f32 0.2, %v1917_v21  ;;  %v16675_v26 = vpop.f32.mrb[84].mxu1  ;;  %16777 = vmatprep.mubr.msk.f32.mxu1 %vm358_vm0, %v2648_v23 }
 0x199   : > { %16881 = vmatprep.mubr.msk.f32.mxu0 %vm358_vm0, %v3357_v24  ;;  %v2036_v27 = vmax.f32 %v1922_v19, %v2004_v22  ;;  %v1932_v28 = vadd.f32 %v16675_v26, %v20471_v58  ;;  %v1926_v29 = vpop.f32.mrb[85].mxu1 }
 0x19a   : > { %v2035_v30 = vmax.f32 %v1917_v21, %v2003_v25  ;;  %v1927_v31 = vadd.f32 %v20471_v58, %v1926_v29 }
 0x19b   : > { %2069 = vst.msk [vmem:[#allocation2 + $0x410] sm:$0xff] %vm358_vm0, %v2036_v27  ;;  %v2006_v32 = vmul.f32 0.2, %v1932_v28  ;;  %v2650_v33 = vld [vmem:[#allocation2 + $0x3d8] ss:$2 sm:$0xff] }
 0x19c   : > { %v3359_v34 = vld [vmem:[#allocation2 + $0x3d9] ss:$2 sm:$0xff]  ;;  %2068 = vst.msk [vmem:[#allocation2 + $0x408] sm:$0xff] %vm358_vm0, %v2035_v30  ;;  %v2005_v35 = vmul.f32 0.2, %v1927_v31  ;;  %v16678_v36 = vpop.f32.mrb[86].mxu1  ;;  %16778 = vmatmul.mubr.msk.f32.gmra.mrb[148].mxu1 %vm358_vm0, %v2650_v33 }
 0x19d   : > { %16882 = vmatmul.mubr.msk.f32.gmra.mrb[20].mxu0 %vm358_vm0, %v3359_v34  ;;  %v2038_v37 = vmax.f32 %v1932_v28, %v2006_v32  ;;  %v1942_v38 = vadd.f32 %v16678_v36, %v20471_v58  ;;  %v1936_v39 = vpop.f32.mrb[87].mxu1 }
 0x19e   : > { %v2037_v40 = vmax.f32 %v1927_v31, %v2005_v35  ;;  %v1937_v41 = vadd.f32 %v20471_v58, %v1936_v39 }
 0x19f   : > { %2071 = vst.msk [vmem:[#allocation2 + $0x430] sm:$0xff] %vm358_vm0, %v2038_v37  ;;  %v2008_v42 = vmul.f32 0.2, %v1942_v38 }
 0x1a0   : > { %2070 = vst.msk [vmem:[#allocation2 + $0x428] sm:$0xff] %vm358_vm0, %v2037_v40  ;;  %v2007_v43 = vmul.f32 0.2, %v1937_v41  ;;  %v16681_v44 = vpop.f32.mrb[88].mxu1 }
 0x1a1   : > { %v2040_v45 = vmax.f32 %v1942_v38, %v2008_v42  ;;  %v1952_v46 = vadd.f32 %v16681_v44, %v20471_v58  ;;  %v1946_v48 = vpop.f32.mrb[89].mxu1 }
 0x1a2   : > { %v2039_v49 = vmax.f32 %v1937_v41, %v2007_v43  ;;  %v1947_v50 = vadd.f32 %v20471_v58, %v1946_v48 }
 0x1a3   : > { %2073 = vst.msk [vmem:[#allocation2 + $0x440] sm:$0xff] %vm358_vm0, %v2040_v45  ;;  %v2010_v51 = vmul.f32 0.2, %v1952_v46 }
 0x1a4   : > { %2072 = vst.msk [vmem:[#allocation2 + $0x438] sm:$0xff] %vm358_vm0, %v2039_v49  ;;  %v2009_v52 = vmul.f32 0.2, %v1947_v50  ;;  %v16684_v53 = vpop.f32.mrb[90].mxu1 }
 0x1a5   : > { %v2042_v54 = vmax.f32 %v1952_v46, %v2010_v51  ;;  %v1962_v55 = vadd.f32 %v16684_v53, %v20471_v58  ;;  %v1956_v57 = vpop.f32.mrb[91].mxu1 }
 0x1a6   : > { %v2041_v60 = vmax.f32 %v1947_v50, %v2009_v52  ;;  %v1957_v61 = vadd.f32 %v20471_v58, %v1956_v57 }
 0x1a7   : > { %2075 = vst.msk [vmem:[#allocation2 + $0x460] sm:$0xff] %vm358_vm0, %v2042_v54  ;;  %v2012_v62 = vmul.f32 0.2, %v1962_v55  ;;  %v2652_v63 = vld [vmem:[#allocation2 + $0x428] ss:$2 sm:$0xff] }
 0x1a8   : > { %v3361_v56 = vld [vmem:[#allocation2 + $0x429] ss:$2 sm:$0xff]  ;;  %2074 = vst.msk [vmem:[#allocation2 + $0x458] sm:$0xff] %vm358_vm0, %v2041_v60  ;;  %v2011_v0 = vmul.f32 0.2, %v1957_v61  ;;  %v16687_v1 = vpop.f32.mrb[92].mxu1  ;;  %16780 = vmatprep.mubr.msk.f32.mxu1 %vm358_vm0, %v2652_v63 }
 0x1a9   : > { %16884 = vmatprep.mubr.msk.f32.mxu0 %vm358_vm0, %v3361_v56  ;;  %v2044_v3 = vmax.f32 %v1962_v55, %v2012_v62  ;;  %v1972_v4 = vadd.f32 %v16687_v1, %v20471_v58  ;;  %v1966_v5 = vpop.f32.mrb[93].mxu1 }
 0x1aa   : > { %v2043_v6 = vmax.f32 %v1957_v61, %v2011_v0  ;;  %v1967_v7 = vadd.f32 %v20471_v58, %v1966_v5 }
 0x1ab   : > { %2077 = vst.msk [vmem:[#allocation2 + $0x470] sm:$0xff] %vm358_vm0, %v2044_v3  ;;  %v2014_v8 = vmul.f32 0.2, %v1972_v4  ;;  %v2654_v9 = vld [vmem:[#allocation2 + $0x438] ss:$2 sm:$0xff] }
 0x1ac   : > { %v3363_v10 = vld [vmem:[#allocation2 + $0x439] ss:$2 sm:$0xff]  ;;  %2076 = vst.msk [vmem:[#allocation2 + $0x468] sm:$0xff] %vm358_vm0, %v2043_v6  ;;  %v2013_v11 = vmul.f32 0.2, %v1967_v7  ;;  %v16690_v12 = vpop.f32.mrb[94].mxu1  ;;  %16781 = vmatmul.mubr.msk.f32.gmra.mrb[150].mxu1 %vm358_vm0, %v2654_v9 }
 0x1ad   : > { %16885 = vmatmul.mubr.msk.f32.gmra.mrb[22].mxu0 %vm358_vm0, %v3363_v10  ;;  %v2046_v13 = vmax.f32 %v1972_v4, %v2014_v8  ;;  %v1982_v14 = vadd.f32 %v16690_v12, %v20471_v58  ;;  %v1976_v15 = vpop.f32.mrb[95].mxu1 }
 0x1ae   : > { %v2045_v16 = vmax.f32 %v1967_v7, %v2013_v11  ;;  %v1977_v17 = vadd.f32 %v20471_v58, %v1976_v15 }
 0x1af   : > { %2079 = vst.msk [vmem:[#allocation2 + $0x490] sm:$0xff] %vm358_vm0, %v2046_v13  ;;  %v2016_v18 = vmul.f32 0.2, %v1982_v14 }
 0x1b0   : > { %2078 = vst.msk [vmem:[#allocation2 + $0x488] sm:$0xff] %vm358_vm0, %v2045_v16  ;;  %v2015_v19 = vmul.f32 0.2, %v1977_v17  ;;  %v16697_v2 = vpop.f32.mrb[96].mxu1 }
 0x1b1   : > { %v2048_v20 = vmax.f32 %v1982_v14, %v2016_v18  ;;  %v2291_v21 = vadd.f32 %v16697_v2, %v20471_v58  ;;  %v2285_v22 = vpop.f32.mrb[97].mxu1 }
 0x1b2   : > { %v2047_v23 = vmax.f32 %v1977_v17, %v2015_v19  ;;  %v2286_v24 = vadd.f32 %v20471_v58, %v2285_v22 }
 0x1b3   : > { %2081 = vst.msk [vmem:[#allocation2 + $0x4a0] sm:$0xff] %vm358_vm0, %v2048_v20  ;;  %v2445_v25 = vmul.f32 0.2, %v2291_v21 }
 0x1b4   : > { %2080 = vst.msk [vmem:[#allocation2 + $0x498] sm:$0xff] %vm358_vm0, %v2047_v23  ;;  %v2444_v26 = vmul.f32 0.2, %v2286_v24  ;;  %v16700_v27 = vpop.f32.mrb[98].mxu1 }
 0x1b5   : > { %v2477_v28 = vmax.f32 %v2291_v21, %v2445_v25  ;;  %v2301_v29 = vadd.f32 %v16700_v27, %v20471_v58  ;;  %v2295_v30 = vpop.f32.mrb[99].mxu1 }
 0x1b6   : > { %v2476_v31 = vmax.f32 %v2286_v24, %v2444_v26  ;;  %v2296_v32 = vadd.f32 %v20471_v58, %v2295_v30 }
 0x1b7   : > { %2510 = vst.msk [vmem:[#allocation2 + $0x4c0] sm:$0xff] %vm358_vm0, %v2477_v28  ;;  %v2447_v33 = vmul.f32 0.2, %v2301_v29  ;;  %v2656_v34 = vld [vmem:[#allocation2 + $0x488] ss:$2 sm:$0xff] }
 0x1b8   : > { %v3365_v35 = vld [vmem:[#allocation2 + $0x489] ss:$2 sm:$0xff]  ;;  %2509 = vst.msk [vmem:[#allocation2 + $0x4b8] sm:$0xff] %vm358_vm0, %v2476_v31  ;;  %v2446_v36 = vmul.f32 0.2, %v2296_v32  ;;  %v16703_v37 = vpop.f32.mrb[100].mxu1  ;;  %16783 = vmatprep.mubr.msk.f32.mxu1 %vm358_vm0, %v2656_v34 }
 0x1b9   : > { %16887 = vmatprep.mubr.msk.f32.mxu0 %vm358_vm0, %v3365_v35  ;;  %v2479_v38 = vmax.f32 %v2301_v29, %v2447_v33  ;;  %v2311_v39 = vadd.f32 %v16703_v37, %v20471_v58  ;;  %v2305_v40 = vpop.f32.mrb[101].mxu1 }
 0x1ba   : > { %v2478_v41 = vmax.f32 %v2296_v32, %v2446_v36  ;;  %v2306_v42 = vadd.f32 %v20471_v58, %v2305_v40 }
 0x1bb   : > { %2512 = vst.msk [vmem:[#allocation2 + $0x4d0] sm:$0xff] %vm358_vm0, %v2479_v38  ;;  %v2449_v43 = vmul.f32 0.2, %v2311_v39  ;;  %v2658_v44 = vld [vmem:[#allocation2 + $0x498] ss:$2 sm:$0xff] }
 0x1bc   : > { %v3367_v45 = vld [vmem:[#allocation2 + $0x499] ss:$2 sm:$0xff]  ;;  %2511 = vst.msk [vmem:[#allocation2 + $0x4c8] sm:$0xff] %vm358_vm0, %v2478_v41  ;;  %v2448_v46 = vmul.f32 0.2, %v2306_v42  ;;  %v16706_v48 = vpop.f32.mrb[102].mxu1  ;;  %16784 = vmatmul.mubr.msk.f32.gmra.mrb[152].mxu1 %vm358_vm0, %v2658_v44 }
 0x1bd   : > { %16888 = vmatmul.mubr.msk.f32.gmra.mrb[24].mxu0 %vm358_vm0, %v3367_v45  ;;  %v2481_v49 = vmax.f32 %v2311_v39, %v2449_v43  ;;  %v2321_v50 = vadd.f32 %v16706_v48, %v20471_v58  ;;  %v2315_v51 = vpop.f32.mrb[103].mxu1 }
 0x1be   : > { %v2480_v52 = vmax.f32 %v2306_v42, %v2448_v46  ;;  %v2316_v53 = vadd.f32 %v20471_v58, %v2315_v51 }
 0x1bf   : > { %2514 = vst.msk [vmem:[#allocation2 + $0x4f0] sm:$0xff] %vm358_vm0, %v2481_v49  ;;  %v2451_v54 = vmul.f32 0.2, %v2321_v50 }
 0x1c0   : > { %2513 = vst.msk [vmem:[#allocation2 + $0x4e8] sm:$0xff] %vm358_vm0, %v2480_v52  ;;  %v2450_v55 = vmul.f32 0.2, %v2316_v53  ;;  %v16709_v57 = vpop.f32.mrb[104].mxu1 }
 0x1c1   : > { %v2483_v60 = vmax.f32 %v2321_v50, %v2451_v54  ;;  %v2331_v61 = vadd.f32 %v16709_v57, %v20471_v58  ;;  %v2325_v62 = vpop.f32.mrb[105].mxu1 }
 0x1c2   : > { %v2482_v63 = vmax.f32 %v2316_v53, %v2450_v55  ;;  %v2326_v56 = vadd.f32 %v20471_v58, %v2325_v62 }
 0x1c3   : > { %2516 = vst.msk [vmem:[#allocation2 + $0x500] sm:$0xff] %vm358_vm0, %v2483_v60  ;;  %v2453_v0 = vmul.f32 0.2, %v2331_v61 }
 0x1c4   : > { %2515 = vst.msk [vmem:[#allocation2 + $0x4f8] sm:$0xff] %vm358_vm0, %v2482_v63  ;;  %v2452_v1 = vmul.f32 0.2, %v2326_v56  ;;  %v16712_v3 = vpop.f32.mrb[106].mxu1 }
 0x1c5   : > { %v2485_v4 = vmax.f32 %v2331_v61, %v2453_v0  ;;  %v2341_v5 = vadd.f32 %v16712_v3, %v20471_v58  ;;  %v2335_v6 = vpop.f32.mrb[107].mxu1 }
 0x1c6   : > { %v2484_v7 = vmax.f32 %v2326_v56, %v2452_v1  ;;  %v2336_v8 = vadd.f32 %v20471_v58, %v2335_v6 }
 0x1c7   : > { %2518 = vst.msk [vmem:[#allocation2 + $0x520] sm:$0xff] %vm358_vm0, %v2485_v4  ;;  %v2455_v9 = vmul.f32 0.2, %v2341_v5  ;;  %v2660_v10 = vld [vmem:[#allocation2 + $0x4e8] ss:$2 sm:$0xff] }
 0x1c8   : > { %v3369_v11 = vld [vmem:[#allocation2 + $0x4e9] ss:$2 sm:$0xff]  ;;  %2517 = vst.msk [vmem:[#allocation2 + $0x518] sm:$0xff] %vm358_vm0, %v2484_v7  ;;  %v2454_v12 = vmul.f32 0.2, %v2336_v8  ;;  %v16715_v13 = vpop.f32.mrb[108].mxu1  ;;  %16786 = vmatprep.mubr.msk.f32.mxu1 %vm358_vm0, %v2660_v10 }
 0x1c9   : > { %16890 = vmatprep.mubr.msk.f32.mxu0 %vm358_vm0, %v3369_v11  ;;  %v2487_v14 = vmax.f32 %v2341_v5, %v2455_v9  ;;  %v2351_v15 = vadd.f32 %v16715_v13, %v20471_v58  ;;  %v2345_v16 = vpop.f32.mrb[109].mxu1 }
 0x1ca   : > { %v2486_v17 = vmax.f32 %v2336_v8, %v2454_v12  ;;  %v2346_v18 = vadd.f32 %v20471_v58, %v2345_v16 }
 0x1cb   : > { %2520 = vst.msk [vmem:[#allocation2 + $0x530] sm:$0xff] %vm358_vm0, %v2487_v14  ;;  %v2457_v19 = vmul.f32 0.2, %v2351_v15  ;;  %v2662_v2 = vld [vmem:[#allocation2 + $0x4f8] ss:$2 sm:$0xff] }
 0x1cc   : > { %v3371_v20 = vld [vmem:[#allocation2 + $0x4f9] ss:$2 sm:$0xff]  ;;  %2519 = vst.msk [vmem:[#allocation2 + $0x528] sm:$0xff] %vm358_vm0, %v2486_v17  ;;  %v2456_v21 = vmul.f32 0.2, %v2346_v18  ;;  %v16718_v22 = vpop.f32.mrb[110].mxu1  ;;  %16787 = vmatmul.mubr.msk.f32.gmra.mrb[154].mxu1 %vm358_vm0, %v2662_v2 }
 0x1cd   : > { %16891 = vmatmul.mubr.msk.f32.gmra.mrb[26].mxu0 %vm358_vm0, %v3371_v20  ;;  %v2489_v23 = vmax.f32 %v2351_v15, %v2457_v19  ;;  %v2361_v24 = vadd.f32 %v16718_v22, %v20471_v58  ;;  %v2355_v25 = vpop.f32.mrb[111].mxu1 }
 0x1ce   : > { %v2488_v26 = vmax.f32 %v2346_v18, %v2456_v21  ;;  %v2356_v27 = vadd.f32 %v20471_v58, %v2355_v25  ;;  %v14717_v25 = vld [vmem:[%s22447_s3 + $0x50] sm:$0xff] }
 0x1cf   : > { %2522 = vst.msk [vmem:[#allocation2 + $0x550] sm:$0xff] %vm358_vm0, %v2489_v23  ;;  %v2459_v28 = vmul.f32 0.2, %v2361_v24  ;;  %v2542_v23 = vld [vmem:[#allocation2 + $0x7] ss:$2 sm:$0xff] }
 0x1d0   : > { %2521 = vst.msk [vmem:[#allocation2 + $0x548] sm:$0xff] %vm358_vm0, %v2488_v26  ;;  %v2458_v29 = vmul.f32 0.2, %v2356_v27  ;;  %v16721_v30 = vpop.f32.mrb[112].mxu1 }
 0x1d1   : > { %v2491_v31 = vmax.f32 %v2361_v24, %v2459_v28  ;;  %v2371_v32 = vadd.f32 %v16721_v30, %v20471_v58  ;;  %v2365_v33 = vpop.f32.mrb[113].mxu1  ;;  %v3737_v24 = vld [vmem:[#allocation2 + $0xa] ss:$2 sm:$0xff]  ;;  %v2544_v30 = vld [vmem:[#allocation2 + $0x17] ss:$2 sm:$0xff] }
 0x1d2   : > { %v2490_v34 = vmax.f32 %v2356_v27, %v2458_v29  ;;  %v2366_v35 = vadd.f32 %v20471_v58, %v2365_v33  ;;  %v14718_v29 = vld [vmem:[%s22447_s3 + $0x58] sm:$0xff]  ;;  %v2546_v33 = vld [vmem:[#allocation2 + $0x67] ss:$2 sm:$0xff] }
 0x1d3   : > { %2524 = vst.msk [vmem:[#allocation2 + $0x560] sm:$0xff] %vm358_vm0, %v2491_v31  ;;  %v2461_v36 = vmul.f32 0.2, %v2371_v32  ;;  %v3739_v31 = vld [vmem:[#allocation2 + $0x1a] ss:$2 sm:$0xff] }
 0x1d4   : > { %2523 = vst.msk [vmem:[#allocation2 + $0x558] sm:$0xff] %vm358_vm0, %v2490_v34  ;;  %v2460_v37 = vmul.f32 0.2, %v2366_v35  ;;  %v16724_v38 = vpop.f32.mrb[114].mxu1  ;;  %v3741_v34 = vld [vmem:[#allocation2 + $0x6a] ss:$2 sm:$0xff] }
 0x1d5   : > { %v2493_v39 = vmax.f32 %v2371_v32, %v2461_v36  ;;  %v2381_v40 = vadd.f32 %v16724_v38, %v20471_v58  ;;  %v2375_v41 = vpop.f32.mrb[115].mxu1  ;;  %v20640_v32 = vpack.c.bf16 %v14718_v29, %v14717_v25  ;;  %v3743_v36 = vld [vmem:[#allocation2 + $0x7a] ss:$2 sm:$0xff]  ;;  %v3745_v38 = vld [vmem:[#allocation2 + $0xca] ss:$2 sm:$0xff] }
 0x1d6   : > { %v2492_v42 = vmax.f32 %v2366_v35, %v2460_v37  ;;  %v2376_v43 = vadd.f32 %v20471_v58, %v2375_v41  ;;  %v2548_v35 = vld [vmem:[#allocation2 + $0x77] ss:$2 sm:$0xff]  ;;  %v2550_v37 = vld [vmem:[#allocation2 + $0xc7] ss:$2 sm:$0xff]  ;;  %v3749_v41 = vld [vmem:[#allocation2 + $0x12a] ss:$2 sm:$0xff] }
 0x1d7   : > { %2526 = vst.msk [vmem:[#allocation2 + $0x580] sm:$0xff] %vm358_vm0, %v2493_v39  ;;  %v2463_v44 = vmul.f32 0.2, %v2381_v40  ;;  %v2664_v45 = vld [vmem:[#allocation2 + $0x548] ss:$2 sm:$0xff] }
 0x1d8   : > { %v3373_v46 = vld [vmem:[#allocation2 + $0x549] ss:$2 sm:$0xff]  ;;  %2525 = vst.msk [vmem:[#allocation2 + $0x578] sm:$0xff] %vm358_vm0, %v2492_v42  ;;  %v2462_v48 = vmul.f32 0.2, %v2376_v43  ;;  %v16727_v49 = vpop.f32.mrb[116].mxu1  ;;  %16789 = vmatprep.mubr.msk.f32.mxu1 %vm358_vm0, %v2664_v45 }
 0x1d9   : > { %16893 = vmatprep.mubr.msk.f32.mxu0 %vm358_vm0, %v3373_v46  ;;  %v2495_v50 = vmax.f32 %v2381_v40, %v2463_v44  ;;  %v2391_v51 = vadd.f32 %v16727_v49, %v20471_v58  ;;  %v2385_v52 = vpop.f32.mrb[117].mxu1  ;;  %v3747_v39 = vld [vmem:[#allocation2 + $0xda] ss:$2 sm:$0xff]  ;;  %v2554_v40 = vld [vmem:[#allocation2 + $0x127] ss:$2 sm:$0xff] }
 0x1da   : > { %v2494_v53 = vmax.f32 %v2376_v43, %v2462_v48  ;;  %v2386_v54 = vadd.f32 %v20471_v58, %v2385_v52  ;;  %v2556_v42 = vld [vmem:[#allocation2 + $0x137] ss:$2 sm:$0xff]  ;;  %v3751_v43 = vld [vmem:[#allocation2 + $0x13a] ss:$2 sm:$0xff]  ;;  %v2558_v44 = vld [vmem:[#allocation2 + $0x187] ss:$2 sm:$0xff] }
 0x1db   : > { %2528 = vst.msk [vmem:[#allocation2 + $0x590] sm:$0xff] %vm358_vm0, %v2495_v50  ;;  %v2465_v55 = vmul.f32 0.2, %v2391_v51  ;;  %v2666_v57 = vld [vmem:[#allocation2 + $0x558] ss:$2 sm:$0xff] }
 0x1dc   : > { %v3375_v60 = vld [vmem:[#allocation2 + $0x559] ss:$2 sm:$0xff]  ;;  %2527 = vst.msk [vmem:[#allocation2 + $0x588] sm:$0xff] %vm358_vm0, %v2494_v53  ;;  %v2464_v61 = vmul.f32 0.2, %v2386_v54  ;;  %v16730_v62 = vpop.f32.mrb[118].mxu1  ;;  %16790 = vmatmul.mubr.msk.f32.gmra.mrb[156].mxu1 %vm358_vm0, %v2666_v57 }
 0x1dd   : > { %16894 = vmatmul.mubr.msk.f32.gmra.mrb[28].mxu0 %vm358_vm0, %v3375_v60  ;;  %v2497_v63 = vmax.f32 %v2391_v51, %v2465_v55  ;;  %v2401_v56 = vadd.f32 %v16730_v62, %v20471_v58  ;;  %v2395_v0 = vpop.f32.mrb[119].mxu1  ;;  %v3753_v45 = vld [vmem:[#allocation2 + $0x18a] ss:$2 sm:$0xff]  ;;  %v2560_v46 = vld [vmem:[#allocation2 + $0x197] ss:$2 sm:$0xff] }
 0x1de   : > { %v2496_v1 = vmax.f32 %v2386_v54, %v2464_v61  ;;  %v2396_v3 = vadd.f32 %v20471_v58, %v2395_v0  ;;  %v3755_v48 = vld [vmem:[#allocation2 + $0x19a] ss:$2 sm:$0xff]  ;;  %v2562_v49 = vld [vmem:[#allocation2 + $0x1e7] ss:$2 sm:$0xff]  ;;  %v3757_v50 = vld [vmem:[#allocation2 + $0x1ea] ss:$2 sm:$0xff] }
 0x1df   : > { %2530 = vst.msk [vmem:[#allocation2 + $0x5b0] sm:$0xff] %vm358_vm0, %v2497_v63  ;;  %v2467_v4 = vmul.f32 0.2, %v2401_v56  ;;  %v2564_v51 = vld [vmem:[#allocation2 + $0x1f7] ss:$2 sm:$0xff] }
 0x1e0   : > { %2529 = vst.msk [vmem:[#allocation2 + $0x5a8] sm:$0xff] %vm358_vm0, %v2496_v1  ;;  %v2466_v5 = vmul.f32 0.2, %v2396_v3  ;;  %v16733_v6 = vpop.f32.mrb[120].mxu1  ;;  %v3759_v52 = vld [vmem:[#allocation2 + $0x1fa] ss:$2 sm:$0xff] }
 0x1e1   : > { %v2499_v7 = vmax.f32 %v2401_v56, %v2467_v4  ;;  %v2411_v8 = vadd.f32 %v16733_v6, %v20471_v58  ;;  %v2405_v9 = vpop.f32.mrb[121].mxu1  ;;  %v2566_v53 = vld [vmem:[#allocation2 + $0x247] ss:$2 sm:$0xff]  ;;  %v3761_v54 = vld [vmem:[#allocation2 + $0x24a] ss:$2 sm:$0xff] }
 0x1e2   : > { %v2498_v10 = vmax.f32 %v2396_v3, %v2466_v5  ;;  %v2406_v11 = vadd.f32 %v20471_v58, %v2405_v9  ;;  %v2568_v55 = vld [vmem:[#allocation2 + $0x257] ss:$2 sm:$0xff]  ;;  %v3763_v57 = vld [vmem:[#allocation2 + $0x25a] ss:$2 sm:$0xff]  ;;  %v2570_v60 = vld [vmem:[#allocation2 + $0x2a7] ss:$2 sm:$0xff] }
 0x1e3   : > { %2532 = vst.msk [vmem:[#allocation2 + $0x5c0] sm:$0xff] %vm358_vm0, %v2499_v7  ;;  %v2469_v12 = vmul.f32 0.2, %v2411_v8  ;;  %v3765_v61 = vld [vmem:[#allocation2 + $0x2aa] ss:$2 sm:$0xff] }
 0x1e4   : > { %2531 = vst.msk [vmem:[#allocation2 + $0x5b8] sm:$0xff] %vm358_vm0, %v2498_v10  ;;  %v2468_v13 = vmul.f32 0.2, %v2406_v11  ;;  %v16736_v14 = vpop.f32.mrb[122].mxu1  ;;  %v2572_v62 = vld [vmem:[#allocation2 + $0x2b7] ss:$2 sm:$0xff] }
 0x1e5   : > { %v2501_v15 = vmax.f32 %v2411_v8, %v2469_v12  ;;  %v2421_v16 = vadd.f32 %v16736_v14, %v20471_v58  ;;  %v2415_v17 = vpop.f32.mrb[123].mxu1  ;;  %v3767_v63 = vld [vmem:[#allocation2 + $0x2ba] ss:$2 sm:$0xff]  ;;  %v2574_v56 = vld [vmem:[#allocation2 + $0x307] ss:$2 sm:$0xff] }
 0x1e6   : > { %v2500_v18 = vmax.f32 %v2406_v11, %v2468_v13  ;;  %v2416_v19 = vadd.f32 %v20471_v58, %v2415_v17  ;;  %v3769_v0 = vld [vmem:[#allocation2 + $0x30a] ss:$2 sm:$0xff]  ;;  %v2576_v1 = vld [vmem:[#allocation2 + $0x317] ss:$2 sm:$0xff]  ;;  %v3771_v3 = vld [vmem:[#allocation2 + $0x31a] ss:$2 sm:$0xff] }
 0x1e7   : > { %v2668_v2 = vld [vmem:[#allocation2 + $0x5a8] ss:$2 sm:$0xff]  ;;  %v3377_v20 = vld [vmem:[#allocation2 + $0x5a9] ss:$2 sm:$0xff]  ;;  %2534 = vst.msk [vmem:[#allocation2 + $0x5e0] sm:$0xff] %vm358_vm0, %v2501_v15 }
 0x1e8   : > { %16792 = vmatprep.mubr.msk.f32.mxu1 %vm358_vm0, %v2668_v2  ;;  %16896 = vmatprep.mubr.msk.f32.mxu0 %vm358_vm0, %v3377_v20  ;;  %2533 = vst.msk [vmem:[#allocation2 + $0x5d8] sm:$0xff] %vm358_vm0, %v2500_v18  ;;  %v2471_v21 = vmul.f32 0.2, %v2421_v16  ;;  %v2470_v22 = vmul.f32 0.2, %v2416_v19 }
 0x1e9   : > { %v2578_v4 = vld [vmem:[#allocation2 + $0x367] ss:$2 sm:$0xff]  ;;  %v3773_v5 = vld [vmem:[#allocation2 + $0x36a] ss:$2 sm:$0xff]  ;;  %v2580_v6 = vld [vmem:[#allocation2 + $0x377] ss:$2 sm:$0xff] }
 0x1ea   : > { %v2503_v26 = vmax.f32 %v2421_v16, %v2471_v21  ;;  %v2502_v58 = vmax.f32 %v2416_v19, %v2470_v22  ;;  %v3775_v7 = vld [vmem:[#allocation2 + $0x37a] ss:$2 sm:$0xff]  ;;  %v2582_v8 = vld [vmem:[#allocation2 + $0x3c7] ss:$2 sm:$0xff]  ;;  %v3777_v9 = vld [vmem:[#allocation2 + $0x3ca] ss:$2 sm:$0xff] }
 0x1eb   : > { %v2670_v27 = vld [vmem:[#allocation2 + $0x5b8] ss:$2 sm:$0xff]  ;;  %v3379_v28 = vld [vmem:[#allocation2 + $0x5b9] ss:$2 sm:$0xff] }
 0x1ec   : > { %16793 = vmatmul.mubr.msk.f32.gmra.mrb[158].mxu1 %vm358_vm0, %v2670_v27  ;;  %16897 = vmatmul.mubr.msk.f32.gmra.mrb[30].mxu0 %vm358_vm0, %v3379_v28  ;;  %2536 = vst.msk [vmem:[#allocation2 + $0x5f0] sm:$0xff] %vm358_vm0, %v2503_v26  ;;  %2535 = vst.msk [vmem:[#allocation2 + $0x5e8] sm:$0xff] %vm358_vm0, %v2502_v58  ;;  %v2584_v10 = vld [vmem:[#allocation2 + $0x3d7] ss:$2 sm:$0xff]  ;;  %v3779_v11 = vld [vmem:[#allocation2 + $0x3da] ss:$2 sm:$0xff] }
 0x1ed   : > { %16799 = vmatprep.mubr.msk.f32.mxu1 %vm358_vm0, %v2542_v23  ;;  %16903 = vmatprep.mubr.msk.f32.mxu0 %vm358_vm0, %v3737_v24  ;;  %v2586_v12 = vld [vmem:[#allocation2 + $0x427] ss:$2 sm:$0xff]  ;;  %v3781_v13 = vld [vmem:[#allocation2 + $0x42a] ss:$2 sm:$0xff]  ;;  %v2588_v14 = vld [vmem:[#allocation2 + $0x437] ss:$2 sm:$0xff] }
 0x1ee   : > { %v3783_v15 = vld [vmem:[#allocation2 + $0x43a] ss:$2 sm:$0xff]  ;;  %v2590_v16 = vld [vmem:[#allocation2 + $0x487] ss:$2 sm:$0xff]  ;;  %v3785_v17 = vld [vmem:[#allocation2 + $0x48a] ss:$2 sm:$0xff] }
 0x1ef   : > { %v2592_v18 = vld [vmem:[#allocation2 + $0x497] ss:$2 sm:$0xff]  ;;  %v3787_v19 = vld [vmem:[#allocation2 + $0x49a] ss:$2 sm:$0xff]  ;;  %v2594_v2 = vld [vmem:[#allocation2 + $0x4e7] ss:$2 sm:$0xff] }
 0x1f0   : > { %16800 = vmatmul.mubr.msk.f32.vlgmr.msra.gmra.mrb[128].mxu1 %vm358_vm0, %v2544_v30  ;;  %16904 = vmatmul.mubr.msk.f32.vlgmr.msra.gmra.mrb[0].mxu0 %vm358_vm0, %v3739_v31  ;;  %v3789_v20 = vld [vmem:[#allocation2 + $0x4ea] ss:$2 sm:$0xff]  ;;  %v2596_v21 = vld [vmem:[#allocation2 + $0x4f7] ss:$2 sm:$0xff]  ;;  %v3791_v22 = vld [vmem:[#allocation2 + $0x4fa] ss:$2 sm:$0xff] }
 0x1f1   : > { %18282 = vmatpush3.bf16.msra.mxu0 %v20473_v59  ;;  %16802 = vmatprep.mubr.msk.f32.mxu1 %vm358_vm0, %v2546_v33  ;;  %v2552_v59 = vld [vmem:[#allocation2 + $0xd7] ss:$2 sm:$0xff]  ;;  %v2598_v23 = vld [vmem:[#allocation2 + $0x547] ss:$2 sm:$0xff]  ;;  %v3793_v24 = vld [vmem:[#allocation2 + $0x54a] ss:$2 sm:$0xff] }
 0x1f2   : > { %16906 = vmatprep.mubr.msk.f32.mxu0 %vm358_vm0, %v3741_v34  ;;  %18284 = vmatprep.subr.bf16.mxu0 %v20640_v32  ;;  %v2600_v25 = vld [vmem:[#allocation2 + $0x557] ss:$2 sm:$0xff]  ;;  %v3795_v26 = vld [vmem:[#allocation2 + $0x55a] ss:$2 sm:$0xff]  ;;  %v2602_v58 = vld [vmem:[#allocation2 + $0x5a7] ss:$2 sm:$0xff] }
 0x1f3   : > { %v3797_v27 = vld [vmem:[#allocation2 + $0x5aa] ss:$2 sm:$0xff]  ;;  %v2604_v28 = vld [vmem:[#allocation2 + $0x5b7] ss:$2 sm:$0xff]  ;;  %v3799_v29 = vld [vmem:[#allocation2 + $0x5ba] ss:$2 sm:$0xff] }
 0x1f4   : > { %16803 = vmatmul.mubr.msk.f32.gmra.mrb[130].mxu1 %vm358_vm0, %v2548_v35  ;;  %16907 = vmatmul.mubr.msk.f32.gmra.mrb[2].mxu0 %vm358_vm0, %v3743_v36  ;;  %v14751_v30 = vld [vmem:[%s22447_s3 + $0x60] sm:$0xff]  ;;  %v14752_v31 = vld [vmem:[%s22447_s3 + $0x68] sm:$0xff] }
 0x1f5   : > { %16805 = vmatprep.mubr.msk.f32.mxu1 %vm358_vm0, %v2550_v37  ;;  %16909 = vmatprep.mubr.msk.f32.mxu0 %vm358_vm0, %v3745_v38  ;;  %v4157_v33 = vld [vmem:[#allocation2 + $0x37] ss:$2 sm:$0xff]  ;;  %v20713_v34 = vpack.c.bf16 %v14752_v31, %v14751_v30  ;;  %v4159_v35 = vld [vmem:[#allocation2 + $0x47] ss:$2 sm:$0xff]  ;;  %v4593_v30 = vld [vmem:[#allocation2 + $0x1b8] ss:$2 sm:$0xff] }
 0x1f6   : > { %v4161_v36 = vld [vmem:[#allocation2 + $0x97] ss:$2 sm:$0xff]  ;;  %v4163_v37 = vld [vmem:[#allocation2 + $0xa7] ss:$2 sm:$0xff]  ;;  %v4595_v31 = vld [vmem:[#allocation2 + $0x1c8] ss:$2 sm:$0xff] }
 0x1f7   : > { %v4165_v38 = vld [vmem:[#allocation2 + $0xf7] ss:$2 sm:$0xff] }
 0x1f8   : > { %16806 = vmatmul.mubr.msk.f32.gmra.mrb[132].mxu1 %vm358_vm0, %v2552_v59  ;;  %16910 = vmatmul.mubr.msk.f32.gmra.mrb[4].mxu0 %vm358_vm0, %v3747_v39  ;;  %v4167_v59 = vld [vmem:[#allocation2 + $0x107] ss:$2 sm:$0xff]  ;;  %v4169_v39 = vld [vmem:[#allocation2 + $0x157] ss:$2 sm:$0xff] }
 0x1f9   : > { %16808 = vmatprep.mubr.msk.f32.mxu1 %vm358_vm0, %v2554_v40  ;;  %16912 = vmatprep.mubr.msk.f32.mxu0 %vm358_vm0, %v3749_v41  ;;  %v4171_v40 = vld [vmem:[#allocation2 + $0x167] ss:$2 sm:$0xff] }
 0x1fa   : > { %v4175_v41 = vld [vmem:[#allocation2 + $0x1c7] ss:$2 sm:$0xff] }
 0x1fc   : > { %16809 = vmatmul.mubr.msk.f32.gmra.mrb[134].mxu1 %vm358_vm0, %v2556_v42  ;;  %16913 = vmatmul.mubr.msk.f32.gmra.mrb[6].mxu0 %vm358_vm0, %v3751_v43  ;;  %v4177_v42 = vld [vmem:[#allocation2 + $0x217] ss:$2 sm:$0xff]  ;;  %v16739_v43 = vpop.f32.mrb[124].mxu1 }
 0x1fd   : > { %16811 = vmatprep.mubr.msk.f32.mxu1 %vm358_vm0, %v2558_v44  ;;  %16915 = vmatprep.mubr.msk.f32.mxu0 %vm358_vm0, %v3753_v45  ;;  %v19413_v44 = vld [vmem:[%s22446_s2] ss:$0 sm:$0xff] }
 0x1fe   : > { %v2431_v45 = vadd.f32 %v19413_v44, %v16739_v43  ;;  %v4621_v43 = vld [vmem:[#allocation2 + $0x458] ss:$2 sm:$0xff] }
 0x200   : > { %16812 = vmatmul.mubr.msk.f32.gmra.mrb[136].mxu1 %vm358_vm0, %v2560_v46  ;;  %16916 = vmatmul.mubr.msk.f32.gmra.mrb[8].mxu0 %vm358_vm0, %v3755_v48  ;;  %v2425_v46 = vpop.f32.mrb[125].mxu1 }
 0x201   : > { %16814 = vmatprep.mubr.msk.f32.mxu1 %vm358_vm0, %v2562_v49  ;;  %16918 = vmatprep.mubr.msk.f32.mxu0 %vm358_vm0, %v3757_v50  ;;  %v2426_v48 = vadd.f32 %v19413_v44, %v2425_v46  ;;  %v16742_v49 = vpop.f32.mrb[126].mxu1  ;;  %v4179_v50 = vld [vmem:[#allocation2 + $0x227] ss:$2 sm:$0xff]  ;;  %v4627_v46 = vld [vmem:[#allocation2 + $0x4c8] ss:$2 sm:$0xff] }
 0x204   : > { %16815 = vmatmul.mubr.msk.f32.gmra.mrb[138].mxu1 %vm358_vm0, %v2564_v51  ;;  %16919 = vmatmul.mubr.msk.f32.gmra.mrb[10].mxu0 %vm358_vm0, %v3759_v52  ;;  %v2473_v51 = vmul.f32 0.2, %v2431_v45  ;;  %v2441_v52 = vadd.f32 %v19413_v44, %v16742_v49  ;;  %v4631_v49 = vld [vmem:[#allocation2 + $0x528] ss:$2 sm:$0xff] }
 0x205   : > { %16817 = vmatprep.mubr.msk.f32.mxu1 %vm358_vm0, %v2566_v53  ;;  %16921 = vmatprep.mubr.msk.f32.mxu0 %vm358_vm0, %v3761_v54  ;;  %v2435_v53 = vpop.f32.mrb[127].mxu1  ;;  %v4181_v54 = vld [vmem:[#allocation2 + $0x277] ss:$2 sm:$0xff] }
 0x208   : > { %16818 = vmatmul.mubr.msk.f32.gmra.mrb[140].mxu1 %vm358_vm0, %v2568_v55  ;;  %16922 = vmatmul.mubr.msk.f32.gmra.mrb[12].mxu0 %vm358_vm0, %v3763_v57  ;;  %v2472_v55 = vmul.f32 0.2, %v2426_v48  ;;  %v2436_v57 = vadd.f32 %v19413_v44, %v2435_v53  ;;  %v4623_v44 = vld [vmem:[#allocation2 + $0x468] ss:$2 sm:$0xff] }
 0x209   : > { %16820 = vmatprep.mubr.msk.f32.mxu1 %vm358_vm0, %v2570_v60  ;;  %16924 = vmatprep.mubr.msk.f32.mxu0 %vm358_vm0, %v3765_v61  ;;  %v2505_v60 = vmax.f32 %v2431_v45, %v2473_v51  ;;  %v2475_v61 = vmul.f32 0.2, %v2441_v52  ;;  %v4625_v45 = vld [vmem:[#allocation2 + $0x4b8] ss:$2 sm:$0xff]  ;;  %v4635_v51 = vld [vmem:[#allocation2 + $0x588] ss:$2 sm:$0xff] }
 0x20a   : > { %v4639_v53 = vld [vmem:[#allocation2 + $0x5e8] ss:$2 sm:$0xff] }
 0x20b   : > { %2538 = vst.msk [vmem:[#allocation2 + $0x610] sm:$0xff] %vm358_vm0, %v2505_v60 }
 0x20c   : > { %16821 = vmatmul.mubr.msk.f32.gmra.mrb[142].mxu1 %vm358_vm0, %v2572_v62  ;;  %16925 = vmatmul.mubr.msk.f32.gmra.mrb[14].mxu0 %vm358_vm0, %v3767_v63  ;;  %v2504_v62 = vmax.f32 %v2426_v48, %v2472_v55  ;;  %v2474_v63 = vmul.f32 0.2, %v2436_v57  ;;  %v4629_v48 = vld [vmem:[#allocation2 + $0x518] ss:$2 sm:$0xff]  ;;  %v14820_v55 = vld [vmem:[%s22447_s3 + $0x88] sm:$0xff] }
 0x20d   : > { %16823 = vmatprep.mubr.msk.f32.mxu1 %vm358_vm0, %v2574_v56  ;;  %16927 = vmatprep.mubr.msk.f32.mxu0 %vm358_vm0, %v3769_v0  ;;  %v4183_v56 = vld [vmem:[#allocation2 + $0x287] ss:$2 sm:$0xff]  ;;  %v2507_v0 = vmax.f32 %v2441_v52, %v2475_v61  ;;  %v4637_v52 = vld [vmem:[#allocation2 + $0x5d8] ss:$2 sm:$0xff] }
 0x20e   : > { %2537 = vst.msk [vmem:[#allocation2 + $0x608] sm:$0xff] %vm358_vm0, %v2504_v62  ;;  %v4999_v61 = vld [vmem:[#allocation2 + $0x49] ss:$2 sm:$0xff]  ;;  %v5001_v62 = vld [vmem:[#allocation2 + $0x99] ss:$2 sm:$0xff] }
 0x20f   : > { %2540 = vst.msk [vmem:[#allocation2 + $0x620] sm:$0xff] %vm358_vm0, %v2507_v0  ;;  %v5007_v0 = vld [vmem:[#allocation2 + $0x109] ss:$2 sm:$0xff] }
 0x210   : > { %16824 = vmatmul.mubr.msk.f32.gmra.mrb[144].mxu1 %vm358_vm0, %v2576_v1  ;;  %16928 = vmatmul.mubr.msk.f32.gmra.mrb[16].mxu0 %vm358_vm0, %v3771_v3  ;;  %v4185_v1 = vld [vmem:[#allocation2 + $0x2d7] ss:$2 sm:$0xff]  ;;  %v2506_v3 = vmax.f32 %v2436_v57, %v2474_v63 }
 0x211   : > { %16826 = vmatprep.mubr.msk.f32.mxu1 %vm358_vm0, %v2578_v4  ;;  %16930 = vmatprep.mubr.msk.f32.mxu0 %vm358_vm0, %v3773_v5  ;;  %v4187_v4 = vld [vmem:[#allocation2 + $0x2e7] ss:$2 sm:$0xff]  ;;  %v4189_v5 = vld [vmem:[#allocation2 + $0x337] ss:$2 sm:$0xff] }
 0x212   : > { %2539 = vst.msk [vmem:[#allocation2 + $0x618] sm:$0xff] %vm358_vm0, %v2506_v3  ;;  %v4997_v57 = vld [vmem:[#allocation2 + $0x39] ss:$2 sm:$0xff]  ;;  %v5003_v63 = vld [vmem:[#allocation2 + $0xa9] ss:$2 sm:$0xff] }
 0x213   : > { %v5011_v3 = vld [vmem:[#allocation2 + $0x169] ss:$2 sm:$0xff] }
 0x214   : > { %16827 = vmatmul.mubr.msk.f32.gmra.mrb[146].mxu1 %vm358_vm0, %v2580_v6  ;;  %16931 = vmatmul.mubr.msk.f32.gmra.mrb[18].mxu0 %vm358_vm0, %v3775_v7  ;;  %v4191_v6 = vld [vmem:[#allocation2 + $0x347] ss:$2 sm:$0xff]  ;;  %v4193_v7 = vld [vmem:[#allocation2 + $0x397] ss:$2 sm:$0xff] }
 0x215   : > { %16829 = vmatprep.mubr.msk.f32.mxu1 %vm358_vm0, %v2582_v8  ;;  %16933 = vmatprep.mubr.msk.f32.mxu0 %vm358_vm0, %v3777_v9  ;;  %v4195_v8 = vld [vmem:[#allocation2 + $0x3a7] ss:$2 sm:$0xff]  ;;  %v4197_v9 = vld [vmem:[#allocation2 + $0x3f7] ss:$2 sm:$0xff] }
 0x218   : > { %16830 = vmatmul.mubr.msk.f32.gmra.mrb[148].mxu1 %vm358_vm0, %v2584_v10  ;;  %16934 = vmatmul.mubr.msk.f32.gmra.mrb[20].mxu0 %vm358_vm0, %v3779_v11  ;;  %v4199_v10 = vld [vmem:[#allocation2 + $0x407] ss:$2 sm:$0xff]  ;;  %v4201_v11 = vld [vmem:[#allocation2 + $0x457] ss:$2 sm:$0xff] }
 0x219   : > { %16832 = vmatprep.mubr.msk.f32.mxu1 %vm358_vm0, %v2586_v12  ;;  %16936 = vmatprep.mubr.msk.f32.mxu0 %vm358_vm0, %v3781_v13  ;;  %v4203_v12 = vld [vmem:[#allocation2 + $0x467] ss:$2 sm:$0xff]  ;;  %v4205_v13 = vld [vmem:[#allocation2 + $0x4b7] ss:$2 sm:$0xff] }
 0x21c   : > { %16833 = vmatmul.mubr.msk.f32.gmra.mrb[150].mxu1 %vm358_vm0, %v2588_v14  ;;  %16937 = vmatmul.mubr.msk.f32.gmra.mrb[22].mxu0 %vm358_vm0, %v3783_v15  ;;  %v4207_v14 = vld [vmem:[#allocation2 + $0x4c7] ss:$2 sm:$0xff]  ;;  %v4209_v15 = vld [vmem:[#allocation2 + $0x517] ss:$2 sm:$0xff] }
 0x21d   : > { %16835 = vmatprep.mubr.msk.f32.mxu1 %vm358_vm0, %v2590_v16  ;;  %16939 = vmatprep.mubr.msk.f32.mxu0 %vm358_vm0, %v3785_v17  ;;  %v4211_v16 = vld [vmem:[#allocation2 + $0x527] ss:$2 sm:$0xff]  ;;  %v4213_v17 = vld [vmem:[#allocation2 + $0x577] ss:$2 sm:$0xff] }
 0x220   : > { %16836 = vmatmul.mubr.msk.f32.gmra.mrb[152].mxu1 %vm358_vm0, %v2592_v18  ;;  %16940 = vmatmul.mubr.msk.f32.gmra.mrb[24].mxu0 %vm358_vm0, %v3787_v19  ;;  %v4215_v18 = vld [vmem:[#allocation2 + $0x587] ss:$2 sm:$0xff]  ;;  %v4217_v19 = vld [vmem:[#allocation2 + $0x5d7] ss:$2 sm:$0xff] }
 0x221   : > { %16838 = vmatprep.mubr.msk.f32.mxu1 %vm358_vm0, %v2594_v2  ;;  %16942 = vmatprep.mubr.msk.f32.mxu0 %vm358_vm0, %v3789_v20  ;;  %v4219_v2 = vld [vmem:[#allocation2 + $0x5e7] ss:$2 sm:$0xff] }
 0x222   : > { %v14785_v20 = vld [vmem:[%s22447_s3 + $0x70] sm:$0xff] }
 0x224   : > { %16839 = vmatmul.mubr.msk.f32.gmra.mrb[154].mxu1 %vm358_vm0, %v2596_v21  ;;  %16943 = vmatmul.mubr.msk.f32.gmra.mrb[26].mxu0 %vm358_vm0, %v3791_v22  ;;  %v14786_v21 = vld [vmem:[%s22447_s3 + $0x78] sm:$0xff] }
 0x225   : > { %16841 = vmatprep.mubr.msk.f32.mxu1 %vm358_vm0, %v2598_v23  ;;  %16945 = vmatprep.mubr.msk.f32.mxu0 %vm358_vm0, %v3793_v24  ;;  %v4577_v22 = vld [vmem:[#allocation2 + $0x38] ss:$2 sm:$0xff]  ;;  %v20762_v23 = vpack.c.bf16 %v14786_v21, %v14785_v20  ;;  %v4579_v24 = vld [vmem:[#allocation2 + $0x48] ss:$2 sm:$0xff]  ;;  %v5033_v21 = vld [vmem:[#allocation2 + $0x399] ss:$2 sm:$0xff] }
 0x228   : > { %16842 = vmatmul.mubr.msk.f32.gmra.mrb[156].mxu1 %vm358_vm0, %v2600_v25  ;;  %16946 = vmatmul.mubr.msk.f32.gmra.mrb[28].mxu0 %vm358_vm0, %v3795_v26  ;;  %v4581_v25 = vld [vmem:[#allocation2 + $0x98] ss:$2 sm:$0xff]  ;;  %v4583_v26 = vld [vmem:[#allocation2 + $0xa8] ss:$2 sm:$0xff] }
 0x229   : > { %16844 = vmatprep.mubr.msk.f32.mxu1 %vm358_vm0, %v2602_v58  ;;  %16948 = vmatprep.mubr.msk.f32.mxu0 %vm358_vm0, %v3797_v27  ;;  %v4585_v58 = vld [vmem:[#allocation2 + $0xf8] ss:$2 sm:$0xff]  ;;  %v4587_v27 = vld [vmem:[#allocation2 + $0x108] ss:$2 sm:$0xff] }
 0x22c   : > { %16845 = vmatmul.mubr.msk.f32.gmra.mrb[158].mxu1 %vm358_vm0, %v2604_v28  ;;  %16949 = vmatmul.mubr.msk.f32.gmra.mrb[30].mxu0 %vm358_vm0, %v3799_v29  ;;  %v4589_v28 = vld [vmem:[#allocation2 + $0x158] ss:$2 sm:$0xff]  ;;  %v4591_v29 = vld [vmem:[#allocation2 + $0x168] ss:$2 sm:$0xff] }
 0x22d   : > { %16955 = vmatprep.mubr.msk.f32.mxu0 %vm358_vm0, %v4157_v33  ;;  %v4597_v33 = vld [vmem:[#allocation2 + $0x218] ss:$2 sm:$0xff] }
 0x230   : > { %16956 = vmatmul.mubr.msk.f32.vlgmr.msra.gmra.mrb[0].mxu0 %vm358_vm0, %v4159_v35  ;;  %v4601_v35 = vld [vmem:[#allocation2 + $0x278] ss:$2 sm:$0xff] }
 0x231   : > { %18286 = vmatpush3.bf16.msra.mxu0 %v20640_v32  ;;  %16958 = vmatprep.mubr.msk.f32.mxu0 %vm358_vm0, %v4161_v36  ;;  %v4173_v32 = vld [vmem:[#allocation2 + $0x1b7] ss:$2 sm:$0xff]  ;;  %v4603_v36 = vld [vmem:[#allocation2 + $0x288] ss:$2 sm:$0xff] }
 0x232   : > { %18288 = vmatprep.subr.bf16.mxu0 %v20713_v34 }
 0x234   : > { %16959 = vmatmul.mubr.msk.f32.gmra.mrb[2].mxu0 %vm358_vm0, %v4163_v37  ;;  %v4605_v37 = vld [vmem:[#allocation2 + $0x2d8] ss:$2 sm:$0xff] }
 0x235   : > { %16961 = vmatprep.mubr.msk.f32.mxu0 %vm358_vm0, %v4165_v38  ;;  %v4607_v38 = vld [vmem:[#allocation2 + $0x2e8] ss:$2 sm:$0xff] }
 0x238   : > { %16962 = vmatmul.mubr.msk.f32.gmra.mrb[4].mxu0 %vm358_vm0, %v4167_v59  ;;  %v4609_v59 = vld [vmem:[#allocation2 + $0x338] ss:$2 sm:$0xff] }
 0x239   : > { %16964 = vmatprep.mubr.msk.f32.mxu0 %vm358_vm0, %v4169_v39  ;;  %v4611_v39 = vld [vmem:[#allocation2 + $0x348] ss:$2 sm:$0xff] }
 0x23c   : > { %16965 = vmatmul.mubr.msk.f32.gmra.mrb[6].mxu0 %vm358_vm0, %v4171_v40  ;;  %v4613_v40 = vld [vmem:[#allocation2 + $0x398] ss:$2 sm:$0xff] }
 0x23d   : > { %16967 = vmatprep.mubr.msk.f32.mxu0 %vm358_vm0, %v4173_v32  ;;  %v4615_v32 = vld [vmem:[#allocation2 + $0x3a8] ss:$2 sm:$0xff] }
 0x240   : > { %16968 = vmatmul.mubr.msk.f32.gmra.mrb[8].mxu0 %vm358_vm0, %v4175_v41  ;;  %v4617_v41 = vld [vmem:[#allocation2 + $0x3f8] ss:$2 sm:$0xff] }
 0x241   : > { %16970 = vmatprep.mubr.msk.f32.mxu0 %vm358_vm0, %v4177_v42  ;;  %v4619_v42 = vld [vmem:[#allocation2 + $0x408] ss:$2 sm:$0xff] }
 0x244   : > { %16971 = vmatmul.mubr.msk.f32.gmra.mrb[10].mxu0 %vm358_vm0, %v4179_v50  ;;  %v4633_v50 = vld [vmem:[#allocation2 + $0x578] ss:$2 sm:$0xff] }
 0x245   : > { %16973 = vmatprep.mubr.msk.f32.mxu0 %vm358_vm0, %v4181_v54  ;;  %v14819_v54 = vld [vmem:[%s22447_s3 + $0x80] sm:$0xff] }
 0x246   : > { %v20804_v60 = vpack.c.bf16 %v14820_v55, %v14819_v54  ;;  %v5421_v55 = vld [vmem:[#allocation2 + $0x9a] ss:$2 sm:$0xff] }
 0x248   : > { %16974 = vmatmul.mubr.msk.f32.gmra.mrb[12].mxu0 %vm358_vm0, %v4183_v56  ;;  %v5005_v56 = vld [vmem:[#allocation2 + $0xf9] ss:$2 sm:$0xff] }
 0x249   : > { %16976 = vmatprep.mubr.msk.f32.mxu0 %vm358_vm0, %v4185_v1  ;;  %v5009_v1 = vld [vmem:[#allocation2 + $0x159] ss:$2 sm:$0xff] }
 0x24c   : > { %16977 = vmatmul.mubr.msk.f32.gmra.mrb[14].mxu0 %vm358_vm0, %v4187_v4  ;;  %v5013_v4 = vld [vmem:[#allocation2 + $0x1b9] ss:$2 sm:$0xff] }
 0x24d   : > { %16979 = vmatprep.mubr.msk.f32.mxu0 %vm358_vm0, %v4189_v5  ;;  %v5015_v5 = vld [vmem:[#allocation2 + $0x1c9] ss:$2 sm:$0xff] }
 0x250   : > { %16980 = vmatmul.mubr.msk.f32.gmra.mrb[16].mxu0 %vm358_vm0, %v4191_v6  ;;  %v5017_v6 = vld [vmem:[#allocation2 + $0x219] ss:$2 sm:$0xff] }
 0x251   : > { %16982 = vmatprep.mubr.msk.f32.mxu0 %vm358_vm0, %v4193_v7  ;;  %v5019_v7 = vld [vmem:[#allocation2 + $0x229] ss:$2 sm:$0xff] }
 0x254   : > { %16983 = vmatmul.mubr.msk.f32.gmra.mrb[18].mxu0 %vm358_vm0, %v4195_v8 }
 0x255   : > { %16985 = vmatprep.mubr.msk.f32.mxu0 %vm358_vm0, %v4197_v9  ;;  %v5021_v9 = vld [vmem:[#allocation2 + $0x279] ss:$2 sm:$0xff] }
 0x258   : > { %16986 = vmatmul.mubr.msk.f32.gmra.mrb[20].mxu0 %vm358_vm0, %v4199_v10 }
 0x259   : > { %16988 = vmatprep.mubr.msk.f32.mxu0 %vm358_vm0, %v4201_v11 }
 0x25c   : > { %16989 = vmatmul.mubr.msk.f32.gmra.mrb[22].mxu0 %vm358_vm0, %v4203_v12  ;;  %v5023_v12 = vld [vmem:[#allocation2 + $0x289] ss:$2 sm:$0xff] }
 0x25d   : > { %16991 = vmatprep.mubr.msk.f32.mxu0 %vm358_vm0, %v4205_v13 }
 0x260   : > { %16992 = vmatmul.mubr.msk.f32.gmra.mrb[24].mxu0 %vm358_vm0, %v4207_v14  ;;  %v5025_v14 = vld [vmem:[#allocation2 + $0x2d9] ss:$2 sm:$0xff] }
 0x261   : > { %16994 = vmatprep.mubr.msk.f32.mxu0 %vm358_vm0, %v4209_v15 }
 0x264   : > { %16995 = vmatmul.mubr.msk.f32.gmra.mrb[26].mxu0 %vm358_vm0, %v4211_v16  ;;  %v5027_v16 = vld [vmem:[#allocation2 + $0x2e9] ss:$2 sm:$0xff] }
 0x265   : > { %16997 = vmatprep.mubr.msk.f32.mxu0 %vm358_vm0, %v4213_v17 }
 0x268   : > { %16998 = vmatmul.mubr.msk.f32.gmra.mrb[28].mxu0 %vm358_vm0, %v4215_v18  ;;  %v5029_v18 = vld [vmem:[#allocation2 + $0x339] ss:$2 sm:$0xff] }
 0x269   : > { %17000 = vmatprep.mubr.msk.f32.mxu0 %vm358_vm0, %v4217_v19 }
 0x26c   : > { %17001 = vmatmul.mubr.msk.f32.gmra.mrb[30].mxu0 %vm358_vm0, %v4219_v2  ;;  %v5031_v2 = vld [vmem:[#allocation2 + $0x349] ss:$2 sm:$0xff] }
 0x26d   : > { %17007 = vmatprep.mubr.msk.f32.mxu0 %vm358_vm0, %v4577_v22 }
 0x270   : > { %17008 = vmatmul.mubr.msk.f32.vlgmr.msra.gmra.mrb[0].mxu0 %vm358_vm0, %v4579_v24 }
 0x271   : > { %18290 = vmatpush3.bf16.msra.mxu0 %v20713_v34  ;;  %17010 = vmatprep.mubr.msk.f32.mxu0 %vm358_vm0, %v4581_v25  ;;  %v4599_v34 = vld [vmem:[#allocation2 + $0x228] ss:$2 sm:$0xff]  ;;  %v5037_v25 = vld [vmem:[#allocation2 + $0x3f9] ss:$2 sm:$0xff] }
 0x272   : > { %18292 = vmatprep.subr.bf16.mxu0 %v20762_v23 }
 0x274   : > { %17011 = vmatmul.mubr.msk.f32.gmra.mrb[2].mxu0 %vm358_vm0, %v4583_v26 }
 0x275   : > { %17013 = vmatprep.mubr.msk.f32.mxu0 %vm358_vm0, %v4585_v58  ;;  %v5039_v58 = vld [vmem:[#allocation2 + $0x409] ss:$2 sm:$0xff] }
 0x278   : > { %17014 = vmatmul.mubr.msk.f32.gmra.mrb[4].mxu0 %vm358_vm0, %v4587_v27 }
 0x279   : > { %17016 = vmatprep.mubr.msk.f32.mxu0 %vm358_vm0, %v4589_v28  ;;  %v5041_v28 = vld [vmem:[#allocation2 + $0x459] ss:$2 sm:$0xff] }
 0x27c   : > { %17017 = vmatmul.mubr.msk.f32.gmra.mrb[6].mxu0 %vm358_vm0, %v4591_v29 }
 0x27d   : > { %17019 = vmatprep.mubr.msk.f32.mxu0 %vm358_vm0, %v4593_v30  ;;  %v5043_v30 = vld [vmem:[#allocation2 + $0x469] ss:$2 sm:$0xff] }
 0x280   : > { %17020 = vmatmul.mubr.msk.f32.gmra.mrb[8].mxu0 %vm358_vm0, %v4595_v31 }
 0x281   : > { %17022 = vmatprep.mubr.msk.f32.mxu0 %vm358_vm0, %v4597_v33  ;;  %v5045_v33 = vld [vmem:[#allocation2 + $0x4b9] ss:$2 sm:$0xff] }
 0x284   : > { %17023 = vmatmul.mubr.msk.f32.gmra.mrb[10].mxu0 %vm358_vm0, %v4599_v34 }
 0x285   : > { %17025 = vmatprep.mubr.msk.f32.mxu0 %vm358_vm0, %v4601_v35  ;;  %v5047_v35 = vld [vmem:[#allocation2 + $0x4c9] ss:$2 sm:$0xff] }
 0x288   : > { %17026 = vmatmul.mubr.msk.f32.gmra.mrb[12].mxu0 %vm358_vm0, %v4603_v36 }
 0x289   : > { %17028 = vmatprep.mubr.msk.f32.mxu0 %vm358_vm0, %v4605_v37  ;;  %v5049_v37 = vld [vmem:[#allocation2 + $0x519] ss:$2 sm:$0xff] }
 0x28c   : > { %17029 = vmatmul.mubr.msk.f32.gmra.mrb[14].mxu0 %vm358_vm0, %v4607_v38 }
 0x28d   : > { %17031 = vmatprep.mubr.msk.f32.mxu0 %vm358_vm0, %v4609_v59  ;;  %v5051_v59 = vld [vmem:[#allocation2 + $0x529] ss:$2 sm:$0xff] }
 0x290   : > { %17032 = vmatmul.mubr.msk.f32.gmra.mrb[16].mxu0 %vm358_vm0, %v4611_v39 }
 0x291   : > { %17034 = vmatprep.mubr.msk.f32.mxu0 %vm358_vm0, %v4613_v40  ;;  %v5053_v40 = vld [vmem:[#allocation2 + $0x579] ss:$2 sm:$0xff] }
 0x294   : > { %17035 = vmatmul.mubr.msk.f32.gmra.mrb[18].mxu0 %vm358_vm0, %v4615_v32 }
 0x295   : > { %17037 = vmatprep.mubr.msk.f32.mxu0 %vm358_vm0, %v4617_v41  ;;  %v5055_v41 = vld [vmem:[#allocation2 + $0x589] ss:$2 sm:$0xff] }
 0x298   : > { %17038 = vmatmul.mubr.msk.f32.gmra.mrb[20].mxu0 %vm358_vm0, %v4619_v42 }
 0x299   : > { %17040 = vmatprep.mubr.msk.f32.mxu0 %vm358_vm0, %v4621_v43  ;;  %v5057_v43 = vld [vmem:[#allocation2 + $0x5d9] ss:$2 sm:$0xff] }
 0x29c   : > { %17041 = vmatmul.mubr.msk.f32.gmra.mrb[22].mxu0 %vm358_vm0, %v4623_v44 }
 0x29d   : > { %17043 = vmatprep.mubr.msk.f32.mxu0 %vm358_vm0, %v4625_v45  ;;  %v5059_v45 = vld [vmem:[#allocation2 + $0x5e9] ss:$2 sm:$0xff] }
 0x2a0   : > { %17044 = vmatmul.mubr.msk.f32.gmra.mrb[24].mxu0 %vm358_vm0, %v4627_v46  ;;  %v14853_v46 = vld [vmem:[%s22447_s3 + $0x90] sm:$0xff] }
 0x2a1   : > { %17046 = vmatprep.mubr.msk.f32.mxu0 %vm358_vm0, %v4629_v48  ;;  %v14854_v48 = vld [vmem:[%s22447_s3 + $0x98] sm:$0xff] }
 0x2a4   : > { %17047 = vmatmul.mubr.msk.f32.gmra.mrb[26].mxu0 %vm358_vm0, %v4631_v49 }
 0x2a5   : > { %17049 = vmatprep.mubr.msk.f32.mxu0 %vm358_vm0, %v4633_v50  ;;  %v5417_v50 = vld [vmem:[#allocation2 + $0x3a] ss:$2 sm:$0xff] }
 0x2a8   : > { %17050 = vmatmul.mubr.msk.f32.gmra.mrb[28].mxu0 %vm358_vm0, %v4635_v51  ;;  %v20890_v51 = vpack.c.bf16 %v14854_v48, %v14853_v46  ;;  %v5473_v46 = vld [vmem:[#allocation2 + $0x57a] ss:$2 sm:$0xff]  ;;  %v5475_v48 = vld [vmem:[#allocation2 + $0x58a] ss:$2 sm:$0xff] }
 0x2a9   : > { %17052 = vmatprep.mubr.msk.f32.mxu0 %vm358_vm0, %v4637_v52 }
 0x2ac   : > { %17053 = vmatmul.mubr.msk.f32.gmra.mrb[30].mxu0 %vm358_vm0, %v4639_v53  ;;  %v5419_v53 = vld [vmem:[#allocation2 + $0x4a] ss:$2 sm:$0xff] }
 0x2ad   : > { %17059 = vmatprep.mubr.msk.f32.mxu0 %vm358_vm0, %v4997_v57 }
 0x2b0   : > { %17060 = vmatmul.mubr.msk.f32.vlgmr.msra.gmra.mrb[0].mxu0 %vm358_vm0, %v4999_v61  ;;  %v5423_v61 = vld [vmem:[#allocation2 + $0xaa] ss:$2 sm:$0xff] }
 0x2b1   : > { %18294 = vmatpush3.bf16.msra.mxu0 %v20762_v23  ;;  %17062 = vmatprep.mubr.msk.f32.mxu0 %vm358_vm0, %v5001_v62  ;;  %v5035_v23 = vld [vmem:[#allocation2 + $0x3a9] ss:$2 sm:$0xff] }
 0x2b2   : > { %18296 = vmatprep.subr.bf16.mxu0 %v20804_v60 }
 0x2b4   : > { %17063 = vmatmul.mubr.msk.f32.gmra.mrb[2].mxu0 %vm358_vm0, %v5003_v63  ;;  %v5425_v63 = vld [vmem:[#allocation2 + $0xfa] ss:$2 sm:$0xff] }
 0x2b5   : > { %17065 = vmatprep.mubr.msk.f32.mxu0 %vm358_vm0, %v5005_v56 }
 0x2b8   : > { %17066 = vmatmul.mubr.msk.f32.gmra.mrb[4].mxu0 %vm358_vm0, %v5007_v0  ;;  %v5427_v0 = vld [vmem:[#allocation2 + $0x10a] ss:$2 sm:$0xff] }
 0x2b9   : > { %17068 = vmatprep.mubr.msk.f32.mxu0 %vm358_vm0, %v5009_v1 }
 0x2bc   : > { %17069 = vmatmul.mubr.msk.f32.gmra.mrb[6].mxu0 %vm358_vm0, %v5011_v3 }
 0x2bd   : > { %17071 = vmatprep.mubr.msk.f32.mxu0 %vm358_vm0, %v5013_v4  ;;  %v5431_v4 = vld [vmem:[#allocation2 + $0x16a] ss:$2 sm:$0xff] }
 0x2c0   : > { %17072 = vmatmul.mubr.msk.f32.gmra.mrb[8].mxu0 %vm358_vm0, %v5015_v5 }
 0x2c1   : > { %17074 = vmatprep.mubr.msk.f32.mxu0 %vm358_vm0, %v5017_v6  ;;  %v5433_v6 = vld [vmem:[#allocation2 + $0x1ba] ss:$2 sm:$0xff] }
 0x2c3   : > { %v20818_v8 = vpop.f32.mrb[128].mxu1 }
 0x2c4   : > { %17075 = vmatmul.mubr.msk.f32.gmra.mrb[10].mxu0 %vm358_vm0, %v5019_v7  ;;  %v20821_v10 = vpop.f32.mrb[129].mxu1 }
 0x2c5   : > { %17077 = vmatprep.mubr.msk.f32.mxu0 %vm358_vm0, %v5021_v9  ;;  %v5435_v9 = vld [vmem:[#allocation2 + $0x1ca] ss:$2 sm:$0xff] }
 0x2c7   : > { %v20824_v11 = vpop.f32.mrb[130].mxu1 }
 0x2c8   : > { %v20826_v13 = vpop.f32.mrb[131].mxu1  ;;  %17078 = vmatmul.mubr.msk.f32.gmra.mrb[12].mxu0 %vm358_vm0, %v5023_v12 }
 0x2c9   : > { %17080 = vmatprep.mubr.msk.f32.mxu0 %vm358_vm0, %v5025_v14  ;;  %v5437_v14 = vld [vmem:[#allocation2 + $0x21a] ss:$2 sm:$0xff] }
 0x2cb   : > { %v20830_v15 = vpop.f32.mrb[132].mxu1 }
 0x2cc   : > { %v20832_v17 = vpop.f32.mrb[133].mxu1  ;;  %17081 = vmatmul.mubr.msk.f32.gmra.mrb[14].mxu0 %vm358_vm0, %v5027_v16  ;;  %v5439_v16 = vld [vmem:[#allocation2 + $0x22a] ss:$2 sm:$0xff] }
 0x2cd   : > { %17083 = vmatprep.mubr.msk.f32.mxu0 %vm358_vm0, %v5029_v18  ;;  %v5441_v18 = vld [vmem:[#allocation2 + $0x27a] ss:$2 sm:$0xff] }
 0x2cf   : > { %v20836_v19 = vpop.f32.mrb[134].mxu1 }
 0x2d0   : > { %v20838_v20 = vpop.f32.mrb[135].mxu1  ;;  %17084 = vmatmul.mubr.msk.f32.gmra.mrb[16].mxu0 %vm358_vm0, %v5031_v2  ;;  %v5443_v2 = vld [vmem:[#allocation2 + $0x28a] ss:$2 sm:$0xff] }
 0x2d1   : > { %17086 = vmatprep.mubr.msk.f32.mxu0 %vm358_vm0, %v5033_v21  ;;  %v5445_v21 = vld [vmem:[#allocation2 + $0x2da] ss:$2 sm:$0xff] }
 0x2d3   : > { %v20842_v22 = vpop.f32.mrb[136].mxu1 }
 0x2d4   : > { %v20844_v24 = vpop.f32.mrb[137].mxu1  ;;  %17087 = vmatmul.mubr.msk.f32.gmra.mrb[18].mxu0 %vm358_vm0, %v5035_v23  ;;  %v5447_v23 = vld [vmem:[#allocation2 + $0x2ea] ss:$2 sm:$0xff] }
 0x2d5   : > { %17089 = vmatprep.mubr.msk.f32.mxu0 %vm358_vm0, %v5037_v25  ;;  %v5449_v25 = vld [vmem:[#allocation2 + $0x33a] ss:$2 sm:$0xff] }
 0x2d7   : > { %v20848_v26 = vpop.f32.mrb[138].mxu1 }
 0x2d8   : > { %v20850_v27 = vpop.f32.mrb[139].mxu1  ;;  %17090 = vmatmul.mubr.msk.f32.gmra.mrb[20].mxu0 %vm358_vm0, %v5039_v58  ;;  %v5451_v58 = vld [vmem:[#allocation2 + $0x34a] ss:$2 sm:$0xff] }
 0x2d9   : > { %17092 = vmatprep.mubr.msk.f32.mxu0 %vm358_vm0, %v5041_v28  ;;  %v5453_v28 = vld [vmem:[#allocation2 + $0x39a] ss:$2 sm:$0xff] }
 0x2db   : > { %v20854_v29 = vpop.f32.mrb[140].mxu1 }
 0x2dc   : > { %v20856_v31 = vpop.f32.mrb[141].mxu1  ;;  %17093 = vmatmul.mubr.msk.f32.gmra.mrb[22].mxu0 %vm358_vm0, %v5043_v30  ;;  %v5455_v30 = vld [vmem:[#allocation2 + $0x3aa] ss:$2 sm:$0xff] }
 0x2dd   : > { %17095 = vmatprep.mubr.msk.f32.mxu0 %vm358_vm0, %v5045_v33  ;;  %v5457_v33 = vld [vmem:[#allocation2 + $0x3fa] ss:$2 sm:$0xff] }
 0x2df   : > { %v20860_v34 = vpop.f32.mrb[142].mxu1 }
 0x2e0   : > { %v20862_v36 = vpop.f32.mrb[143].mxu1  ;;  %17096 = vmatmul.mubr.msk.f32.gmra.mrb[24].mxu0 %vm358_vm0, %v5047_v35  ;;  %v5459_v35 = vld [vmem:[#allocation2 + $0x40a] ss:$2 sm:$0xff] }
 0x2e1   : > { %17098 = vmatprep.mubr.msk.f32.mxu0 %vm358_vm0, %v5049_v37  ;;  %v5461_v37 = vld [vmem:[#allocation2 + $0x45a] ss:$2 sm:$0xff] }
 0x2e3   : > { %v20866_v38 = vpop.f32.mrb[144].mxu1 }
 0x2e4   : > { %v20868_v39 = vpop.f32.mrb[145].mxu1  ;;  %17099 = vmatmul.mubr.msk.f32.gmra.mrb[26].mxu0 %vm358_vm0, %v5051_v59  ;;  %v5463_v59 = vld [vmem:[#allocation2 + $0x46a] ss:$2 sm:$0xff] }
 0x2e5   : > { %17101 = vmatprep.mubr.msk.f32.mxu0 %vm358_vm0, %v5053_v40  ;;  %v5465_v40 = vld [vmem:[#allocation2 + $0x4ba] ss:$2 sm:$0xff] }
 0x2e7   : > { %v20872_v32 = vpop.f32.mrb[146].mxu1 }
 0x2e8   : > { %v20874_v42 = vpop.f32.mrb[147].mxu1  ;;  %17102 = vmatmul.mubr.msk.f32.gmra.mrb[28].mxu0 %vm358_vm0, %v5055_v41  ;;  %v5467_v41 = vld [vmem:[#allocation2 + $0x4ca] ss:$2 sm:$0xff] }
 0x2e9   : > { %17104 = vmatprep.mubr.msk.f32.mxu0 %vm358_vm0, %v5057_v43  ;;  %v5469_v43 = vld [vmem:[#allocation2 + $0x51a] ss:$2 sm:$0xff] }
 0x2eb   : > { %v20878_v44 = vpop.f32.mrb[148].mxu1 }
 0x2ec   : > { %v20886_v49 = vpop.f32.mrb[149].mxu1  ;;  %17105 = vmatmul.mubr.msk.f32.gmra.mrb[30].mxu0 %vm358_vm0, %v5059_v45  ;;  %v5471_v45 = vld [vmem:[#allocation2 + $0x52a] ss:$2 sm:$0xff] }
 0x2ed   : > { %17111 = vmatprep.mubr.msk.f32.mxu0 %vm358_vm0, %v5417_v50  ;;  %v5477_v50 = vld [vmem:[#allocation2 + $0x5da] ss:$2 sm:$0xff] }
 0x2ef   : > { %v20892_v52 = vpop.f32.mrb[150].mxu1 }
 0x2f0   : > { %v20894_v54 = vpop.f32.mrb[151].mxu1  ;;  %17112 = vmatmul.mubr.msk.f32.vlgmr.msra.gmra.mrb[0].mxu0 %vm358_vm0, %v5419_v53  ;;  %v5479_v53 = vld [vmem:[#allocation2 + $0x5ea] ss:$2 sm:$0xff] }
 0x2f1   : > { %18298 = vmatpush3.bf16.msra.mxu0 %v20804_v60  ;;  %17114 = vmatprep.mubr.msk.f32.mxu0 %vm358_vm0, %v5421_v55  ;;  %v5429_v60 = vld [vmem:[#allocation2 + $0x15a] ss:$2 sm:$0xff] }
 0x2f2   : > { %18300 = vmatprep.subr.bf16.mxu0 %v20890_v51  ;;  %v14887_v55 = vld [vmem:[%s22447_s3 + $0xa0] sm:$0xff] }
 0x2f3   : > { %v20900_v57 = vpop.f32.mrb[152].mxu1 }
 0x2f4   : > { %v20902_v62 = vpop.f32.mrb[153].mxu1  ;;  %17115 = vmatmul.mubr.msk.f32.gmra.mrb[2].mxu0 %vm358_vm0, %v5423_v61  ;;  %v14888_v61 = vld [vmem:[%s22447_s3 + $0xa8] sm:$0xff] }
 0x2f5   : > { %17117 = vmatprep.mubr.msk.f32.mxu0 %vm358_vm0, %v5425_v63  ;;  %v5838_v63 = vld [vmem:[#allocation2 + $0x67] ss:$2 sm:$0xff] }
 0x2f7   : > { %v20906_v56 = vpop.f32.mrb[154].mxu1 }
 0x2f8   : > { %v20908_v1 = vpop.f32.mrb[155].mxu1  ;;  %17118 = vmatmul.mubr.msk.f32.gmra.mrb[4].mxu0 %vm358_vm0, %v5427_v0  ;;  %v20952_v0 = vpack.c.bf16 %v14888_v61, %v14887_v55  ;;  %v5894_v55 = vld [vmem:[#allocation2 + $0x5a7] ss:$2 sm:$0xff]  ;;  %v5896_v61 = vld [vmem:[#allocation2 + $0x5b7] ss:$2 sm:$0xff] }
 0x2f9   : > { %17120 = vmatprep.mubr.msk.f32.mxu0 %vm358_vm0, %v5429_v60  ;;  %v5840_v60 = vld [vmem:[#allocation2 + $0x77] ss:$2 sm:$0xff] }
 0x2fb   : > { %v20912_v3 = vpop.f32.mrb[156].mxu1 }
 0x2fc   : > { %v20914_v5 = vpop.f32.mrb[157].mxu1  ;;  %17121 = vmatmul.mubr.msk.f32.gmra.mrb[6].mxu0 %vm358_vm0, %v5431_v4  ;;  %v5842_v4 = vld [vmem:[#allocation2 + $0xc7] ss:$2 sm:$0xff] }
 0x2fd   : > { %17123 = vmatprep.mubr.msk.f32.mxu0 %vm358_vm0, %v5433_v6  ;;  %v5844_v6 = vld [vmem:[#allocation2 + $0xd7] ss:$2 sm:$0xff] }
 0x2ff   : > { %v20918_v7 = vpop.f32.mrb[158].mxu1 }
 0x300   : > { %v20920_v12 = vpop.f32.mrb[159].mxu1  ;;  %17124 = vmatmul.mubr.msk.f32.gmra.mrb[8].mxu0 %vm358_vm0, %v5435_v9  ;;  %v5846_v9 = vld [vmem:[#allocation2 + $0x127] ss:$2 sm:$0xff] }
 0x301   : > { %17126 = vmatprep.mubr.msk.f32.mxu0 %vm358_vm0, %v5437_v14  ;;  %v5848_v14 = vld [vmem:[#allocation2 + $0x137] ss:$2 sm:$0xff] }
 0x304   : > { %17127 = vmatmul.mubr.msk.f32.gmra.mrb[10].mxu0 %vm358_vm0, %v5439_v16  ;;  %v5850_v16 = vld [vmem:[#allocation2 + $0x187] ss:$2 sm:$0xff] }
 0x305   : > { %17129 = vmatprep.mubr.msk.f32.mxu0 %vm358_vm0, %v5441_v18  ;;  %v5852_v18 = vld [vmem:[#allocation2 + $0x197] ss:$2 sm:$0xff] }
 0x308   : > { %17130 = vmatmul.mubr.msk.f32.gmra.mrb[12].mxu0 %vm358_vm0, %v5443_v2  ;;  %v5856_v2 = vld [vmem:[#allocation2 + $0x1f7] ss:$2 sm:$0xff] }
 0x309   : > { %17132 = vmatprep.mubr.msk.f32.mxu0 %vm358_vm0, %v5445_v21  ;;  %v5858_v21 = vld [vmem:[#allocation2 + $0x247] ss:$2 sm:$0xff] }
 0x30c   : > { %17133 = vmatmul.mubr.msk.f32.gmra.mrb[14].mxu0 %vm358_vm0, %v5447_v23  ;;  %v5860_v23 = vld [vmem:[#allocation2 + $0x257] ss:$2 sm:$0xff] }
 0x30d   : > { %17135 = vmatprep.mubr.msk.f32.mxu0 %vm358_vm0, %v5449_v25  ;;  %v5862_v25 = vld [vmem:[#allocation2 + $0x2a7] ss:$2 sm:$0xff] }
 0x310   : > { %17136 = vmatmul.mubr.msk.f32.gmra.mrb[16].mxu0 %vm358_vm0, %v5451_v58  ;;  %v5864_v58 = vld [vmem:[#allocation2 + $0x2b7] ss:$2 sm:$0xff] }
 0x311   : > { %17138 = vmatprep.mubr.msk.f32.mxu0 %vm358_vm0, %v5453_v28  ;;  %v5866_v28 = vld [vmem:[#allocation2 + $0x307] ss:$2 sm:$0xff] }
 0x314   : > { %17139 = vmatmul.mubr.msk.f32.gmra.mrb[18].mxu0 %vm358_vm0, %v5455_v30  ;;  %v5868_v30 = vld [vmem:[#allocation2 + $0x317] ss:$2 sm:$0xff] }
 0x315   : > { %17141 = vmatprep.mubr.msk.f32.mxu0 %vm358_vm0, %v5457_v33  ;;  %v5870_v33 = vld [vmem:[#allocation2 + $0x367] ss:$2 sm:$0xff] }
 0x318   : > { %17142 = vmatmul.mubr.msk.f32.gmra.mrb[20].mxu0 %vm358_vm0, %v5459_v35  ;;  %v5872_v35 = vld [vmem:[#allocation2 + $0x377] ss:$2 sm:$0xff] }
 0x319   : > { %17144 = vmatprep.mubr.msk.f32.mxu0 %vm358_vm0, %v5461_v37  ;;  %v5874_v37 = vld [vmem:[#allocation2 + $0x3c7] ss:$2 sm:$0xff] }
 0x31c   : > { %17145 = vmatmul.mubr.msk.f32.gmra.mrb[22].mxu0 %vm358_vm0, %v5463_v59  ;;  %v5876_v59 = vld [vmem:[#allocation2 + $0x3d7] ss:$2 sm:$0xff] }
 0x31d   : > { %17147 = vmatprep.mubr.msk.f32.mxu0 %vm358_vm0, %v5465_v40  ;;  %v5878_v40 = vld [vmem:[#allocation2 + $0x427] ss:$2 sm:$0xff] }
 0x320   : > { %17148 = vmatmul.mubr.msk.f32.gmra.mrb[24].mxu0 %vm358_vm0, %v5467_v41  ;;  %v5880_v41 = vld [vmem:[#allocation2 + $0x437] ss:$2 sm:$0xff] }
 0x321   : > { %17150 = vmatprep.mubr.msk.f32.mxu0 %vm358_vm0, %v5469_v43  ;;  %v5882_v43 = vld [vmem:[#allocation2 + $0x487] ss:$2 sm:$0xff] }
 0x324   : > { %17151 = vmatmul.mubr.msk.f32.gmra.mrb[26].mxu0 %vm358_vm0, %v5471_v45  ;;  %v5884_v45 = vld [vmem:[#allocation2 + $0x497] ss:$2 sm:$0xff] }
 0x325   : > { %17153 = vmatprep.mubr.msk.f32.mxu0 %vm358_vm0, %v5473_v46  ;;  %v5886_v46 = vld [vmem:[#allocation2 + $0x4e7] ss:$2 sm:$0xff] }
 0x328   : > { %17154 = vmatmul.mubr.msk.f32.gmra.mrb[28].mxu0 %vm358_vm0, %v5475_v48  ;;  %v5888_v48 = vld [vmem:[#allocation2 + $0x4f7] ss:$2 sm:$0xff] }
 0x329   : > { %17156 = vmatprep.mubr.msk.f32.mxu0 %vm358_vm0, %v5477_v50  ;;  %v5890_v50 = vld [vmem:[#allocation2 + $0x547] ss:$2 sm:$0xff] }
 0x32c   : > { %17157 = vmatmul.mubr.msk.f32.gmra.mrb[30].mxu0 %vm358_vm0, %v5479_v53  ;;  %v5892_v53 = vld [vmem:[#allocation2 + $0x557] ss:$2 sm:$0xff] }
 0x32d   : > { %17163 = vmatprep.mubr.msk.f32.mxu0 %vm358_vm0, %v5838_v63  ;;  %v5898_v63 = vld [vmem:[#allocation2 + $0x607] ss:$2 sm:$0xff] }
 0x330   : > { %17164 = vmatmul.mubr.msk.f32.vlgmr.msra.gmra.mrb[0].mxu0 %vm358_vm0, %v5840_v60  ;;  %v5900_v60 = vld [vmem:[#allocation2 + $0x617] ss:$2 sm:$0xff] }
 0x331   : > { %18302 = vmatpush3.bf16.msra.mxu0 %v20890_v51  ;;  %17166 = vmatprep.mubr.msk.f32.mxu0 %vm358_vm0, %v5842_v4  ;;  %v5854_v51 = vld [vmem:[#allocation2 + $0x1e7] ss:$2 sm:$0xff] }
 0x332   : > { %18304 = vmatprep.subr.bf16.mxu0 %v20952_v0  ;;  %v14921_v4 = vld [vmem:[%s22447_s3 + $0xb0] sm:$0xff] }
 0x334   : > { %17167 = vmatmul.mubr.msk.f32.gmra.mrb[2].mxu0 %vm358_vm0, %v5844_v6  ;;  %v14922_v6 = vld [vmem:[%s22447_s3 + $0xb8] sm:$0xff] }
 0x335   : > { %17169 = vmatprep.mubr.msk.f32.mxu0 %vm358_vm0, %v5846_v9  ;;  %v6258_v9 = vld [vmem:[#allocation2 + $0x68] ss:$2 sm:$0xff] }
 0x338   : > { %17170 = vmatmul.mubr.msk.f32.gmra.mrb[4].mxu0 %vm358_vm0, %v5848_v14  ;;  %v20994_v14 = vpack.c.bf16 %v14922_v6, %v14921_v4  ;;  %v6314_v4 = vld [vmem:[#allocation2 + $0x5a8] ss:$2 sm:$0xff]  ;;  %v6316_v6 = vld [vmem:[#allocation2 + $0x5b8] ss:$2 sm:$0xff] }
 0x339   : > { %17172 = vmatprep.mubr.msk.f32.mxu0 %vm358_vm0, %v5850_v16  ;;  %v6260_v16 = vld [vmem:[#allocation2 + $0x78] ss:$2 sm:$0xff] }
 0x33c   : > { %17173 = vmatmul.mubr.msk.f32.gmra.mrb[6].mxu0 %vm358_vm0, %v5852_v18  ;;  %v6262_v18 = vld [vmem:[#allocation2 + $0xc8] ss:$2 sm:$0xff] }
 0x33d   : > { %17175 = vmatprep.mubr.msk.f32.mxu0 %vm358_vm0, %v5854_v51  ;;  %v6264_v51 = vld [vmem:[#allocation2 + $0xd8] ss:$2 sm:$0xff] }
 0x340   : > { %17176 = vmatmul.mubr.msk.f32.gmra.mrb[8].mxu0 %vm358_vm0, %v5856_v2  ;;  %v6266_v2 = vld [vmem:[#allocation2 + $0x128] ss:$2 sm:$0xff] }
 0x341   : > { %17178 = vmatprep.mubr.msk.f32.mxu0 %vm358_vm0, %v5858_v21  ;;  %v6268_v21 = vld [vmem:[#allocation2 + $0x138] ss:$2 sm:$0xff] }
 0x344   : > { %17179 = vmatmul.mubr.msk.f32.gmra.mrb[10].mxu0 %vm358_vm0, %v5860_v23  ;;  %v6270_v23 = vld [vmem:[#allocation2 + $0x188] ss:$2 sm:$0xff] }
 0x345   : > { %17181 = vmatprep.mubr.msk.f32.mxu0 %vm358_vm0, %v5862_v25  ;;  %v6272_v25 = vld [vmem:[#allocation2 + $0x198] ss:$2 sm:$0xff] }
 0x348   : > { %17182 = vmatmul.mubr.msk.f32.gmra.mrb[12].mxu0 %vm358_vm0, %v5864_v58  ;;  %v6276_v58 = vld [vmem:[#allocation2 + $0x1f8] ss:$2 sm:$0xff] }
 0x349   : > { %17184 = vmatprep.mubr.msk.f32.mxu0 %vm358_vm0, %v5866_v28  ;;  %v6278_v28 = vld [vmem:[#allocation2 + $0x248] ss:$2 sm:$0xff] }
 0x34c   : > { %17185 = vmatmul.mubr.msk.f32.gmra.mrb[14].mxu0 %vm358_vm0, %v5868_v30  ;;  %v6280_v30 = vld [vmem:[#allocation2 + $0x258] ss:$2 sm:$0xff] }
 0x34d   : > { %17187 = vmatprep.mubr.msk.f32.mxu0 %vm358_vm0, %v5870_v33  ;;  %v6282_v33 = vld [vmem:[#allocation2 + $0x2a8] ss:$2 sm:$0xff] }
 0x350   : > { %17188 = vmatmul.mubr.msk.f32.gmra.mrb[16].mxu0 %vm358_vm0, %v5872_v35  ;;  %v6284_v35 = vld [vmem:[#allocation2 + $0x2b8] ss:$2 sm:$0xff] }
 0x351   : > { %17190 = vmatprep.mubr.msk.f32.mxu0 %vm358_vm0, %v5874_v37  ;;  %v6286_v37 = vld [vmem:[#allocation2 + $0x308] ss:$2 sm:$0xff] }
 0x354   : > { %17191 = vmatmul.mubr.msk.f32.gmra.mrb[18].mxu0 %vm358_vm0, %v5876_v59  ;;  %v6288_v59 = vld [vmem:[#allocation2 + $0x318] ss:$2 sm:$0xff] }
 0x355   : > { %17193 = vmatprep.mubr.msk.f32.mxu0 %vm358_vm0, %v5878_v40  ;;  %v6290_v40 = vld [vmem:[#allocation2 + $0x368] ss:$2 sm:$0xff] }
 0x358   : > { %17194 = vmatmul.mubr.msk.f32.gmra.mrb[20].mxu0 %vm358_vm0, %v5880_v41  ;;  %v6292_v41 = vld [vmem:[#allocation2 + $0x378] ss:$2 sm:$0xff] }
 0x359   : > { %17196 = vmatprep.mubr.msk.f32.mxu0 %vm358_vm0, %v5882_v43  ;;  %v6294_v43 = vld [vmem:[#allocation2 + $0x3c8] ss:$2 sm:$0xff] }
 0x35c   : > { %17197 = vmatmul.mubr.msk.f32.gmra.mrb[22].mxu0 %vm358_vm0, %v5884_v45  ;;  %v6296_v45 = vld [vmem:[#allocation2 + $0x3d8] ss:$2 sm:$0xff] }
 0x35d   : > { %17199 = vmatprep.mubr.msk.f32.mxu0 %vm358_vm0, %v5886_v46  ;;  %v6298_v46 = vld [vmem:[#allocation2 + $0x428] ss:$2 sm:$0xff] }
 0x360   : > { %17200 = vmatmul.mubr.msk.f32.gmra.mrb[24].mxu0 %vm358_vm0, %v5888_v48  ;;  %v6300_v48 = vld [vmem:[#allocation2 + $0x438] ss:$2 sm:$0xff] }
 0x361   : > { %17202 = vmatprep.mubr.msk.f32.mxu0 %vm358_vm0, %v5890_v50  ;;  %v6302_v50 = vld [vmem:[#allocation2 + $0x488] ss:$2 sm:$0xff] }
 0x364   : > { %17203 = vmatmul.mubr.msk.f32.gmra.mrb[26].mxu0 %vm358_vm0, %v5892_v53  ;;  %v6304_v53 = vld [vmem:[#allocation2 + $0x498] ss:$2 sm:$0xff] }
 0x365   : > { %17205 = vmatprep.mubr.msk.f32.mxu0 %vm358_vm0, %v5894_v55  ;;  %v6306_v55 = vld [vmem:[#allocation2 + $0x4e8] ss:$2 sm:$0xff] }
 0x368   : > { %17206 = vmatmul.mubr.msk.f32.gmra.mrb[28].mxu0 %vm358_vm0, %v5896_v61  ;;  %v6308_v61 = vld [vmem:[#allocation2 + $0x4f8] ss:$2 sm:$0xff] }
 0x369   : > { %17208 = vmatprep.mubr.msk.f32.mxu0 %vm358_vm0, %v5898_v63  ;;  %v6310_v63 = vld [vmem:[#allocation2 + $0x548] ss:$2 sm:$0xff] }
 0x36c   : > { %17209 = vmatmul.mubr.msk.f32.gmra.mrb[30].mxu0 %vm358_vm0, %v5900_v60  ;;  %v6312_v60 = vld [vmem:[#allocation2 + $0x558] ss:$2 sm:$0xff] }
 0x36d   : > { %17215 = vmatprep.mubr.msk.f32.mxu0 %vm358_vm0, %v6258_v9  ;;  %v6318_v9 = vld [vmem:[#allocation2 + $0x608] ss:$2 sm:$0xff] }
 0x370   : > { %17216 = vmatmul.mubr.msk.f32.vlgmr.msra.gmra.mrb[0].mxu0 %vm358_vm0, %v6260_v16  ;;  %v6320_v16 = vld [vmem:[#allocation2 + $0x618] ss:$2 sm:$0xff] }
 0x371   : > { %18306 = vmatpush3.bf16.msra.mxu0 %v20952_v0  ;;  %17218 = vmatprep.mubr.msk.f32.mxu0 %vm358_vm0, %v6262_v18  ;;  %v6274_v0 = vld [vmem:[#allocation2 + $0x1e8] ss:$2 sm:$0xff]  ;;  %v14955_v18 = vld [vmem:[%s22447_s3 + $0xc0] sm:$0xff] }
 0x372   : > { %18308 = vmatprep.subr.bf16.mxu0 %v20994_v14 }
 0x374   : > { %17219 = vmatmul.mubr.msk.f32.gmra.mrb[2].mxu0 %vm358_vm0, %v6264_v51  ;;  %v14956_v51 = vld [vmem:[%s22447_s3 + $0xc8] sm:$0xff] }
 0x375   : > { %17221 = vmatprep.mubr.msk.f32.mxu0 %vm358_vm0, %v6266_v2  ;;  %v6678_v2 = vld [vmem:[#allocation2 + $0x69] ss:$2 sm:$0xff] }
 0x378   : > { %17222 = vmatmul.mubr.msk.f32.gmra.mrb[4].mxu0 %vm358_vm0, %v6268_v21  ;;  %v21036_v21 = vpack.c.bf16 %v14956_v51, %v14955_v18  ;;  %v6734_v18 = vld [vmem:[#allocation2 + $0x5a9] ss:$2 sm:$0xff]  ;;  %v6736_v51 = vld [vmem:[#allocation2 + $0x5b9] ss:$2 sm:$0xff] }
 0x379   : > { %17224 = vmatprep.mubr.msk.f32.mxu0 %vm358_vm0, %v6270_v23  ;;  %v6680_v23 = vld [vmem:[#allocation2 + $0x79] ss:$2 sm:$0xff] }
 0x37c   : > { %17225 = vmatmul.mubr.msk.f32.gmra.mrb[6].mxu0 %vm358_vm0, %v6272_v25  ;;  %v6682_v25 = vld [vmem:[#allocation2 + $0xc9] ss:$2 sm:$0xff] }
 0x37d   : > { %17227 = vmatprep.mubr.msk.f32.mxu0 %vm358_vm0, %v6274_v0  ;;  %v6684_v0 = vld [vmem:[#allocation2 + $0xd9] ss:$2 sm:$0xff] }
 0x380   : > { %17228 = vmatmul.mubr.msk.f32.gmra.mrb[8].mxu0 %vm358_vm0, %v6276_v58  ;;  %v6686_v58 = vld [vmem:[#allocation2 + $0x129] ss:$2 sm:$0xff] }
 0x381   : > { %17230 = vmatprep.mubr.msk.f32.mxu0 %vm358_vm0, %v6278_v28  ;;  %v6688_v28 = vld [vmem:[#allocation2 + $0x139] ss:$2 sm:$0xff] }
 0x384   : > { %17231 = vmatmul.mubr.msk.f32.gmra.mrb[10].mxu0 %vm358_vm0, %v6280_v30  ;;  %v6690_v30 = vld [vmem:[#allocation2 + $0x189] ss:$2 sm:$0xff] }
 0x385   : > { %17233 = vmatprep.mubr.msk.f32.mxu0 %vm358_vm0, %v6282_v33  ;;  %v6692_v33 = vld [vmem:[#allocation2 + $0x199] ss:$2 sm:$0xff] }
 0x388   : > { %17234 = vmatmul.mubr.msk.f32.gmra.mrb[12].mxu0 %vm358_vm0, %v6284_v35  ;;  %v6696_v35 = vld [vmem:[#allocation2 + $0x1f9] ss:$2 sm:$0xff] }
 0x389   : > { %17236 = vmatprep.mubr.msk.f32.mxu0 %vm358_vm0, %v6286_v37  ;;  %v6698_v37 = vld [vmem:[#allocation2 + $0x249] ss:$2 sm:$0xff] }
 0x38c   : > { %17237 = vmatmul.mubr.msk.f32.gmra.mrb[14].mxu0 %vm358_vm0, %v6288_v59  ;;  %v6700_v59 = vld [vmem:[#allocation2 + $0x259] ss:$2 sm:$0xff] }
 0x38d   : > { %17239 = vmatprep.mubr.msk.f32.mxu0 %vm358_vm0, %v6290_v40  ;;  %v6702_v40 = vld [vmem:[#allocation2 + $0x2a9] ss:$2 sm:$0xff] }
 0x390   : > { %17240 = vmatmul.mubr.msk.f32.gmra.mrb[16].mxu0 %vm358_vm0, %v6292_v41  ;;  %v6704_v41 = vld [vmem:[#allocation2 + $0x2b9] ss:$2 sm:$0xff] }
 0x391   : > { %17242 = vmatprep.mubr.msk.f32.mxu0 %vm358_vm0, %v6294_v43  ;;  %v6706_v43 = vld [vmem:[#allocation2 + $0x309] ss:$2 sm:$0xff] }
 0x394   : > { %17243 = vmatmul.mubr.msk.f32.gmra.mrb[18].mxu0 %vm358_vm0, %v6296_v45  ;;  %v6708_v45 = vld [vmem:[#allocation2 + $0x319] ss:$2 sm:$0xff] }
 0x395   : > { %17245 = vmatprep.mubr.msk.f32.mxu0 %vm358_vm0, %v6298_v46  ;;  %v6710_v46 = vld [vmem:[#allocation2 + $0x369] ss:$2 sm:$0xff] }
 0x398   : > { %17246 = vmatmul.mubr.msk.f32.gmra.mrb[20].mxu0 %vm358_vm0, %v6300_v48  ;;  %v6712_v48 = vld [vmem:[#allocation2 + $0x379] ss:$2 sm:$0xff] }
 0x399   : > { %17248 = vmatprep.mubr.msk.f32.mxu0 %vm358_vm0, %v6302_v50  ;;  %v6714_v50 = vld [vmem:[#allocation2 + $0x3c9] ss:$2 sm:$0xff] }
 0x39c   : > { %17249 = vmatmul.mubr.msk.f32.gmra.mrb[22].mxu0 %vm358_vm0, %v6304_v53  ;;  %v6716_v53 = vld [vmem:[#allocation2 + $0x3d9] ss:$2 sm:$0xff] }
 0x39d   : > { %17251 = vmatprep.mubr.msk.f32.mxu0 %vm358_vm0, %v6306_v55  ;;  %v6718_v55 = vld [vmem:[#allocation2 + $0x429] ss:$2 sm:$0xff] }
 0x3a0   : > { %17252 = vmatmul.mubr.msk.f32.gmra.mrb[24].mxu0 %vm358_vm0, %v6308_v61  ;;  %v6720_v61 = vld [vmem:[#allocation2 + $0x439] ss:$2 sm:$0xff] }
 0x3a1   : > { %17254 = vmatprep.mubr.msk.f32.mxu0 %vm358_vm0, %v6310_v63  ;;  %v6722_v63 = vld [vmem:[#allocation2 + $0x489] ss:$2 sm:$0xff] }
 0x3a4   : > { %17255 = vmatmul.mubr.msk.f32.gmra.mrb[26].mxu0 %vm358_vm0, %v6312_v60  ;;  %v6724_v60 = vld [vmem:[#allocation2 + $0x499] ss:$2 sm:$0xff] }
 0x3a5   : > { %17257 = vmatprep.mubr.msk.f32.mxu0 %vm358_vm0, %v6314_v4  ;;  %v6726_v4 = vld [vmem:[#allocation2 + $0x4e9] ss:$2 sm:$0xff] }
 0x3a8   : > { %17258 = vmatmul.mubr.msk.f32.gmra.mrb[28].mxu0 %vm358_vm0, %v6316_v6  ;;  %v6728_v6 = vld [vmem:[#allocation2 + $0x4f9] ss:$2 sm:$0xff] }
 0x3a9   : > { %17260 = vmatprep.mubr.msk.f32.mxu0 %vm358_vm0, %v6318_v9  ;;  %v6730_v9 = vld [vmem:[#allocation2 + $0x549] ss:$2 sm:$0xff] }
 0x3ac   : > { %17261 = vmatmul.mubr.msk.f32.gmra.mrb[30].mxu0 %vm358_vm0, %v6320_v16  ;;  %v6732_v16 = vld [vmem:[#allocation2 + $0x559] ss:$2 sm:$0xff] }
 0x3ad   : > { %17267 = vmatprep.mubr.msk.f32.mxu0 %vm358_vm0, %v6678_v2  ;;  %v6738_v2 = vld [vmem:[#allocation2 + $0x609] ss:$2 sm:$0xff] }
 0x3b0   : > { %17268 = vmatmul.mubr.msk.f32.vlgmr.msra.gmra.mrb[0].mxu0 %vm358_vm0, %v6680_v23  ;;  %v6740_v23 = vld [vmem:[#allocation2 + $0x619] ss:$2 sm:$0xff] }
 0x3b1   : > { %18310 = vmatpush3.bf16.msra.mxu0 %v20994_v14  ;;  %17270 = vmatprep.mubr.msk.f32.mxu0 %vm358_vm0, %v6682_v25  ;;  %v6694_v14 = vld [vmem:[#allocation2 + $0x1e9] ss:$2 sm:$0xff] }
 0x3b2   : > { %18312 = vmatprep.subr.bf16.mxu0 %v21036_v21  ;;  %v14989_v25 = vld [vmem:[%s22447_s3 + $0xd0] sm:$0xff] }
 0x3b4   : > { %17271 = vmatmul.mubr.msk.f32.gmra.mrb[2].mxu0 %vm358_vm0, %v6684_v0  ;;  %v14990_v0 = vld [vmem:[%s22447_s3 + $0xd8] sm:$0xff] }
 0x3b5   : > { %17273 = vmatprep.mubr.msk.f32.mxu0 %vm358_vm0, %v6686_v58  ;;  %v7098_v58 = vld [vmem:[#allocation2 + $0x6a] ss:$2 sm:$0xff] }
 0x3b8   : > { %17274 = vmatmul.mubr.msk.f32.gmra.mrb[4].mxu0 %vm358_vm0, %v6688_v28  ;;  %v21078_v28 = vpack.c.bf16 %v14990_v0, %v14989_v25  ;;  %v7154_v25 = vld [vmem:[#allocation2 + $0x5aa] ss:$2 sm:$0xff]  ;;  %v7156_v0 = vld [vmem:[#allocation2 + $0x5ba] ss:$2 sm:$0xff] }
 0x3b9   : > { %17276 = vmatprep.mubr.msk.f32.mxu0 %vm358_vm0, %v6690_v30  ;;  %v7100_v30 = vld [vmem:[#allocation2 + $0x7a] ss:$2 sm:$0xff] }
 0x3bc   : > { %17277 = vmatmul.mubr.msk.f32.gmra.mrb[6].mxu0 %vm358_vm0, %v6692_v33  ;;  %v7102_v33 = vld [vmem:[#allocation2 + $0xca] ss:$2 sm:$0xff] }
 0x3bd   : > { %17279 = vmatprep.mubr.msk.f32.mxu0 %vm358_vm0, %v6694_v14  ;;  %v7104_v14 = vld [vmem:[#allocation2 + $0xda] ss:$2 sm:$0xff] }
 0x3c0   : > { %17280 = vmatmul.mubr.msk.f32.gmra.mrb[8].mxu0 %vm358_vm0, %v6696_v35  ;;  %v7106_v35 = vld [vmem:[#allocation2 + $0x12a] ss:$2 sm:$0xff] }
 0x3c1   : > { %17282 = vmatprep.mubr.msk.f32.mxu0 %vm358_vm0, %v6698_v37  ;;  %v7108_v37 = vld [vmem:[#allocation2 + $0x13a] ss:$2 sm:$0xff] }
 0x3c4   : > { %17283 = vmatmul.mubr.msk.f32.gmra.mrb[10].mxu0 %vm358_vm0, %v6700_v59  ;;  %v7110_v59 = vld [vmem:[#allocation2 + $0x18a] ss:$2 sm:$0xff] }
 0x3c5   : > { %17285 = vmatprep.mubr.msk.f32.mxu0 %vm358_vm0, %v6702_v40  ;;  %v7112_v40 = vld [vmem:[#allocation2 + $0x19a] ss:$2 sm:$0xff] }
 0x3c8   : > { %17286 = vmatmul.mubr.msk.f32.gmra.mrb[12].mxu0 %vm358_vm0, %v6704_v41  ;;  %v7116_v41 = vld [vmem:[#allocation2 + $0x1fa] ss:$2 sm:$0xff] }
 0x3c9   : > { %17288 = vmatprep.mubr.msk.f32.mxu0 %vm358_vm0, %v6706_v43  ;;  %v7118_v43 = vld [vmem:[#allocation2 + $0x24a] ss:$2 sm:$0xff] }
 0x3cc   : > { %17289 = vmatmul.mubr.msk.f32.gmra.mrb[14].mxu0 %vm358_vm0, %v6708_v45  ;;  %v7120_v45 = vld [vmem:[#allocation2 + $0x25a] ss:$2 sm:$0xff] }
 0x3cd   : > { %17291 = vmatprep.mubr.msk.f32.mxu0 %vm358_vm0, %v6710_v46  ;;  %v7122_v46 = vld [vmem:[#allocation2 + $0x2aa] ss:$2 sm:$0xff] }
 0x3d0   : > { %17292 = vmatmul.mubr.msk.f32.gmra.mrb[16].mxu0 %vm358_vm0, %v6712_v48  ;;  %v7124_v48 = vld [vmem:[#allocation2 + $0x2ba] ss:$2 sm:$0xff] }
 0x3d1   : > { %17294 = vmatprep.mubr.msk.f32.mxu0 %vm358_vm0, %v6714_v50  ;;  %v7126_v50 = vld [vmem:[#allocation2 + $0x30a] ss:$2 sm:$0xff] }
 0x3d4   : > { %17295 = vmatmul.mubr.msk.f32.gmra.mrb[18].mxu0 %vm358_vm0, %v6716_v53  ;;  %v7128_v53 = vld [vmem:[#allocation2 + $0x31a] ss:$2 sm:$0xff] }
 0x3d5   : > { %17297 = vmatprep.mubr.msk.f32.mxu0 %vm358_vm0, %v6718_v55  ;;  %v7130_v55 = vld [vmem:[#allocation2 + $0x36a] ss:$2 sm:$0xff] }
 0x3d8   : > { %17298 = vmatmul.mubr.msk.f32.gmra.mrb[20].mxu0 %vm358_vm0, %v6720_v61  ;;  %v7132_v61 = vld [vmem:[#allocation2 + $0x37a] ss:$2 sm:$0xff] }
 0x3d9   : > { %17300 = vmatprep.mubr.msk.f32.mxu0 %vm358_vm0, %v6722_v63  ;;  %v7134_v63 = vld [vmem:[#allocation2 + $0x3ca] ss:$2 sm:$0xff] }
 0x3dc   : > { %17301 = vmatmul.mubr.msk.f32.gmra.mrb[22].mxu0 %vm358_vm0, %v6724_v60  ;;  %v7136_v60 = vld [vmem:[#allocation2 + $0x3da] ss:$2 sm:$0xff] }
 0x3dd   : > { %17303 = vmatprep.mubr.msk.f32.mxu0 %vm358_vm0, %v6726_v4  ;;  %v7138_v4 = vld [vmem:[#allocation2 + $0x42a] ss:$2 sm:$0xff] }
 0x3e0   : > { %17304 = vmatmul.mubr.msk.f32.gmra.mrb[24].mxu0 %vm358_vm0, %v6728_v6  ;;  %v7140_v6 = vld [vmem:[#allocation2 + $0x43a] ss:$2 sm:$0xff] }
 0x3e1   : > { %17306 = vmatprep.mubr.msk.f32.mxu0 %vm358_vm0, %v6730_v9  ;;  %v7142_v9 = vld [vmem:[#allocation2 + $0x48a] ss:$2 sm:$0xff] }
 0x3e4   : > { %17307 = vmatmul.mubr.msk.f32.gmra.mrb[26].mxu0 %vm358_vm0, %v6732_v16  ;;  %v7144_v16 = vld [vmem:[#allocation2 + $0x49a] ss:$2 sm:$0xff] }
 0x3e5   : > { %17309 = vmatprep.mubr.msk.f32.mxu0 %vm358_vm0, %v6734_v18  ;;  %v7146_v18 = vld [vmem:[#allocation2 + $0x4ea] ss:$2 sm:$0xff] }
 0x3e8   : > { %17310 = vmatmul.mubr.msk.f32.gmra.mrb[28].mxu0 %vm358_vm0, %v6736_v51  ;;  %v7148_v51 = vld [vmem:[#allocation2 + $0x4fa] ss:$2 sm:$0xff] }
 0x3e9   : > { %17312 = vmatprep.mubr.msk.f32.mxu0 %vm358_vm0, %v6738_v2  ;;  %v7150_v2 = vld [vmem:[#allocation2 + $0x54a] ss:$2 sm:$0xff] }
 0x3ec   : > { %17313 = vmatmul.mubr.msk.f32.gmra.mrb[30].mxu0 %vm358_vm0, %v6740_v23  ;;  %v7152_v23 = vld [vmem:[#allocation2 + $0x55a] ss:$2 sm:$0xff] }
 0x3ed   : > { %17319 = vmatprep.mubr.msk.f32.mxu0 %vm358_vm0, %v7098_v58  ;;  %v7158_v58 = vld [vmem:[#allocation2 + $0x60a] ss:$2 sm:$0xff] }
 0x3f0   : > { %17320 = vmatmul.mubr.msk.f32.vlgmr.msra.gmra.mrb[0].mxu0 %vm358_vm0, %v7100_v30  ;;  %v7160_v30 = vld [vmem:[#allocation2 + $0x61a] ss:$2 sm:$0xff] }
 0x3f1   : > { %18314 = vmatpush3.bf16.msra.mxu0 %v21036_v21  ;;  %17322 = vmatprep.mubr.msk.f32.mxu0 %vm358_vm0, %v7102_v33  ;;  %v7114_v21 = vld [vmem:[#allocation2 + $0x1ea] ss:$2 sm:$0xff]  ;;  %v15023_v33 = vld [vmem:[%s22447_s3 + $0xe0] sm:$0xff] }
 0x3f2   : > { %18316 = vmatprep.subr.bf16.mxu0 %v21078_v28 }
 0x3f4   : > { %17323 = vmatmul.mubr.msk.f32.gmra.mrb[2].mxu0 %vm358_vm0, %v7104_v14  ;;  %v15024_v14 = vld [vmem:[%s22447_s3 + $0xe8] sm:$0xff] }
 0x3f5   : > { %17325 = vmatprep.mubr.msk.f32.mxu0 %vm358_vm0, %v7106_v35  ;;  %v7519_v35 = vld [vmem:[#allocation2 + $0x97] ss:$2 sm:$0xff] }
 0x3f8   : > { %17326 = vmatmul.mubr.msk.f32.gmra.mrb[4].mxu0 %vm358_vm0, %v7108_v37  ;;  %v21120_v37 = vpack.c.bf16 %v15024_v14, %v15023_v33  ;;  %v7575_v33 = vld [vmem:[#allocation2 + $0x5d7] ss:$2 sm:$0xff] }
 0x3f9   : > { %17328 = vmatprep.mubr.msk.f32.mxu0 %vm358_vm0, %v7110_v59  ;;  %v7521_v59 = vld [vmem:[#allocation2 + $0xa7] ss:$2 sm:$0xff]  ;;  %v7579_v14 = vld [vmem:[#allocation2 + $0x637] ss:$2 sm:$0xff] }
 0x3fc   : > { %17329 = vmatmul.mubr.msk.f32.gmra.mrb[6].mxu0 %vm358_vm0, %v7112_v40  ;;  %v7523_v40 = vld [vmem:[#allocation2 + $0xf7] ss:$2 sm:$0xff] }
 0x3fd   : > { %17331 = vmatprep.mubr.msk.f32.mxu0 %vm358_vm0, %v7114_v21  ;;  %v7525_v21 = vld [vmem:[#allocation2 + $0x107] ss:$2 sm:$0xff] }
 0x400   : > { %17332 = vmatmul.mubr.msk.f32.gmra.mrb[8].mxu0 %vm358_vm0, %v7116_v41  ;;  %v7527_v41 = vld [vmem:[#allocation2 + $0x157] ss:$2 sm:$0xff] }
 0x401   : > { %17334 = vmatprep.mubr.msk.f32.mxu0 %vm358_vm0, %v7118_v43  ;;  %v7529_v43 = vld [vmem:[#allocation2 + $0x167] ss:$2 sm:$0xff] }
 0x404   : > { %17335 = vmatmul.mubr.msk.f32.gmra.mrb[10].mxu0 %vm358_vm0, %v7120_v45  ;;  %v7531_v45 = vld [vmem:[#allocation2 + $0x1b7] ss:$2 sm:$0xff] }
 0x405   : > { %17337 = vmatprep.mubr.msk.f32.mxu0 %vm358_vm0, %v7122_v46  ;;  %v7533_v46 = vld [vmem:[#allocation2 + $0x1c7] ss:$2 sm:$0xff] }
 0x408   : > { %17338 = vmatmul.mubr.msk.f32.gmra.mrb[12].mxu0 %vm358_vm0, %v7124_v48  ;;  %v7537_v48 = vld [vmem:[#allocation2 + $0x227] ss:$2 sm:$0xff] }
 0x409   : > { %17340 = vmatprep.mubr.msk.f32.mxu0 %vm358_vm0, %v7126_v50  ;;  %v7539_v50 = vld [vmem:[#allocation2 + $0x277] ss:$2 sm:$0xff] }
 0x40c   : > { %17341 = vmatmul.mubr.msk.f32.gmra.mrb[14].mxu0 %vm358_vm0, %v7128_v53  ;;  %v7541_v53 = vld [vmem:[#allocation2 + $0x287] ss:$2 sm:$0xff] }
 0x40d   : > { %17343 = vmatprep.mubr.msk.f32.mxu0 %vm358_vm0, %v7130_v55  ;;  %v7543_v55 = vld [vmem:[#allocation2 + $0x2d7] ss:$2 sm:$0xff] }
 0x410   : > { %17344 = vmatmul.mubr.msk.f32.gmra.mrb[16].mxu0 %vm358_vm0, %v7132_v61  ;;  %v7545_v61 = vld [vmem:[#allocation2 + $0x2e7] ss:$2 sm:$0xff] }
 0x411   : > { %17346 = vmatprep.mubr.msk.f32.mxu0 %vm358_vm0, %v7134_v63  ;;  %v7547_v63 = vld [vmem:[#allocation2 + $0x337] ss:$2 sm:$0xff] }
 0x414   : > { %17347 = vmatmul.mubr.msk.f32.gmra.mrb[18].mxu0 %vm358_vm0, %v7136_v60  ;;  %v7549_v60 = vld [vmem:[#allocation2 + $0x347] ss:$2 sm:$0xff] }
 0x415   : > { %17349 = vmatprep.mubr.msk.f32.mxu0 %vm358_vm0, %v7138_v4  ;;  %v7551_v4 = vld [vmem:[#allocation2 + $0x397] ss:$2 sm:$0xff] }
 0x418   : > { %17350 = vmatmul.mubr.msk.f32.gmra.mrb[20].mxu0 %vm358_vm0, %v7140_v6  ;;  %v7553_v6 = vld [vmem:[#allocation2 + $0x3a7] ss:$2 sm:$0xff] }
 0x419   : > { %17352 = vmatprep.mubr.msk.f32.mxu0 %vm358_vm0, %v7142_v9  ;;  %v7555_v9 = vld [vmem:[#allocation2 + $0x3f7] ss:$2 sm:$0xff] }
 0x41c   : > { %17353 = vmatmul.mubr.msk.f32.gmra.mrb[22].mxu0 %vm358_vm0, %v7144_v16  ;;  %v7557_v16 = vld [vmem:[#allocation2 + $0x407] ss:$2 sm:$0xff] }
 0x41d   : > { %17355 = vmatprep.mubr.msk.f32.mxu0 %vm358_vm0, %v7146_v18  ;;  %v7559_v18 = vld [vmem:[#allocation2 + $0x457] ss:$2 sm:$0xff] }
 0x420   : > { %17356 = vmatmul.mubr.msk.f32.gmra.mrb[24].mxu0 %vm358_vm0, %v7148_v51  ;;  %v7561_v51 = vld [vmem:[#allocation2 + $0x467] ss:$2 sm:$0xff] }
 0x421   : > { %17358 = vmatprep.mubr.msk.f32.mxu0 %vm358_vm0, %v7150_v2  ;;  %v7563_v2 = vld [vmem:[#allocation2 + $0x4b7] ss:$2 sm:$0xff] }
 0x424   : > { %17359 = vmatmul.mubr.msk.f32.gmra.mrb[26].mxu0 %vm358_vm0, %v7152_v23  ;;  %v7565_v23 = vld [vmem:[#allocation2 + $0x4c7] ss:$2 sm:$0xff] }
 0x425   : > { %17361 = vmatprep.mubr.msk.f32.mxu0 %vm358_vm0, %v7154_v25  ;;  %v7567_v25 = vld [vmem:[#allocation2 + $0x517] ss:$2 sm:$0xff] }
 0x428   : > { %17362 = vmatmul.mubr.msk.f32.gmra.mrb[28].mxu0 %vm358_vm0, %v7156_v0  ;;  %v7569_v0 = vld [vmem:[#allocation2 + $0x527] ss:$2 sm:$0xff] }
 0x429   : > { %17364 = vmatprep.mubr.msk.f32.mxu0 %vm358_vm0, %v7158_v58  ;;  %v7571_v58 = vld [vmem:[#allocation2 + $0x577] ss:$2 sm:$0xff] }
 0x42c   : > { %17365 = vmatmul.mubr.msk.f32.gmra.mrb[30].mxu0 %vm358_vm0, %v7160_v30  ;;  %v7573_v30 = vld [vmem:[#allocation2 + $0x587] ss:$2 sm:$0xff] }
 0x42d   : > { %17371 = vmatprep.mubr.msk.f32.mxu0 %vm358_vm0, %v7519_v35  ;;  %v7577_v35 = vld [vmem:[#allocation2 + $0x5e7] ss:$2 sm:$0xff] }
 0x430   : > { %17372 = vmatmul.mubr.msk.f32.vlgmr.msra.gmra.mrb[0].mxu0 %vm358_vm0, %v7521_v59  ;;  %v7581_v59 = vld [vmem:[#allocation2 + $0x647] ss:$2 sm:$0xff] }
 0x431   : > { %18318 = vmatpush3.bf16.msra.mxu0 %v21078_v28  ;;  %17374 = vmatprep.mubr.msk.f32.mxu0 %vm358_vm0, %v7523_v40  ;;  %v7535_v28 = vld [vmem:[#allocation2 + $0x217] ss:$2 sm:$0xff] }
 0x432   : > { %18320 = vmatprep.subr.bf16.mxu0 %v21120_v37  ;;  %v15057_v40 = vld [vmem:[%s22447_s3 + $0xf0] sm:$0xff] }
 0x434   : > { %17375 = vmatmul.mubr.msk.f32.gmra.mrb[2].mxu0 %vm358_vm0, %v7525_v21  ;;  %v15058_v21 = vld [vmem:[%s22447_s3 + $0xf8] sm:$0xff] }
 0x435   : > { %17377 = vmatprep.mubr.msk.f32.mxu0 %vm358_vm0, %v7527_v41  ;;  %v7939_v41 = vld [vmem:[#allocation2 + $0x98] ss:$2 sm:$0xff] }
 0x438   : > { %17378 = vmatmul.mubr.msk.f32.gmra.mrb[4].mxu0 %vm358_vm0, %v7529_v43  ;;  %v21162_v43 = vpack.c.bf16 %v15058_v21, %v15057_v40  ;;  %v7995_v40 = vld [vmem:[#allocation2 + $0x5d8] ss:$2 sm:$0xff] }
 0x439   : > { %17380 = vmatprep.mubr.msk.f32.mxu0 %vm358_vm0, %v7531_v45  ;;  %v7941_v45 = vld [vmem:[#allocation2 + $0xa8] ss:$2 sm:$0xff]  ;;  %v7999_v21 = vld [vmem:[#allocation2 + $0x638] ss:$2 sm:$0xff] }
 0x43c   : > { %17381 = vmatmul.mubr.msk.f32.gmra.mrb[6].mxu0 %vm358_vm0, %v7533_v46  ;;  %v7943_v46 = vld [vmem:[#allocation2 + $0xf8] ss:$2 sm:$0xff] }
 0x43d   : > { %17383 = vmatprep.mubr.msk.f32.mxu0 %vm358_vm0, %v7535_v28  ;;  %v7945_v28 = vld [vmem:[#allocation2 + $0x108] ss:$2 sm:$0xff] }
 0x440   : > { %17384 = vmatmul.mubr.msk.f32.gmra.mrb[8].mxu0 %vm358_vm0, %v7537_v48  ;;  %v7947_v48 = vld [vmem:[#allocation2 + $0x158] ss:$2 sm:$0xff] }
 0x441   : > { %17386 = vmatprep.mubr.msk.f32.mxu0 %vm358_vm0, %v7539_v50  ;;  %v7949_v50 = vld [vmem:[#allocation2 + $0x168] ss:$2 sm:$0xff] }
 0x444   : > { %17387 = vmatmul.mubr.msk.f32.gmra.mrb[10].mxu0 %vm358_vm0, %v7541_v53  ;;  %v7951_v53 = vld [vmem:[#allocation2 + $0x1b8] ss:$2 sm:$0xff] }
 0x445   : > { %17389 = vmatprep.mubr.msk.f32.mxu0 %vm358_vm0, %v7543_v55  ;;  %v7953_v55 = vld [vmem:[#allocation2 + $0x1c8] ss:$2 sm:$0xff] }
 0x448   : > { %17390 = vmatmul.mubr.msk.f32.gmra.mrb[12].mxu0 %vm358_vm0, %v7545_v61  ;;  %v7957_v61 = vld [vmem:[#allocation2 + $0x228] ss:$2 sm:$0xff] }
 0x449   : > { %17392 = vmatprep.mubr.msk.f32.mxu0 %vm358_vm0, %v7547_v63  ;;  %v7959_v63 = vld [vmem:[#allocation2 + $0x278] ss:$2 sm:$0xff] }
 0x44c   : > { %17393 = vmatmul.mubr.msk.f32.gmra.mrb[14].mxu0 %vm358_vm0, %v7549_v60  ;;  %v7961_v60 = vld [vmem:[#allocation2 + $0x288] ss:$2 sm:$0xff] }
 0x44d   : > { %17395 = vmatprep.mubr.msk.f32.mxu0 %vm358_vm0, %v7551_v4  ;;  %v7963_v4 = vld [vmem:[#allocation2 + $0x2d8] ss:$2 sm:$0xff] }
 0x450   : > { %17396 = vmatmul.mubr.msk.f32.gmra.mrb[16].mxu0 %vm358_vm0, %v7553_v6  ;;  %v7965_v6 = vld [vmem:[#allocation2 + $0x2e8] ss:$2 sm:$0xff] }
 0x451   : > { %17398 = vmatprep.mubr.msk.f32.mxu0 %vm358_vm0, %v7555_v9  ;;  %v7967_v9 = vld [vmem:[#allocation2 + $0x338] ss:$2 sm:$0xff] }
 0x454   : > { %17399 = vmatmul.mubr.msk.f32.gmra.mrb[18].mxu0 %vm358_vm0, %v7557_v16  ;;  %v7969_v16 = vld [vmem:[#allocation2 + $0x348] ss:$2 sm:$0xff] }
 0x455   : > { %17401 = vmatprep.mubr.msk.f32.mxu0 %vm358_vm0, %v7559_v18  ;;  %v7971_v18 = vld [vmem:[#allocation2 + $0x398] ss:$2 sm:$0xff] }
 0x458   : > { %17402 = vmatmul.mubr.msk.f32.gmra.mrb[20].mxu0 %vm358_vm0, %v7561_v51  ;;  %v7973_v51 = vld [vmem:[#allocation2 + $0x3a8] ss:$2 sm:$0xff] }
 0x459   : > { %17404 = vmatprep.mubr.msk.f32.mxu0 %vm358_vm0, %v7563_v2  ;;  %v7975_v2 = vld [vmem:[#allocation2 + $0x3f8] ss:$2 sm:$0xff] }
 0x45c   : > { %17405 = vmatmul.mubr.msk.f32.gmra.mrb[22].mxu0 %vm358_vm0, %v7565_v23  ;;  %v7977_v23 = vld [vmem:[#allocation2 + $0x408] ss:$2 sm:$0xff] }
 0x45d   : > { %17407 = vmatprep.mubr.msk.f32.mxu0 %vm358_vm0, %v7567_v25  ;;  %v7979_v25 = vld [vmem:[#allocation2 + $0x458] ss:$2 sm:$0xff] }
 0x460   : > { %17408 = vmatmul.mubr.msk.f32.gmra.mrb[24].mxu0 %vm358_vm0, %v7569_v0  ;;  %v7981_v0 = vld [vmem:[#allocation2 + $0x468] ss:$2 sm:$0xff] }
 0x461   : > { %17410 = vmatprep.mubr.msk.f32.mxu0 %vm358_vm0, %v7571_v58  ;;  %v7983_v58 = vld [vmem:[#allocation2 + $0x4b8] ss:$2 sm:$0xff] }
 0x464   : > { %17411 = vmatmul.mubr.msk.f32.gmra.mrb[26].mxu0 %vm358_vm0, %v7573_v30  ;;  %v7985_v30 = vld [vmem:[#allocation2 + $0x4c8] ss:$2 sm:$0xff] }
 0x465   : > { %17413 = vmatprep.mubr.msk.f32.mxu0 %vm358_vm0, %v7575_v33  ;;  %v7987_v33 = vld [vmem:[#allocation2 + $0x518] ss:$2 sm:$0xff] }
 0x468   : > { %17414 = vmatmul.mubr.msk.f32.gmra.mrb[28].mxu0 %vm358_vm0, %v7577_v35  ;;  %v7991_v35 = vld [vmem:[#allocation2 + $0x578] ss:$2 sm:$0xff] }
 0x469   : > { %17416 = vmatprep.mubr.msk.f32.mxu0 %vm358_vm0, %v7579_v14  ;;  %v7989_v14 = vld [vmem:[#allocation2 + $0x528] ss:$2 sm:$0xff] }
 0x46c   : > { %17417 = vmatmul.mubr.msk.f32.gmra.mrb[30].mxu0 %vm358_vm0, %v7581_v59  ;;  %v7993_v59 = vld [vmem:[#allocation2 + $0x588] ss:$2 sm:$0xff] }
 0x46d   : > { %17423 = vmatprep.mubr.msk.f32.mxu0 %vm358_vm0, %v7939_v41  ;;  %v7997_v41 = vld [vmem:[#allocation2 + $0x5e8] ss:$2 sm:$0xff] }
 0x470   : > { %17424 = vmatmul.mubr.msk.f32.vlgmr.msra.gmra.mrb[0].mxu0 %vm358_vm0, %v7941_v45  ;;  %v8001_v45 = vld [vmem:[#allocation2 + $0x648] ss:$2 sm:$0xff] }
 0x471   : > { %18322 = vmatpush3.bf16.msra.mxu0 %v21120_v37  ;;  %17426 = vmatprep.mubr.msk.f32.mxu0 %vm358_vm0, %v7943_v46  ;;  %v7955_v37 = vld [vmem:[#allocation2 + $0x218] ss:$2 sm:$0xff]  ;;  %v8359_v46 = vld [vmem:[#allocation2 + $0x99] ss:$2 sm:$0xff] }
 0x472   : > { %18324 = vmatprep.subr.bf16.mxu0 %v21162_v43 }
 0x474   : > { %17427 = vmatmul.mubr.msk.f32.gmra.mrb[2].mxu0 %vm358_vm0, %v7945_v28  ;;  %v15092_v28 = vld [vmem:[%s22449_s5 + $0x20] sm:$0xff] }
 0x475   : > { %17429 = vmatprep.mubr.msk.f32.mxu0 %vm358_vm0, %v7947_v48  ;;  %v15093_v48 = vld [vmem:[%s22449_s5 + $0x28] sm:$0xff] }
 0x478   : > { %17430 = vmatmul.mubr.msk.f32.gmra.mrb[4].mxu0 %vm358_vm0, %v7949_v50  ;;  %v21204_v50 = vpack.c.bf16 %v15093_v48, %v15092_v28  ;;  %v8419_v28 = vld [vmem:[#allocation2 + $0x639] ss:$2 sm:$0xff]  ;;  %v8417_v48 = vld [vmem:[#allocation2 + $0x5e9] ss:$2 sm:$0xff] }
 0x479   : > { %17432 = vmatprep.mubr.msk.f32.mxu0 %vm358_vm0, %v7951_v53  ;;  %v8361_v53 = vld [vmem:[#allocation2 + $0xa9] ss:$2 sm:$0xff] }
 0x47a   : > { %18328 = vmatprep.subr.bf16.mxu1 %v21204_v50 }
 0x47b   : > { %18330 = vmatpush3.bf16.msra.mxu1 %v21204_v50  ;;  %v8421_v50 = vld [vmem:[#allocation2 + $0x649] ss:$2 sm:$0xff] }
 0x47c   : > { %17433 = vmatmul.mubr.msk.f32.gmra.mrb[6].mxu0 %vm358_vm0, %v7953_v55  ;;  %v8363_v55 = vld [vmem:[#allocation2 + $0xf9] ss:$2 sm:$0xff] }
 0x47d   : > { %17435 = vmatprep.mubr.msk.f32.mxu0 %vm358_vm0, %v7955_v37  ;;  %v8365_v37 = vld [vmem:[#allocation2 + $0x109] ss:$2 sm:$0xff] }
 0x480   : > { %17436 = vmatmul.mubr.msk.f32.gmra.mrb[8].mxu0 %vm358_vm0, %v7957_v61  ;;  %v8367_v61 = vld [vmem:[#allocation2 + $0x159] ss:$2 sm:$0xff] }
 0x481   : > { %17438 = vmatprep.mubr.msk.f32.mxu0 %vm358_vm0, %v7959_v63  ;;  %v8369_v63 = vld [vmem:[#allocation2 + $0x169] ss:$2 sm:$0xff] }
 0x484   : > { %17439 = vmatmul.mubr.msk.f32.gmra.mrb[10].mxu0 %vm358_vm0, %v7961_v60  ;;  %v8371_v60 = vld [vmem:[#allocation2 + $0x1b9] ss:$2 sm:$0xff] }
 0x485   : > { %17441 = vmatprep.mubr.msk.f32.mxu0 %vm358_vm0, %v7963_v4  ;;  %v8373_v4 = vld [vmem:[#allocation2 + $0x1c9] ss:$2 sm:$0xff] }
 0x488   : > { %17442 = vmatmul.mubr.msk.f32.gmra.mrb[12].mxu0 %vm358_vm0, %v7965_v6  ;;  %v8375_v6 = vld [vmem:[#allocation2 + $0x219] ss:$2 sm:$0xff] }
 0x489   : > { %17444 = vmatprep.mubr.msk.f32.mxu0 %vm358_vm0, %v7967_v9  ;;  %v8379_v9 = vld [vmem:[#allocation2 + $0x279] ss:$2 sm:$0xff] }
 0x48c   : > { %17445 = vmatmul.mubr.msk.f32.gmra.mrb[14].mxu0 %vm358_vm0, %v7969_v16  ;;  %v8381_v16 = vld [vmem:[#allocation2 + $0x289] ss:$2 sm:$0xff] }
 0x48d   : > { %17447 = vmatprep.mubr.msk.f32.mxu0 %vm358_vm0, %v7971_v18  ;;  %v8383_v18 = vld [vmem:[#allocation2 + $0x2d9] ss:$2 sm:$0xff] }
 0x490   : > { %17448 = vmatmul.mubr.msk.f32.gmra.mrb[16].mxu0 %vm358_vm0, %v7973_v51  ;;  %v8385_v51 = vld [vmem:[#allocation2 + $0x2e9] ss:$2 sm:$0xff] }
 0x491   : > { %17450 = vmatprep.mubr.msk.f32.mxu0 %vm358_vm0, %v7975_v2  ;;  %v8387_v2 = vld [vmem:[#allocation2 + $0x339] ss:$2 sm:$0xff] }
 0x494   : > { %17451 = vmatmul.mubr.msk.f32.gmra.mrb[18].mxu0 %vm358_vm0, %v7977_v23  ;;  %v8389_v23 = vld [vmem:[#allocation2 + $0x349] ss:$2 sm:$0xff] }
 0x495   : > { %17453 = vmatprep.mubr.msk.f32.mxu0 %vm358_vm0, %v7979_v25  ;;  %v8391_v25 = vld [vmem:[#allocation2 + $0x399] ss:$2 sm:$0xff] }
 0x498   : > { %17454 = vmatmul.mubr.msk.f32.gmra.mrb[20].mxu0 %vm358_vm0, %v7981_v0  ;;  %v8393_v0 = vld [vmem:[#allocation2 + $0x3a9] ss:$2 sm:$0xff] }
 0x499   : > { %17456 = vmatprep.mubr.msk.f32.mxu0 %vm358_vm0, %v7983_v58  ;;  %v8395_v58 = vld [vmem:[#allocation2 + $0x3f9] ss:$2 sm:$0xff] }
 0x49c   : > { %17457 = vmatmul.mubr.msk.f32.gmra.mrb[22].mxu0 %vm358_vm0, %v7985_v30  ;;  %v8397_v30 = vld [vmem:[#allocation2 + $0x409] ss:$2 sm:$0xff] }
 0x49d   : > { %17459 = vmatprep.mubr.msk.f32.mxu0 %vm358_vm0, %v7987_v33  ;;  %v8399_v33 = vld [vmem:[#allocation2 + $0x459] ss:$2 sm:$0xff] }
 0x4a0   : > { %17460 = vmatmul.mubr.msk.f32.gmra.mrb[24].mxu0 %vm358_vm0, %v7989_v14  ;;  %v8401_v14 = vld [vmem:[#allocation2 + $0x469] ss:$2 sm:$0xff] }
 0x4a1   : > { %17462 = vmatprep.mubr.msk.f32.mxu0 %vm358_vm0, %v7991_v35  ;;  %v8403_v35 = vld [vmem:[#allocation2 + $0x4b9] ss:$2 sm:$0xff] }
 0x4a4   : > { %17463 = vmatmul.mubr.msk.f32.gmra.mrb[26].mxu0 %vm358_vm0, %v7993_v59  ;;  %v8405_v59 = vld [vmem:[#allocation2 + $0x4c9] ss:$2 sm:$0xff] }
 0x4a5   : > { %17465 = vmatprep.mubr.msk.f32.mxu0 %vm358_vm0, %v7995_v40  ;;  %v8407_v40 = vld [vmem:[#allocation2 + $0x519] ss:$2 sm:$0xff] }
 0x4a8   : > { %17466 = vmatmul.mubr.msk.f32.gmra.mrb[28].mxu0 %vm358_vm0, %v7997_v41  ;;  %v8411_v41 = vld [vmem:[#allocation2 + $0x579] ss:$2 sm:$0xff] }
 0x4a9   : > { %17468 = vmatprep.mubr.msk.f32.mxu0 %vm358_vm0, %v7999_v21  ;;  %v8409_v21 = vld [vmem:[#allocation2 + $0x529] ss:$2 sm:$0xff] }
 0x4ac   : > { %17469 = vmatmul.mubr.msk.f32.gmra.mrb[30].mxu0 %vm358_vm0, %v8001_v45  ;;  %v8413_v45 = vld [vmem:[#allocation2 + $0x589] ss:$2 sm:$0xff] }
 0x4ad   : > { %17475 = vmatprep.mubr.msk.f32.mxu0 %vm358_vm0, %v8359_v46  ;;  %v8415_v46 = vld [vmem:[#allocation2 + $0x5d9] ss:$2 sm:$0xff] }
 0x4b0   : > { %17476 = vmatmul.mubr.msk.f32.vlgmr.msra.gmra.mrb[0].mxu0 %vm358_vm0, %v8361_v53  ;;  %v8779_v53 = vld [vmem:[#allocation2 + $0x9a] ss:$2 sm:$0xff] }
 0x4b1   : > { %18326 = vmatpush3.bf16.msra.mxu0 %v21162_v43  ;;  %17478 = vmatprep.mubr.msk.f32.mxu0 %vm358_vm0, %v8363_v55  ;;  %v8377_v43 = vld [vmem:[#allocation2 + $0x229] ss:$2 sm:$0xff]  ;;  %v8781_v55 = vld [vmem:[#allocation2 + $0xaa] ss:$2 sm:$0xff] }
 0x4b4   : > { %17479 = vmatmul.mubr.msk.f32.gmra.mrb[2].mxu0 %vm358_vm0, %v8365_v37  ;;  %v8783_v37 = vld [vmem:[#allocation2 + $0xfa] ss:$2 sm:$0xff] }
 0x4b5   : > { %17481 = vmatprep.mubr.msk.f32.mxu0 %vm358_vm0, %v8367_v61  ;;  %v8785_v61 = vld [vmem:[#allocation2 + $0x10a] ss:$2 sm:$0xff] }
 0x4b8   : > { %17482 = vmatmul.mubr.msk.f32.gmra.mrb[4].mxu0 %vm358_vm0, %v8369_v63  ;;  %v8787_v63 = vld [vmem:[#allocation2 + $0x15a] ss:$2 sm:$0xff] }
 0x4b9   : > { %17484 = vmatprep.mubr.msk.f32.mxu0 %vm358_vm0, %v8371_v60  ;;  %v8789_v60 = vld [vmem:[#allocation2 + $0x16a] ss:$2 sm:$0xff] }
 0x4bc   : > { %17485 = vmatmul.mubr.msk.f32.gmra.mrb[6].mxu0 %vm358_vm0, %v8373_v4  ;;  %v8791_v4 = vld [vmem:[#allocation2 + $0x1ba] ss:$2 sm:$0xff] }
 0x4bd   : > { %17487 = vmatprep.mubr.msk.f32.mxu0 %vm358_vm0, %v8375_v6  ;;  %v8793_v6 = vld [vmem:[#allocation2 + $0x1ca] ss:$2 sm:$0xff] }
 0x4c0   : > { %17488 = vmatmul.mubr.msk.f32.gmra.mrb[8].mxu0 %vm358_vm0, %v8377_v43  ;;  %v8795_v43 = vld [vmem:[#allocation2 + $0x21a] ss:$2 sm:$0xff] }
 0x4c1   : > { %17490 = vmatprep.mubr.msk.f32.mxu0 %vm358_vm0, %v8379_v9  ;;  %v8797_v9 = vld [vmem:[#allocation2 + $0x22a] ss:$2 sm:$0xff] }
 0x4c4   : > { %17491 = vmatmul.mubr.msk.f32.gmra.mrb[10].mxu0 %vm358_vm0, %v8381_v16  ;;  %v8799_v16 = vld [vmem:[#allocation2 + $0x27a] ss:$2 sm:$0xff] }
 0x4c5   : > { %17493 = vmatprep.mubr.msk.f32.mxu0 %vm358_vm0, %v8383_v18  ;;  %v8801_v18 = vld [vmem:[#allocation2 + $0x28a] ss:$2 sm:$0xff] }
 0x4c8   : > { %17494 = vmatmul.mubr.msk.f32.gmra.mrb[12].mxu0 %vm358_vm0, %v8385_v51  ;;  %v8803_v51 = vld [vmem:[#allocation2 + $0x2da] ss:$2 sm:$0xff] }
 0x4c9   : > { %17496 = vmatprep.mubr.msk.f32.mxu0 %vm358_vm0, %v8387_v2  ;;  %v8805_v2 = vld [vmem:[#allocation2 + $0x2ea] ss:$2 sm:$0xff] }
 0x4cc   : > { %17497 = vmatmul.mubr.msk.f32.gmra.mrb[14].mxu0 %vm358_vm0, %v8389_v23  ;;  %v8807_v23 = vld [vmem:[#allocation2 + $0x33a] ss:$2 sm:$0xff] }
 0x4cd   : > { %17499 = vmatprep.mubr.msk.f32.mxu0 %vm358_vm0, %v8391_v25  ;;  %v8809_v25 = vld [vmem:[#allocation2 + $0x34a] ss:$2 sm:$0xff] }
 0x4d0   : > { %17500 = vmatmul.mubr.msk.f32.gmra.mrb[16].mxu0 %vm358_vm0, %v8393_v0  ;;  %v8811_v0 = vld [vmem:[#allocation2 + $0x39a] ss:$2 sm:$0xff] }
 0x4d1   : > { %17502 = vmatprep.mubr.msk.f32.mxu0 %vm358_vm0, %v8395_v58  ;;  %v8813_v58 = vld [vmem:[#allocation2 + $0x3aa] ss:$2 sm:$0xff] }
 0x4d4   : > { %17503 = vmatmul.mubr.msk.f32.gmra.mrb[18].mxu0 %vm358_vm0, %v8397_v30  ;;  %v8815_v30 = vld [vmem:[#allocation2 + $0x3fa] ss:$2 sm:$0xff] }
 0x4d5   : > { %17505 = vmatprep.mubr.msk.f32.mxu0 %vm358_vm0, %v8399_v33  ;;  %v8817_v33 = vld [vmem:[#allocation2 + $0x40a] ss:$2 sm:$0xff] }
 0x4d8   : > { %17506 = vmatmul.mubr.msk.f32.gmra.mrb[20].mxu0 %vm358_vm0, %v8401_v14  ;;  %v8819_v14 = vld [vmem:[#allocation2 + $0x45a] ss:$2 sm:$0xff] }
 0x4d9   : > { %17508 = vmatprep.mubr.msk.f32.mxu0 %vm358_vm0, %v8403_v35  ;;  %v8821_v35 = vld [vmem:[#allocation2 + $0x46a] ss:$2 sm:$0xff] }
 0x4dc   : > { %17509 = vmatmul.mubr.msk.f32.gmra.mrb[22].mxu0 %vm358_vm0, %v8405_v59  ;;  %v8823_v59 = vld [vmem:[#allocation2 + $0x4ba] ss:$2 sm:$0xff] }
 0x4dd   : > { %17511 = vmatprep.mubr.msk.f32.mxu0 %vm358_vm0, %v8407_v40  ;;  %v8825_v40 = vld [vmem:[#allocation2 + $0x4ca] ss:$2 sm:$0xff] }
 0x4e0   : > { %17512 = vmatmul.mubr.msk.f32.gmra.mrb[24].mxu0 %vm358_vm0, %v8409_v21  ;;  %v8827_v21 = vld [vmem:[#allocation2 + $0x51a] ss:$2 sm:$0xff] }
 0x4e1   : > { %17514 = vmatprep.mubr.msk.f32.mxu0 %vm358_vm0, %v8411_v41  ;;  %v8829_v41 = vld [vmem:[#allocation2 + $0x52a] ss:$2 sm:$0xff] }
 0x4e4   : > { %17515 = vmatmul.mubr.msk.f32.gmra.mrb[26].mxu0 %vm358_vm0, %v8413_v45  ;;  %v8831_v45 = vld [vmem:[#allocation2 + $0x57a] ss:$2 sm:$0xff] }
 0x4e5   : > { %17517 = vmatprep.mubr.msk.f32.mxu0 %vm358_vm0, %v8415_v46  ;;  %v8833_v46 = vld [vmem:[#allocation2 + $0x58a] ss:$2 sm:$0xff] }
 0x4e8   : > { %17518 = vmatmul.mubr.msk.f32.gmra.mrb[28].mxu0 %vm358_vm0, %v8417_v48  ;;  %v8839_v48 = vld [vmem:[#allocation2 + $0x63a] ss:$2 sm:$0xff] }
 0x4e9   : > { %17520 = vmatprep.mubr.msk.f32.mxu0 %vm358_vm0, %v8419_v28  ;;  %v8835_v28 = vld [vmem:[#allocation2 + $0x5da] ss:$2 sm:$0xff] }
 0x4ec   : > { %17521 = vmatmul.mubr.msk.f32.gmra.mrb[30].mxu0 %vm358_vm0, %v8421_v50  ;;  %v8837_v50 = vld [vmem:[#allocation2 + $0x5ea] ss:$2 sm:$0xff] }
 0x4ed   : > { %17527 = vmatprep.mubr.msk.f32.mxu0 %vm358_vm0, %v8779_v53  ;;  %v8841_v53 = vld [vmem:[#allocation2 + $0x64a] ss:$2 sm:$0xff] }
 0x4f0   : > { %17528 = vmatmul.mubr.msk.f32.vlgmr.msra.gmra.mrb[0].mxu0 %vm358_vm0, %v8781_v55  ;;  %v15094_v55 = vld [vmem:[%s22449_s5 + $0x30] sm:$0xff] }
 0x4f1   : > { %17530 = vmatprep.mubr.msk.f32.mxu0 %vm358_vm0, %v8783_v37  ;;  %v15095_v37 = vld [vmem:[%s22449_s5 + $0x38] sm:$0xff] }
 0x4f4   : > { %17531 = vmatmul.mubr.msk.f32.gmra.mrb[2].mxu0 %vm358_vm0, %v8785_v61  ;;  %v18331_v61 = vpack.c.bf16 %v15095_v37, %v15094_v55 }
 0x4f5   : > { %17533 = vmatprep.mubr.msk.f32.mxu0 %vm358_vm0, %v8787_v63  ;;  %v9355_v63 = vld [vmem:[#allocation3 + $0x8] ss:$2 sm:$0xff] }
 0x4f6   : > { %18332 = vmatprep.subr.bf16.mxu1 %v18331_v61  ;;  %17583 = vmatprep.mubr.msk.f32.mxu1 %vm575_vm1, %v9355_v63 }
 0x4f7   : > { %18334 = vmatpush3.bf16.msra.mxu1 %v18331_v61 }
 0x4f8   : > { %17534 = vmatmul.mubr.msk.f32.gmra.mrb[4].mxu0 %vm358_vm0, %v8789_v60  ;;  %v9350_v60 = vld [vmem:[%s22449_s5] sm:$0xff] }
 0x4f9   : > { %17536 = vmatprep.mubr.msk.f32.mxu0 %vm358_vm0, %v8791_v4  ;;  %v9351_v4 = vld [vmem:[%s22449_s5 + $0x8] sm:$0xff] }
 0x4fc   : > { %17537 = vmatmul.mubr.msk.f32.gmra.mrb[6].mxu0 %vm358_vm0, %v8793_v6  ;;  %v21429_v6 = vpack.c.bf16 %v9351_v4, %v9350_v60 }
 0x4fd   : > { %17539 = vmatprep.mubr.msk.f32.mxu0 %vm358_vm0, %v8795_v43 }
 0x4fe   : > { %18336 = vmatprep.subr.bf16.mxu1 %v21429_v6 }
 0x500   : > { %17540 = vmatmul.mubr.msk.f32.gmra.mrb[8].mxu0 %vm358_vm0, %v8797_v9  ;;  %v21435_v9 = vld [vmem:[%s22448_s4] ss:$0 sm:$0xff] }
 0x501   : > { %17542 = vmatprep.mubr.msk.f32.mxu0 %vm358_vm0, %v8799_v16 }
 0x504   : > { %17543 = vmatmul.mubr.msk.f32.gmra.mrb[10].mxu0 %vm358_vm0, %v8801_v18 }
 0x505   : > { %17545 = vmatprep.mubr.msk.f32.mxu0 %vm358_vm0, %v8803_v51 }
 0x508   : > { %17546 = vmatmul.mubr.msk.f32.gmra.mrb[12].mxu0 %vm358_vm0, %v8805_v2 }
 0x509   : > { %17548 = vmatprep.mubr.msk.f32.mxu0 %vm358_vm0, %v8807_v23 }
 0x50c   : > { %17549 = vmatmul.mubr.msk.f32.gmra.mrb[14].mxu0 %vm358_vm0, %v8809_v25 }
 0x50d   : > { %17551 = vmatprep.mubr.msk.f32.mxu0 %vm358_vm0, %v8811_v0 }
 0x510   : > { %17552 = vmatmul.mubr.msk.f32.gmra.mrb[16].mxu0 %vm358_vm0, %v8813_v58 }
 0x511   : > { %17554 = vmatprep.mubr.msk.f32.mxu0 %vm358_vm0, %v8815_v30 }
 0x514   : > { %17555 = vmatmul.mubr.msk.f32.gmra.mrb[18].mxu0 %vm358_vm0, %v8817_v33 }
 0x515   : > { %17557 = vmatprep.mubr.msk.f32.mxu0 %vm358_vm0, %v8819_v14 }
 0x518   : > { %17558 = vmatmul.mubr.msk.f32.gmra.mrb[20].mxu0 %vm358_vm0, %v8821_v35 }
 0x519   : > { %17560 = vmatprep.mubr.msk.f32.mxu0 %vm358_vm0, %v8823_v59 }
 0x51c   : > { %17561 = vmatmul.mubr.msk.f32.gmra.mrb[22].mxu0 %vm358_vm0, %v8825_v40 }
 0x51d   : > { %17563 = vmatprep.mubr.msk.f32.mxu0 %vm358_vm0, %v8827_v21 }
 0x520   : > { %17564 = vmatmul.mubr.msk.f32.gmra.mrb[24].mxu0 %vm358_vm0, %v8829_v41 }
 0x521   : > { %17566 = vmatprep.mubr.msk.f32.mxu0 %vm358_vm0, %v8831_v45 }
 0x524   : > { %17567 = vmatmul.mubr.msk.f32.gmra.mrb[26].mxu0 %vm358_vm0, %v8833_v46 }
 0x525   : > { %17569 = vmatprep.mubr.msk.f32.mxu0 %vm358_vm0, %v8835_v28 }
 0x528   : > { %17570 = vmatmul.mubr.msk.f32.gmra.mrb[28].mxu0 %vm358_vm0, %v8837_v50 }
 0x529   : > { %17572 = vmatprep.mubr.msk.f32.mxu0 %vm358_vm0, %v8839_v48 }
 0x52c   : > { %17573 = vmatmul.mubr.msk.f32.gmra.mrb[30].mxu0 %vm358_vm0, %v8841_v53 }
 0x5c3   : > { %v17529_v43 = vpop.f32.mrb[0].mxu0 }
 0x5c4   : > { %v18711_v16 = vadd.f32 %v17529_v43, %v20818_v8  ;;  %v9007_v18 = vpop.f32.mrb[1].mxu0 }
 0x5c5   : > { %v18712_v51 = vadd.f32 %v9007_v18, %v20821_v10 }
 0x5c6   : > { %v9206_v2 = vadd.f32 %v18711_v16, %v21435_v9 }
 0x5c7   : > { %v9205_v23 = vadd.f32 %v18712_v51, %v21435_v9  ;;  %v17532_v25 = vpop.f32.mrb[2].mxu0 }
 0x5c8   : > { %v9238_v0 = vmul.f32 0.2, %v9206_v2  ;;  %v18713_v58 = vadd.f32 %v17532_v25, %v20824_v11  ;;  %v9017_v30 = vpop.f32.mrb[3].mxu0 }
 0x5c9   : > { %v9237_v33 = vmul.f32 0.2, %v9205_v23  ;;  %v18714_v14 = vadd.f32 %v9017_v30, %v20826_v13 }
 0x5ca   : > { %v9270_v35 = vmax.f32 %v9206_v2, %v9238_v0  ;;  %v9208_v59 = vadd.f32 %v18713_v58, %v21435_v9 }
 0x5cb   : > { %v9269_v40 = vmax.f32 %v9205_v23, %v9237_v33  ;;  %v9207_v8 = vadd.f32 %v18714_v14, %v21435_v9  ;;  %v17535_v21 = vpop.f32.mrb[4].mxu0 }
 0x5cc   : > { %9303 = vst.msk [vmem:[#allocation3 + $0x30] sm:$0xff] %vm575_vm1, %v9270_v35  ;;  %v9240_v10 = vmul.f32 0.2, %v9208_v59  ;;  %v18715_v41 = vadd.f32 %v17535_v21, %v20830_v15  ;;  %v9027_v45 = vpop.f32.mrb[5].mxu0  ;;  %v15112_v35 = vld [vmem:[%s22449_s5 + $0x40] sm:$0xff] }
 0x5cd   : > { %9302 = vst.msk [vmem:[#allocation3 + $0x28] sm:$0xff] %vm575_vm1, %v9269_v40  ;;  %v9239_v11 = vmul.f32 0.2, %v9207_v8  ;;  %v18716_v46 = vadd.f32 %v9027_v45, %v20832_v17 }
 0x5ce   : > { %v9272_v28 = vmax.f32 %v9208_v59, %v9240_v10  ;;  %v9210_v13 = vadd.f32 %v18715_v41, %v21435_v9 }
 0x5cf   : > { %v9271_v48 = vmax.f32 %v9207_v8, %v9239_v11  ;;  %v9209_v50 = vadd.f32 %v18716_v46, %v21435_v9  ;;  %v17538_v53 = vpop.f32.mrb[6].mxu0 }
 0x5d0   : > { %9305 = vst.msk [vmem:[#allocation3 + $0x50] sm:$0xff] %vm575_vm1, %v9272_v28  ;;  %v9242_v55 = vmul.f32 0.2, %v9210_v13  ;;  %v18717_v37 = vadd.f32 %v17538_v53, %v20836_v19  ;;  %v9037_v61 = vpop.f32.mrb[7].mxu0  ;;  %v9352_v19 = vld [vmem:[%s22449_s5 + $0x10] sm:$0xff] }
 0x5d1   : > { %9304 = vst.msk [vmem:[#allocation3 + $0x48] sm:$0xff] %vm575_vm1, %v9271_v48  ;;  %v9241_v15 = vmul.f32 0.2, %v9209_v50  ;;  %v18718_v63 = vadd.f32 %v9037_v61, %v20838_v20  ;;  %v9353_v20 = vld [vmem:[%s22449_s5 + $0x18] sm:$0xff] }
 0x5d2   : > { %v9274_v60 = vmax.f32 %v9210_v13, %v9242_v55  ;;  %v9212_v17 = vadd.f32 %v18717_v37, %v21435_v9  ;;  %v18339_v14 = vpack.c.bf16 %v9353_v20, %v9352_v19 }
 0x5d3   : > { %v9273_v4 = vmax.f32 %v9209_v50, %v9241_v15  ;;  %v9211_v43 = vadd.f32 %v18718_v63, %v21435_v9  ;;  %v17541_v16 = vpop.f32.mrb[8].mxu0 }
 0x5d4   : > { %9307 = vst.msk [vmem:[#allocation3 + $0x70] sm:$0xff] %vm575_vm1, %v9274_v60  ;;  %v9244_v18 = vmul.f32 0.2, %v9212_v17  ;;  %v18719_v51 = vadd.f32 %v17541_v16, %v20842_v22  ;;  %v9047_v2 = vpop.f32.mrb[9].mxu0 }
 0x5d5   : > { %9306 = vst.msk [vmem:[#allocation3 + $0x68] sm:$0xff] %vm575_vm1, %v9273_v4  ;;  %v9243_v23 = vmul.f32 0.2, %v9211_v43  ;;  %v18720_v25 = vadd.f32 %v9047_v2, %v20844_v24  ;;  %v15113_v24 = vld [vmem:[%s22449_s5 + $0x48] sm:$0xff] }
 0x5d6   : > { %v9276_v0 = vmax.f32 %v9212_v17, %v9244_v18  ;;  %v9214_v58 = vadd.f32 %v18719_v51, %v21435_v9  ;;  %v21483_v13 = vpack.c.bf16 %v15113_v24, %v15112_v35 }
 0x5d7   : > { %v9275_v30 = vmax.f32 %v9211_v43, %v9243_v23  ;;  %v9213_v22 = vadd.f32 %v18720_v25, %v21435_v9  ;;  %v17544_v33 = vpop.f32.mrb[10].mxu0 }
 0x5d8   : > { %9309 = vst.msk [vmem:[#allocation3 + $0x90] sm:$0xff] %vm575_vm1, %v9276_v0  ;;  %v9246_v59 = vmul.f32 0.2, %v9214_v58  ;;  %v18721_v40 = vadd.f32 %v17544_v33, %v20848_v26  ;;  %v9057_v8 = vpop.f32.mrb[11].mxu0  ;;  %v9357_v21 = vld [vmem:[#allocation3 + $0x48] ss:$2 sm:$0xff] }
 0x5d9   : > { %9308 = vst.msk [vmem:[#allocation3 + $0x88] sm:$0xff] %vm575_vm1, %v9275_v30  ;;  %v9245_v10 = vmul.f32 0.2, %v9213_v22  ;;  %v18722_v41 = vadd.f32 %v9057_v8, %v20850_v27  ;;  %17584 = vmatmul.mubr.msk.f32.vlgmr.msra.gmra.mrb[160].mxu1 %vm575_vm1, %v9357_v21 }
 0x5da   : > { %v9278_v45 = vmax.f32 %v9214_v58, %v9246_v59  ;;  %v9216_v11 = vadd.f32 %v18721_v40, %v21435_v9  ;;  %18338 = vmatpush3.bf16.msra.mxu1 %v21429_v6 }
 0x5db   : > { %v9277_v46 = vmax.f32 %v9213_v22, %v9245_v10  ;;  %v9215_v26 = vadd.f32 %v18722_v41, %v21435_v9  ;;  %v17547_v28 = vpop.f32.mrb[12].mxu0  ;;  %18340 = vmatprep.subr.bf16.mxu1 %v18339_v14 }
 0x5dc   : > { %9311 = vst.msk [vmem:[#allocation3 + $0xb0] sm:$0xff] %vm575_vm1, %v9278_v45  ;;  %v9248_v48 = vmul.f32 0.2, %v9216_v11  ;;  %v18723_v50 = vadd.f32 %v17547_v28, %v20854_v29  ;;  %v9067_v27 = vpop.f32.mrb[13].mxu0 }
 0x5dd   : > { %9310 = vst.msk [vmem:[#allocation3 + $0xa8] sm:$0xff] %vm575_vm1, %v9277_v46  ;;  %v9247_v53 = vmul.f32 0.2, %v9215_v26  ;;  %v18724_v55 = vadd.f32 %v9067_v27, %v20856_v31 }
 0x5de   : > { %v9280_v37 = vmax.f32 %v9216_v11, %v9248_v48  ;;  %v9218_v6 = vadd.f32 %v18723_v50, %v21435_v9  ;;  %18342 = vmatpush3.bf16.msra.mxu1 %v18339_v14 }
 0x5df   : > { %v9279_v61 = vmax.f32 %v9215_v26, %v9247_v53  ;;  %v9217_v15 = vadd.f32 %v18724_v55, %v21435_v9  ;;  %v17550_v63 = vpop.f32.mrb[14].mxu0  ;;  %18344 = vmatprep.subr.bf16.mxu1 %v21483_v13 }
 0x5e0   : > { %9313 = vst.msk [vmem:[#allocation3 + $0xd0] sm:$0xff] %vm575_vm1, %v9280_v37  ;;  %v9250_v60 = vmul.f32 0.2, %v9218_v6  ;;  %v18725_v29 = vadd.f32 %v17550_v63, %v20860_v34  ;;  %v9077_v17 = vpop.f32.mrb[15].mxu0  ;;  %v9359_v4 = vld [vmem:[#allocation3 + $0x88] ss:$2 sm:$0xff] }
 0x5e1   : > { %9312 = vst.msk [vmem:[#allocation3 + $0xc8] sm:$0xff] %vm575_vm1, %v9279_v61  ;;  %v9249_v31 = vmul.f32 0.2, %v9217_v15  ;;  %v18726_v43 = vadd.f32 %v9077_v17, %v20862_v36  ;;  %17586 = vmatprep.mubr.msk.f32.mxu1 %vm575_vm1, %v9359_v4 }
 0x5e2   : > { %v9282_v16 = vmax.f32 %v9218_v6, %v9250_v60  ;;  %v9220_v18 = vadd.f32 %v18725_v29, %v21435_v9 }
 0x5e3   : > { %v9281_v51 = vmax.f32 %v9217_v15, %v9249_v31  ;;  %v9219_v2 = vadd.f32 %v18726_v43, %v21435_v9  ;;  %v17553_v19 = vpop.f32.mrb[16].mxu0 }
 0x5e4   : > { %9315 = vst.msk [vmem:[#allocation3 + $0xf0] sm:$0xff] %vm575_vm1, %v9282_v16  ;;  %v9252_v20 = vmul.f32 0.2, %v9220_v18  ;;  %v18727_v34 = vadd.f32 %v17553_v19, %v20866_v38  ;;  %v9087_v23 = vpop.f32.mrb[17].mxu0 }
 0x5e5   : > { %9314 = vst.msk [vmem:[#allocation3 + $0xe8] sm:$0xff] %vm575_vm1, %v9281_v51  ;;  %v9251_v25 = vmul.f32 0.2, %v9219_v2  ;;  %v18728_v36 = vadd.f32 %v9087_v23, %v20868_v39 }
 0x5e6   : > { %v9284_v0 = vmax.f32 %v9220_v18, %v9252_v20  ;;  %v9222_v58 = vadd.f32 %v18727_v34, %v21435_v9 }
 0x5e7   : > { %v9283_v30 = vmax.f32 %v9219_v2, %v9251_v25  ;;  %v9221_v22 = vadd.f32 %v18728_v36, %v21435_v9  ;;  %v17556_v33 = vpop.f32.mrb[18].mxu0 }
 0x5e8   : > { %9317 = vst.msk [vmem:[#allocation3 + $0x110] sm:$0xff] %vm575_vm1, %v9284_v0  ;;  %v9254_v14 = vmul.f32 0.2, %v9222_v58  ;;  %v18729_v35 = vadd.f32 %v17556_v33, %v20872_v32  ;;  %v9097_v59 = vpop.f32.mrb[19].mxu0  ;;  %v9361_v38 = vld [vmem:[#allocation3 + $0xc8] ss:$2 sm:$0xff] }
 0x5e9   : > { %9316 = vst.msk [vmem:[#allocation3 + $0x108] sm:$0xff] %vm575_vm1, %v9283_v30  ;;  %v9253_v40 = vmul.f32 0.2, %v9221_v22  ;;  %v18730_v8 = vadd.f32 %v9097_v59, %v20874_v42  ;;  %17587 = vmatmul.mubr.msk.f32.gmra.mrb[162].mxu1 %vm575_vm1, %v9361_v38 }
 0x5ea   : > { %v9286_v39 = vmax.f32 %v9222_v58, %v9254_v14  ;;  %v9224_v21 = vadd.f32 %v18729_v35, %v21435_v9 }
 0x5eb   : > { %v9285_v24 = vmax.f32 %v9221_v22, %v9253_v40  ;;  %v9223_v10 = vadd.f32 %v18730_v8, %v21435_v9  ;;  %v17559_v41 = vpop.f32.mrb[20].mxu0 }
 0x5ec   : > { %9319 = vst.msk [vmem:[#allocation3 + $0x130] sm:$0xff] %vm575_vm1, %v9286_v39  ;;  %v9256_v45 = vmul.f32 0.2, %v9224_v21  ;;  %v18731_v32 = vadd.f32 %v17559_v41, %v20878_v44  ;;  %v9107_v11 = vpop.f32.mrb[21].mxu0 }
 0x5ed   : > { %9318 = vst.msk [vmem:[#allocation3 + $0x128] sm:$0xff] %vm575_vm1, %v9285_v24  ;;  %v9255_v46 = vmul.f32 0.2, %v9223_v10  ;;  %v18732_v42 = vadd.f32 %v9107_v11, %v20886_v49 }
 0x5ee   : > { %v9288_v26 = vmax.f32 %v9224_v21, %v9256_v45  ;;  %v9226_v28 = vadd.f32 %v18731_v32, %v21435_v9 }
 0x5ef   : > { %v9287_v48 = vmax.f32 %v9223_v10, %v9255_v46  ;;  %v9225_v50 = vadd.f32 %v18732_v42, %v21435_v9  ;;  %v17562_v27 = vpop.f32.mrb[22].mxu0 }
 0x5f0   : > { %9321 = vst.msk [vmem:[#allocation3 + $0x150] sm:$0xff] %vm575_vm1, %v9288_v26  ;;  %v9258_v53 = vmul.f32 0.2, %v9226_v28  ;;  %v18733_v55 = vadd.f32 %v17562_v27, %v20892_v52  ;;  %v9117_v37 = vpop.f32.mrb[23].mxu0  ;;  %v9363_v44 = vld [vmem:[#allocation3 + $0x108] ss:$2 sm:$0xff] }
 0x5f1   : > { %9320 = vst.msk [vmem:[#allocation3 + $0x148] sm:$0xff] %vm575_vm1, %v9287_v48  ;;  %v9257_v6 = vmul.f32 0.2, %v9225_v50  ;;  %v18734_v61 = vadd.f32 %v9117_v37, %v20894_v54  ;;  %17589 = vmatprep.mubr.msk.f32.mxu1 %vm575_vm1, %v9363_v44  ;;  %v15114_v48 = vld [vmem:[%s22449_s5 + $0x50] sm:$0xff] }
 0x5f2   : > { %v9290_v49 = vmax.f32 %v9226_v28, %v9258_v53  ;;  %v9228_v15 = vadd.f32 %v18733_v55, %v21435_v9  ;;  %v9335_v28 = vld [vmem:[#allocation3 + $0x7] ss:$2 sm:$0xff] }
 0x5f3   : > { %v9289_v63 = vmax.f32 %v9225_v50, %v9257_v6  ;;  %v9227_v60 = vadd.f32 %v18734_v61, %v21435_v9  ;;  %v17565_v29 = vpop.f32.mrb[24].mxu0  ;;  %v9337_v27 = vld [vmem:[#allocation3 + $0x47] ss:$2 sm:$0xff] }
 0x5f4   : > { %9323 = vst.msk [vmem:[#allocation3 + $0x170] sm:$0xff] %vm575_vm1, %v9290_v49  ;;  %v9260_v17 = vmul.f32 0.2, %v9228_v15  ;;  %v18735_v52 = vadd.f32 %v17565_v29, %v20900_v57  ;;  %v9127_v4 = vpop.f32.mrb[25].mxu0  ;;  %v15124_v53 = vld [vmem:[%s22449_s5 + $0x60] sm:$0xff]  ;;  %v15125_v55 = vld [vmem:[%s22449_s5 + $0x68] sm:$0xff] }
 0x5f5   : > { %9322 = vst.msk [vmem:[#allocation3 + $0x168] sm:$0xff] %vm575_vm1, %v9289_v63  ;;  %v9259_v31 = vmul.f32 0.2, %v9227_v60  ;;  %v18736_v54 = vadd.f32 %v9127_v4, %v20902_v62  ;;  %v9339_v37 = vld [vmem:[#allocation3 + $0x87] ss:$2 sm:$0xff]  ;;  %v18351_v44 = vpack.c.bf16 %v15125_v55, %v15124_v53  ;;  %v15127_v29 = vld [vmem:[%s22449_s5 + $0x78] sm:$0xff] }
 0x5f6   : > { %v9292_v43 = vmax.f32 %v9228_v15, %v9260_v17  ;;  %v9230_v16 = vadd.f32 %v18735_v52, %v21435_v9  ;;  %v9341_v6 = vld [vmem:[#allocation3 + $0xc7] ss:$2 sm:$0xff] }
 0x5f7   : > { %v9291_v18 = vmax.f32 %v9227_v60, %v9259_v31  ;;  %v9229_v51 = vadd.f32 %v18736_v54, %v21435_v9  ;;  %v17568_v2 = vpop.f32.mrb[26].mxu0  ;;  %v9343_v61 = vld [vmem:[#allocation3 + $0x107] ss:$2 sm:$0xff] }
 0x5f8   : > { %9325 = vst.msk [vmem:[#allocation3 + $0x190] sm:$0xff] %vm575_vm1, %v9292_v43  ;;  %v9262_v19 = vmul.f32 0.2, %v9230_v16  ;;  %v18737_v20 = vadd.f32 %v17568_v2, %v20906_v56  ;;  %v9137_v34 = vpop.f32.mrb[27].mxu0  ;;  %v9365_v57 = vld [vmem:[#allocation3 + $0x148] ss:$2 sm:$0xff] }
 0x5f9   : > { %9324 = vst.msk [vmem:[#allocation3 + $0x188] sm:$0xff] %vm575_vm1, %v9291_v18  ;;  %v9261_v23 = vmul.f32 0.2, %v9229_v51  ;;  %v18738_v25 = vadd.f32 %v9137_v34, %v20908_v1  ;;  %17590 = vmatmul.mubr.msk.f32.gmra.mrb[164].mxu1 %vm575_vm1, %v9365_v57  ;;  %v9345_v49 = vld [vmem:[#allocation3 + $0x147] ss:$2 sm:$0xff]  ;;  %v15139_v57 = vld [vmem:[%s22449_s5 + $0x98] sm:$0xff] }
 0x5fa   : > { %v9294_v62 = vmax.f32 %v9230_v16, %v9262_v19  ;;  %v9232_v36 = vadd.f32 %v18737_v20, %v21435_v9  ;;  %v9634_v63 = vld [vmem:[#allocation3 + $0x9] ss:$2 sm:$0xff]  ;;  %v15136_v4 = vld [vmem:[%s22449_s5 + $0x80] sm:$0xff]  ;;  %v9792_v19 = vld [vmem:[#allocation3 + $0xa] ss:$2 sm:$0xff] }
 0x5fb   : > { %v9293_v0 = vmax.f32 %v9229_v51, %v9261_v23  ;;  %v9231_v58 = vadd.f32 %v18738_v25, %v21435_v9  ;;  %v17571_v30 = vpop.f32.mrb[28].mxu0  ;;  %v15126_v60 = vld [vmem:[%s22449_s5 + $0x70] sm:$0xff]  ;;  %v15137_v31 = vld [vmem:[%s22449_s5 + $0x88] sm:$0xff] }
 0x5fc   : > { %9327 = vst.msk [vmem:[#allocation3 + $0x1b0] sm:$0xff] %vm575_vm1, %v9294_v62  ;;  %v9264_v22 = vmul.f32 0.2, %v9232_v36  ;;  %v18739_v56 = vadd.f32 %v17571_v30, %v20912_v3  ;;  %v9147_v33 = vpop.f32.mrb[29].mxu0  ;;  %v18355_v17 = vpack.c.bf16 %v15127_v29, %v15126_v60  ;;  %v9636_v52 = vld [vmem:[#allocation3 + $0x49] ss:$2 sm:$0xff]  ;;  %v18359_v43 = vpack.c.bf16 %v15137_v31, %v15136_v4 }
 0x5fd   : > { %9326 = vst.msk [vmem:[#allocation3 + $0x1a8] sm:$0xff] %vm575_vm1, %v9293_v0  ;;  %v9263_v14 = vmul.f32 0.2, %v9231_v58  ;;  %v18740_v1 = vadd.f32 %v9147_v33, %v20914_v5  ;;  %v9638_v54 = vld [vmem:[#allocation3 + $0x89] ss:$2 sm:$0xff]  ;;  %v15148_v62 = vld [vmem:[%s22449_s5 + $0xa0] sm:$0xff] }
 0x5fe   : > { %v9296_v35 = vmax.f32 %v9232_v36, %v9264_v22  ;;  %v9234_v59 = vadd.f32 %v18739_v56, %v21435_v9  ;;  %v9640_v16 = vld [vmem:[#allocation3 + $0xc9] ss:$2 sm:$0xff]  ;;  %v9794_v25 = vld [vmem:[#allocation3 + $0x4a] ss:$2 sm:$0xff] }
 0x5ff   : > { %v9295_v38 = vmax.f32 %v9231_v58, %v9263_v14  ;;  %v9233_v40 = vadd.f32 %v18740_v1, %v21435_v9  ;;  %v17574_v8 = vpop.f32.mrb[30].mxu0  ;;  %v9642_v18 = vld [vmem:[#allocation3 + $0x109] ss:$2 sm:$0xff]  ;;  %v9796_v0 = vld [vmem:[#allocation3 + $0x8a] ss:$2 sm:$0xff] }
 0x600   : > { %9329 = vst.msk [vmem:[#allocation3 + $0x1d0] sm:$0xff] %vm575_vm1, %v9296_v35  ;;  %v9266_v39 = vmul.f32 0.2, %v9234_v59  ;;  %v18741_v21 = vadd.f32 %v17574_v8, %v20918_v7  ;;  %v9157_v24 = vpop.f32.mrb[31].mxu0  ;;  %v9367_v3 = vld [vmem:[#allocation3 + $0x188] ss:$2 sm:$0xff] }
 0x601   : > { %9328 = vst.msk [vmem:[#allocation3 + $0x1c8] sm:$0xff] %vm575_vm1, %v9295_v38  ;;  %v9265_v10 = vmul.f32 0.2, %v9233_v40  ;;  %v18742_v41 = vadd.f32 %v9157_v24, %v20920_v12  ;;  %17592 = vmatprep.mubr.msk.f32.mxu1 %vm575_vm1, %v9367_v3  ;;  %v9347_v15 = vld [vmem:[#allocation3 + $0x187] ss:$2 sm:$0xff]  ;;  %v15151_v35 = vld [vmem:[%s22449_s5 + $0xb8] sm:$0xff] }
 0x602   : > { %v9298_v5 = vmax.f32 %v9234_v59, %v9266_v39  ;;  %v9236_v45 = vadd.f32 %v18741_v21, %v21435_v9  ;;  %v9644_v51 = vld [vmem:[#allocation3 + $0x149] ss:$2 sm:$0xff]  ;;  %v9798_v30 = vld [vmem:[#allocation3 + $0xca] ss:$2 sm:$0xff]  ;;  %v15160_v8 = vld [vmem:[%s22449_s5 + $0xc0] sm:$0xff] }
 0x603   : > { %v9297_v32 = vmax.f32 %v9233_v40, %v9265_v10  ;;  %v9235_v11 = vadd.f32 %v18742_v41, %v21435_v9  ;;  %v15115_v9 = vld [vmem:[%s22449_s5 + $0x58] sm:$0xff]  ;;  %v9646_v2 = vld [vmem:[#allocation3 + $0x189] ss:$2 sm:$0xff] }
 0x604   : > { %9331 = vst.msk [vmem:[#allocation3 + $0x1f0] sm:$0xff] %vm575_vm1, %v9298_v5  ;;  %v9268_v46 = vmul.f32 0.2, %v9236_v45  ;;  %v18347_v50 = vpack.c.bf16 %v15115_v9, %v15114_v48  ;;  %v15138_v34 = vld [vmem:[%s22449_s5 + $0x90] sm:$0xff]  ;;  %v15149_v36 = vld [vmem:[%s22449_s5 + $0xa8] sm:$0xff] }
 0x605   : > { %9330 = vst.msk [vmem:[#allocation3 + $0x1e8] sm:$0xff] %vm575_vm1, %v9297_v32  ;;  %v9267_v7 = vmul.f32 0.2, %v9235_v11  ;;  %v18363_v23 = vpack.c.bf16 %v15139_v57, %v15138_v34  ;;  %v18367_v58 = vpack.c.bf16 %v15149_v36, %v15148_v62  ;;  %v9800_v22 = vld [vmem:[#allocation3 + $0x10a] ss:$2 sm:$0xff] }
 0x606   : > { %v9300_v42 = vmax.f32 %v9236_v45, %v9268_v46  ;;  %v9802_v56 = vld [vmem:[#allocation3 + $0x14a] ss:$2 sm:$0xff]  ;;  %v9950_v59 = vld [vmem:[#allocation3 + $0x27] ss:$2 sm:$0xff] }
 0x607   : > { %v9299_v26 = vmax.f32 %v9235_v11, %v9267_v7  ;;  %v9804_v33 = vld [vmem:[#allocation3 + $0x18a] ss:$2 sm:$0xff]  ;;  %v9952_v40 = vld [vmem:[#allocation3 + $0x67] ss:$2 sm:$0xff] }
 0x608   : > { %9333 = vst.msk [vmem:[#allocation3 + $0x210] sm:$0xff] %vm575_vm1, %v9300_v42  ;;  %v9369_v12 = vld [vmem:[#allocation3 + $0x1c8] ss:$2 sm:$0xff]  ;;  %v9648_v20 = vld [vmem:[#allocation3 + $0x1c9] ss:$2 sm:$0xff]  ;;  %v15163_v11 = vld [vmem:[%s22449_s5 + $0xd8] sm:$0xff] }
 0x609   : > { %9332 = vst.msk [vmem:[#allocation3 + $0x208] sm:$0xff] %vm575_vm1, %v9299_v26  ;;  %17593 = vmatmul.mubr.msk.f32.gmra.mrb[166].mxu1 %vm575_vm1, %v9369_v12  ;;  %v9806_v14 = vld [vmem:[#allocation3 + $0x1ca] ss:$2 sm:$0xff]  ;;  %v9954_v21 = vld [vmem:[#allocation3 + $0xa7] ss:$2 sm:$0xff] }
 0x60a   : > { %17603 = vmatprep.mubr.msk.f32.mxu1 %vm575_vm1, %v9335_v28  ;;  %v15150_v1 = vld [vmem:[%s22449_s5 + $0xb0] sm:$0xff]  ;;  %v15161_v39 = vld [vmem:[%s22449_s5 + $0xc8] sm:$0xff]  ;;  %v15172_v26 = vld [vmem:[%s22449_s5 + $0xe0] sm:$0xff] }
 0x60b   : > { %v18371_v38 = vpack.c.bf16 %v15151_v35, %v15150_v1  ;;  %v18375_v24 = vpack.c.bf16 %v15161_v39, %v15160_v8  ;;  %v9956_v3 = vld [vmem:[#allocation3 + $0xe7] ss:$2 sm:$0xff]  ;;  %v10108_v46 = vld [vmem:[#allocation3 + $0x28] ss:$2 sm:$0xff] }
 0x60c   : > { %v9958_v10 = vld [vmem:[#allocation3 + $0x127] ss:$2 sm:$0xff]  ;;  %v10110_v42 = vld [vmem:[#allocation3 + $0x68] ss:$2 sm:$0xff] }
 0x60d   : > { %17604 = vmatmul.mubr.msk.f32.vlgmr.msra.gmra.mrb[160].mxu1 %vm575_vm1, %v9337_v27  ;;  %v9960_v41 = vld [vmem:[#allocation3 + $0x167] ss:$2 sm:$0xff]  ;;  %v10112_v12 = vld [vmem:[#allocation3 + $0xa8] ss:$2 sm:$0xff] }
 0x60e   : > { %18346 = vmatpush3.bf16.msra.mxu1 %v21483_v13  ;;  %17606 = vmatprep.mubr.msk.f32.mxu1 %vm575_vm1, %v9339_v37  ;;  %v9349_v13 = vld [vmem:[#allocation3 + $0x1c7] ss:$2 sm:$0xff]  ;;  %v10114_v9 = vld [vmem:[#allocation3 + $0xe8] ss:$2 sm:$0xff] }
 0x60f   : > { %18348 = vmatprep.subr.bf16.mxu1 %v18347_v50  ;;  %v9962_v5 = vld [vmem:[#allocation3 + $0x1a7] ss:$2 sm:$0xff]  ;;  %v10118_v27 = vld [vmem:[#allocation3 + $0x168] ss:$2 sm:$0xff] }
 0x610   : > { %v9964_v45 = vld [vmem:[#allocation3 + $0x1e7] ss:$2 sm:$0xff]  ;;  %v10120_v53 = vld [vmem:[#allocation3 + $0x1a8] ss:$2 sm:$0xff] }
 0x611   : > { %17607 = vmatmul.mubr.msk.f32.gmra.mrb[162].mxu1 %vm575_vm1, %v9341_v6  ;;  %v15162_v32 = vld [vmem:[%s22449_s5 + $0xd0] sm:$0xff]  ;;  %v15173_v28 = vld [vmem:[%s22449_s5 + $0xe8] sm:$0xff] }
 0x612   : > { %17609 = vmatprep.mubr.msk.f32.mxu1 %vm575_vm1, %v9343_v61  ;;  %18350 = vmatpush3.bf16.msra.mxu1 %v18347_v50  ;;  %v18379_v7 = vpack.c.bf16 %v15163_v11, %v15162_v32  ;;  %v18383_v48 = vpack.c.bf16 %v15173_v28, %v15172_v26  ;;  %v10116_v50 = vld [vmem:[#allocation3 + $0x128] ss:$2 sm:$0xff]  ;;  %v10266_v6 = vld [vmem:[#allocation3 + $0x29] ss:$2 sm:$0xff] }
 0x613   : > { %18352 = vmatprep.subr.bf16.mxu1 %v18351_v44  ;;  %v10122_v55 = vld [vmem:[#allocation3 + $0x1e8] ss:$2 sm:$0xff]  ;;  %v10272_v29 = vld [vmem:[#allocation3 + $0xe9] ss:$2 sm:$0xff] }
 0x614   : > { %v15174_v37 = vld [vmem:[%s22449_s5 + $0xf0] sm:$0xff] }
 0x615   : > { %17610 = vmatmul.mubr.msk.f32.gmra.mrb[164].mxu1 %vm575_vm1, %v9345_v49  ;;  %v10268_v49 = vld [vmem:[#allocation3 + $0x69] ss:$2 sm:$0xff]  ;;  %v10430_v57 = vld [vmem:[#allocation3 + $0xea] ss:$2 sm:$0xff] }
 0x616   : > { %17612 = vmatprep.mubr.msk.f32.mxu1 %vm575_vm1, %v9347_v15  ;;  %v15184_v15 = vld [vmem:[%s22449_s5 + $0x100] sm:$0xff]  ;;  %v10278_v4 = vld [vmem:[#allocation3 + $0x1a9] ss:$2 sm:$0xff]  ;;  %v10436_v62 = vld [vmem:[#allocation3 + $0x1aa] ss:$2 sm:$0xff] }
 0x617   : > { %v10280_v31 = vld [vmem:[#allocation3 + $0x1e9] ss:$2 sm:$0xff]  ;;  %v10438_v36 = vld [vmem:[#allocation3 + $0x1ea] ss:$2 sm:$0xff] }
 0x618   : > { %v10587_v1 = vld [vmem:[#allocation3 + $0xc7] ss:$2 sm:$0xff]  ;;  %v10747_v11 = vld [vmem:[#allocation3 + $0x108] ss:$2 sm:$0xff] }
 0x619   : > { %17613 = vmatmul.mubr.msk.f32.gmra.mrb[166].mxu1 %vm575_vm1, %v9349_v13  ;;  %v10270_v13 = vld [vmem:[#allocation3 + $0xa9] ss:$2 sm:$0xff]  ;;  %v10755_v26 = vld [vmem:[#allocation3 + $0x208] ss:$2 sm:$0xff] }
 0x61a   : > { %17623 = vmatprep.mubr.msk.f32.mxu1 %vm575_vm1, %v9634_v63  ;;  %v15185_v63 = vld [vmem:[%s22449_s5 + $0x108] sm:$0xff]  ;;  %v15210_v39 = vld [vmem:[%s22449_s5 + $0x150] sm:$0xff] }
 0x61b   : > { %v18391_v60 = vpack.c.bf16 %v15185_v63, %v15184_v15  ;;  %v10589_v47 = vld [vmem:[#allocation3 + $0x107] ss:$2 sm:$0xff] }
 0x61c   : > { %v10597_v8 = vld [vmem:[#allocation3 + $0x207] ss:$2 sm:$0xff] }
 0x61d   : > { %17624 = vmatmul.mubr.msk.f32.vlgmr.msra.gmra.mrb[160].mxu1 %vm575_vm1, %v9636_v52  ;;  %v10276_v52 = vld [vmem:[#allocation3 + $0x169] ss:$2 sm:$0xff] }
 0x61e   : > { %18354 = vmatpush3.bf16.msra.mxu1 %v18351_v44  ;;  %17626 = vmatprep.mubr.msk.f32.mxu1 %vm575_vm1, %v9638_v54  ;;  %v15175_v44 = vld [vmem:[%s22449_s5 + $0xf8] sm:$0xff]  ;;  %v15186_v54 = vld [vmem:[%s22449_s5 + $0x110] sm:$0xff] }
 0x61f   : > { %18356 = vmatprep.subr.bf16.mxu1 %v18355_v17  ;;  %v18387_v61 = vpack.c.bf16 %v15175_v44, %v15174_v37  ;;  %v15222_v28 = vld [vmem:[%s22449_s5 + $0x170] sm:$0xff] }
 0x620   : > { %v10905_v44 = vld [vmem:[#allocation3 + $0x109] ss:$2 sm:$0xff] }
 0x621   : > { %17627 = vmatmul.mubr.msk.f32.gmra.mrb[162].mxu1 %vm575_vm1, %v9640_v16  ;;  %v10424_v16 = vld [vmem:[#allocation3 + $0x2a] ss:$2 sm:$0xff]  ;;  %v10913_v15 = vld [vmem:[#allocation3 + $0x209] ss:$2 sm:$0xff] }
 0x622   : > { %17629 = vmatprep.mubr.msk.f32.mxu1 %vm575_vm1, %v9642_v18  ;;  %18358 = vmatpush3.bf16.msra.mxu1 %v18355_v17  ;;  %v10274_v17 = vld [vmem:[#allocation3 + $0x129] ss:$2 sm:$0xff] }
 0x623   : > { %18360 = vmatprep.subr.bf16.mxu1 %v18359_v43  ;;  %v15234_v63 = vld [vmem:[%s22449_s5 + $0x190] sm:$0xff] }
 0x625   : > { %17630 = vmatmul.mubr.msk.f32.gmra.mrb[164].mxu1 %vm575_vm1, %v9644_v51  ;;  %v10426_v51 = vld [vmem:[#allocation3 + $0x6a] ss:$2 sm:$0xff] }
 0x626   : > { %17632 = vmatprep.mubr.msk.f32.mxu1 %vm575_vm1, %v9646_v2  ;;  %v15196_v2 = vld [vmem:[%s22449_s5 + $0x120] sm:$0xff] }
 0x629   : > { %17633 = vmatmul.mubr.msk.f32.gmra.mrb[166].mxu1 %vm575_vm1, %v9648_v20  ;;  %v10428_v20 = vld [vmem:[#allocation3 + $0xaa] ss:$2 sm:$0xff] }
 0x62a   : > { %17643 = vmatprep.mubr.msk.f32.mxu1 %vm575_vm1, %v9792_v19  ;;  %v15197_v19 = vld [vmem:[%s22449_s5 + $0x128] sm:$0xff] }
 0x62b   : > { %v21692_v34 = vpack.c.bf16 %v15197_v19, %v15196_v2  ;;  %v11071_v2 = vld [vmem:[#allocation3 + $0x20a] ss:$2 sm:$0xff] }
 0x62c   : > { %v15246_v19 = vld [vmem:[%s22449_s5 + $0x1b0] sm:$0xff] }
 0x62d   : > { %17644 = vmatmul.mubr.msk.f32.vlgmr.msra.gmra.mrb[160].mxu1 %vm575_vm1, %v9794_v25  ;;  %v10434_v25 = vld [vmem:[#allocation3 + $0x16a] ss:$2 sm:$0xff] }
 0x62e   : > { %18362 = vmatpush3.bf16.msra.mxu1 %v18359_v43  ;;  %17646 = vmatprep.mubr.msk.f32.mxu1 %vm575_vm1, %v9796_v0  ;;  %v15187_v43 = vld [vmem:[%s22449_s5 + $0x118] sm:$0xff]  ;;  %v15198_v0 = vld [vmem:[%s22449_s5 + $0x130] sm:$0xff] }
 0x62f   : > { %18364 = vmatprep.subr.bf16.mxu1 %v18363_v23  ;;  %v18395_v18 = vpack.c.bf16 %v15187_v43, %v15186_v54  ;;  %v11063_v43 = vld [vmem:[#allocation3 + $0x10a] ss:$2 sm:$0xff] }
 0x631   : > { %17647 = vmatmul.mubr.msk.f32.gmra.mrb[162].mxu1 %vm575_vm1, %v9798_v30  ;;  %v10583_v30 = vld [vmem:[#allocation3 + $0x47] ss:$2 sm:$0xff] }
 0x632   : > { %17649 = vmatprep.mubr.msk.f32.mxu1 %vm575_vm1, %v9800_v22  ;;  %18366 = vmatpush3.bf16.msra.mxu1 %v18363_v23  ;;  %v10432_v23 = vld [vmem:[#allocation3 + $0x12a] ss:$2 sm:$0xff] }
 0x633   : > { %18368 = vmatprep.subr.bf16.mxu1 %v18367_v58 }
 0x635   : > { %17650 = vmatmul.mubr.msk.f32.gmra.mrb[164].mxu1 %vm575_vm1, %v9802_v56  ;;  %v10585_v56 = vld [vmem:[#allocation3 + $0x87] ss:$2 sm:$0xff] }
 0x636   : > { %17652 = vmatprep.mubr.msk.f32.mxu1 %vm575_vm1, %v9804_v33  ;;  %v15208_v33 = vld [vmem:[%s22449_s5 + $0x140] sm:$0xff] }
 0x639   : > { %17653 = vmatmul.mubr.msk.f32.gmra.mrb[166].mxu1 %vm575_vm1, %v9806_v14  ;;  %v15209_v14 = vld [vmem:[%s22449_s5 + $0x148] sm:$0xff] }
 0x63a   : > { %17663 = vmatprep.mubr.msk.f32.mxu1 %vm575_vm1, %v9950_v59  ;;  %v18407_v35 = vpack.c.bf16 %v15209_v14, %v15208_v33  ;;  %v10591_v59 = vld [vmem:[#allocation3 + $0x147] ss:$2 sm:$0xff] }
 0x63b   : > { %v11230_v33 = vld [vmem:[#allocation3 + $0x227] ss:$2 sm:$0xff] }
 0x63c   : > { %v15258_v14 = vld [vmem:[%s22449_s5 + $0x1d0] sm:$0xff] }
 0x63d   : > { %17664 = vmatmul.mubr.msk.f32.vlgmr.msra.gmra.mrb[160].mxu1 %vm575_vm1, %v9952_v40  ;;  %v10595_v40 = vld [vmem:[#allocation3 + $0x1c7] ss:$2 sm:$0xff] }
 0x63e   : > { %18370 = vmatpush3.bf16.msra.mxu1 %v18367_v58  ;;  %17666 = vmatprep.mubr.msk.f32.mxu1 %vm575_vm1, %v9954_v21  ;;  %v15199_v58 = vld [vmem:[%s22449_s5 + $0x138] sm:$0xff] }
 0x63f   : > { %18372 = vmatprep.subr.bf16.mxu1 %v18371_v38  ;;  %v18403_v22 = vpack.c.bf16 %v15199_v58, %v15198_v0  ;;  %v15211_v21 = vld [vmem:[%s22449_s5 + $0x158] sm:$0xff]  ;;  %v11222_v58 = vld [vmem:[#allocation3 + $0x127] ss:$2 sm:$0xff] }
 0x641   : > { %17667 = vmatmul.mubr.msk.f32.gmra.mrb[162].mxu1 %vm575_vm1, %v9956_v3  ;;  %v18411_v3 = vpack.c.bf16 %v15211_v21, %v15210_v39  ;;  %v11380_v21 = vld [vmem:[#allocation3 + $0x128] ss:$2 sm:$0xff] }
 0x642   : > { %17669 = vmatprep.mubr.msk.f32.mxu1 %vm575_vm1, %v9958_v10  ;;  %18374 = vmatpush3.bf16.msra.mxu1 %v18371_v38  ;;  %v10593_v38 = vld [vmem:[#allocation3 + $0x187] ss:$2 sm:$0xff]  ;;  %v10743_v10 = vld [vmem:[#allocation3 + $0x88] ss:$2 sm:$0xff] }
 0x643   : > { %18376 = vmatprep.subr.bf16.mxu1 %v18375_v24 }
 0x645   : > { %17670 = vmatmul.mubr.msk.f32.gmra.mrb[164].mxu1 %vm575_vm1, %v9960_v41  ;;  %v15220_v41 = vld [vmem:[%s22449_s5 + $0x160] sm:$0xff] }
 0x646   : > { %17672 = vmatprep.mubr.msk.f32.mxu1 %vm575_vm1, %v9962_v5  ;;  %v15221_v5 = vld [vmem:[%s22449_s5 + $0x168] sm:$0xff] }
 0x647   : > { %v18415_v32 = vpack.c.bf16 %v15221_v5, %v15220_v41  ;;  %v11388_v41 = vld [vmem:[#allocation3 + $0x228] ss:$2 sm:$0xff] }
 0x648   : > { %v15270_v5 = vld [vmem:[%s22449_s5 + $0x1f0] sm:$0xff] }
 0x649   : > { %17673 = vmatmul.mubr.msk.f32.gmra.mrb[166].mxu1 %vm575_vm1, %v9964_v45  ;;  %v10745_v45 = vld [vmem:[#allocation3 + $0xc8] ss:$2 sm:$0xff] }
 0x64a   : > { %17683 = vmatprep.mubr.msk.f32.mxu1 %vm575_vm1, %v10108_v46  ;;  %v10749_v46 = vld [vmem:[#allocation3 + $0x148] ss:$2 sm:$0xff] }
 0x64d   : > { %17684 = vmatmul.mubr.msk.f32.vlgmr.msra.gmra.mrb[160].mxu1 %vm575_vm1, %v10110_v42  ;;  %v10753_v42 = vld [vmem:[#allocation3 + $0x1c8] ss:$2 sm:$0xff] }
 0x64e   : > { %18378 = vmatpush3.bf16.msra.mxu1 %v18375_v24  ;;  %17686 = vmatprep.mubr.msk.f32.mxu1 %vm575_vm1, %v10112_v12  ;;  %v10741_v24 = vld [vmem:[#allocation3 + $0x48] ss:$2 sm:$0xff]  ;;  %v15223_v12 = vld [vmem:[%s22449_s5 + $0x178] sm:$0xff] }
 0x64f   : > { %18380 = vmatprep.subr.bf16.mxu1 %v18379_v7 }
 0x651   : > { %17687 = vmatmul.mubr.msk.f32.gmra.mrb[162].mxu1 %vm575_vm1, %v10114_v9  ;;  %v18419_v9 = vpack.c.bf16 %v15223_v12, %v15222_v28  ;;  %v11538_v12 = vld [vmem:[#allocation3 + $0x129] ss:$2 sm:$0xff] }
 0x652   : > { %17689 = vmatprep.mubr.msk.f32.mxu1 %vm575_vm1, %v10116_v50  ;;  %18382 = vmatpush3.bf16.msra.mxu1 %v18379_v7  ;;  %v10751_v7 = vld [vmem:[#allocation3 + $0x188] ss:$2 sm:$0xff]  ;;  %v10901_v50 = vld [vmem:[#allocation3 + $0x89] ss:$2 sm:$0xff] }
 0x653   : > { %18384 = vmatprep.subr.bf16.mxu1 %v18383_v48 }
 0x655   : > { %17690 = vmatmul.mubr.msk.f32.gmra.mrb[164].mxu1 %vm575_vm1, %v10118_v27  ;;  %v15232_v27 = vld [vmem:[%s22449_s5 + $0x180] sm:$0xff] }
 0x656   : > { %17692 = vmatprep.mubr.msk.f32.mxu1 %vm575_vm1, %v10120_v53  ;;  %v15233_v53 = vld [vmem:[%s22449_s5 + $0x188] sm:$0xff] }
 0x657   : > { %v18423_v37 = vpack.c.bf16 %v15233_v53, %v15232_v27  ;;  %v11546_v27 = vld [vmem:[#allocation3 + $0x229] ss:$2 sm:$0xff]  ;;  %v11690_v53 = vld [vmem:[#allocation3 + $0x6a] ss:$2 sm:$0xff] }
 0x659   : > { %17693 = vmatmul.mubr.msk.f32.gmra.mrb[166].mxu1 %vm575_vm1, %v10122_v55  ;;  %v10903_v55 = vld [vmem:[#allocation3 + $0xc9] ss:$2 sm:$0xff] }
 0x65a   : > { %17703 = vmatprep.mubr.msk.f32.mxu1 %vm575_vm1, %v10266_v6  ;;  %v10907_v6 = vld [vmem:[#allocation3 + $0x149] ss:$2 sm:$0xff] }
 0x65d   : > { %17704 = vmatmul.mubr.msk.f32.vlgmr.msra.gmra.mrb[160].mxu1 %vm575_vm1, %v10268_v49  ;;  %v10911_v49 = vld [vmem:[#allocation3 + $0x1c9] ss:$2 sm:$0xff] }
 0x65e   : > { %18386 = vmatpush3.bf16.msra.mxu1 %v18383_v48  ;;  %17706 = vmatprep.mubr.msk.f32.mxu1 %vm575_vm1, %v10270_v13  ;;  %v10899_v48 = vld [vmem:[#allocation3 + $0x49] ss:$2 sm:$0xff]  ;;  %v15235_v13 = vld [vmem:[%s22449_s5 + $0x198] sm:$0xff] }
 0x65f   : > { %18388 = vmatprep.subr.bf16.mxu1 %v18387_v61 }
 0x661   : > { %17707 = vmatmul.mubr.msk.f32.gmra.mrb[162].mxu1 %vm575_vm1, %v10272_v29  ;;  %v18427_v29 = vpack.c.bf16 %v15235_v13, %v15234_v63  ;;  %v15283_v63 = vld [vmem:[%s22451_s7 + $0x50] sm:$0xff]  ;;  %v15284_v13 = vld [vmem:[%s22451_s7 + $0x58] sm:$0xff] }
 0x662   : > { %17709 = vmatprep.mubr.msk.f32.mxu1 %vm575_vm1, %v10274_v17  ;;  %18390 = vmatpush3.bf16.msra.mxu1 %v18387_v61  ;;  %v10909_v61 = vld [vmem:[#allocation3 + $0x189] ss:$2 sm:$0xff]  ;;  %v11059_v17 = vld [vmem:[#allocation3 + $0x8a] ss:$2 sm:$0xff] }
 0x663   : > { %18392 = vmatprep.subr.bf16.mxu1 %v18391_v60 }
 0x665   : > { %17710 = vmatmul.mubr.msk.f32.gmra.mrb[164].mxu1 %vm575_vm1, %v10276_v52  ;;  %v15244_v52 = vld [vmem:[%s22449_s5 + $0x1a0] sm:$0xff] }
 0x666   : > { %17712 = vmatprep.mubr.msk.f32.mxu1 %vm575_vm1, %v10278_v4  ;;  %v15245_v4 = vld [vmem:[%s22449_s5 + $0x1a8] sm:$0xff] }
 0x667   : > { %v18431_v54 = vpack.c.bf16 %v15245_v4, %v15244_v52  ;;  %v15287_v4 = vld [vmem:[%s22451_s7 + $0x70] sm:$0xff] }
 0x669   : > { %17713 = vmatmul.mubr.msk.f32.gmra.mrb[166].mxu1 %vm575_vm1, %v10280_v31  ;;  %v11061_v31 = vld [vmem:[#allocation3 + $0xca] ss:$2 sm:$0xff] }
 0x66a   : > { %17723 = vmatprep.mubr.msk.f32.mxu1 %vm575_vm1, %v10424_v16  ;;  %v11065_v16 = vld [vmem:[#allocation3 + $0x14a] ss:$2 sm:$0xff] }
 0x66d   : > { %17724 = vmatmul.mubr.msk.f32.vlgmr.msra.gmra.mrb[160].mxu1 %vm575_vm1, %v10426_v51  ;;  %v11069_v51 = vld [vmem:[#allocation3 + $0x1ca] ss:$2 sm:$0xff] }
 0x66e   : > { %18394 = vmatpush3.bf16.msra.mxu1 %v18391_v60  ;;  %17726 = vmatprep.mubr.msk.f32.mxu1 %vm575_vm1, %v10428_v20  ;;  %v11057_v60 = vld [vmem:[#allocation3 + $0x4a] ss:$2 sm:$0xff] }
 0x66f   : > { %18396 = vmatprep.subr.bf16.mxu1 %v18395_v18  ;;  %v15247_v20 = vld [vmem:[%s22449_s5 + $0x1b8] sm:$0xff] }
 0x671   : > { %17727 = vmatmul.mubr.msk.f32.gmra.mrb[162].mxu1 %vm575_vm1, %v10430_v57  ;;  %v18435_v57 = vpack.c.bf16 %v15247_v20, %v15246_v19 }
 0x672   : > { %17729 = vmatprep.mubr.msk.f32.mxu1 %vm575_vm1, %v10432_v23  ;;  %18398 = vmatpush3.bf16.msra.mxu1 %v18395_v18  ;;  %v11067_v18 = vld [vmem:[#allocation3 + $0x18a] ss:$2 sm:$0xff]  ;;  %v11218_v23 = vld [vmem:[#allocation3 + $0xa7] ss:$2 sm:$0xff] }
 0x673   : > { %18400 = vmatprep.subr.bf16.mxu1 %v21692_v34 }
 0x675   : > { %17730 = vmatmul.mubr.msk.f32.gmra.mrb[164].mxu1 %vm575_vm1, %v10434_v25  ;;  %v15256_v25 = vld [vmem:[%s22449_s5 + $0x1c0] sm:$0xff] }
 0x676   : > { %17732 = vmatprep.mubr.msk.f32.mxu1 %vm575_vm1, %v10436_v62  ;;  %v15257_v62 = vld [vmem:[%s22449_s5 + $0x1c8] sm:$0xff] }
 0x677   : > { %v18439_v0 = vpack.c.bf16 %v15257_v62, %v15256_v25 }
 0x679   : > { %17733 = vmatmul.mubr.msk.f32.gmra.mrb[166].mxu1 %vm575_vm1, %v10438_v36  ;;  %v11220_v36 = vld [vmem:[#allocation3 + $0xe7] ss:$2 sm:$0xff] }
 0x67a   : > { %17743 = vmatprep.mubr.msk.f32.mxu1 %vm575_vm1, %v10583_v30  ;;  %v11224_v30 = vld [vmem:[#allocation3 + $0x167] ss:$2 sm:$0xff] }
 0x67d   : > { %17744 = vmatmul.mubr.msk.f32.vlgmr.msra.gmra.mrb[160].mxu1 %vm575_vm1, %v10585_v56  ;;  %v11228_v56 = vld [vmem:[#allocation3 + $0x1e7] ss:$2 sm:$0xff] }
 0x67e   : > { %18402 = vmatpush3.bf16.msra.mxu1 %v21692_v34  ;;  %17746 = vmatprep.mubr.msk.f32.mxu1 %vm575_vm1, %v10587_v1  ;;  %v11216_v34 = vld [vmem:[#allocation3 + $0x67] ss:$2 sm:$0xff]  ;;  %v15259_v1 = vld [vmem:[%s22449_s5 + $0x1d8] sm:$0xff] }
 0x67f   : > { %18404 = vmatprep.subr.bf16.mxu1 %v18403_v22 }
 0x681   : > { %17747 = vmatmul.mubr.msk.f32.gmra.mrb[162].mxu1 %vm575_vm1, %v10589_v47  ;;  %v18443_v47 = vpack.c.bf16 %v15259_v1, %v15258_v14 }
 0x682   : > { %17749 = vmatprep.mubr.msk.f32.mxu1 %vm575_vm1, %v10591_v59  ;;  %18406 = vmatpush3.bf16.msra.mxu1 %v18403_v22  ;;  %v11226_v22 = vld [vmem:[#allocation3 + $0x1a7] ss:$2 sm:$0xff]  ;;  %v11376_v59 = vld [vmem:[#allocation3 + $0xa8] ss:$2 sm:$0xff] }
 0x683   : > { %18408 = vmatprep.subr.bf16.mxu1 %v18407_v35 }
 0x685   : > { %17750 = vmatmul.mubr.msk.f32.gmra.mrb[164].mxu1 %vm575_vm1, %v10593_v38  ;;  %v15268_v38 = vld [vmem:[%s22449_s5 + $0x1e0] sm:$0xff] }
 0x686   : > { %17752 = vmatprep.mubr.msk.f32.mxu1 %vm575_vm1, %v10595_v40  ;;  %v15269_v40 = vld [vmem:[%s22449_s5 + $0x1e8] sm:$0xff] }
 0x687   : > { %v18447_v39 = vpack.c.bf16 %v15269_v40, %v15268_v38  ;;  %v11897_v40 = vld [vmem:[%s22451_s7 + $0x10] sm:$0xff] }
 0x689   : > { %17753 = vmatmul.mubr.msk.f32.gmra.mrb[166].mxu1 %vm575_vm1, %v10597_v8  ;;  %v11378_v8 = vld [vmem:[#allocation3 + $0xe8] ss:$2 sm:$0xff] }
 0x68a   : > { %17763 = vmatprep.mubr.msk.f32.mxu1 %vm575_vm1, %v10741_v24  ;;  %v11382_v24 = vld [vmem:[#allocation3 + $0x168] ss:$2 sm:$0xff] }
 0x68d   : > { %17764 = vmatmul.mubr.msk.f32.vlgmr.msra.gmra.mrb[160].mxu1 %vm575_vm1, %v10743_v10  ;;  %v11386_v10 = vld [vmem:[#allocation3 + $0x1e8] ss:$2 sm:$0xff] }
 0x68e   : > { %18410 = vmatpush3.bf16.msra.mxu1 %v18407_v35  ;;  %17766 = vmatprep.mubr.msk.f32.mxu1 %vm575_vm1, %v10745_v45  ;;  %v11374_v35 = vld [vmem:[#allocation3 + $0x68] ss:$2 sm:$0xff]  ;;  %v15271_v45 = vld [vmem:[%s22449_s5 + $0x1f8] sm:$0xff] }
 0x68f   : > { %18412 = vmatprep.subr.bf16.mxu1 %v18411_v3 }
 0x691   : > { %17767 = vmatmul.mubr.msk.f32.gmra.mrb[162].mxu1 %vm575_vm1, %v10747_v11  ;;  %v18451_v11 = vpack.c.bf16 %v15271_v45, %v15270_v5 }
 0x692   : > { %17769 = vmatprep.mubr.msk.f32.mxu1 %vm575_vm1, %v10749_v46  ;;  %18414 = vmatpush3.bf16.msra.mxu1 %v18411_v3  ;;  %v11384_v3 = vld [vmem:[#allocation3 + $0x1a8] ss:$2 sm:$0xff]  ;;  %v11534_v46 = vld [vmem:[#allocation3 + $0xa9] ss:$2 sm:$0xff] }
 0x693   : > { %18416 = vmatprep.subr.bf16.mxu1 %v18415_v32 }
 0x695   : > { %17770 = vmatmul.mubr.msk.f32.gmra.mrb[164].mxu1 %vm575_vm1, %v10751_v7  ;;  %v15281_v7 = vld [vmem:[%s22451_s7 + $0x40] sm:$0xff] }
 0x696   : > { %17772 = vmatprep.mubr.msk.f32.mxu1 %vm575_vm1, %v10753_v42  ;;  %v15282_v42 = vld [vmem:[%s22451_s7 + $0x48] sm:$0xff] }
 0x697   : > { %v18455_v28 = vpack.c.bf16 %v15282_v42, %v15281_v7  ;;  %v11900_v7 = vld [vmem:[%s22451_s7 + $0x28] sm:$0xff] }
 0x699   : > { %17773 = vmatmul.mubr.msk.f32.gmra.mrb[166].mxu1 %vm575_vm1, %v10755_v26  ;;  %v11536_v26 = vld [vmem:[#allocation3 + $0xe9] ss:$2 sm:$0xff] }
 0x69a   : > { %17783 = vmatprep.mubr.msk.f32.mxu1 %vm575_vm1, %v10899_v48  ;;  %v11540_v48 = vld [vmem:[#allocation3 + $0x169] ss:$2 sm:$0xff] }
 0x69d   : > { %17784 = vmatmul.mubr.msk.f32.vlgmr.msra.gmra.mrb[160].mxu1 %vm575_vm1, %v10901_v50  ;;  %v11544_v50 = vld [vmem:[#allocation3 + $0x1e9] ss:$2 sm:$0xff] }
 0x69e   : > { %18418 = vmatpush3.bf16.msra.mxu1 %v18415_v32  ;;  %17786 = vmatprep.mubr.msk.f32.mxu1 %vm575_vm1, %v10903_v55  ;;  %v11532_v32 = vld [vmem:[#allocation3 + $0x69] ss:$2 sm:$0xff]  ;;  %v11692_v55 = vld [vmem:[#allocation3 + $0xaa] ss:$2 sm:$0xff] }
 0x69f   : > { %18420 = vmatprep.subr.bf16.mxu1 %v18419_v9 }
 0x6a1   : > { %17787 = vmatmul.mubr.msk.f32.gmra.mrb[162].mxu1 %vm575_vm1, %v10905_v44  ;;  %v11696_v44 = vld [vmem:[#allocation3 + $0x12a] ss:$2 sm:$0xff] }
 0x6a2   : > { %17789 = vmatprep.mubr.msk.f32.mxu1 %vm575_vm1, %v10907_v6  ;;  %18422 = vmatpush3.bf16.msra.mxu1 %v18419_v9  ;;  %v11542_v9 = vld [vmem:[#allocation3 + $0x1a9] ss:$2 sm:$0xff]  ;;  %v11698_v6 = vld [vmem:[#allocation3 + $0x16a] ss:$2 sm:$0xff] }
 0x6a3   : > { %18424 = vmatprep.subr.bf16.mxu1 %v18423_v37 }
 0x6a5   : > { %17790 = vmatmul.mubr.msk.f32.gmra.mrb[164].mxu1 %vm575_vm1, %v10909_v61  ;;  %v11700_v61 = vld [vmem:[#allocation3 + $0x1aa] ss:$2 sm:$0xff] }
 0x6a6   : > { %17792 = vmatprep.mubr.msk.f32.mxu1 %vm575_vm1, %v10911_v49  ;;  %v11702_v49 = vld [vmem:[#allocation3 + $0x1ea] ss:$2 sm:$0xff] }
 0x6a9   : > { %17793 = vmatmul.mubr.msk.f32.gmra.mrb[166].mxu1 %vm575_vm1, %v10913_v15  ;;  %v11704_v15 = vld [vmem:[#allocation3 + $0x22a] ss:$2 sm:$0xff] }
 0x6aa   : > { %17803 = vmatprep.mubr.msk.f32.mxu1 %vm575_vm1, %v11057_v60  ;;  %v18459_v60 = vpack.c.bf16 %v15284_v13, %v15283_v63 }
 0x6ad   : > { %17804 = vmatmul.mubr.msk.f32.vlgmr.msra.gmra.mrb[160].mxu1 %vm575_vm1, %v11059_v17  ;;  %v15286_v17 = vld [vmem:[%s22451_s7 + $0x68] sm:$0xff] }
 0x6ae   : > { %18426 = vmatpush3.bf16.msra.mxu1 %v18423_v37  ;;  %17806 = vmatprep.mubr.msk.f32.mxu1 %vm575_vm1, %v11061_v31  ;;  %v11694_v37 = vld [vmem:[#allocation3 + $0xea] ss:$2 sm:$0xff] }
 0x6af   : > { %18428 = vmatprep.subr.bf16.mxu1 %v18427_v29  ;;  %v15288_v31 = vld [vmem:[%s22451_s7 + $0x78] sm:$0xff] }
 0x6b1   : > { %17807 = vmatmul.mubr.msk.f32.gmra.mrb[162].mxu1 %vm575_vm1, %v11063_v43  ;;  %v11904_v43 = vld [vmem:[#allocation4 + $0x8] ss:$2 sm:$0xff] }
 0x6b2   : > { %17809 = vmatprep.mubr.msk.f32.mxu1 %vm575_vm1, %v11065_v16  ;;  %18430 = vmatpush3.bf16.msra.mxu1 %v18427_v29  ;;  %v15285_v29 = vld [vmem:[%s22451_s7 + $0x60] sm:$0xff] }
 0x6b3   : > { %18432 = vmatprep.subr.bf16.mxu1 %v18431_v54  ;;  %v18463_v52 = vpack.c.bf16 %v15286_v17, %v15285_v29  ;;  %v11895_v16 = vld [vmem:[%s22451_s7] sm:$0xff]  ;;  %v15302_v29 = vld [vmem:[%s22451_s7 + $0xa8] sm:$0xff] }
 0x6b5   : > { %17810 = vmatmul.mubr.msk.f32.gmra.mrb[164].mxu1 %vm575_vm1, %v11067_v18  ;;  %v11896_v18 = vld [vmem:[%s22451_s7 + $0x8] sm:$0xff] }
 0x6b6   : > { %17812 = vmatprep.mubr.msk.f32.mxu1 %vm575_vm1, %v11069_v51  ;;  %v18471_v51 = vpack.c.bf16 %v11896_v18, %v11895_v16  ;;  %v15309_v18 = vld [vmem:[%s22451_s7 + $0xc0] sm:$0xff] }
 0x6b9   : > { %17813 = vmatmul.mubr.msk.f32.gmra.mrb[166].mxu1 %vm575_vm1, %v11071_v2  ;;  %v15280_v2 = vld [vmem:[%s22450_s6] ss:$0 sm:$0xff] }
 0x6ba   : > { %17823 = vmatprep.mubr.msk.f32.mxu1 %vm575_vm1, %v11216_v34 }
 0x6bd   : > { %17824 = vmatmul.mubr.msk.f32.vlgmr.msra.gmra.mrb[160].mxu1 %vm575_vm1, %v11218_v23 }
 0x6be   : > { %18434 = vmatpush3.bf16.msra.mxu1 %v18431_v54  ;;  %17826 = vmatprep.mubr.msk.f32.mxu1 %vm575_vm1, %v11220_v36  ;;  %v18467_v54 = vpack.c.bf16 %v15288_v31, %v15287_v4  ;;  %v12115_v4 = vld [vmem:[#allocation4 + $0x9] ss:$2 sm:$0xff] }
 0x6bf   : > { %18436 = vmatprep.subr.bf16.mxu1 %v18435_v57 }
 0x6c1   : > { %17827 = vmatmul.mubr.msk.f32.gmra.mrb[162].mxu1 %vm575_vm1, %v11222_v58 }
 0x6c2   : > { %17829 = vmatprep.mubr.msk.f32.mxu1 %vm575_vm1, %v11224_v30  ;;  %18438 = vmatpush3.bf16.msra.mxu1 %v18435_v57 }
 0x6c3   : > { %18440 = vmatprep.subr.bf16.mxu1 %v18439_v0 }
 0x6c5   : > { %17830 = vmatmul.mubr.msk.f32.gmra.mrb[164].mxu1 %vm575_vm1, %v11226_v22 }
 0x6c6   : > { %17832 = vmatprep.mubr.msk.f32.mxu1 %vm575_vm1, %v11228_v56 }
 0x6c9   : > { %17833 = vmatmul.mubr.msk.f32.gmra.mrb[166].mxu1 %vm575_vm1, %v11230_v33 }
 0x6ca   : > { %17843 = vmatprep.mubr.msk.f32.mxu1 %vm575_vm1, %v11374_v35 }
 0x6cd   : > { %17844 = vmatmul.mubr.msk.f32.vlgmr.msra.gmra.mrb[160].mxu1 %vm575_vm1, %v11376_v59 }
 0x6ce   : > { %18442 = vmatpush3.bf16.msra.mxu1 %v18439_v0  ;;  %17846 = vmatprep.mubr.msk.f32.mxu1 %vm575_vm1, %v11378_v8  ;;  %v11898_v8 = vld [vmem:[%s22451_s7 + $0x18] sm:$0xff] }
 0x6cf   : > { %18444 = vmatprep.subr.bf16.mxu1 %v18443_v47  ;;  %v18475_v5 = vpack.c.bf16 %v11898_v8, %v11897_v40  ;;  %v15325_v40 = vld [vmem:[%s22451_s7 + $0x120] sm:$0xff]  ;;  %v15326_v8 = vld [vmem:[%s22451_s7 + $0x128] sm:$0xff] }
 0x6d1   : > { %17847 = vmatmul.mubr.msk.f32.gmra.mrb[162].mxu1 %vm575_vm1, %v11380_v21 }
 0x6d2   : > { %17849 = vmatprep.mubr.msk.f32.mxu1 %vm575_vm1, %v11382_v24  ;;  %18446 = vmatpush3.bf16.msra.mxu1 %v18443_v47 }
 0x6d3   : > { %18448 = vmatprep.subr.bf16.mxu1 %v18447_v39 }
 0x6d5   : > { %17850 = vmatmul.mubr.msk.f32.gmra.mrb[164].mxu1 %vm575_vm1, %v11384_v3 }
 0x6d6   : > { %17852 = vmatprep.mubr.msk.f32.mxu1 %vm575_vm1, %v11386_v10 }
 0x6d9   : > { %17853 = vmatmul.mubr.msk.f32.gmra.mrb[166].mxu1 %vm575_vm1, %v11388_v41 }
 0x6da   : > { %17863 = vmatprep.mubr.msk.f32.mxu1 %vm575_vm1, %v11532_v32 }
 0x6dd   : > { %17864 = vmatmul.mubr.msk.f32.vlgmr.msra.gmra.mrb[160].mxu1 %vm575_vm1, %v11534_v46  ;;  %v11899_v46 = vld [vmem:[%s22451_s7 + $0x20] sm:$0xff] }
 0x6de   : > { %18450 = vmatpush3.bf16.msra.mxu1 %v18447_v39  ;;  %17866 = vmatprep.mubr.msk.f32.mxu1 %vm575_vm1, %v11536_v26 }
 0x6df   : > { %18452 = vmatprep.subr.bf16.mxu1 %v18451_v11 }
 0x6e1   : > { %17867 = vmatmul.mubr.msk.f32.gmra.mrb[162].mxu1 %vm575_vm1, %v11538_v12  ;;  %v18479_v12 = vpack.c.bf16 %v11900_v7, %v11899_v46  ;;  %v15335_v46 = vld [vmem:[%s22451_s7 + $0x150] sm:$0xff]  ;;  %v15336_v7 = vld [vmem:[%s22451_s7 + $0x158] sm:$0xff] }
 0x6e2   : > { %17869 = vmatprep.mubr.msk.f32.mxu1 %vm575_vm1, %v11540_v48  ;;  %18454 = vmatpush3.bf16.msra.mxu1 %v18451_v11 }
 0x6e3   : > { %18456 = vmatprep.subr.bf16.mxu1 %v18455_v28 }
 0x6e5   : > { %17870 = vmatmul.mubr.msk.f32.gmra.mrb[164].mxu1 %vm575_vm1, %v11542_v9 }
 0x6e6   : > { %17872 = vmatprep.mubr.msk.f32.mxu1 %vm575_vm1, %v11544_v50  ;;  %v11901_v50 = vld [vmem:[%s22451_s7 + $0x30] sm:$0xff] }
 0x6e9   : > { %17873 = vmatmul.mubr.msk.f32.gmra.mrb[166].mxu1 %vm575_vm1, %v11546_v27  ;;  %v11902_v27 = vld [vmem:[%s22451_s7 + $0x38] sm:$0xff] }
 0x6ea   : > { %17883 = vmatprep.mubr.msk.f32.mxu1 %vm575_vm1, %v11690_v53  ;;  %v18483_v53 = vpack.c.bf16 %v11902_v27, %v11901_v50  ;;  %v15339_v27 = vld [vmem:[%s22451_s7 + $0x170] sm:$0xff] }
 0x6ed   : > { %17884 = vmatmul.mubr.msk.f32.vlgmr.msra.gmra.mrb[160].mxu1 %vm575_vm1, %v11692_v55  ;;  %v11888_v55 = vld [vmem:[#allocation4 + $0x7] ss:$2 sm:$0xff] }
 0x6ee   : > { %17886 = vmatprep.mubr.msk.f32.mxu1 %vm575_vm1, %v11694_v37  ;;  %18458 = vmatpush3.bf16.msra.mxu1 %v18455_v28 }
 0x6ef   : > { %18460 = vmatprep.subr.bf16.mxu1 %v18459_v60 }
 0x6f1   : > { %17887 = vmatmul.mubr.msk.f32.gmra.mrb[162].mxu1 %vm575_vm1, %v11696_v44  ;;  %v15297_v44 = vld [vmem:[%s22451_s7 + $0x80] sm:$0xff] }
 0x6f2   : > { %17889 = vmatprep.mubr.msk.f32.mxu1 %vm575_vm1, %v11698_v6  ;;  %18462 = vmatpush3.bf16.msra.mxu1 %v18459_v60  ;;  %v15298_v6 = vld [vmem:[%s22451_s7 + $0x88] sm:$0xff]  ;;  %v15301_v60 = vld [vmem:[%s22451_s7 + $0xa0] sm:$0xff] }
 0x6f3   : > { %18464 = vmatprep.subr.bf16.mxu1 %v18463_v52 }
 0x6f5   : > { %17890 = vmatmul.mubr.msk.f32.gmra.mrb[164].mxu1 %vm575_vm1, %v11700_v61  ;;  %v18487_v61 = vpack.c.bf16 %v15298_v6, %v15297_v44  ;;  %v15345_v44 = vld [vmem:[%s22451_s7 + $0x180] sm:$0xff]  ;;  %v15346_v6 = vld [vmem:[%s22451_s7 + $0x188] sm:$0xff] }
 0x6f6   : > { %17892 = vmatprep.mubr.msk.f32.mxu1 %vm575_vm1, %v11702_v49  ;;  %18466 = vmatpush3.bf16.msra.mxu1 %v18463_v52  ;;  %v15299_v49 = vld [vmem:[%s22451_s7 + $0x90] sm:$0xff]  ;;  %v18495_v52 = vpack.c.bf16 %v15302_v29, %v15301_v60  ;;  %v15349_v60 = vld [vmem:[%s22451_s7 + $0x1a0] sm:$0xff]  ;;  %v15350_v29 = vld [vmem:[%s22451_s7 + $0x1a8] sm:$0xff] }
 0x6f7   : > { %18468 = vmatprep.subr.bf16.mxu1 %v18467_v54 }
 0x6f9   : > { %17893 = vmatmul.mubr.msk.f32.gmra.mrb[166].mxu1 %vm575_vm1, %v11704_v15  ;;  %v15300_v15 = vld [vmem:[%s22451_s7 + $0x98] sm:$0xff] }
 0x6fa   : > { %18470 = vmatpush3.bf16.msra.mxu1 %v18467_v54  ;;  %17911 = vmatprep.mubr.msk.f32.mxu1 %vm656_vm2, %v11904_v43  ;;  %v18491_v63 = vpack.c.bf16 %v15300_v15, %v15299_v49  ;;  %v15303_v54 = vld [vmem:[%s22451_s7 + $0xb0] sm:$0xff]  ;;  %v15304_v43 = vld [vmem:[%s22451_s7 + $0xb8] sm:$0xff] }
 0x6fb   : > { %18472 = vmatprep.subr.bf16.mxu1 %v18471_v51  ;;  %v18499_v16 = vpack.c.bf16 %v15304_v43, %v15303_v54  ;;  %v15347_v49 = vld [vmem:[%s22451_s7 + $0x190] sm:$0xff]  ;;  %v15348_v15 = vld [vmem:[%s22451_s7 + $0x198] sm:$0xff] }
 0x6fc   : > { %v15352_v54 = vld [vmem:[%s22451_s7 + $0x1b8] sm:$0xff] }
 0x7c0   : > { %v17885_v19 = vpop.f32.mrb[160].mxu1 }
 0x7c1   : > { %v11855_v20 = vadd.f32 %v17885_v19, %v15280_v2  ;;  %v11800_v34 = vpop.f32.mrb[161].mxu1  ;;  %v15311_v19 = vld [vmem:[%s22451_s7 + $0xd0] sm:$0xff] }
 0x7c2   : > { %v11854_v57 = vadd.f32 %v15280_v2, %v11800_v34 }
 0x7c3   : > { %v11863_v23 = vmul.f32 0.2, %v11855_v20 }
 0x7c4   : > { %v11862_v25 = vmul.f32 0.2, %v11854_v57  ;;  %v17888_v62 = vpop.f32.mrb[162].mxu1 }
 0x7c5   : > { %v11871_v36 = vmax.f32 %v11855_v20, %v11863_v23  ;;  %v11857_v0 = vadd.f32 %v17888_v62, %v15280_v2  ;;  %v11810_v58 = vpop.f32.mrb[163].mxu1  ;;  %v15312_v20 = vld [vmem:[%s22451_s7 + $0xd8] sm:$0xff]  ;;  %v15313_v23 = vld [vmem:[%s22451_s7 + $0xe0] sm:$0xff] }
 0x7c6   : > { %v11870_v30 = vmax.f32 %v11854_v57, %v11862_v25  ;;  %v11856_v22 = vadd.f32 %v15280_v2, %v11810_v58  ;;  %v18507_v34 = vpack.c.bf16 %v15312_v20, %v15311_v19  ;;  %v15314_v25 = vld [vmem:[%s22451_s7 + $0xe8] sm:$0xff]  ;;  %v15359_v19 = vld [vmem:[%s22451_s7 + $0x1d0] sm:$0xff]  ;;  %v15360_v20 = vld [vmem:[%s22451_s7 + $0x1d8] sm:$0xff] }
 0x7c7   : > { %11880 = vst.msk [vmem:[#allocation4 + $0x48] sm:$0xff] %vm656_vm2, %v11871_v36  ;;  %v11865_v56 = vmul.f32 0.2, %v11857_v0  ;;  %v18511_v36 = vpack.c.bf16 %v15314_v25, %v15313_v23  ;;  %v15361_v23 = vld [vmem:[%s22451_s7 + $0x1e0] sm:$0xff]  ;;  %v15362_v25 = vld [vmem:[%s22451_s7 + $0x1e8] sm:$0xff] }
 0x7c8   : > { %11879 = vst.msk [vmem:[#allocation4 + $0x28] sm:$0xff] %vm656_vm2, %v11870_v30  ;;  %v11864_v33 = vmul.f32 0.2, %v11856_v22  ;;  %v17891_v14 = vpop.f32.mrb[164].mxu1  ;;  %v15315_v30 = vld [vmem:[%s22451_s7 + $0xf0] sm:$0xff] }
 0x7c9   : > { %v11873_v1 = vmax.f32 %v11857_v0, %v11865_v56  ;;  %v11859_v35 = vadd.f32 %v17891_v14, %v15280_v2  ;;  %v11820_v47 = vpop.f32.mrb[165].mxu1  ;;  %v12233_v0 = vld [vmem:[#allocation4 + $0xa] ss:$2 sm:$0xff] }
 0x7ca   : > { %v11872_v59 = vmax.f32 %v11856_v22, %v11864_v33  ;;  %v11858_v38 = vadd.f32 %v15280_v2, %v11820_v47  ;;  %v15316_v22 = vld [vmem:[%s22451_s7 + $0xf8] sm:$0xff]  ;;  %v15321_v33 = vld [vmem:[%s22451_s7 + $0x100] sm:$0xff]  ;;  %v15322_v14 = vld [vmem:[%s22451_s7 + $0x108] sm:$0xff] }
 0x7cb   : > { %11882 = vst.msk [vmem:[#allocation4 + $0x88] sm:$0xff] %vm656_vm2, %v11873_v1  ;;  %v11867_v39 = vmul.f32 0.2, %v11859_v35  ;;  %v18515_v56 = vpack.c.bf16 %v15316_v22, %v15315_v30  ;;  %v18519_v1 = vpack.c.bf16 %v15322_v14, %v15321_v33  ;;  %v15324_v47 = vld [vmem:[%s22451_s7 + $0x118] sm:$0xff]  ;;  %v15369_v33 = vld [vmem:[%s22451_s7 + $0x200] sm:$0xff]  ;;  %v15370_v14 = vld [vmem:[%s22451_s7 + $0x208] sm:$0xff] }
 0x7cc   : > { %11881 = vst.msk [vmem:[#allocation4 + $0x68] sm:$0xff] %vm656_vm2, %v11872_v59  ;;  %v11866_v21 = vmul.f32 0.2, %v11858_v38  ;;  %v17894_v24 = vpop.f32.mrb[166].mxu1  ;;  %v15364_v30 = vld [vmem:[%s22451_s7 + $0x1f8] sm:$0xff] }
 0x7cd   : > { %v11875_v3 = vmax.f32 %v11859_v35, %v11867_v39  ;;  %v11861_v10 = vadd.f32 %v17894_v24, %v15280_v2  ;;  %v11830_v41 = vpop.f32.mrb[167].mxu1  ;;  %v15323_v35 = vld [vmem:[%s22451_s7 + $0x110] sm:$0xff] }
 0x7ce   : > { %v11874_v45 = vmax.f32 %v11858_v38, %v11866_v21  ;;  %v11860_v32 = vadd.f32 %v15280_v2, %v11830_v41  ;;  %v11906_v11 = vld [vmem:[#allocation4 + $0x48] ss:$2 sm:$0xff]  ;;  %v11890_v13 = vld [vmem:[#allocation4 + $0x47] ss:$2 sm:$0xff]  ;;  %v18523_v59 = vpack.c.bf16 %v15324_v47, %v15323_v35  ;;  %v18527_v21 = vpack.c.bf16 %v15326_v8, %v15325_v40  ;;  %v15372_v47 = vld [vmem:[%s22451_s7 + $0x218] sm:$0xff] }
 0x7cf   : > { %11884 = vst.msk [vmem:[#allocation4 + $0xc8] sm:$0xff] %vm656_vm2, %v11875_v3  ;;  %v11869_v42 = vmul.f32 0.2, %v11861_v10  ;;  %17912 = vmatmul.mubr.msk.f32.vlgmr.msra.gmra.mrb[168].mxu1 %vm656_vm2, %v11906_v11  ;;  %v12117_v57 = vld [vmem:[#allocation4 + $0x49] ss:$2 sm:$0xff]  ;;  %v15373_v40 = vld [vmem:[%s22451_s7 + $0x220] sm:$0xff] }
 0x7d0   : > { %11883 = vst.msk [vmem:[#allocation4 + $0xa8] sm:$0xff] %vm656_vm2, %v11874_v45  ;;  %v11868_v26 = vmul.f32 0.2, %v11860_v32  ;;  %18474 = vmatpush3.bf16.msra.mxu1 %v18471_v51  ;;  %v15310_v51 = vld [vmem:[%s22451_s7 + $0xc8] sm:$0xff]  ;;  %v15327_v3 = vld [vmem:[%s22451_s7 + $0x130] sm:$0xff]  ;;  %v15333_v45 = vld [vmem:[%s22451_s7 + $0x140] sm:$0xff] }
 0x7d1   : > { %v11877_v28 = vmax.f32 %v11861_v10, %v11869_v42  ;;  %18476 = vmatprep.subr.bf16.mxu1 %v18475_v5  ;;  %v18503_v2 = vpack.c.bf16 %v15310_v51, %v15309_v18  ;;  %v12235_v38 = vld [vmem:[#allocation4 + $0x4a] ss:$2 sm:$0xff]  ;;  %v12351_v41 = vld [vmem:[#allocation4 + $0x27] ss:$2 sm:$0xff]  ;;  %v18539_v42 = vpack.c.bf16 %v15336_v7, %v15335_v46 }
 0x7d2   : > { %v11876_v48 = vmax.f32 %v11860_v32, %v11868_v26  ;;  %v11908_v9 = vld [vmem:[#allocation4 + $0x88] ss:$2 sm:$0xff]  ;;  %v11892_v17 = vld [vmem:[#allocation4 + $0x87] ss:$2 sm:$0xff]  ;;  %v15328_v10 = vld [vmem:[%s22451_s7 + $0x138] sm:$0xff] }
 0x7d3   : > { %11886 = vst.msk [vmem:[#allocation4 + $0x108] sm:$0xff] %vm656_vm2, %v11877_v28  ;;  %17914 = vmatprep.mubr.msk.f32.mxu1 %vm656_vm2, %v11908_v9  ;;  %v12119_v62 = vld [vmem:[#allocation4 + $0x89] ss:$2 sm:$0xff]  ;;  %v12237_v39 = vld [vmem:[#allocation4 + $0x8a] ss:$2 sm:$0xff]  ;;  %v15337_v28 = vld [vmem:[%s22451_s7 + $0x160] sm:$0xff] }
 0x7d4   : > { %11885 = vst.msk [vmem:[#allocation4 + $0xe8] sm:$0xff] %vm656_vm2, %v11876_v48  ;;  %18478 = vmatpush3.bf16.msra.mxu1 %v18475_v5  ;;  %v18531_v5 = vpack.c.bf16 %v15328_v10, %v15327_v3  ;;  %v15334_v32 = vld [vmem:[%s22451_s7 + $0x148] sm:$0xff]  ;;  %v15357_v18 = vld [vmem:[%s22451_s7 + $0x1c0] sm:$0xff]  ;;  %v15371_v35 = vld [vmem:[%s22451_s7 + $0x210] sm:$0xff] }
 0x7d5   : > { %18480 = vmatprep.subr.bf16.mxu1 %v18479_v12  ;;  %v18535_v11 = vpack.c.bf16 %v15334_v32, %v15333_v45  ;;  %v12353_v26 = vld [vmem:[#allocation4 + $0x67] ss:$2 sm:$0xff]  ;;  %v12705_v22 = vld [vmem:[#allocation4 + $0x2a] ss:$2 sm:$0xff] }
 0x7d6   : > { %v11910_v37 = vld [vmem:[#allocation4 + $0xc8] ss:$2 sm:$0xff]  ;;  %v11894_v31 = vld [vmem:[#allocation4 + $0xc7] ss:$2 sm:$0xff]  ;;  %v15376_v10 = vld [vmem:[%s22451_s7 + $0x238] sm:$0xff] }
 0x7d7   : > { %17915 = vmatmul.mubr.msk.f32.gmra.mrb[170].mxu1 %vm656_vm2, %v11910_v37  ;;  %v12121_v58 = vld [vmem:[#allocation4 + $0xc9] ss:$2 sm:$0xff]  ;;  %v12239_v24 = vld [vmem:[#allocation4 + $0xca] ss:$2 sm:$0xff]  ;;  %v15381_v45 = vld [vmem:[%s22451_s7 + $0x240] sm:$0xff] }
 0x7d8   : > { %18482 = vmatpush3.bf16.msra.mxu1 %v18479_v12  ;;  %17933 = vmatprep.mubr.msk.f32.mxu1 %vm656_vm2, %v11888_v55  ;;  %v15338_v12 = vld [vmem:[%s22451_s7 + $0x168] sm:$0xff]  ;;  %v15375_v3 = vld [vmem:[%s22451_s7 + $0x230] sm:$0xff]  ;;  %v15384_v7 = vld [vmem:[%s22451_s7 + $0x258] sm:$0xff] }
 0x7d9   : > { %18484 = vmatprep.subr.bf16.mxu1 %v18483_v53  ;;  %v12355_v48 = vld [vmem:[#allocation4 + $0xa7] ss:$2 sm:$0xff]  ;;  %v18543_v9 = vpack.c.bf16 %v15338_v12, %v15337_v28  ;;  %v12469_v55 = vld [vmem:[#allocation4 + $0x28] ss:$2 sm:$0xff] }
 0x7da   : > { %v12587_v43 = vld [vmem:[#allocation4 + $0x29] ss:$2 sm:$0xff]  ;;  %v15385_v28 = vld [vmem:[%s22451_s7 + $0x260] sm:$0xff] }
 0x7db   : > { %v12357_v50 = vld [vmem:[#allocation4 + $0xe7] ss:$2 sm:$0xff] }
 0x7dc   : > { %18486 = vmatpush3.bf16.msra.mxu1 %v18483_v53  ;;  %v15340_v53 = vld [vmem:[%s22451_s7 + $0x178] sm:$0xff]  ;;  %v15358_v51 = vld [vmem:[%s22451_s7 + $0x1c8] sm:$0xff]  ;;  %v15383_v46 = vld [vmem:[%s22451_s7 + $0x250] sm:$0xff] }
 0x7dd   : > { %18488 = vmatprep.subr.bf16.mxu1 %v18487_v61  ;;  %v18547_v37 = vpack.c.bf16 %v15340_v53, %v15339_v27  ;;  %v15374_v8 = vld [vmem:[%s22451_s7 + $0x228] sm:$0xff]  ;;  %v15387_v27 = vld [vmem:[%s22451_s7 + $0x270] sm:$0xff]  ;;  %v15388_v53 = vld [vmem:[%s22451_s7 + $0x278] sm:$0xff] }
 0x7de   : > { %v15382_v32 = vld [vmem:[%s22451_s7 + $0x248] sm:$0xff] }
 0x7df   : > { %17934 = vmatmul.mubr.msk.f32.vlgmr.msra.gmra.mrb[168].mxu1 %vm656_vm2, %v11890_v13  ;;  %v12471_v13 = vld [vmem:[#allocation4 + $0x68] ss:$2 sm:$0xff] }
 0x7e0   : > { %17936 = vmatprep.mubr.msk.f32.mxu1 %vm656_vm2, %v11892_v17  ;;  %18490 = vmatpush3.bf16.msra.mxu1 %v18487_v61  ;;  %v18551_v61 = vpack.c.bf16 %v15346_v6, %v15345_v44  ;;  %v12473_v17 = vld [vmem:[#allocation4 + $0xa8] ss:$2 sm:$0xff]  ;;  %v15393_v44 = vld [vmem:[%s22451_s7 + $0x280] sm:$0xff] }
 0x7e1   : > { %18492 = vmatprep.subr.bf16.mxu1 %v18491_v63  ;;  %v15386_v12 = vld [vmem:[%s22451_s7 + $0x268] sm:$0xff] }
 0x7e2   : > { %v15394_v6 = vld [vmem:[%s22451_s7 + $0x288] sm:$0xff] }
 0x7e3   : > { %17937 = vmatmul.mubr.msk.f32.gmra.mrb[170].mxu1 %vm656_vm2, %v11894_v31  ;;  %v15351_v31 = vld [vmem:[%s22451_s7 + $0x1b0] sm:$0xff] }
 0x7e4   : > { %18494 = vmatpush3.bf16.msra.mxu1 %v18491_v63  ;;  %17955 = vmatprep.mubr.msk.f32.mxu1 %vm656_vm2, %v12115_v4  ;;  %v18555_v63 = vpack.c.bf16 %v15348_v15, %v15347_v49  ;;  %v12475_v4 = vld [vmem:[#allocation4 + $0xe8] ss:$2 sm:$0xff]  ;;  %v15396_v15 = vld [vmem:[%s22451_s7 + $0x298] sm:$0xff] }
 0x7e5   : > { %18496 = vmatprep.subr.bf16.mxu1 %v18495_v52  ;;  %v15395_v49 = vld [vmem:[%s22451_s7 + $0x290] sm:$0xff] }
 0x7e8   : > { %18498 = vmatpush3.bf16.msra.mxu1 %v18495_v52  ;;  %v18559_v52 = vpack.c.bf16 %v15350_v29, %v15349_v60  ;;  %v15397_v60 = vld [vmem:[%s22451_s7 + $0x2a0] sm:$0xff]  ;;  %v15398_v29 = vld [vmem:[%s22451_s7 + $0x2a8] sm:$0xff] }
 0x7e9   : > { %18500 = vmatprep.subr.bf16.mxu1 %v18499_v16 }
 0x7ec   : > { %18502 = vmatpush3.bf16.msra.mxu1 %v18499_v16  ;;  %v18563_v16 = vpack.c.bf16 %v15352_v54, %v15351_v31  ;;  %v15399_v31 = vld [vmem:[%s22451_s7 + $0x2b0] sm:$0xff]  ;;  %v15400_v54 = vld [vmem:[%s22451_s7 + $0x2b8] sm:$0xff] }
 0x7ed   : > { %18504 = vmatprep.subr.bf16.mxu1 %v18503_v2 }
 0x7ef   : > { %17956 = vmatmul.mubr.msk.f32.vlgmr.msra.gmra.mrb[168].mxu1 %vm656_vm2, %v12117_v57  ;;  %v12589_v57 = vld [vmem:[#allocation4 + $0x69] ss:$2 sm:$0xff] }
 0x7f0   : > { %17958 = vmatprep.mubr.msk.f32.mxu1 %vm656_vm2, %v12119_v62  ;;  %18506 = vmatpush3.bf16.msra.mxu1 %v18503_v2  ;;  %v18567_v2 = vpack.c.bf16 %v15358_v51, %v15357_v18  ;;  %v12591_v62 = vld [vmem:[#allocation4 + $0xa9] ss:$2 sm:$0xff]  ;;  %v15405_v18 = vld [vmem:[%s22451_s7 + $0x2c0] sm:$0xff] }
 0x7f1   : > { %18508 = vmatprep.subr.bf16.mxu1 %v18507_v34  ;;  %v15406_v51 = vld [vmem:[%s22451_s7 + $0x2c8] sm:$0xff] }
 0x7f3   : > { %17959 = vmatmul.mubr.msk.f32.gmra.mrb[170].mxu1 %vm656_vm2, %v12121_v58  ;;  %v15363_v58 = vld [vmem:[%s22451_s7 + $0x1f0] sm:$0xff] }
 0x7f4   : > { %18510 = vmatpush3.bf16.msra.mxu1 %v18507_v34  ;;  %17977 = vmatprep.mubr.msk.f32.mxu1 %vm656_vm2, %v12233_v0  ;;  %v18571_v34 = vpack.c.bf16 %v15360_v20, %v15359_v19  ;;  %v12593_v0 = vld [vmem:[#allocation4 + $0xe9] ss:$2 sm:$0xff]  ;;  %v15408_v20 = vld [vmem:[%s22451_s7 + $0x2d8] sm:$0xff] }
 0x7f5   : > { %18512 = vmatprep.subr.bf16.mxu1 %v18511_v36  ;;  %v15407_v19 = vld [vmem:[%s22451_s7 + $0x2d0] sm:$0xff] }
 0x7f8   : > { %18514 = vmatpush3.bf16.msra.mxu1 %v18511_v36  ;;  %v18575_v36 = vpack.c.bf16 %v15362_v25, %v15361_v23  ;;  %v15409_v23 = vld [vmem:[%s22451_s7 + $0x2e0] sm:$0xff]  ;;  %v15410_v25 = vld [vmem:[%s22451_s7 + $0x2e8] sm:$0xff] }
 0x7f9   : > { %18516 = vmatprep.subr.bf16.mxu1 %v18515_v56 }
 0x7fc   : > { %18518 = vmatpush3.bf16.msra.mxu1 %v18515_v56  ;;  %v18579_v56 = vpack.c.bf16 %v15364_v30, %v15363_v58  ;;  %v15411_v58 = vld [vmem:[%s22451_s7 + $0x2f0] sm:$0xff]  ;;  %v15412_v30 = vld [vmem:[%s22451_s7 + $0x2f8] sm:$0xff] }
 0x7fd   : > { %18520 = vmatprep.subr.bf16.mxu1 %v18519_v1 }
 0x7ff   : > { %17978 = vmatmul.mubr.msk.f32.vlgmr.msra.gmra.mrb[168].mxu1 %vm656_vm2, %v12235_v38  ;;  %v12707_v38 = vld [vmem:[#allocation4 + $0x6a] ss:$2 sm:$0xff] }
 0x800   : > { %17980 = vmatprep.mubr.msk.f32.mxu1 %vm656_vm2, %v12237_v39  ;;  %18522 = vmatpush3.bf16.msra.mxu1 %v18519_v1  ;;  %v18583_v1 = vpack.c.bf16 %v15370_v14, %v15369_v33  ;;  %v12709_v39 = vld [vmem:[#allocation4 + $0xaa] ss:$2 sm:$0xff]  ;;  %v15417_v33 = vld [vmem:[%s22451_s7 + $0x300] sm:$0xff] }
 0x801   : > { %18524 = vmatprep.subr.bf16.mxu1 %v18523_v59  ;;  %v15418_v14 = vld [vmem:[%s22451_s7 + $0x308] sm:$0xff] }
 0x803   : > { %17981 = vmatmul.mubr.msk.f32.gmra.mrb[170].mxu1 %vm656_vm2, %v12239_v24  ;;  %v12711_v24 = vld [vmem:[#allocation4 + $0xea] ss:$2 sm:$0xff] }
 0x804   : > { %18526 = vmatpush3.bf16.msra.mxu1 %v18523_v59  ;;  %17999 = vmatprep.mubr.msk.f32.mxu1 %vm656_vm2, %v12351_v41  ;;  %v18587_v59 = vpack.c.bf16 %v15372_v47, %v15371_v35  ;;  %v12824_v41 = vld [vmem:[#allocation4 + $0x47] ss:$2 sm:$0xff]  ;;  %v15420_v47 = vld [vmem:[%s22451_s7 + $0x318] sm:$0xff] }
 0x805   : > { %18528 = vmatprep.subr.bf16.mxu1 %v18527_v21  ;;  %v15419_v35 = vld [vmem:[%s22451_s7 + $0x310] sm:$0xff] }
 0x808   : > { %18530 = vmatpush3.bf16.msra.mxu1 %v18527_v21  ;;  %v18591_v21 = vpack.c.bf16 %v15374_v8, %v15373_v40  ;;  %v15421_v40 = vld [vmem:[%s22451_s7 + $0x320] sm:$0xff]  ;;  %v15422_v8 = vld [vmem:[%s22451_s7 + $0x328] sm:$0xff] }
 0x809   : > { %18532 = vmatprep.subr.bf16.mxu1 %v18531_v5 }
 0x80c   : > { %18534 = vmatpush3.bf16.msra.mxu1 %v18531_v5  ;;  %v18595_v5 = vpack.c.bf16 %v15376_v10, %v15375_v3  ;;  %v15423_v3 = vld [vmem:[%s22451_s7 + $0x330] sm:$0xff]  ;;  %v15424_v10 = vld [vmem:[%s22451_s7 + $0x338] sm:$0xff] }
 0x80d   : > { %18536 = vmatprep.subr.bf16.mxu1 %v18535_v11 }
 0x80f   : > { %18000 = vmatmul.mubr.msk.f32.vlgmr.msra.gmra.mrb[168].mxu1 %vm656_vm2, %v12353_v26  ;;  %v12826_v26 = vld [vmem:[#allocation4 + $0x87] ss:$2 sm:$0xff] }
 0x810   : > { %18002 = vmatprep.mubr.msk.f32.mxu1 %vm656_vm2, %v12355_v48  ;;  %18538 = vmatpush3.bf16.msra.mxu1 %v18535_v11  ;;  %v18599_v11 = vpack.c.bf16 %v15382_v32, %v15381_v45  ;;  %v12828_v48 = vld [vmem:[#allocation4 + $0xc7] ss:$2 sm:$0xff] }
 0x811   : > { %18540 = vmatprep.subr.bf16.mxu1 %v18539_v42  ;;  %v15429_v45 = vld [vmem:[%s22451_s7 + $0x340] sm:$0xff]  ;;  %v15430_v32 = vld [vmem:[%s22451_s7 + $0x348] sm:$0xff] }
 0x813   : > { %18003 = vmatmul.mubr.msk.f32.gmra.mrb[170].mxu1 %vm656_vm2, %v12357_v50  ;;  %v12830_v50 = vld [vmem:[#allocation4 + $0x107] ss:$2 sm:$0xff] }
 0x814   : > { %18542 = vmatpush3.bf16.msra.mxu1 %v18539_v42  ;;  %18021 = vmatprep.mubr.msk.f32.mxu1 %vm656_vm2, %v12469_v55  ;;  %v18603_v42 = vpack.c.bf16 %v15384_v7, %v15383_v46  ;;  %v12942_v55 = vld [vmem:[#allocation4 + $0x48] ss:$2 sm:$0xff]  ;;  %v15432_v7 = vld [vmem:[%s22451_s7 + $0x358] sm:$0xff] }
 0x815   : > { %18544 = vmatprep.subr.bf16.mxu1 %v18543_v9  ;;  %v15431_v46 = vld [vmem:[%s22451_s7 + $0x350] sm:$0xff] }
 0x818   : > { %18546 = vmatpush3.bf16.msra.mxu1 %v18543_v9  ;;  %v18607_v9 = vpack.c.bf16 %v15386_v12, %v15385_v28  ;;  %v15433_v28 = vld [vmem:[%s22451_s7 + $0x360] sm:$0xff]  ;;  %v15434_v12 = vld [vmem:[%s22451_s7 + $0x368] sm:$0xff] }
 0x819   : > { %18548 = vmatprep.subr.bf16.mxu1 %v18547_v37 }
 0x81c   : > { %18550 = vmatpush3.bf16.msra.mxu1 %v18547_v37  ;;  %v18611_v37 = vpack.c.bf16 %v15388_v53, %v15387_v27  ;;  %v15435_v27 = vld [vmem:[%s22451_s7 + $0x370] sm:$0xff]  ;;  %v15436_v53 = vld [vmem:[%s22451_s7 + $0x378] sm:$0xff] }
 0x81d   : > { %18552 = vmatprep.subr.bf16.mxu1 %v18551_v61 }
 0x81f   : > { %18022 = vmatmul.mubr.msk.f32.vlgmr.msra.gmra.mrb[168].mxu1 %vm656_vm2, %v12471_v13  ;;  %v12944_v13 = vld [vmem:[#allocation4 + $0x88] ss:$2 sm:$0xff] }
 0x820   : > { %18024 = vmatprep.mubr.msk.f32.mxu1 %vm656_vm2, %v12473_v17  ;;  %18554 = vmatpush3.bf16.msra.mxu1 %v18551_v61  ;;  %v18615_v61 = vpack.c.bf16 %v15394_v6, %v15393_v44  ;;  %v12946_v17 = vld [vmem:[#allocation4 + $0xc8] ss:$2 sm:$0xff]  ;;  %v15441_v44 = vld [vmem:[%s22451_s7 + $0x380] sm:$0xff] }
 0x821   : > { %18556 = vmatprep.subr.bf16.mxu1 %v18555_v63  ;;  %v15442_v6 = vld [vmem:[%s22451_s7 + $0x388] sm:$0xff] }
 0x823   : > { %18025 = vmatmul.mubr.msk.f32.gmra.mrb[170].mxu1 %vm656_vm2, %v12475_v4  ;;  %v12948_v4 = vld [vmem:[#allocation4 + $0x108] ss:$2 sm:$0xff] }
 0x824   : > { %18558 = vmatpush3.bf16.msra.mxu1 %v18555_v63  ;;  %18043 = vmatprep.mubr.msk.f32.mxu1 %vm656_vm2, %v12587_v43  ;;  %v18619_v63 = vpack.c.bf16 %v15396_v15, %v15395_v49  ;;  %v13060_v43 = vld [vmem:[#allocation4 + $0x49] ss:$2 sm:$0xff]  ;;  %v15444_v15 = vld [vmem:[%s22451_s7 + $0x398] sm:$0xff] }
 0x825   : > { %18560 = vmatprep.subr.bf16.mxu1 %v18559_v52  ;;  %v15443_v49 = vld [vmem:[%s22451_s7 + $0x390] sm:$0xff] }
 0x828   : > { %18562 = vmatpush3.bf16.msra.mxu1 %v18559_v52  ;;  %v18623_v52 = vpack.c.bf16 %v15398_v29, %v15397_v60  ;;  %v15445_v60 = vld [vmem:[%s22451_s7 + $0x3a0] sm:$0xff]  ;;  %v15446_v29 = vld [vmem:[%s22451_s7 + $0x3a8] sm:$0xff] }
 0x829   : > { %18564 = vmatprep.subr.bf16.mxu1 %v18563_v16 }
 0x82c   : > { %18566 = vmatpush3.bf16.msra.mxu1 %v18563_v16  ;;  %v18627_v16 = vpack.c.bf16 %v15400_v54, %v15399_v31  ;;  %v15447_v31 = vld [vmem:[%s22451_s7 + $0x3b0] sm:$0xff]  ;;  %v15448_v54 = vld [vmem:[%s22451_s7 + $0x3b8] sm:$0xff] }
 0x82d   : > { %18568 = vmatprep.subr.bf16.mxu1 %v18567_v2 }
 0x82f   : > { %18044 = vmatmul.mubr.msk.f32.vlgmr.msra.gmra.mrb[168].mxu1 %vm656_vm2, %v12589_v57  ;;  %v13062_v57 = vld [vmem:[#allocation4 + $0x89] ss:$2 sm:$0xff] }
 0x830   : > { %18046 = vmatprep.mubr.msk.f32.mxu1 %vm656_vm2, %v12591_v62  ;;  %18570 = vmatpush3.bf16.msra.mxu1 %v18567_v2  ;;  %v18631_v2 = vpack.c.bf16 %v15406_v51, %v15405_v18  ;;  %v13064_v62 = vld [vmem:[#allocation4 + $0xc9] ss:$2 sm:$0xff]  ;;  %v15453_v18 = vld [vmem:[%s22451_s7 + $0x3c0] sm:$0xff] }
 0x831   : > { %18572 = vmatprep.subr.bf16.mxu1 %v18571_v34  ;;  %v15454_v51 = vld [vmem:[%s22451_s7 + $0x3c8] sm:$0xff] }
 0x833   : > { %18047 = vmatmul.mubr.msk.f32.gmra.mrb[170].mxu1 %vm656_vm2, %v12593_v0  ;;  %v13066_v0 = vld [vmem:[#allocation4 + $0x109] ss:$2 sm:$0xff] }
 0x834   : > { %18574 = vmatpush3.bf16.msra.mxu1 %v18571_v34  ;;  %18065 = vmatprep.mubr.msk.f32.mxu1 %vm656_vm2, %v12705_v22  ;;  %v18635_v34 = vpack.c.bf16 %v15408_v20, %v15407_v19  ;;  %v13178_v22 = vld [vmem:[#allocation4 + $0x4a] ss:$2 sm:$0xff] }
 0x835   : > { %18576 = vmatprep.subr.bf16.mxu1 %v18575_v36  ;;  %v15455_v19 = vld [vmem:[%s22451_s7 + $0x3d0] sm:$0xff]  ;;  %v15456_v20 = vld [vmem:[%s22451_s7 + $0x3d8] sm:$0xff] }
 0x838   : > { %18578 = vmatpush3.bf16.msra.mxu1 %v18575_v36  ;;  %v18639_v36 = vpack.c.bf16 %v15410_v25, %v15409_v23  ;;  %v15457_v23 = vld [vmem:[%s22451_s7 + $0x3e0] sm:$0xff]  ;;  %v15458_v25 = vld [vmem:[%s22451_s7 + $0x3e8] sm:$0xff] }
 0x839   : > { %18580 = vmatprep.subr.bf16.mxu1 %v18579_v56 }
 0x83c   : > { %18582 = vmatpush3.bf16.msra.mxu1 %v18579_v56  ;;  %v18643_v56 = vpack.c.bf16 %v15412_v30, %v15411_v58  ;;  %v15459_v58 = vld [vmem:[%s22451_s7 + $0x3f0] sm:$0xff]  ;;  %v15460_v30 = vld [vmem:[%s22451_s7 + $0x3f8] sm:$0xff] }
 0x83d   : > { %18584 = vmatprep.subr.bf16.mxu1 %v18583_v1 }
 0x83f   : > { %18066 = vmatmul.mubr.msk.f32.vlgmr.msra.gmra.mrb[168].mxu1 %vm656_vm2, %v12707_v38  ;;  %v13180_v38 = vld [vmem:[#allocation4 + $0x8a] ss:$2 sm:$0xff] }
 0x840   : > { %18068 = vmatprep.mubr.msk.f32.mxu1 %vm656_vm2, %v12709_v39  ;;  %18586 = vmatpush3.bf16.msra.mxu1 %v18583_v1  ;;  %v18647_v1 = vpack.c.bf16 %v15418_v14, %v15417_v33  ;;  %v13182_v39 = vld [vmem:[#allocation4 + $0xca] ss:$2 sm:$0xff] }
 0x841   : > { %18588 = vmatprep.subr.bf16.mxu1 %v18587_v59  ;;  %v13653_v33 = vld [vmem:[#allocation4 + $0xaa] ss:$2 sm:$0xff] }
 0x842   : > { %v13655_v14 = vld [vmem:[#allocation4 + $0xea] ss:$2 sm:$0xff] }
 0x843   : > { %18069 = vmatmul.mubr.msk.f32.gmra.mrb[170].mxu1 %vm656_vm2, %v12711_v24  ;;  %v13184_v24 = vld [vmem:[#allocation4 + $0x10a] ss:$2 sm:$0xff] }
 0x844   : > { %18590 = vmatpush3.bf16.msra.mxu1 %v18587_v59  ;;  %18087 = vmatprep.mubr.msk.f32.mxu1 %vm656_vm2, %v12824_v41  ;;  %v18651_v59 = vpack.c.bf16 %v15420_v47, %v15419_v35  ;;  %v13297_v41 = vld [vmem:[#allocation4 + $0x67] ss:$2 sm:$0xff]  ;;  %v15465_v35 = vld [vmem:[%s22452_s8] ss:$0 sm:$0xff] }
 0x845   : > { %18592 = vmatprep.subr.bf16.mxu1 %v18591_v21 }
 0x848   : > { %18594 = vmatpush3.bf16.msra.mxu1 %v18591_v21  ;;  %v18655_v21 = vpack.c.bf16 %v15422_v8, %v15421_v40 }
 0x849   : > { %18596 = vmatprep.subr.bf16.mxu1 %v18595_v5 }
 0x84c   : > { %18598 = vmatpush3.bf16.msra.mxu1 %v18595_v5  ;;  %v18659_v5 = vpack.c.bf16 %v15424_v10, %v15423_v3  ;;  %v13787_v10 = vld [vmem:[%s22453_s9] sm:$0xff] }
 0x84d   : > { %18600 = vmatprep.subr.bf16.mxu1 %v18599_v11 }
 0x84f   : > { %18088 = vmatmul.mubr.msk.f32.vlgmr.msra.gmra.mrb[168].mxu1 %vm656_vm2, %v12826_v26  ;;  %v13299_v26 = vld [vmem:[#allocation4 + $0xa7] ss:$2 sm:$0xff] }
 0x850   : > { %18090 = vmatprep.mubr.msk.f32.mxu1 %vm656_vm2, %v12828_v48  ;;  %18602 = vmatpush3.bf16.msra.mxu1 %v18599_v11  ;;  %v18663_v11 = vpack.c.bf16 %v15430_v32, %v15429_v45  ;;  %v13301_v48 = vld [vmem:[#allocation4 + $0xe7] ss:$2 sm:$0xff] }
 0x851   : > { %18604 = vmatprep.subr.bf16.mxu1 %v18603_v42 }
 0x853   : > { %18091 = vmatmul.mubr.msk.f32.gmra.mrb[170].mxu1 %vm656_vm2, %v12830_v50  ;;  %v18671_v50 = vpack.c.bf16 %v15434_v12, %v15433_v28 }
 0x854   : > { %18606 = vmatpush3.bf16.msra.mxu1 %v18603_v42  ;;  %18109 = vmatprep.mubr.msk.f32.mxu1 %vm656_vm2, %v12942_v55  ;;  %v18667_v42 = vpack.c.bf16 %v15432_v7, %v15431_v46  ;;  %v13415_v55 = vld [vmem:[#allocation4 + $0x68] ss:$2 sm:$0xff] }
 0x855   : > { %18608 = vmatprep.subr.bf16.mxu1 %v18607_v9 }
 0x858   : > { %18610 = vmatpush3.bf16.msra.mxu1 %v18607_v9  ;;  %v13303_v9 = vld [vmem:[#allocation4 + $0x127] ss:$2 sm:$0xff] }
 0x859   : > { %18612 = vmatprep.subr.bf16.mxu1 %v18611_v37 }
 0x85c   : > { %18614 = vmatpush3.bf16.msra.mxu1 %v18611_v37  ;;  %v18675_v37 = vpack.c.bf16 %v15436_v53, %v15435_v27 }
 0x85d   : > { %18616 = vmatprep.subr.bf16.mxu1 %v18615_v61 }
 0x85f   : > { %18110 = vmatmul.mubr.msk.f32.vlgmr.msra.gmra.mrb[168].mxu1 %vm656_vm2, %v12944_v13  ;;  %v13417_v13 = vld [vmem:[#allocation4 + $0xa8] ss:$2 sm:$0xff] }
 0x860   : > { %18112 = vmatprep.mubr.msk.f32.mxu1 %vm656_vm2, %v12946_v17  ;;  %18618 = vmatpush3.bf16.msra.mxu1 %v18615_v61  ;;  %v18679_v61 = vpack.c.bf16 %v15442_v6, %v15441_v44  ;;  %v13419_v17 = vld [vmem:[#allocation4 + $0xe8] ss:$2 sm:$0xff] }
 0x861   : > { %18620 = vmatprep.subr.bf16.mxu1 %v18619_v63 }
 0x863   : > { %18113 = vmatmul.mubr.msk.f32.gmra.mrb[170].mxu1 %vm656_vm2, %v12948_v4  ;;  %v18687_v4 = vpack.c.bf16 %v15446_v29, %v15445_v60 }
 0x864   : > { %18622 = vmatpush3.bf16.msra.mxu1 %v18619_v63  ;;  %18131 = vmatprep.mubr.msk.f32.mxu1 %vm656_vm2, %v13060_v43  ;;  %v18683_v63 = vpack.c.bf16 %v15444_v15, %v15443_v49  ;;  %v13533_v43 = vld [vmem:[#allocation4 + $0x69] ss:$2 sm:$0xff] }
 0x865   : > { %18624 = vmatprep.subr.bf16.mxu1 %v18623_v52 }
 0x868   : > { %18626 = vmatpush3.bf16.msra.mxu1 %v18623_v52  ;;  %v13421_v52 = vld [vmem:[#allocation4 + $0x128] ss:$2 sm:$0xff] }
 0x869   : > { %18628 = vmatprep.subr.bf16.mxu1 %v18627_v16 }
 0x86c   : > { %18630 = vmatpush3.bf16.msra.mxu1 %v18627_v16  ;;  %v18691_v16 = vpack.c.bf16 %v15448_v54, %v15447_v31 }
 0x86d   : > { %18632 = vmatprep.subr.bf16.mxu1 %v18631_v2 }
 0x86f   : > { %18132 = vmatmul.mubr.msk.f32.vlgmr.msra.gmra.mrb[168].mxu1 %vm656_vm2, %v13062_v57  ;;  %v13535_v57 = vld [vmem:[#allocation4 + $0xa9] ss:$2 sm:$0xff] }
 0x870   : > { %18134 = vmatprep.mubr.msk.f32.mxu1 %vm656_vm2, %v13064_v62  ;;  %18634 = vmatpush3.bf16.msra.mxu1 %v18631_v2  ;;  %v18695_v2 = vpack.c.bf16 %v15454_v51, %v15453_v18  ;;  %v13537_v62 = vld [vmem:[#allocation4 + $0xe9] ss:$2 sm:$0xff] }
 0x871   : > { %18636 = vmatprep.subr.bf16.mxu1 %v18635_v34 }
 0x873   : > { %18135 = vmatmul.mubr.msk.f32.gmra.mrb[170].mxu1 %vm656_vm2, %v13066_v0  ;;  %v18703_v0 = vpack.c.bf16 %v15458_v25, %v15457_v23 }
 0x874   : > { %18638 = vmatpush3.bf16.msra.mxu1 %v18635_v34  ;;  %18153 = vmatprep.mubr.msk.f32.mxu1 %vm656_vm2, %v13178_v22  ;;  %v18699_v34 = vpack.c.bf16 %v15456_v20, %v15455_v19  ;;  %v13651_v22 = vld [vmem:[#allocation4 + $0x6a] ss:$2 sm:$0xff] }
 0x875   : > { %18640 = vmatprep.subr.bf16.mxu1 %v18639_v36 }
 0x878   : > { %18642 = vmatpush3.bf16.msra.mxu1 %v18639_v36  ;;  %v13539_v36 = vld [vmem:[#allocation4 + $0x129] ss:$2 sm:$0xff] }
 0x879   : > { %18644 = vmatprep.subr.bf16.mxu1 %v18643_v56 }
 0x87c   : > { %18646 = vmatpush3.bf16.msra.mxu1 %v18643_v56  ;;  %v18707_v56 = vpack.c.bf16 %v15460_v30, %v15459_v58 }
 0x87d   : > { %18648 = vmatprep.subr.bf16.mxu1 %v18647_v1 }
 0x87f   : > { %18154 = vmatmul.mubr.msk.f32.vlgmr.msra.gmra.mrb[168].mxu1 %vm656_vm2, %v13180_v38 }
 0x880   : > { %18156 = vmatprep.mubr.msk.f32.mxu1 %vm656_vm2, %v13182_v39  ;;  %18650 = vmatpush3.bf16.msra.mxu1 %v18647_v1  ;;  %v13657_v1 = vld [vmem:[#allocation4 + $0x12a] ss:$2 sm:$0xff] }
 0x881   : > { %18652 = vmatprep.subr.bf16.mxu1 %v18651_v59  ;;  %v13788_v39 = vld [vmem:[%s22453_s9 + $0x8] sm:$0xff] }
 0x883   : > { %18157 = vmatmul.mubr.msk.f32.gmra.mrb[170].mxu1 %vm656_vm2, %v13184_v24 }
 0x884   : > { %18654 = vmatpush3.bf16.msra.mxu1 %v18651_v59  ;;  %18175 = vmatprep.mubr.msk.f32.mxu1 %vm656_vm2, %v13297_v41 }
 0x885   : > { %18656 = vmatprep.subr.bf16.mxu1 %v18655_v21 }
 0x888   : > { %18658 = vmatpush3.bf16.msra.mxu1 %v18655_v21 }
 0x889   : > { %18660 = vmatprep.subr.bf16.mxu1 %v18659_v5 }
 0x88c   : > { %18662 = vmatpush3.bf16.msra.mxu1 %v18659_v5 }
 0x88d   : > { %18664 = vmatprep.subr.bf16.mxu1 %v18663_v11 }
 0x88f   : > { %18176 = vmatmul.mubr.msk.f32.vlgmr.msra.gmra.mrb[168].mxu1 %vm656_vm2, %v13299_v26  ;;  %v13789_v26 = vld [vmem:[%s22453_s9 + $0x10] sm:$0xff] }
 0x890   : > { %18178 = vmatprep.mubr.msk.f32.mxu1 %vm656_vm2, %v13301_v48  ;;  %18666 = vmatpush3.bf16.msra.mxu1 %v18663_v11 }
 0x891   : > { %18668 = vmatprep.subr.bf16.mxu1 %v18667_v42 }
 0x893   : > { %18179 = vmatmul.mubr.msk.f32.gmra.mrb[170].mxu1 %vm656_vm2, %v13303_v9  ;;  %v13790_v9 = vld [vmem:[%s22453_s9 + $0x18] sm:$0xff] }
 0x894   : > { %18670 = vmatpush3.bf16.msra.mxu1 %v18667_v42  ;;  %18197 = vmatprep.mubr.msk.f32.mxu1 %vm656_vm2, %v13415_v55 }
 0x895   : > { %18672 = vmatprep.subr.bf16.mxu1 %v18671_v50 }
 0x898   : > { %18674 = vmatpush3.bf16.msra.mxu1 %v18671_v50 }
 0x899   : > { %18676 = vmatprep.subr.bf16.mxu1 %v18675_v37 }
 0x89c   : > { %18678 = vmatpush3.bf16.msra.mxu1 %v18675_v37 }
 0x89d   : > { %18680 = vmatprep.subr.bf16.mxu1 %v18679_v61 }
 0x89f   : > { %18198 = vmatmul.mubr.msk.f32.vlgmr.msra.gmra.mrb[168].mxu1 %vm656_vm2, %v13417_v13 }
 0x8a0   : > { %18200 = vmatprep.mubr.msk.f32.mxu1 %vm656_vm2, %v13419_v17  ;;  %18682 = vmatpush3.bf16.msra.mxu1 %v18679_v61 }
 0x8a1   : > { %18684 = vmatprep.subr.bf16.mxu1 %v18683_v63 }
 0x8a3   : > { %18201 = vmatmul.mubr.msk.f32.gmra.mrb[170].mxu1 %vm656_vm2, %v13421_v52 }
 0x8a4   : > { %18686 = vmatpush3.bf16.msra.mxu1 %v18683_v63  ;;  %18219 = vmatprep.mubr.msk.f32.mxu1 %vm656_vm2, %v13533_v43 }
 0x8a5   : > { %18688 = vmatprep.subr.bf16.mxu1 %v18687_v4 }
 0x8a8   : > { %18690 = vmatpush3.bf16.msra.mxu1 %v18687_v4 }
 0x8a9   : > { %18692 = vmatprep.subr.bf16.mxu1 %v18691_v16 }
 0x8ac   : > { %18694 = vmatpush3.bf16.msra.mxu1 %v18691_v16 }
 0x8ad   : > { %18696 = vmatprep.subr.bf16.mxu1 %v18695_v2 }
 0x8af   : > { %18220 = vmatmul.mubr.msk.f32.vlgmr.msra.gmra.mrb[168].mxu1 %vm656_vm2, %v13535_v57 }
 0x8b0   : > { %18222 = vmatprep.mubr.msk.f32.mxu1 %vm656_vm2, %v13537_v62  ;;  %18698 = vmatpush3.bf16.msra.mxu1 %v18695_v2 }
 0x8b1   : > { %18700 = vmatprep.subr.bf16.mxu1 %v18699_v34 }
 0x8b3   : > { %18223 = vmatmul.mubr.msk.f32.gmra.mrb[170].mxu1 %vm656_vm2, %v13539_v36 }
 0x8b4   : > { %18702 = vmatpush3.bf16.msra.mxu1 %v18699_v34  ;;  %18241 = vmatprep.mubr.msk.f32.mxu1 %vm656_vm2, %v13651_v22 }
 0x8b5   : > { %18704 = vmatprep.subr.bf16.mxu1 %v18703_v0 }
 0x8b8   : > { %18706 = vmatpush3.bf16.msra.mxu1 %v18703_v0 }
 0x8b9   : > { %18708 = vmatprep.subr.bf16.mxu1 %v18707_v56 }
 0x8bc   : > { %18710 = vmatpush3.bf16.msra.mxu1 %v18707_v56 }
 0x8bf   : > { %18242 = vmatmul.mubr.msk.f32.vlgmr.msra.gmra.mrb[168].mxu1 %vm656_vm2, %v13653_v33 }
 0x8c0   : > { %18244 = vmatprep.mubr.msk.f32.mxu1 %vm656_vm2, %v13655_v14 }
 0x8c3   : > { %18245 = vmatmul.mubr.msk.f32.gmra.mrb[170].mxu1 %vm656_vm2, %v13657_v1 }
 0x992   : > { %v18243_v47 = vpop.f32.mrb[168].mxu1 }
 0x993   : > { %v13776_v59 = vadd.f32 %v18243_v47, %v15465_v35  ;;  %v13745_v38 = vpop.f32.mrb[169].mxu1 }
 0x994   : > { %v13775_v40 = vadd.f32 %v15465_v35, %v13745_v38 }
 0x995   : > { %v13780_v8 = vmul.f32 0.2, %v13776_v59 }
 0x996   : > { %v13779_v21 = vmul.f32 0.2, %v13775_v40  ;;  %v18246_v24 = vpop.f32.mrb[170].mxu1 }
 0x997   : > { %v13784_v3 = vmax.f32 %v13776_v59, %v13780_v8  ;;  %v13778_v41 = vadd.f32 %v18246_v24, %v15465_v35  ;;  %v13755_v5 = vpop.f32.mrb[171].mxu1 }
 0x998   : > { %v13783_v45 = vmax.f32 %v13775_v40, %v13779_v21  ;;  %v13777_v32 = vadd.f32 %v15465_v35, %v13755_v5 }
 0x999   : > { %v13792_v11 = vmul.f32 %v13788_v39, %v13784_v3  ;;  %v13782_v46 = vmul.f32 0.2, %v13778_v41 }
 0x99a   : > { %v13791_v7 = vmul.f32 %v13787_v10, %v13783_v45  ;;  %v13781_v42 = vmul.f32 0.2, %v13777_v32 }
 0x99b   : > { %v13786_v28 = vmax.f32 %v13778_v41, %v13782_v46 }
 0x99c   : > { %v13785_v12 = vmax.f32 %v13777_v32, %v13781_v42  ;;  %v13795_v48 = vadd.f32 %v13792_v11, %v13791_v7 }
 0x99d   : > { %v13794_v27 = vmul.f32 %v13790_v9, %v13786_v28 }
 0x99e   : > { %v13793_v50 = vmul.f32 %v13789_v26, %v13785_v12 }
 0x9a0   : > { %v13796_v53 = vadd.f32 %v13795_v48, %v13793_v50 }
 0x9a2   : > { %v13797_v55 = vadd.f32 %v13796_v53, %v13794_v27 }
 0x9a4   : > { %13798 = vadd.xlane.f32.xlu0 %v13797_v55 }
 0xa31   : > { %v13799_v37 = vpop.xlane.xlu0 %13798 }
 0xa32   : > { %v13800_v44 = vrot.slane %v13799_v37, 4 }
 0xa34   : > { %v13801_v6 = vadd.f32 %v13800_v44, %v13799_v37 }
 0xa36   : > { %v13802_v61 = vrot.slane %v13801_v6, 2 }
 0xa38   : > { %v13803_v49 = vadd.f32 %v13802_v61, %v13801_v6 }
 0xa3a   : > { %v13804_v15 = vrot.slane %v13803_v49, 1 }
 0xa3c   : > { %v13805_v63 = vadd.f32 %v13804_v15, %v13803_v49 }
 0xa3e   : > { %19371 = vpush %v13805_v63 }
 0xa6f   : > { %s19372_s20 = spop %19371 }
 0xa70   : > { %v13807_v13 = vstv %s19372_s20 }
 0xa71   : > { %13808 = vst [vmem:[%s352_s11] sm:$0xff] %v13807_v13 }
 0xa72   : > { %19427 = shalt.err (!%p19424_p3)
}
 0xa73   : > { %s19428_s29 = scalar_lea.hbm %s22404_s26, 128  ;;  %s19432_s20 = scalar_lea.hbm %s22454_s10, 256 }
 0xa74   : > { %p19429_p4 = scmp.ne.s32.totalorder %s22404_s26, %s19428_s29  ;;  %p19433_p9 = scmp.lt.u32.totalorder %s22404_s26, %s22454_s10 }
 0xa75   : > { %p19434_p10 = scmp.lt.u32.totalorder %s19432_s20, %s19428_s29  ;;  %p19436_p12 = scmp.lt.u32.totalorder %s19428_s29, %s22404_s26 }
 0xa76   : > { %p19430_p7 = pnand %p19429_p4, %p19573_p5 }
 0xa77   : > { %p19435_p11 = por %p19434_p10, %p19433_p9 }
 0xa78   : > { %p19431_p8 = pneg %p19430_p7 }
 0xa79   : > { %p19437_p13 = por %p19436_p12, %p19435_p11 }
 0xa7b   : > { %p19438_p0 = pnand %p19437_p13, %p19431_p8 }
 0xa7d   : > { %19441 = shalt.err (!%p19438_p0)
}
 0xa7e   : > { %19373 = dma.vmem_to_hbm [thread:$0]  (%p19573_p5), %s22399_s12, 128, %s22404_s26, %s13810_s27  }
 0xa7f PF: > { %p19379_p1 = scmp.ge.s32.totalorder %s19476_s16, 2  ;;  %s13835_s0 = sand.u32 1, %s19464_s13  }
 0xa80   : > { %s13836_s28 = scalar_lea.sflag [#allocation6], %s13835_s0 }
 0xa81   : > { %p19376_p2 = pnand %p19379_p1, %p19577_p6 }
 0xa83   : > { %19459 = dma.done.wait (!%p19376_p2), %s13836_s28, 128  }
 0xa84   : > { %19461 = vsyncadd (!%p19376_p2), %s13836_s28, 4294967168  ;;  %p20_p3 = scmp.ge.s32.totalorder %s19560_s19, 4   ;;  %s22459_s13 = smov %s19468_s14 }
 0xa85   : > { %s22460_s14 = smov %s19472_s15  ;;  %s22461_s15 = smov %s19571_s22 }
 0xa86   : > { %s22462_s16 = smov %s19560_s19  ;;  %22 = sbr.rel (!%p20_p3) target bundleno = 5 (0x5), region = 856 }
 0xa8d   :  { %13841 = vsyncpa [#allocation6], 1 }
 0xa8e   :  { %13843 = vsyncpa [#allocation6 + $0x1], 1 }

</bundles_post_ra>
